<compile_context>
chip_gen: v7x
topology: tpu7x:2x2x1
jax: 0.10.0
libtpu: 0.0.40
codegen_flags: <defaults>
</compile_context>

<pallas_src>
import jax
import jax.numpy as jnp
from jax.experimental import pallas as pl
from jax.experimental.pallas import tpu as pltpu


def _tap_groups(c):
    """Group the 9 conv taps so each im2col store is 128 lanes wide when the
    channel count allows it. Returns (group_size, padded_tap_count)."""
    if c < 128 and 128 % c == 0:
        g = 128 // c
    else:
        g = 1
    ntap_pad = ((9 + g - 1) // g) * g
    return g, ntap_pad


def basic_block_kernel(xb_ref, xr_ref, w1_ref, s1_ref, b1_ref,
                       w2_ref, s2_ref, b2_ref, o_ref,
                       p1_ref, mid_ref, p2_ref):
    # xb_ref : (B, H+2, W+2, Cin)   bf16 zero-padded input (im2col source)
    # xr_ref : (B, H, W, Cin)       f32 unpadded input (residual, aligned)
    # w1_ref : (K1, Cmid)           bf16 im2col weights of conv1 (K padded)
    # s1/b1  : (1, Cmid)            f32 folded BN1 scale / bias
    # w2_ref : (K2, Cout)           bf16 im2col weights of conv2 (K padded)
    # s2/b2  : (1, Cout)            f32 folded BN2 scale / bias
    # o_ref  : (B, H, W, Cout)      f32 output block
    # p1_ref : (B*H*W, K1)          bf16 scratch: im2col of x
    # mid_ref: (B, H+2, W+2, Cmid)  bf16 scratch: padded relu(BN1(conv1))
    # p2_ref : (B*H*W, K2)          bf16 scratch: im2col of mid
    B, Hp, Wp, Cin = xb_ref.shape
    H, W = Hp - 2, Wp - 2
    M = B * H * W
    Cmid = w1_ref.shape[1]
    Cout = w2_ref.shape[1]
    cdt = p1_ref.dtype
    mdt = mid_ref.dtype

    taps = [(dy, dx) for dy in range(3) for dx in range(3)]

    def build_im2col(src_ref, dst_ref, c):
        """im2col of src into dst; taps grouped so stores are 128-lane-wide
        and tile-aligned (tail group padded with zero columns)."""
        ntap_pad = dst_ref.shape[1] // c
        g = _tap_groups(c)[0]
        assert ntap_pad % g == 0
        for grp in range(ntap_pad // g):
            pieces = []
            for j in range(g):
                t = grp * g + j
                if t < 9:
                    dy, dx = taps[t]
                    patch = src_ref[:, dy:dy + H, dx:dx + W, :]
                    pieces.append(patch.reshape(M, c).astype(cdt))
                else:
                    pieces.append(jnp.zeros((M, c), cdt))
            blk = pieces[0] if len(pieces) == 1 else jnp.concatenate(pieces, axis=-1)
            dst_ref[:, grp * g * c:(grp + 1) * g * c] = blk

    # ---- conv1 im2col (source already bf16 -> no per-tap casts) ----
    build_im2col(xb_ref, p1_ref, Cin)

    # Clear only the 1-pixel border of the padded bf16 mid scratch; interior
    # is fully overwritten below.  Done every iteration so the kernel stays
    # correct when the batch axis is sharded across TensorCores.
    mid_ref[:, 0:1, :, :] = jnp.zeros((B, 1, Wp, Cmid), mdt)
    mid_ref[:, H + 1:H + 2, :, :] = jnp.zeros((B, 1, Wp, Cmid), mdt)
    mid_ref[:, :, 0:1, :] = jnp.zeros((B, Hp, 1, Cmid), mdt)
    mid_ref[:, :, W + 1:W + 2, :] = jnp.zeros((B, Hp, 1, Cmid), mdt)

    # ---- conv1: one (M, K1) x (K1, Cmid) matmul + BN1 + ReLU, bf16 cast once ----
    a1 = jnp.dot(p1_ref[...], w1_ref[...], preferred_element_type=jnp.float32)
    mid = jnp.maximum(a1 * s1_ref[...] + b1_ref[...], 0.0)
    mid_ref[:, 1:H + 1, 1:W + 1, :] = mid.reshape(B, H, W, Cmid).astype(mdt)

    # ---- conv2 im2col (bf16 source -> no casts) ----
    build_im2col(mid_ref, p2_ref, Cmid)

    # ---- conv2 matmul + BN2 + residual (f32, aligned unpadded x) + ReLU ----
    a2 = jnp.dot(p2_ref[...], w2_ref[...], preferred_element_type=jnp.float32)
    y = a2 * s2_ref[...] + b2_ref[...]
    y = jnp.maximum(y + xr_ref[...].reshape(M, Cout), 0.0)
    o_ref[...] = y.reshape(B, H, W, Cout).astype(o_ref.dtype)


def basic_block_pallas(x_nhwc, w1_hwio, scale1, bias1, w2_hwio, scale2, bias2,
                       *, batch_tile=None, compute_dtype=jnp.bfloat16,
                       vmem_budget_bytes=40 * 1024 * 1024):
    """Fused BasicBlock forward. NHWC activations, HWIO weights, folded BN."""
    N, H, W, Cin = x_nhwc.shape
    kh, kw, _, Cmid = w1_hwio.shape
    Cout = w2_hwio.shape[3]
    assert (kh, kw) == (3, 3)
    assert w2_hwio.shape[2] == Cmid
    assert Cin == Cout, "downsample is None -> in_channels must equal out_channels"
    assert W % 8 == 0, "demo kernel assumes W is a multiple of 8"

    Hp, Wp = H + 2, W + 2
    HW = H * W
    _, nt1 = _tap_groups(Cin)
    _, nt2 = _tap_groups(Cmid)
    K1, K2 = nt1 * Cin, nt2 * Cmid
    itemsize = jnp.dtype(compute_dtype).itemsize

    def vmem_est(b):
        m = b * HW
        scr = m * (K1 + K2) * itemsize + b * Hp * Wp * Cmid * itemsize
        io = 2 * (b * Hp * Wp * Cin * itemsize          # bf16 padded input
                  + b * HW * Cin * 4                    # f32 residual input
                  + b * HW * Cout * 4)                  # f32 output
        wts = 2 * ((K1 * Cmid + K2 * Cout) * itemsize + 4 * (Cmid + Cout) * 4)
        return scr + io + wts

    if batch_tile is None:
        # Largest divisor of N that fits the VMEM budget AND keeps >=2 grid
        # steps (DMA pipelining / v7x megacore).  Worst case degrades to 1.
        batch_tile = 1
        for cand in range(1, min(N, 8) + 1):
            if N % cand:
                continue
            if N >= 2 and N // cand < 2:
                continue
            if vmem_est(cand) <= vmem_budget_bytes:
                batch_tile = cand
    assert N % batch_tile == 0
    B = batch_tile

    # Wrapper glue (one-time / XLA-fused): SAME padding + single bf16 cast of
    # the padded input, im2col weight reshape with zero-row K padding, f32
    # unpadded input kept for the exact residual add.
    x32 = x_nhwc.astype(jnp.float32)
    xb = jnp.pad(x32, ((0, 0), (1, 1), (1, 1), (0, 0))).astype(compute_dtype)
    xr = x32

    def prep_w(w, cin_, cout_, k_pad):
        w_r = w.reshape(9 * cin_, cout_)
        w_r = jnp.pad(w_r, ((0, k_pad - 9 * cin_), (0, 0)))
        return w_r.astype(compute_dtype)

    w1_r = prep_w(w1_hwio, Cin, Cmid, K1)
    w2_r = prep_w(w2_hwio, Cmid, Cout, K2)
    s1 = scale1.reshape(1, Cmid).astype(jnp.float32)
    b1 = bias1.reshape(1, Cmid).astype(jnp.float32)
    s2 = scale2.reshape(1, Cout).astype(jnp.float32)
    b2 = bias2.reshape(1, Cout).astype(jnp.float32)

    flops = 2 * N * HW * 9 * (Cin * Cmid + Cmid * Cout)
    bytes_accessed = (xb.size * itemsize + xr.size * 4
                      + (w1_r.size + w2_r.size) * itemsize
                      + (s1.size + b1.size + s2.size + b2.size) * 4
                      + N * HW * Cout * 4)

    grid_spec = pltpu.PrefetchScalarGridSpec(
        num_scalar_prefetch=0,
        grid=(N // B,),
        in_specs=[
            pl.BlockSpec((B, Hp, Wp, Cin), lambda n: (n, 0, 0, 0)),   # bf16 padded x
            pl.BlockSpec((B, H, W, Cin), lambda n: (n, 0, 0, 0)),     # f32 residual x
            pl.BlockSpec((K1, Cmid), lambda n: (0, 0)),
            pl.BlockSpec((1, Cmid), lambda n: (0, 0)),
            pl.BlockSpec((1, Cmid), lambda n: (0, 0)),
            pl.BlockSpec((K2, Cout), lambda n: (0, 0)),
            pl.BlockSpec((1, Cout), lambda n: (0, 0)),
            pl.BlockSpec((1, Cout), lambda n: (0, 0)),
        ],
        out_specs=pl.BlockSpec((B, H, W, Cout), lambda n: (n, 0, 0, 0)),
        scratch_shapes=[
            pltpu.VMEM((B * HW, K1), compute_dtype),   # im2col of x
            pltpu.VMEM((B, Hp, Wp, Cmid), compute_dtype),  # padded mid (bf16)
            pltpu.VMEM((B * HW, K2), compute_dtype),   # im2col of mid
        ],
    )

    vmem_limit = int(min(100 * 1024 * 1024,
                         max(32 * 1024 * 1024, 2 * vmem_est(B))))

    return pl.pallas_call(
        basic_block_kernel,
        out_shape=jax.ShapeDtypeStruct((N, H, W, Cout), jnp.float32),
        grid_spec=grid_spec,
        compiler_params=pltpu.CompilerParams(
            dimension_semantics=("parallel",),     # batch tiles are independent
            vmem_limit_bytes=vmem_limit),
        cost_estimate=pl.CostEstimate(flops=flops, transcendentals=0,
                                      bytes_accessed=bytes_accessed),
    )(xb, xr, w1_r, s1, b1, w2_r, s2, b2)


def basic_block_nchw(x_nchw, w1_oihw, gamma1, beta1, mean1, var1,
                     w2_oihw, gamma2, beta2, mean2, var2,
                     *, eps=1e-5, compute_dtype=jnp.bfloat16):
    """Drop-in equivalent of BasicBlock.forward (eval-mode BN): NCHW in/out."""
    scale1 = gamma1 / jnp.sqrt(var1 + eps)
    bias1 = beta1 - mean1 * scale1
    scale2 = gamma2 / jnp.sqrt(var2 + eps)
    bias2 = beta2 - mean2 * scale2
    w1_hwio = jnp.transpose(w1_oihw, (2, 3, 1, 0))
    w2_hwio = jnp.transpose(w2_oihw, (2, 3, 1, 0))
    x_nhwc = jnp.transpose(x_nchw, (0, 2, 3, 1))
    y = basic_block_pallas(x_nhwc, w1_hwio, scale1, bias1, w2_hwio, scale2,
                           bias2, compute_dtype=compute_dtype)
    return jnp.transpose(y, (0, 3, 1, 2))


def basic_block_reference_nchw(x, w1, g1, b1, m1, v1, w2, g2, b2, m2, v2, eps):
    """Pure-JAX f32 reference mirroring the PyTorch module (eval mode)."""
    def conv(x, w):
        return jax.lax.conv_general_dilated(
            x, w, window_strides=(1, 1), padding="SAME",
            dimension_numbers=("NCHW", "OIHW", "NCHW"),
            precision=jax.lax.Precision.HIGHEST)

    def bn(x, g, b, m, v):
        g, b, m, v = (t[None, :, None, None] for t in (g, b, m, v))
        return (x - m) / jnp.sqrt(v + eps) * g + b

    y = jnp.maximum(bn(conv(x, w1), g1, b1, m1, v1), 0.0)
    y = bn(conv(y, w2), g2, b2, m2, v2)
    return jnp.maximum(y + x, 0.0)


if __name__ == "__main__":
    # Small shapes: batch=2, in_channels=out_channels=32, spatial 16x16.
    N, C, Hs, Ws = 2, 32, 16, 16
    eps = 1e-5

    key = jax.random.PRNGKey(0)
    (kx, kw1, kw2, kg1, kb1, km1, kv1, kg2, kb2, km2, kv2) = jax.random.split(key, 11)

    # PyTorch-layout tensors: NCHW input, OIHW conv weights, BN running stats.
    x = jax.random.normal(kx, (N, C, Hs, Ws), dtype=jnp.float32)
    w1 = jax.random.normal(kw1, (C, C, 3, 3), dtype=jnp.float32) * 0.05
    w2 = jax.random.normal(kw2, (C, C, 3, 3), dtype=jnp.float32) * 0.05

    gamma1 = 1.0 + 0.1 * jax.random.normal(kg1, (C,), dtype=jnp.float32)
    beta1 = 0.1 * jax.random.normal(kb1, (C,), dtype=jnp.float32)
    mean1 = 0.1 * jax.random.normal(km1, (C,), dtype=jnp.float32)
    var1 = jnp.abs(jax.random.normal(kv1, (C,), dtype=jnp.float32)) + 0.5

    gamma2 = 1.0 + 0.1 * jax.random.normal(kg2, (C,), dtype=jnp.float32)
    beta2 = 0.1 * jax.random.normal(kb2, (C,), dtype=jnp.float32)
    mean2 = 0.1 * jax.random.normal(km2, (C,), dtype=jnp.float32)
    var2 = jnp.abs(jax.random.normal(kv2, (C,), dtype=jnp.float32)) + 0.5

    out = basic_block_nchw(x, w1, gamma1, beta1, mean1, var1,
                           w2, gamma2, beta2, mean2, var2, eps=eps)
    out = jax.block_until_ready(out)

    ref = basic_block_reference_nchw(x, w1, gamma1, beta1, mean1, var1,
                                     w2, gamma2, beta2, mean2, var2, eps)
    ref = jax.block_until_ready(ref)

    assert out.shape == (N, C, Hs, Ws)
    # bf16 matmul operands with f32 accumulation -> relaxed tolerance vs. the
    # f32 reference (documented; use an f32 im2col path if accuracy-critical).
    max_err = float(jnp.max(jnp.abs(out - ref)))
    assert jnp.allclose(out, ref, atol=5e-2, rtol=5e-2), f"max abs err {max_err}"

    print("KERNEL_OK")
</pallas_src>

<mosaic_0001>
module attributes {stable_mosaic.version = 11 : i64} {
  func.func @basic_block_kernel(%arg0: i32, %arg1: memref<1x18x18x32xbf16, #tpu.memory_space<vmem>>, %arg2: memref<1x16x16x32xf32, #tpu.memory_space<vmem>>, %arg3: memref<384x32xbf16, #tpu.memory_space<vmem>>, %arg4: memref<1x32xf32, #tpu.memory_space<vmem>>, %arg5: memref<1x32xf32, #tpu.memory_space<vmem>>, %arg6: memref<384x32xbf16, #tpu.memory_space<vmem>>, %arg7: memref<1x32xf32, #tpu.memory_space<vmem>>, %arg8: memref<1x32xf32, #tpu.memory_space<vmem>>, %arg9: memref<1x16x16x32xf32, #tpu.memory_space<vmem>>, %arg10: memref<256x384xbf16, #tpu.memory_space<vmem>>, %arg11: memref<1x18x18x32xbf16, #tpu.memory_space<vmem>>, %arg12: memref<256x384xbf16, #tpu.memory_space<vmem>>) attributes {dimension_semantics = [#tpu.dimension_semantics<parallel>], iteration_bounds = array<i64: 2>, scalar_prefetch = 0 : i64, scratch_operands = 3 : i64, tpu.core_type = #tpu.core_type<tc>, window_params = [{transform_indices = @transform_0, window_bounds = array<i64: 1, 18, 18, 32>}, {transform_indices = @transform_1, window_bounds = array<i64: 1, 16, 16, 32>}, {pipeline_mode = #tpu.pipeline_mode<synchronous>, transform_indices = @transform_2, window_bounds = array<i64: 384, 32>}, {pipeline_mode = #tpu.pipeline_mode<synchronous>, transform_indices = @transform_3, window_bounds = array<i64: 1, 32>}, {pipeline_mode = #tpu.pipeline_mode<synchronous>, transform_indices = @transform_4, window_bounds = array<i64: 1, 32>}, {pipeline_mode = #tpu.pipeline_mode<synchronous>, transform_indices = @transform_5, window_bounds = array<i64: 384, 32>}, {pipeline_mode = #tpu.pipeline_mode<synchronous>, transform_indices = @transform_6, window_bounds = array<i64: 1, 32>}, {pipeline_mode = #tpu.pipeline_mode<synchronous>, transform_indices = @transform_7, window_bounds = array<i64: 1, 32>}, {transform_indices = @transform_8, window_bounds = array<i64: 1, 16, 16, 32>}]} {
    %c0 = arith.constant 0 : index
    %c0_0 = arith.constant 0 : index
    %c0_1 = arith.constant 0 : index
    %c0_2 = arith.constant 0 : index
    %0 = vector.load %arg1[%c0, %c0_0, %c0_1, %c0_2] : memref<1x18x18x32xbf16, #tpu.memory_space<vmem>>, vector<1x16x16x32xbf16>
    %1 = vector.shape_cast %0 : vector<1x16x16x32xbf16> to vector<256x32xbf16>
    %c0_3 = arith.constant 0 : index
    %c0_4 = arith.constant 0 : index
    %c1 = arith.constant 1 : index
    %c0_5 = arith.constant 0 : index
    %2 = vector.load %arg1[%c0_3, %c0_4, %c1, %c0_5] : memref<1x18x18x32xbf16, #tpu.memory_space<vmem>>, vector<1x16x16x32xbf16>
    %3 = vector.shape_cast %2 : vector<1x16x16x32xbf16> to vector<256x32xbf16>
    %c0_6 = arith.constant 0 : index
    %c0_7 = arith.constant 0 : index
    %c2 = arith.constant 2 : index
    %c0_8 = arith.constant 0 : index
    %4 = vector.load %arg1[%c0_6, %c0_7, %c2, %c0_8] : memref<1x18x18x32xbf16, #tpu.memory_space<vmem>>, vector<1x16x16x32xbf16>
    %5 = vector.shape_cast %4 : vector<1x16x16x32xbf16> to vector<256x32xbf16>
    %c0_9 = arith.constant 0 : index
    %c1_10 = arith.constant 1 : index
    %c0_11 = arith.constant 0 : index
    %c0_12 = arith.constant 0 : index
    %6 = vector.load %arg1[%c0_9, %c1_10, %c0_11, %c0_12] : memref<1x18x18x32xbf16, #tpu.memory_space<vmem>>, vector<1x16x16x32xbf16>
    %7 = vector.shape_cast %6 : vector<1x16x16x32xbf16> to vector<256x32xbf16>
    %8 = tpu.concatenate %1, %3, %5, %7 in 1 : vector<256x32xbf16>, vector<256x32xbf16>, vector<256x32xbf16>, vector<256x32xbf16> -> vector<256x128xbf16>
    %c0_13 = arith.constant 0 : index
    %c0_14 = arith.constant 0 : index
    %9 = vector.load %arg10[%c0_13, %c0_14] : memref<256x384xbf16, #tpu.memory_space<vmem>>, vector<256x128xbf16>
    tpu.vector_store %arg10[%c0_13, %c0_14], %8 {strides = array<i32>} : memref<256x384xbf16, #tpu.memory_space<vmem>>, vector<256x128xbf16>,
    %c0_15 = arith.constant 0 : index
    %c1_16 = arith.constant 1 : index
    %c1_17 = arith.constant 1 : index
    %c0_18 = arith.constant 0 : index
    %10 = vector.load %arg1[%c0_15, %c1_16, %c1_17, %c0_18] : memref<1x18x18x32xbf16, #tpu.memory_space<vmem>>, vector<1x16x16x32xbf16>
    %11 = vector.shape_cast %10 : vector<1x16x16x32xbf16> to vector<256x32xbf16>
    %c0_19 = arith.constant 0 : index
    %c1_20 = arith.constant 1 : index
    %c2_21 = arith.constant 2 : index
    %c0_22 = arith.constant 0 : index
    %12 = vector.load %arg1[%c0_19, %c1_20, %c2_21, %c0_22] : memref<1x18x18x32xbf16, #tpu.memory_space<vmem>>, vector<1x16x16x32xbf16>
    %13 = vector.shape_cast %12 : vector<1x16x16x32xbf16> to vector<256x32xbf16>
    %c0_23 = arith.constant 0 : index
    %c2_24 = arith.constant 2 : index
    %c0_25 = arith.constant 0 : index
    %c0_26 = arith.constant 0 : index
    %14 = vector.load %arg1[%c0_23, %c2_24, %c0_25, %c0_26] : memref<1x18x18x32xbf16, #tpu.memory_space<vmem>>, vector<1x16x16x32xbf16>
    %15 = vector.shape_cast %14 : vector<1x16x16x32xbf16> to vector<256x32xbf16>
    %c0_27 = arith.constant 0 : index
    %c2_28 = arith.constant 2 : index
    %c1_29 = arith.constant 1 : index
    %c0_30 = arith.constant 0 : index
    %16 = vector.load %arg1[%c0_27, %c2_28, %c1_29, %c0_30] : memref<1x18x18x32xbf16, #tpu.memory_space<vmem>>, vector<1x16x16x32xbf16>
    %17 = vector.shape_cast %16 : vector<1x16x16x32xbf16> to vector<256x32xbf16>
    %18 = tpu.concatenate %11, %13, %15, %17 in 1 : vector<256x32xbf16>, vector<256x32xbf16>, vector<256x32xbf16>, vector<256x32xbf16> -> vector<256x128xbf16>
    %c0_31 = arith.constant 0 : index
    %c128 = arith.constant 128 : index
    %19 = vector.load %arg10[%c0_31, %c128] : memref<256x384xbf16, #tpu.memory_space<vmem>>, vector<256x128xbf16>
    tpu.vector_store %arg10[%c0_31, %c128], %18 {strides = array<i32>} : memref<256x384xbf16, #tpu.memory_space<vmem>>, vector<256x128xbf16>,
    %c0_32 = arith.constant 0 : index
    %c2_33 = arith.constant 2 : index
    %c2_34 = arith.constant 2 : index
    %c0_35 = arith.constant 0 : index
    %20 = vector.load %arg1[%c0_32, %c2_33, %c2_34, %c0_35] : memref<1x18x18x32xbf16, #tpu.memory_space<vmem>>, vector<1x16x16x32xbf16>
    %21 = vector.shape_cast %20 : vector<1x16x16x32xbf16> to vector<256x32xbf16>
    %cst = arith.constant 0.000000e+00 : bf16
    %22 = vector.broadcast %cst : bf16 to vector<256x32xbf16>
    %cst_36 = arith.constant 0.000000e+00 : bf16
    %23 = vector.broadcast %cst_36 : bf16 to vector<256x32xbf16>
    %cst_37 = arith.constant 0.000000e+00 : bf16
    %24 = vector.broadcast %cst_37 : bf16 to vector<256x32xbf16>
    %25 = tpu.concatenate %21, %22, %23, %24 in 1 : vector<256x32xbf16>, vector<256x32xbf16>, vector<256x32xbf16>, vector<256x32xbf16> -> vector<256x128xbf16>
    %c0_38 = arith.constant 0 : index
    %c256 = arith.constant 256 : index
    %26 = vector.load %arg10[%c0_38, %c256] : memref<256x384xbf16, #tpu.memory_space<vmem>>, vector<256x128xbf16>
    tpu.vector_store %arg10[%c0_38, %c256], %25 {strides = array<i32>} : memref<256x384xbf16, #tpu.memory_space<vmem>>, vector<256x128xbf16>,
    %cst_39 = arith.constant 0.000000e+00 : bf16
    %27 = vector.broadcast %cst_39 : bf16 to vector<1x1x18x32xbf16>
    %c0_40 = arith.constant 0 : index
    %c0_41 = arith.constant 0 : index
    %c0_42 = arith.constant 0 : index
    %c0_43 = arith.constant 0 : index
    %28 = vector.load %arg11[%c0_40, %c0_41, %c0_42, %c0_43] : memref<1x18x18x32xbf16, #tpu.memory_space<vmem>>, vector<1x1x18x32xbf16>
    tpu.vector_store %arg11[%c0_40, %c0_41, %c0_42, %c0_43], %27 {strides = array<i32>} : memref<1x18x18x32xbf16, #tpu.memory_space<vmem>>, vector<1x1x18x32xbf16>,
    %cst_44 = arith.constant 0.000000e+00 : bf16
    %29 = vector.broadcast %cst_44 : bf16 to vector<1x1x18x32xbf16>
    %c0_45 = arith.constant 0 : index
    %c17 = arith.constant 17 : index
    %c0_46 = arith.constant 0 : index
    %c0_47 = arith.constant 0 : index
    %30 = vector.load %arg11[%c0_45, %c17, %c0_46, %c0_47] : memref<1x18x18x32xbf16, #tpu.memory_space<vmem>>, vector<1x1x18x32xbf16>
    tpu.vector_store %arg11[%c0_45, %c17, %c0_46, %c0_47], %29 {strides = array<i32>} : memref<1x18x18x32xbf16, #tpu.memory_space<vmem>>, vector<1x1x18x32xbf16>,
    %cst_48 = arith.constant 0.000000e+00 : bf16
    %31 = vector.broadcast %cst_48 : bf16 to vector<1x18x1x32xbf16>
    %c0_49 = arith.constant 0 : index
    %c0_50 = arith.constant 0 : index
    %c0_51 = arith.constant 0 : index
    %c0_52 = arith.constant 0 : index
    %32 = vector.load %arg11[%c0_49, %c0_50, %c0_51, %c0_52] : memref<1x18x18x32xbf16, #tpu.memory_space<vmem>>, vector<1x18x1x32xbf16>
    tpu.vector_store %arg11[%c0_49, %c0_50, %c0_51, %c0_52], %31 {strides = array<i32>} : memref<1x18x18x32xbf16, #tpu.memory_space<vmem>>, vector<1x18x1x32xbf16>,
    %cst_53 = arith.constant 0.000000e+00 : bf16
    %33 = vector.broadcast %cst_53 : bf16 to vector<1x18x1x32xbf16>
    %c0_54 = arith.constant 0 : index
    %c0_55 = arith.constant 0 : index
    %c17_56 = arith.constant 17 : index
    %c0_57 = arith.constant 0 : index
    %34 = vector.load %arg11[%c0_54, %c0_55, %c17_56, %c0_57] : memref<1x18x18x32xbf16, #tpu.memory_space<vmem>>, vector<1x18x1x32xbf16>
    tpu.vector_store %arg11[%c0_54, %c0_55, %c17_56, %c0_57], %33 {strides = array<i32>} : memref<1x18x18x32xbf16, #tpu.memory_space<vmem>>, vector<1x18x1x32xbf16>,
    %c0_58 = arith.constant 0 : index
    %c0_59 = arith.constant 0 : index
    %35 = vector.load %arg10[%c0_58, %c0_59] : memref<256x384xbf16, #tpu.memory_space<vmem>>, vector<256x384xbf16>
    %c0_60 = arith.constant 0 : index
    %c0_61 = arith.constant 0 : index
    %36 = vector.load %arg3[%c0_60, %c0_61] : memref<384x32xbf16, #tpu.memory_space<vmem>>, vector<384x32xbf16>
    %cst_62 = arith.constant dense<0.000000e+00> : vector<256x32xf32>
    %37 = tpu.matmul %35, %36, %cst_62 {dimension_numbers = #tpu.dot_dimension_numbers<[1], [0], [0], [1], [0, 0, 1, 1], [], []>} : vector<256x384xbf16>, vector<384x32xbf16>, vector<256x32xf32> -> vector<256x32xf32>
    %c0_63 = arith.constant 0 : index
    %c0_64 = arith.constant 0 : index
    %38 = vector.load %arg4[%c0_63, %c0_64] : memref<1x32xf32, #tpu.memory_space<vmem>>, vector<1x32xf32>
    %39 = vector.broadcast %38 : vector<1x32xf32> to vector<256x32xf32>
    %40 = arith.mulf %37, %39 : vector<256x32xf32>
    %c0_65 = arith.constant 0 : index
    %c0_66 = arith.constant 0 : index
    %41 = vector.load %arg5[%c0_65, %c0_66] : memref<1x32xf32, #tpu.memory_space<vmem>>, vector<1x32xf32>
    %42 = vector.broadcast %41 : vector<1x32xf32> to vector<256x32xf32>
    %43 = arith.addf %40, %42 : vector<256x32xf32>
    %cst_67 = arith.constant 0.000000e+00 : f32
    %44 = vector.broadcast %cst_67 : f32 to vector<256x32xf32>
    %45 = arith.maximumf %43, %44 : vector<256x32xf32>
    %46 = vector.shape_cast %45 : vector<256x32xf32> to vector<1x16x16x32xf32>
    %47 = arith.truncf %46 : vector<1x16x16x32xf32> to vector<1x16x16x32xbf16>
    %c0_68 = arith.constant 0 : index
    %c1_69 = arith.constant 1 : index
    %c1_70 = arith.constant 1 : index
    %c0_71 = arith.constant 0 : index
    %48 = vector.load %arg11[%c0_68, %c1_69, %c1_70, %c0_71] : memref<1x18x18x32xbf16, #tpu.memory_space<vmem>>, vector<1x16x16x32xbf16>
    tpu.vector_store %arg11[%c0_68, %c1_69, %c1_70, %c0_71], %47 {strides = array<i32>} : memref<1x18x18x32xbf16, #tpu.memory_space<vmem>>, vector<1x16x16x32xbf16>,
    %c0_72 = arith.constant 0 : index
    %c0_73 = arith.constant 0 : index
    %c0_74 = arith.constant 0 : index
    %c0_75 = arith.constant 0 : index
    %49 = vector.load %arg11[%c0_72, %c0_73, %c0_74, %c0_75] : memref<1x18x18x32xbf16, #tpu.memory_space<vmem>>, vector<1x16x16x32xbf16>
    %50 = vector.shape_cast %49 : vector<1x16x16x32xbf16> to vector<256x32xbf16>
    %c0_76 = arith.constant 0 : index
    %c0_77 = arith.constant 0 : index
    %c1_78 = arith.constant 1 : index
    %c0_79 = arith.constant 0 : index
    %51 = vector.load %arg11[%c0_76, %c0_77, %c1_78, %c0_79] : memref<1x18x18x32xbf16, #tpu.memory_space<vmem>>, vector<1x16x16x32xbf16>
    %52 = vector.shape_cast %51 : vector<1x16x16x32xbf16> to vector<256x32xbf16>
    %c0_80 = arith.constant 0 : index
    %c0_81 = arith.constant 0 : index
    %c2_82 = arith.constant 2 : index
    %c0_83 = arith.constant 0 : index
    %53 = vector.load %arg11[%c0_80, %c0_81, %c2_82, %c0_83] : memref<1x18x18x32xbf16, #tpu.memory_space<vmem>>, vector<1x16x16x32xbf16>
    %54 = vector.shape_cast %53 : vector<1x16x16x32xbf16> to vector<256x32xbf16>
    %c0_84 = arith.constant 0 : index
    %c1_85 = arith.constant 1 : index
    %c0_86 = arith.constant 0 : index
    %c0_87 = arith.constant 0 : index
    %55 = vector.load %arg11[%c0_84, %c1_85, %c0_86, %c0_87] : memref<1x18x18x32xbf16, #tpu.memory_space<vmem>>, vector<1x16x16x32xbf16>
    %56 = vector.shape_cast %55 : vector<1x16x16x32xbf16> to vector<256x32xbf16>
    %57 = tpu.concatenate %50, %52, %54, %56 in 1 : vector<256x32xbf16>, vector<256x32xbf16>, vector<256x32xbf16>, vector<256x32xbf16> -> vector<256x128xbf16>
    %c0_88 = arith.constant 0 : index
    %c0_89 = arith.constant 0 : index
    %58 = vector.load %arg12[%c0_88, %c0_89] : memref<256x384xbf16, #tpu.memory_space<vmem>>, vector<256x128xbf16>
    tpu.vector_store %arg12[%c0_88, %c0_89], %57 {strides = array<i32>} : memref<256x384xbf16, #tpu.memory_space<vmem>>, vector<256x128xbf16>,
    %c0_90 = arith.constant 0 : index
    %c1_91 = arith.constant 1 : index
    %c1_92 = arith.constant 1 : index
    %c0_93 = arith.constant 0 : index
    %59 = vector.load %arg11[%c0_90, %c1_91, %c1_92, %c0_93] : memref<1x18x18x32xbf16, #tpu.memory_space<vmem>>, vector<1x16x16x32xbf16>
    %60 = vector.shape_cast %59 : vector<1x16x16x32xbf16> to vector<256x32xbf16>
    %c0_94 = arith.constant 0 : index
    %c1_95 = arith.constant 1 : index
    %c2_96 = arith.constant 2 : index
    %c0_97 = arith.constant 0 : index
    %61 = vector.load %arg11[%c0_94, %c1_95, %c2_96, %c0_97] : memref<1x18x18x32xbf16, #tpu.memory_space<vmem>>, vector<1x16x16x32xbf16>
    %62 = vector.shape_cast %61 : vector<1x16x16x32xbf16> to vector<256x32xbf16>
    %c0_98 = arith.constant 0 : index
    %c2_99 = arith.constant 2 : index
    %c0_100 = arith.constant 0 : index
    %c0_101 = arith.constant 0 : index
    %63 = vector.load %arg11[%c0_98, %c2_99, %c0_100, %c0_101] : memref<1x18x18x32xbf16, #tpu.memory_space<vmem>>, vector<1x16x16x32xbf16>
    %64 = vector.shape_cast %63 : vector<1x16x16x32xbf16> to vector<256x32xbf16>
    %c0_102 = arith.constant 0 : index
    %c2_103 = arith.constant 2 : index
    %c1_104 = arith.constant 1 : index
    %c0_105 = arith.constant 0 : index
    %65 = vector.load %arg11[%c0_102, %c2_103, %c1_104, %c0_105] : memref<1x18x18x32xbf16, #tpu.memory_space<vmem>>, vector<1x16x16x32xbf16>
    %66 = vector.shape_cast %65 : vector<1x16x16x32xbf16> to vector<256x32xbf16>
    %67 = tpu.concatenate %60, %62, %64, %66 in 1 : vector<256x32xbf16>, vector<256x32xbf16>, vector<256x32xbf16>, vector<256x32xbf16> -> vector<256x128xbf16>
    %c0_106 = arith.constant 0 : index
    %c128_107 = arith.constant 128 : index
    %68 = vector.load %arg12[%c0_106, %c128_107] : memref<256x384xbf16, #tpu.memory_space<vmem>>, vector<256x128xbf16>
    tpu.vector_store %arg12[%c0_106, %c128_107], %67 {strides = array<i32>} : memref<256x384xbf16, #tpu.memory_space<vmem>>, vector<256x128xbf16>,
    %c0_108 = arith.constant 0 : index
    %c2_109 = arith.constant 2 : index
    %c2_110 = arith.constant 2 : index
    %c0_111 = arith.constant 0 : index
    %69 = vector.load %arg11[%c0_108, %c2_109, %c2_110, %c0_111] : memref<1x18x18x32xbf16, #tpu.memory_space<vmem>>, vector<1x16x16x32xbf16>
    %70 = vector.shape_cast %69 : vector<1x16x16x32xbf16> to vector<256x32xbf16>
    %cst_112 = arith.constant 0.000000e+00 : bf16
    %71 = vector.broadcast %cst_112 : bf16 to vector<256x32xbf16>
    %cst_113 = arith.constant 0.000000e+00 : bf16
    %72 = vector.broadcast %cst_113 : bf16 to vector<256x32xbf16>
    %cst_114 = arith.constant 0.000000e+00 : bf16
    %73 = vector.broadcast %cst_114 : bf16 to vector<256x32xbf16>
    %74 = tpu.concatenate %70, %71, %72, %73 in 1 : vector<256x32xbf16>, vector<256x32xbf16>, vector<256x32xbf16>, vector<256x32xbf16> -> vector<256x128xbf16>
    %c0_115 = arith.constant 0 : index
    %c256_116 = arith.constant 256 : index
    %75 = vector.load %arg12[%c0_115, %c256_116] : memref<256x384xbf16, #tpu.memory_space<vmem>>, vector<256x128xbf16>
    tpu.vector_store %arg12[%c0_115, %c256_116], %74 {strides = array<i32>} : memref<256x384xbf16, #tpu.memory_space<vmem>>, vector<256x128xbf16>,
    %c0_117 = arith.constant 0 : index
    %c0_118 = arith.constant 0 : index
    %76 = vector.load %arg12[%c0_117, %c0_118] : memref<256x384xbf16, #tpu.memory_space<vmem>>, vector<256x384xbf16>
    %c0_119 = arith.constant 0 : index
    %c0_120 = arith.constant 0 : index
    %77 = vector.load %arg6[%c0_119, %c0_120] : memref<384x32xbf16, #tpu.memory_space<vmem>>, vector<384x32xbf16>
    %cst_121 = arith.constant dense<0.000000e+00> : vector<256x32xf32>
    %78 = tpu.matmul %76, %77, %cst_121 {dimension_numbers = #tpu.dot_dimension_numbers<[1], [0], [0], [1], [0, 0, 1, 1], [], []>} : vector<256x384xbf16>, vector<384x32xbf16>, vector<256x32xf32> -> vector<256x32xf32>
    %c0_122 = arith.constant 0 : index
    %c0_123 = arith.constant 0 : index
    %79 = vector.load %arg7[%c0_122, %c0_123] : memref<1x32xf32, #tpu.memory_space<vmem>>, vector<1x32xf32>
    %80 = vector.broadcast %79 : vector<1x32xf32> to vector<256x32xf32>
    %81 = arith.mulf %78, %80 : vector<256x32xf32>
    %c0_124 = arith.constant 0 : index
    %c0_125 = arith.constant 0 : index
    %82 = vector.load %arg8[%c0_124, %c0_125] : memref<1x32xf32, #tpu.memory_space<vmem>>, vector<1x32xf32>
    %83 = vector.broadcast %82 : vector<1x32xf32> to vector<256x32xf32>
    %84 = arith.addf %81, %83 : vector<256x32xf32>
    %c0_126 = arith.constant 0 : index
    %c0_127 = arith.constant 0 : index
    %c0_128 = arith.constant 0 : index
    %c0_129 = arith.constant 0 : index
    %85 = vector.load %arg2[%c0_126, %c0_127, %c0_128, %c0_129] : memref<1x16x16x32xf32, #tpu.memory_space<vmem>>, vector<1x16x16x32xf32>
    %86 = vector.shape_cast %85 : vector<1x16x16x32xf32> to vector<256x32xf32>
    %87 = arith.addf %84, %86 : vector<256x32xf32>
    %cst_130 = arith.constant 0.000000e+00 : f32
    %88 = vector.broadcast %cst_130 : f32 to vector<256x32xf32>
    %89 = arith.maximumf %87, %88 : vector<256x32xf32>
    %90 = vector.shape_cast %89 : vector<256x32xf32> to vector<1x16x16x32xf32>
    %c0_131 = arith.constant 0 : index
    %c0_132 = arith.constant 0 : index
    %c0_133 = arith.constant 0 : index
    %c0_134 = arith.constant 0 : index
    %91 = vector.load %arg9[%c0_131, %c0_132, %c0_133, %c0_134] : memref<1x16x16x32xf32, #tpu.memory_space<vmem>>, vector<1x16x16x32xf32>
    tpu.vector_store %arg9[%c0_131, %c0_132, %c0_133, %c0_134], %90 {strides = array<i32>} : memref<1x16x16x32xf32, #tpu.memory_space<vmem>>, vector<1x16x16x32xf32>,
    return
  }
  func.func @transform_0(%arg0: i32) -> (i32, i32, i32, i32) {
    %c0_i32 = arith.constant 0 : i32
    %c0_i32_0 = arith.constant 0 : i32
    %c0_i32_1 = arith.constant 0 : i32
    %c0_i32_2 = arith.constant 0 : i32
    return %arg0, %c0_i32, %c0_i32_0, %c0_i32_1 : i32, i32, i32, i32
  }
  func.func @transform_1(%arg0: i32) -> (i32, i32, i32, i32) {
    %c0_i32 = arith.constant 0 : i32
    %c0_i32_0 = arith.constant 0 : i32
    %c0_i32_1 = arith.constant 0 : i32
    %c0_i32_2 = arith.constant 0 : i32
    return %arg0, %c0_i32, %c0_i32_0, %c0_i32_1 : i32, i32, i32, i32
  }
  func.func @transform_2(%arg0: i32) -> (i32, i32) {
    %c0_i32 = arith.constant 0 : i32
    %c0_i32_0 = arith.constant 0 : i32
    %c0_i32_1 = arith.constant 0 : i32
    return %c0_i32, %c0_i32_0 : i32, i32
  }
  func.func @transform_3(%arg0: i32) -> (i32, i32) {
    %c0_i32 = arith.constant 0 : i32
    %c0_i32_0 = arith.constant 0 : i32
    %c0_i32_1 = arith.constant 0 : i32
    return %c0_i32, %c0_i32_0 : i32, i32
  }
  func.func @transform_4(%arg0: i32) -> (i32, i32) {
    %c0_i32 = arith.constant 0 : i32
    %c0_i32_0 = arith.constant 0 : i32
    %c0_i32_1 = arith.constant 0 : i32
    return %c0_i32, %c0_i32_0 : i32, i32
  }
  func.func @transform_5(%arg0: i32) -> (i32, i32) {
    %c0_i32 = arith.constant 0 : i32
    %c0_i32_0 = arith.constant 0 : i32
    %c0_i32_1 = arith.constant 0 : i32
    return %c0_i32, %c0_i32_0 : i32, i32
  }
  func.func @transform_6(%arg0: i32) -> (i32, i32) {
    %c0_i32 = arith.constant 0 : i32
    %c0_i32_0 = arith.constant 0 : i32
    %c0_i32_1 = arith.constant 0 : i32
    return %c0_i32, %c0_i32_0 : i32, i32
  }
  func.func @transform_7(%arg0: i32) -> (i32, i32) {
    %c0_i32 = arith.constant 0 : i32
    %c0_i32_0 = arith.constant 0 : i32
    %c0_i32_1 = arith.constant 0 : i32
    return %c0_i32, %c0_i32_0 : i32, i32
  }
  func.func @transform_8(%arg0: i32) -> (i32, i32, i32, i32) {
    %c0_i32 = arith.constant 0 : i32
    %c0_i32_0 = arith.constant 0 : i32
    %c0_i32_1 = arith.constant 0 : i32
    %c0_i32_2 = arith.constant 0 : i32
    return %arg0, %c0_i32, %c0_i32_0, %c0_i32_1 : i32, i32, i32, i32
  }
}

</mosaic_0001>

<bundles_post_ra>
// kernel: tpu_custom_call.1
= control target key start
LH: loop header
LB: loop body
LE: loop exit
PB: predicated region body
PF: predicated region fallthrough
CT: control target
= control target key end

     0   :  { %13 = vsyncpa [#allocation6], 0  ;;  %s13764_s0 = inlined_call_operand.vmem [shape: bf16[2,18,18,32], index: 0, kind: input, shape index: {}]   ;;  %s13765_s1 = inlined_call_operand.vmem [shape: f32[2,16,16,32], index: 1, kind: input, shape index: {}]   ;;  %s13766_s2 = inlined_call_operand.vmem [shape: bf16[384,32], index: 2, kind: input, shape index: {}]   ;;  %s13767_s3 = inlined_call_operand.vmem [shape: f32[1,32], index: 3, kind: input, shape index: {}]   ;;  %s13768_s4 = inlined_call_operand.vmem [shape: f32[1,32], index: 4, kind: input, shape index: {}]   ;;  %s13769_s5 = inlined_call_operand.vmem [shape: bf16[384,32], index: 5, kind: input, shape index: {}]   ;;  %s13770_s6 = inlined_call_operand.vmem [shape: f32[1,32], index: 6, kind: input, shape index: {}]   ;;  %s13771_s7 = inlined_call_operand.vmem [shape: f32[1,32], index: 7, kind: input, shape index: {}]   ;;  %s13772_s8 = inlined_call_operand.hbm [shape: f32[2,16,16,32], index: 8, kind: output, shape index: {}]  }
   0x1   :  { %15 = vsyncpa [#allocation6 + $0x1], 0  ;;  %s9993_s27 = smov 0   ;;  %s9995_s28 = smov 0  }
   0x2   :  { %s9997_s29 = smov 0   ;;  %s9999_s30 = smov 0  }
   0x3 LB: > { %s10014_s9 = sadd.s32 4294967295, %s9939_s30   ;;  %s8473_s10 = sadd.s32 4294967294, %s9939_s30   ;;  %s9939_s30 = sphi %s9999_s30, %s13832_s30   ;;  %s9935_s29 = sphi %s9997_s29, %s13831_s29   ;;  %s9931_s28 = sphi %s9995_s28, %s13830_s28   ;;  %s9927_s27 = sphi %s9993_s27, %s13829_s27  }
   0x4   : > { %s10018_s11 = sadd.s32 1, %s9939_s30   ;;  %s206_s12 = sadd.s32 1, %s9935_s29 }
   0x5   : > { %s203_s13 = ssub.s32 %s9939_s30, %s10018_s11  ;;  %p216_p0 = scmp.ne.s32.totalorder %s9935_s29, %s9931_s28 }
   0x6   : > { %p204_p1 = scmp.eq.s32.totalorder %s203_s13, 0  ;;  %p217_p2 = scmp.eq.s32.totalorder %s10014_s9, 1 }
   0x7   : > { %p222_p3 = scmp.ne.s32.totalorder %s9931_s28, %s9927_s27  ;;  %p223_p4 = scmp.eq.s32.totalorder %s8473_s10, 1 }
   0x8   : > { %s10029_s14 = scalar_select %p204_p1, %s9935_s29, %s206_s12  }
   0x9   : > { %p10031_p5 = por %p217_p2, %p216_p0  ;;  %p10035_p6 = por %p223_p4, %p222_p3 }
   0xa   : > { %p8476_p7 = scmp.ge.s32.totalorder %s9939_s30, 1  ;;  %p275_p8 = scmp.lt.s32.totalorder %s9939_s30, 3 }
   0xc   : > { %p276_p9 = pnand %p8476_p7, %p275_p8 }
   0xe   : > { %279 = sbr.rel (%p276_p9) target bundleno = 1159 (0x487), region = 52 }
  0x15   : > { %p314_p10 = scmp.lt.s32.totalorder %s10014_s9, 1  ;;  %v9642_v0 = vld [vmem:[%s13766_s2 + $0x80] sm:$0xff]   ;;  %vm824_vm0 = vcmask 1042432   ;;  %v9647_v3 = vld [vmem:[%s13766_s2 + $0x88] sm:$0xff]   ;;  %vm825_vm1 = vcmask 1046532   ;;  %s9941_s20 = smov 64  }
  0x16   : > { %v9644_v1 = vld [vmem:[%s13766_s2 + $0x40] sm:$0xff]   ;;  %9484 = vmatprep.subr.bf16.mxu1 %v9642_v0  ;;  %v9648_v4 = vld [vmem:[%s13766_s2 + $0x48] sm:$0xff]   ;;  %vm10089_vm2 = vmor %vm824_vm0, %vm825_vm1  ;;  %s9942_s21 = smov 96   ;;  %vm373_vm3 = vsmask.f32 3328  ;;  %vm1308_vm6 = vcmask 261120  }
  0x17   : > { %s10043_s17 = scalar_select %p314_p10, %s10014_s9, 1  ;;  %v9645_v2 = vld [vmem:[%s13766_s2] sm:$0xff]   ;;  %9212 = vmatprep.subr.bf16.mxu0 %v9644_v1  ;;  %9485 = vmatpush3.bf16.msra.mxu1 %v9642_v0  ;;  %vm374_vm4 = vsmask.f32 7440  ;;  %vm1357_vm7 = vcmask 523264   ;;  %vm1390_vm8 = vcmask 785408  }
  0x18   : > { %9213 = vmatpush3.bf16.msra.mxu0 %v9645_v2  ;;  %9486 = vmatprep.subr.bf16.mxu1 %v9647_v3  ;;  %vm10143_vm5 = vmor %vm373_vm3, %vm374_vm4  ;;  %vm3313_vm9 = vcmask 257024   ;;  %vm3316_vm10 = vcmask 253952   ;;  %vm3323_vm11 = vsmask.f32 256  ;;  %vm3379_vm12 = vsmask.f32 7938 }
  0x19   : > { %s9580_s22 = smul.u32 216, %s10043_s17  ;;  %9214 = vmatprep.subr.bf16.mxu0 %v9648_v4  ;;  %vm11602_vm13 = vmand %vm3316_vm10, %vm3323_vm11  ;;  %vm4203_vm15 = vsmask.f32 4368  ;;  %s9179_s18 = sshll.u32 %s10014_s9, 12 }
  0x1a   : > { %vm11624_vm14 = vmand %vm3316_vm10, %vm3379_vm12  ;;  %s9945_s24 = smov [#allocation5]  }
  0x1b   : > { %s10061_s13 = scalar_lea.vmem %s13764_s0, %s9580_s22  ;;  %9487 = vmatpush3.bf16.msra.mxu1 %v9647_v3  ;;  %s9943_s22 = smov 32   ;;  %vm11745_vm0 = vmand %vm3313_vm9, %vm3379_vm12 }
  0x1c   : > { %v8673_v5 = vld [vmem:[%s10061_s13 + $0x18] sm:$0xf]  ;;  %v8674_v6 = vld [vmem:[%s10061_s13 + $0x1c] sm:$0xf]  ;;  %v8675_v7 = vld [vmem:[%s10061_s13 + $0x24] sm:$0xf] }
  0x1d   : > { %v2122_v8 = vshll.u32 %v8674_v6, 16  ;;  %v2126_v9 = vshrl.u32 %v8674_v6, 16  ;;  %v8753_v10 = vcombine.low %v8673_v5, %v8674_v6  ;;  %v2113_v11 = vshrl.u32 %v8673_v5, 16  ;;  %v8676_v12 = vld [vmem:[%s10061_s13 + $0x28] sm:$0xf]  ;;  %v9628_v17 = vld [vmem:[%s10061_s13 + $0xc] sm:$0xff]   ;;  %vm11751_vm1 = vmor %vm3323_vm11, %vm4203_vm15 }
  0x1e   : > { %v2116_v13 = vshll.u32 %v8673_v5, 16  ;;  %v2146_v14 = vshll.u32 %v8676_v12, 16  ;;  %v2150_v15 = vshrl.u32 %v8676_v12, 16  ;;  %v8754_v16 = vcombine.low %v8675_v7, %v8676_v12  ;;  %v10078_v26 = vld [vmem:[%s10061_s13 + $0x10] sm:$0xf] }
  0x1f   : > { %v10071_v18 = vrot.slane %v2122_v8, 5  ;;  %v2128_v19 = vrot.slane %v2126_v9, 4  ;;  %2704 = vrot.lane.b32.xlu1 %v8753_v10, %s9941_s20  ;;  %v2115_v20 = vrot.slane %v2113_v11, 4  ;;  %v2137_v21 = vshrl.u32 %v8675_v7, 16  ;;  %v10082_v29 = vld [vmem:[%s10061_s13 + $0x14] sm:$0x1] }
  0x20   : > { %v2118_v22 = vrot.slane %v2116_v13, 5  ;;  %v10074_v23 = vrot.slane %v2146_v14, 5  ;;  %v2152_v24 = vrot.slane %v2150_v15, 4  ;;  %2706 = vrot.lane.b32.xlu0 %v8754_v16, %s9941_s20  ;;  %v2140_v25 = vshll.u32 %v8675_v7, 16  ;;  %v8641_v30 = vld [vmem:[%s10061_s13 + $0xc] sm:$0xe] }
  0x21   : > { %v2129_v27 = vor.u32 %v2128_v19, %v10071_v18  ;;  %v2139_v28 = vrot.slane %v2137_v21, 4  ;;  %v1953_v31 = vrot.slane %v10078_v26, 5  ;;  %v326_v36 = vld [vmem:[%s10061_s13 + $0x4] sm:$0xf]  ;;  %v357_v37 = vld [vmem:[%s10061_s13 + $0x8] sm:$0x1] }
  0x22   : > { %v2119_v32 = vor.u32 %v2118_v22, %v2115_v20  ;;  %v2153_v33 = vor.u32 %v2152_v24, %v10074_v23  ;;  %v2142_v34 = vrot.slane %v2140_v25, 5  ;;  %v8657_v38 = vrot.slane %v8641_v30, 9  ;;  %v760_v41 = vld [vmem:[%s10061_s13] sm:$0xe]  ;;  %v10102_v45 = vld [vmem:[%s10061_s13 + $0x1c] sm:$0xf] }
  0x23   : > { %1276 = vrot.lane.b32.xlu1 %v9628_v17, %s9942_s21  ;;  %v1955_v39 = vrot.slane %v1953_v31, 4  ;;  %v1956_v40 = vrot.slane %v10082_v29, 5  ;;  %v10098_v42 = vrot.slane %v2129_v27, 4  ;;  %v1523_v44 = vshll.u32 %v10082_v29, 16  ;;  %v10109_v50 = vld [vmem:[%s10061_s13 + $0x20] sm:$0x1] }
  0x24   : > { %v2143_v43 = vor.u32 %v2142_v34, %v2139_v28  ;;  %v1954_v46 = vsel %vm10089_vm2, %v8657_v38, %v1953_v31  ;;  %v8481_v48 = vrot.slane %v760_v41, 9  ;;  %v829_v49 = vrot.slane %v326_v36, 5  ;;  %v8642_v51 = vld [vmem:[%s10061_s13 + $0x18] sm:$0xe]  ;;  %v328_v56 = vld [vmem:[%s10061_s13 + $0x10] sm:$0xf] }
  0x25   : > { %v1957_v47 = vsel %vm10089_vm2, %v1955_v39, %v1956_v40  ;;  %v10112_v52 = vrot.slane %v2119_v32, 4  ;;  %v10114_v53 = vrot.slane %v2153_v33, 4  ;;  %v832_v55 = vrot.slane %v357_v37, 5  ;;  %v358_v61 = vld [vmem:[%s10061_s13 + $0x14] sm:$0x1] }
  0x26   : > { %v8737_v54 = vcombine.low %v1954_v46, %v1957_v47  ;;  %v10117_v57 = vrot.slane %v2143_v43, 4  ;;  %v830_v58 = vsel %vm10089_vm2, %v8481_v48, %v829_v49  ;;  %v831_v59 = vrot.slane %v829_v49, 4  ;;  %v761_v0 = vld [vmem:[%s10061_s13 + $0xc] sm:$0xe]  ;;  %v325_v5 = vld [vmem:[%s10061_s13] sm:$0xf] }
  0x27   : > { %v8658_v60 = vrot.slane %v8642_v51, 9  ;;  %v1960_v62 = vrot.slane %v10102_v45, 5  ;;  %v1963_v63 = vrot.slane %v10109_v50, 5  ;;  %v836_v1 = vrot.slane %v328_v56, 5  ;;  %v327_v12 = vld [vmem:[%s10061_s13 + $0xc] sm:$0xf] }
  0x28   : > { %2592 = vrot.lane.b32.xlu0 %v8737_v54, %s9943_s22  ;;  %v839_v2 = vrot.slane %v358_v61, 5  ;;  %v833_v3 = vsel %vm10089_vm2, %v831_v59, %v832_v55  ;;  %v8482_v4 = vrot.slane %v761_v0, 9  ;;  %v386_v6 = vshll.u32 %v326_v36, 16  ;;  %v8705_v33 = vld [vmem:[%s10061_s13 + $0x20] sm:$0x1]  ;;  %v9649_v49 = vld [vmem:[%s13766_s2 + $0x8] sm:$0xff]  }
  0x29   : > { %v390_v7 = vshrl.u32 %v326_v36, 16  ;;  %v8561_v8 = vcombine.low %v830_v58, %v833_v3  ;;  %v1961_v9 = vsel %vm10089_vm2, %v8658_v60, %v1960_v62  ;;  %v1962_v10 = vrot.slane %v1960_v62, 4  ;;  %v8706_v40 = vld [vmem:[%s10061_s13 + $0x2c] sm:$0x1]  ;;  %v329_v48 = vld [vmem:[%s10061_s13 + $0x18] sm:$0xf]  ;;  %9215 = vmatpush3.bf16.msra.mxu0 %v9649_v49 }
  0x2a   : > { %v838_v11 = vrot.slane %v836_v1, 4  ;;  %v837_v13 = vsel %vm10089_vm2, %v8482_v4, %v836_v1  ;;  %v377_v14 = vshrl.u32 %v325_v5, 16  ;;  %v380_v15 = vshll.u32 %v325_v5, 16 }
  0x2b   : > { %v388_v16 = vrot.slane %v386_v6, 5  ;;  %1164 = vrot.lane.b32.xlu1 %v8561_v8, %s9941_s20  ;;  %v1964_v17 = vsel %vm10089_vm2, %v1962_v10, %v1963_v63  ;;  %v392_v20 = vrot.slane %v390_v7, 4  ;;  %v396_v21 = vshll.u32 %v357_v37, 16 }
  0x2c   : > { %v840_v19 = vsel %vm10089_vm2, %v838_v11, %v839_v2  ;;  %v8738_v22 = vcombine.low %v1961_v9, %v1964_v17  ;;  %v379_v25 = vrot.slane %v377_v14, 4  ;;  %v382_v27 = vrot.slane %v380_v15, 5  ;;  %v359_v11 = vld [vmem:[%s10061_s13 + $0x20] sm:$0x1]  ;;  %v8643_v14 = vld [vmem:[%s10061_s13 + $0x24] sm:$0xe] }
  0x2d   : > { %v8562_v24 = vcombine.low %v837_v13, %v840_v19  ;;  %v393_v28 = vor.u32 %v392_v20, %v388_v16  ;;  %v398_v30 = vrot.slane %v396_v21, 5  ;;  %v401_v31 = vshrl.u32 %v327_v12, 16  ;;  %v10190_v20 = vld [vmem:[%s10061_s13 + $0x28] sm:$0xf]  ;;  %v9652_v21 = vld [vmem:[%s13766_s2 + $0x10] sm:$0xff]  }
  0x2e   : > { %v404_v32 = vshll.u32 %v327_v12, 16  ;;  %2594 = vrot.lane.b32.xlu0 %v8738_v22, %s9943_s22  ;;  %v383_v36 = vor.u32 %v382_v27, %v379_v25  ;;  %v410_v37 = vshll.u32 %v328_v56, 16  ;;  %v414_v38 = vshrl.u32 %v328_v56, 16 }
  0x2f   : > { %v420_v39 = vshll.u32 %v358_v61, 16  ;;  %1166 = vrot.lane.b32.xlu1 %v8562_v24, %s9941_s20  ;;  %v394_v41 = vrot.slane %v393_v28, 4  ;;  %v403_v43 = vrot.slane %v401_v31, 4  ;;  %v2125_v47 = vsel %vm10143_vm5, %v10112_v52, %v10071_v18  ;;  %v10164_v18 = vld [vmem:[%s10061_s13 + $0x1c] sm:$0xf]  ;;  %v9650_v52 = vld [vmem:[%s13766_s2 + $0x90] sm:$0xff]  }
  0x30   : > { %v406_v46 = vrot.slane %v404_v32, 5  ;;  %v384_v51 = vrot.slane %v383_v36, 4  ;;  %v412_v54 = vrot.slane %v410_v37, 5  ;;  %v416_v55 = vrot.slane %v414_v38, 4  ;;  %9488 = vmatprep.subr.bf16.mxu1 %v9650_v52  ;;  %v762_v28 = vld [vmem:[%s10061_s13 + $0x18] sm:$0xe] }
  0x31   : > { %v422_v56 = vrot.slane %v420_v39, 5  ;;  %v399_v58 = vsel %vm10143_vm5, %v394_v41, %v398_v30  ;;  %v2132_v60 = vshll.u32 %v8705_v33, 16  ;;  %v2149_v61 = vsel %vm10143_vm5, %v10117_v57, %v10074_v23  ;;  %v9651_v23 = vld [vmem:[%s13766_s2 + $0x50] sm:$0xff]   ;;  %9489 = vmatpush3.bf16.msra.mxu1 %v9650_v52  ;;  %v9629_v31 = vld [vmem:[%s10061_s13 + $0x18] sm:$0xff]  }
  0x32   : > { %v407_v59 = vor.u32 %v406_v46, %v403_v43  ;;  %v389_v62 = vsel %vm10143_vm5, %v384_v51, %v388_v16  ;;  %v417_v63 = vor.u32 %v416_v55, %v412_v54  ;;  %v2156_v0 = vshll.u32 %v8706_v40, 16  ;;  %9216 = vmatprep.subr.bf16.mxu0 %v9651_v23  ;;  %v10210_v41 = vld [vmem:[%s10061_s13 + $0x30] sm:$0xf]  ;;  %v9655_v43 = vld [vmem:[%s13766_s2 + $0x58] sm:$0xff]   ;;  %v10217_v51 = vld [vmem:[%s10061_s13 + $0x34] sm:$0xf] }
  0x33   : > { %v425_v1 = vshrl.u32 %v329_v48, 16  ;;  %v8545_v2 = vcombine.low %v389_v62, %v399_v58  ;;  %v2134_v4 = vrot.slane %v2132_v60, 5  ;;  %v428_v5 = vshll.u32 %v329_v48, 16  ;;  %9217 = vmatpush3.bf16.msra.mxu0 %v9652_v21  ;;  %v9656_v52 = vld [vmem:[%s13766_s2 + $0x18] sm:$0xff]  }
  0x34   : > { %v408_v3 = vrot.slane %v407_v59, 4  ;;  %v418_v57 = vrot.slane %v417_v63, 4  ;;  %v2158_v6 = vrot.slane %v2156_v0, 5  ;;  %v434_v8 = vshll.u32 %v10164_v18, 16  ;;  %9218 = vmatprep.subr.bf16.mxu0 %v9655_v43 }
  0x35   : > { %v427_v7 = vrot.slane %v425_v1, 4  ;;  %1084 = vrot.lane.b32.xlu0 %v8545_v2, %s9943_s22  ;;  %v2135_v10 = vsel %vm10143_vm5, %v10098_v42, %v2134_v4  ;;  %v430_v12 = vrot.slane %v428_v5, 5  ;;  %v438_v13 = vshrl.u32 %v10164_v18, 16  ;;  %v10193_v42 = vld [vmem:[%s10061_s13 + $0x2c] sm:$0x1] }
  0x36   : > { %v413_v9 = vsel %vm10143_vm5, %v408_v3, %v412_v54  ;;  %v423_v15 = vsel %vm10143_vm5, %v418_v57, %v422_v56  ;;  %v8769_v16 = vcombine.low %v2125_v47, %v2135_v10  ;;  %v2159_v17 = vsel %vm10143_vm5, %v10114_v53, %v2158_v6  ;;  %v9653_v53 = vld [vmem:[%s13766_s2 + $0x98] sm:$0xff]   ;;  %v331_v3 = vld [vmem:[%s10061_s13 + $0x24] sm:$0xf]  ;;  %v10243_v6 = vld [vmem:[%s10061_s13 + $0x28] sm:$0xf] }
  0x37   : > { %v436_v19 = vrot.slane %v434_v8, 5  ;;  %v1517_v22 = vshrl.u32 %v10078_v26, 16  ;;  %v8546_v24 = vcombine.low %v413_v9, %v423_v15  ;;  %v431_v25 = vor.u32 %v430_v12, %v427_v7  ;;  %9490 = vmatprep.subr.bf16.mxu1 %v9653_v53  ;;  %v8707_v2 = vld [vmem:[%s10061_s13 + $0x38] sm:$0x1]  ;;  %9219 = vmatpush3.bf16.msra.mxu0 %v9656_v52  ;;  %v9658_v12 = vld [vmem:[%s13766_s2 + $0xa0] sm:$0xff]  }
  0x38   : > { %v440_v27 = vrot.slane %v438_v13, 4  ;;  %v1541_v30 = vshrl.u32 %v10102_v45, 16  ;;  %v8770_v32 = vcombine.low %v2149_v61, %v2159_v17  ;;  %v444_v33 = vshll.u32 %v359_v11, 16  ;;  %9491 = vmatpush3.bf16.msra.mxu1 %v9653_v53  ;;  %v9659_v17 = vld [vmem:[%s13766_s2 + $0x60] sm:$0xff]  }
  0x39   : > { %v8659_v36 = vrot.slane %v8643_v14, 9  ;;  %1086 = vrot.lane.b32.xlu1 %v8546_v24, %s9943_s22  ;;  %2784 = vrot.lane.b32.xlu0 %v8769_v16, %s9942_s21  ;;  %v432_v37 = vrot.slane %v431_v25, 4  ;;  %v1967_v39 = vrot.slane %v10190_v20, 5  ;;  %v1970_v40 = vrot.slane %v10193_v42, 5 }
  0x3a   : > { %v441_v38 = vor.u32 %v440_v27, %v436_v19  ;;  %v446_v46 = vrot.slane %v444_v33, 5  ;;  %v8483_v47 = vrot.slane %v762_v28, 9  ;;  %v843_v48 = vrot.slane %v10164_v18, 5  ;;  %v10261_v27 = vld [vmem:[%s10061_s13 + $0x34] sm:$0xf]  ;;  %9492 = vmatprep.subr.bf16.mxu1 %v9658_v12  ;;  %9220 = vmatprep.subr.bf16.mxu0 %v9659_v17 }
  0x3b   : > { %v846_v49 = vrot.slane %v359_v11, 5  ;;  %v437_v54 = vsel %vm10143_vm5, %v432_v37, %v436_v19  ;;  %v1968_v56 = vsel %vm10089_vm2, %v8659_v36, %v1967_v39  ;;  %v1969_v58 = vrot.slane %v1967_v39, 4  ;;  %v10246_v11 = vld [vmem:[%s10061_s13 + $0x2c] sm:$0x1]  ;;  %v10264_v28 = vld [vmem:[%s10061_s13 + $0x38] sm:$0x1] }
  0x3c   : > { %v442_v55 = vrot.slane %v441_v38, 4  ;;  %v844_v59 = vsel %vm10089_vm2, %v8483_v47, %v843_v48  ;;  %v845_v60 = vrot.slane %v843_v48, 4  ;;  %v2161_v61 = vshrl.u32 %v10210_v41, 16  ;;  %v8644_v36 = vld [vmem:[%s10061_s13 + $0x30] sm:$0xe]  ;;  %9493 = vmatpush3.bf16.msra.mxu1 %v9658_v12  ;;  %v9660_v47 = vld [vmem:[%s13766_s2 + $0x20] sm:$0xff]  }
  0x3d   : > { %v2164_v18 = vshll.u32 %v10210_v41, 16  ;;  %1278 = vrot.lane.b32.xlu1 %v9629_v31, %s9942_s21  ;;  %2786 = vrot.lane.b32.xlu0 %v8770_v32, %s9942_s21  ;;  %v1971_v63 = vsel %vm10089_vm2, %v1969_v58, %v1970_v40  ;;  %v2170_v0 = vshll.u32 %v10217_v51, 16  ;;  %v2174_v1 = vshrl.u32 %v10217_v51, 16  ;;  %v9631_v48 = vld [vmem:[%s10061_s13 + $0x24] sm:$0xff]  }
  0x3e   : > { %v447_v62 = vsel %vm10143_vm5, %v442_v55, %v446_v46  ;;  %v8739_v5 = vcombine.low %v1968_v56, %v1971_v63  ;;  %v847_v23 = vsel %vm10089_vm2, %v845_v60, %v846_v49  ;;  %v2163_v57 = vrot.slane %v2161_v61, 4  ;;  %v763_v46 = vld [vmem:[%s10061_s13 + $0x24] sm:$0xe]  ;;  %v10280_v56 = vld [vmem:[%s10061_s13 + $0x3c] sm:$0xf]  ;;  %9221 = vmatpush3.bf16.msra.mxu0 %v9660_v47 }
  0x3f   : > { %v8547_v4 = vcombine.low %v437_v54, %v447_v62  ;;  %v8563_v7 = vcombine.low %v844_v59, %v847_v23  ;;  %v2166_v8 = vrot.slane %v2164_v18, 5  ;;  %v2172_v9 = vrot.slane %v2170_v0, 5  ;;  %v9661_v18 = vld [vmem:[%s13766_s2 + $0xa8] sm:$0xff]   ;;  %v10327_v47 = vld [vmem:[%s10061_s13 + $0x44] sm:$0x1] }
  0x40   : > { %v2176_v10 = vrot.slane %v2174_v1, 4  ;;  %v8755_v13 = vcombine.low %v10210_v41, %v10217_v51  ;;  %v2180_v14 = vshll.u32 %v8707_v2, 16  ;;  %v449_v15 = vshrl.u32 %v331_v3, 16  ;;  %v8680_v1 = vld [vmem:[%s10061_s13 + $0x40] sm:$0xf]  ;;  %9494 = vmatprep.subr.bf16.mxu1 %v9661_v18 }
  0x41   : > { %v452_v16 = vshll.u32 %v331_v3, 16  ;;  %1088 = vrot.lane.b32.xlu1 %v8547_v4, %s9943_s22  ;;  %2596 = vrot.lane.b32.xlu0 %v8739_v5, %s9943_s22  ;;  %v2167_v19 = vor.u32 %v2166_v8, %v2163_v57  ;;  %v458_v24 = vshll.u32 %v10243_v6, 16  ;;  %v462_v25 = vshrl.u32 %v10243_v6, 16  ;;  %v8708_v8 = vld [vmem:[%s10061_s13 + $0x44] sm:$0x1] }
  0x42   : > { %v2177_v21 = vor.u32 %v2176_v10, %v2172_v9  ;;  %v2182_v53 = vrot.slane %v2180_v14, 5  ;;  %v451_v31 = vrot.slane %v449_v15, 4  ;;  %v468_v33 = vshll.u32 %v10246_v11, 16  ;;  %v10307_v14 = vld [vmem:[%s10061_s13 + $0x34] sm:$0xf]  ;;  %9495 = vmatpush3.bf16.msra.mxu1 %v9661_v18 }
  0x43   : > { %v454_v32 = vrot.slane %v452_v16, 5  ;;  %v2168_v37 = vrot.slane %v2167_v19, 4  ;;  %v460_v39 = vrot.slane %v458_v24, 5  ;;  %v464_v40 = vrot.slane %v462_v25, 4  ;;  %v10310_v15 = vld [vmem:[%s10061_s13 + $0x38] sm:$0x1] }
  0x44   : > { %v2178_v38 = vrot.slane %v2177_v21, 4  ;;  %v470_v43 = vrot.slane %v468_v33, 5  ;;  %v8660_v55 = vrot.slane %v8644_v36, 9  ;;  %v1974_v60 = vrot.slane %v10261_v27, 5  ;;  %v764_v18 = vld [vmem:[%s10061_s13 + $0x30] sm:$0xe] }
  0x45   : > { %v455_v41 = vor.u32 %v454_v32, %v451_v31  ;;  %1168 = vrot.lane.b32.xlu1 %v8563_v7, %s9941_s20  ;;  %2708 = vrot.lane.b32.xlu0 %v8755_v13, %s9941_s20  ;;  %v2173_v49 = vsel %vm10143_vm5, %v2168_v37, %v2172_v9  ;;  %v465_v54 = vor.u32 %v464_v40, %v460_v39  ;;  %v1977_v61 = vrot.slane %v10264_v28, 5  ;;  %v333_v9 = vld [vmem:[%s10061_s13 + $0x30] sm:$0xf] }
  0x46   : > { %v2183_v51 = vsel %vm10143_vm5, %v2178_v38, %v2182_v53  ;;  %v8484_v62 = vrot.slane %v763_v46, 9  ;;  %v850_v63 = vrot.slane %v10243_v6, 5  ;;  %v853_v0 = vrot.slane %v10246_v11, 5  ;;  %v10318_v38 = vld [vmem:[%s10061_s13 + $0x40] sm:$0xf] }
  0x47   : > { %v8771_v58 = vcombine.low %v2173_v49, %v2183_v51  ;;  %v456_v59 = vrot.slane %v455_v41, 4  ;;  %v466_v52 = vrot.slane %v465_v54, 4  ;;  %v1975_v3 = vsel %vm10089_vm2, %v8660_v55, %v1974_v60  ;;  %v8645_v55 = vld [vmem:[%s10061_s13 + $0x3c] sm:$0xe] }
  0x48   : > { %v1976_v4 = vrot.slane %v1974_v60, 4  ;;  %v2185_v5 = vshrl.u32 %v10280_v56, 16  ;;  %v851_v57 = vsel %vm10089_vm2, %v8484_v62, %v850_v63  ;;  %v852_v6 = vrot.slane %v850_v63, 4 }
  0x49   : > { %v461_v2 = vsel %vm10143_vm5, %v456_v59, %v460_v39  ;;  %1280 = vrot.lane.b32.xlu1 %v9631_v48, %s9942_s21  ;;  %2788 = vrot.lane.b32.xlu0 %v8771_v58, %s9942_s21  ;;  %v471_v23 = vsel %vm10143_vm5, %v466_v52, %v470_v43  ;;  %v2188_v7 = vshll.u32 %v10280_v56, 16  ;;  %v2194_v13 = vshll.u32 %v8680_v1, 16  ;;  %v9662_v39 = vld [vmem:[%s13766_s2 + $0x68] sm:$0xff]   ;;  %v9633_v52 = vld [vmem:[%s10061_s13 + $0x30] sm:$0xff]  }
  0x4a   : > { %v8548_v10 = vcombine.low %v461_v2, %v471_v23  ;;  %v1978_v11 = vsel %vm10089_vm2, %v1976_v4, %v1977_v61  ;;  %v2187_v12 = vrot.slane %v2185_v5, 4  ;;  %v854_v17 = vsel %vm10089_vm2, %v852_v6, %v853_v0  ;;  %9222 = vmatprep.subr.bf16.mxu0 %v9662_v39  ;;  %v10344_v23 = vld [vmem:[%s10061_s13 + $0x48] sm:$0xf] }
  0x4b   : > { %v8740_v16 = vcombine.low %v1975_v3, %v1978_v11  ;;  %v2190_v19 = vrot.slane %v2188_v7, 5  ;;  %v2198_v21 = vshrl.u32 %v8680_v1, 16  ;;  %v8564_v24 = vcombine.low %v851_v57, %v854_v17  ;;  %v9664_v57 = vld [vmem:[%s13766_s2 + $0xb0] sm:$0xff]  }
  0x4c   : > { %v2196_v25 = vrot.slane %v2194_v13, 5  ;;  %v8756_v53 = vcombine.low %v10280_v56, %v8680_v1  ;;  %v2204_v31 = vshll.u32 %v8708_v8, 16  ;;  %v473_v36 = vshrl.u32 %v333_v9, 16  ;;  %v9663_v56 = vld [vmem:[%s13766_s2 + $0x28] sm:$0xff]   ;;  %v9666_v11 = vld [vmem:[%s13766_s2 + $0x70] sm:$0xff]   ;;  %9496 = vmatprep.subr.bf16.mxu1 %v9664_v57 }
  0x4d   : > { %1090 = vrot.lane.b32.xlu1 %v8548_v10, %s9943_s22  ;;  %2598 = vrot.lane.b32.xlu0 %v8740_v16, %s9943_s22  ;;  %v2200_v32 = vrot.slane %v2198_v21, 4  ;;  %v2191_v33 = vor.u32 %v2190_v19, %v2187_v12  ;;  %v476_v37 = vshll.u32 %v333_v9, 16  ;;  %v482_v41 = vshll.u32 %v10307_v14, 16  ;;  %v10353_v10 = vld [vmem:[%s10061_s13 + $0x4c] sm:$0xf] }
  0x4e   : > { %v2206_v40 = vrot.slane %v2204_v31, 5  ;;  %v486_v43 = vshrl.u32 %v10307_v14, 16  ;;  %v492_v46 = vshll.u32 %v10310_v15, 16  ;;  %v475_v51 = vrot.slane %v473_v36, 4  ;;  %9223 = vmatpush3.bf16.msra.mxu0 %v9663_v56  ;;  %v335_v36 = vld [vmem:[%s10061_s13 + $0x3c] sm:$0xf]  ;;  %9497 = vmatpush3.bf16.msra.mxu1 %v9664_v57 }
  0x4f   : > { %v2192_v48 = vrot.slane %v2191_v33, 4  ;;  %v2201_v49 = vor.u32 %v2200_v32, %v2196_v25  ;;  %v478_v54 = vrot.slane %v476_v37, 5  ;;  %v1547_v58 = vshll.u32 %v10109_v50, 16  ;;  %9224 = vmatprep.subr.bf16.mxu0 %v9666_v11  ;;  %v8709_v33 = vld [vmem:[%s10061_s13 + $0x50] sm:$0x1] }
  0x50   : > { %v1565_v59 = vshrl.u32 %v10190_v20, 16  ;;  %v484_v60 = vrot.slane %v482_v41, 5  ;;  %v488_v61 = vrot.slane %v486_v43, 4  ;;  %v494_v1 = vrot.slane %v492_v46, 5  ;;  %v10379_v41 = vld [vmem:[%s10061_s13 + $0x40] sm:$0xf] }
  0x51   : > { %1170 = vrot.lane.b32.xlu1 %v8564_v24, %s9941_s20  ;;  %2710 = vrot.lane.b32.xlu0 %v8756_v53, %s9941_s20  ;;  %v2197_v62 = vsel %vm10143_vm5, %v2192_v48, %v2196_v25  ;;  %v2202_v63 = vrot.slane %v2201_v49, 4  ;;  %v479_v0 = vor.u32 %v478_v54, %v475_v51  ;;  %v8661_v3 = vrot.slane %v8645_v55, 9  ;;  %v9667_v43 = vld [vmem:[%s13766_s2 + $0x30] sm:$0xff]   ;;  %v10386_v54 = vld [vmem:[%s10061_s13 + $0x44] sm:$0x1] }
  0x52   : > { %v489_v2 = vor.u32 %v488_v61, %v484_v60  ;;  %v1981_v4 = vrot.slane %v10318_v38, 5  ;;  %v1984_v5 = vrot.slane %v10327_v47, 5  ;;  %v8485_v8 = vrot.slane %v764_v18, 9  ;;  %9225 = vmatpush3.bf16.msra.mxu0 %v9667_v43  ;;  %v9670_v18 = vld [vmem:[%s13766_s2 + $0xb8] sm:$0xff]  }
  0x53   : > { %v2207_v6 = vsel %vm10143_vm5, %v2202_v63, %v2206_v40  ;;  %v480_v7 = vrot.slane %v479_v0, 4  ;;  %v857_v9 = vrot.slane %v10307_v14, 5  ;;  %v860_v24 = vrot.slane %v10310_v15, 5  ;;  %9498 = vmatprep.subr.bf16.mxu1 %v9670_v18 }
  0x54   : > { %v8772_v12 = vcombine.low %v2197_v62, %v2207_v6  ;;  %v490_v13 = vrot.slane %v489_v2, 4  ;;  %v1982_v16 = vsel %vm10089_vm2, %v8661_v3, %v1981_v4  ;;  %v1983_v17 = vrot.slane %v1981_v4, 4  ;;  %v10400_v2 = vld [vmem:[%s10061_s13 + $0x50] sm:$0x1]  ;;  %v8646_v3 = vld [vmem:[%s10061_s13 + $0x48] sm:$0xe]  ;;  %9499 = vmatpush3.bf16.msra.mxu1 %v9670_v18 }
  0x55   : > { %1282 = vrot.lane.b32.xlu1 %v9633_v52, %s9942_s21  ;;  %v485_v14 = vsel %vm10143_vm5, %v480_v7, %v484_v60  ;;  %v858_v19 = vsel %vm10089_vm2, %v8485_v8, %v857_v9  ;;  %v859_v21 = vrot.slane %v857_v9, 4  ;;  %v2209_v31 = vshrl.u32 %v10344_v23, 16  ;;  %v9671_v4 = vld [vmem:[%s13766_s2 + $0x78] sm:$0xff]  }
  0x56   : > { %2790 = vrot.lane.b32.xlu0 %v8772_v12, %s9942_s21  ;;  %v495_v25 = vsel %vm10143_vm5, %v490_v13, %v494_v1  ;;  %v1985_v53 = vsel %vm10089_vm2, %v1983_v17, %v1984_v5  ;;  %v2212_v32 = vshll.u32 %v10344_v23, 16  ;;  %v2218_v40 = vshll.u32 %v10353_v10, 16  ;;  %v10397_v1 = vld [vmem:[%s10061_s13 + $0x4c] sm:$0xf]  ;;  %v9635_v5 = vld [vmem:[%s10061_s13 + $0x3c] sm:$0xff]   ;;  %9226 = vmatprep.subr.bf16.mxu0 %v9671_v4 }
  0x57   : > { %v8549_v37 = vcombine.low %v485_v14, %v495_v25  ;;  %v8741_v39 = vcombine.low %v1982_v16, %v1985_v53  ;;  %v861_v15 = vsel %vm10089_vm2, %v859_v21, %v860_v24  ;;  %v2211_v48 = vrot.slane %v2209_v31, 4  ;;  %v765_v8 = vld [vmem:[%s10061_s13 + $0x3c] sm:$0xe] }
  0x58   : > { %v8565_v46 = vcombine.low %v858_v19, %v861_v15  ;;  %v2214_v49 = vrot.slane %v2212_v32, 5  ;;  %v2222_v51 = vshrl.u32 %v10353_v10, 16  ;;  %v2220_v55 = vrot.slane %v2218_v40, 5  ;;  %v9673_v13 = vld [vmem:[%s13766_s2 + $0x38] sm:$0xff]  }
  0x59   : > { %1092 = vrot.lane.b32.xlu1 %v8549_v37, %s9943_s22  ;;  %v8757_v56 = vcombine.low %v10344_v23, %v10353_v10  ;;  %v2228_v60 = vshll.u32 %v8709_v33, 16  ;;  %v497_v61 = vshrl.u32 %v335_v36, 16  ;;  %v500_v63 = vshll.u32 %v335_v36, 16  ;;  %9227 = vmatpush3.bf16.msra.mxu0 %v9673_v13  ;;  %v8683_v37 = vld [vmem:[%s10061_s13 + $0x54] sm:$0xf] }
  0x5a   : > { %2600 = vrot.lane.b32.xlu0 %v8741_v39, %s9943_s22  ;;  %v2224_v52 = vrot.slane %v2222_v51, 4  ;;  %v2215_v62 = vor.u32 %v2214_v49, %v2211_v48  ;;  %v506_v0 = vshll.u32 %v10379_v41, 16  ;;  %v510_v6 = vshrl.u32 %v10379_v41, 16 }
  0x5b   : > { %v2230_v23 = vrot.slane %v2228_v60, 5  ;;  %v499_v57 = vrot.slane %v497_v61, 4  ;;  %v516_v7 = vshll.u32 %v10386_v54, 16  ;;  %v502_v11 = vrot.slane %v500_v63, 5 }
  0x5c   : > { %v2216_v9 = vrot.slane %v2215_v62, 4  ;;  %v2225_v10 = vor.u32 %v2224_v52, %v2220_v55  ;;  %v508_v12 = vrot.slane %v506_v0, 5  ;;  %v1571_v16 = vshll.u32 %v10193_v42, 16  ;;  %v337_v0 = vld [vmem:[%s10061_s13 + $0x48] sm:$0xf] }
  0x5d   : > { %v1589_v17 = vshrl.u32 %v10261_v27, 16  ;;  %1172 = vrot.lane.b32.xlu1 %v8565_v46, %s9941_s20  ;;  %v512_v14 = vrot.slane %v510_v6, 4  ;;  %v518_v19 = vrot.slane %v516_v7, 5  ;;  %v503_v25 = vor.u32 %v502_v11, %v499_v57  ;;  %v8684_v46 = vld [vmem:[%s10061_s13 + $0x58] sm:$0xf] }
  0x5e   : > { %2712 = vrot.lane.b32.xlu0 %v8757_v56, %s9941_s20  ;;  %v2221_v21 = vsel %vm10143_vm5, %v2216_v9, %v2220_v55  ;;  %v2226_v24 = vrot.slane %v2225_v10, 4  ;;  %v8662_v53 = vrot.slane %v8646_v3, 9  ;;  %v1988_v32 = vrot.slane %v10397_v1, 5  ;;  %v10442_v3 = vld [vmem:[%s10061_s13 + $0x4c] sm:$0xf] }
  0x5f   : > { %v513_v31 = vor.u32 %v512_v14, %v508_v12  ;;  %v1991_v33 = vrot.slane %v10400_v2, 5  ;;  %v8486_v36 = vrot.slane %v765_v8, 9  ;;  %v504_v15 = vrot.slane %v503_v25, 4  ;;  %v10447_v10 = vld [vmem:[%s10061_s13 + $0x50] sm:$0x1] }
  0x60   : > { %v2231_v39 = vsel %vm10143_vm5, %v2226_v24, %v2230_v23  ;;  %v864_v40 = vrot.slane %v10379_v41, 5  ;;  %v867_v43 = vrot.slane %v10386_v54, 5  ;;  %v1989_v51 = vsel %vm10089_vm2, %v8662_v53, %v1988_v32  ;;  %v8710_v54 = vld [vmem:[%s10061_s13 + $0x5c] sm:$0x1]  ;;  %v10454_v53 = vld [vmem:[%s10061_s13 + $0x58] sm:$0xf] }
  0x61   : > { %1284 = vrot.lane.b32.xlu1 %v9635_v5, %s9942_s21  ;;  %v8773_v48 = vcombine.low %v2221_v21, %v2231_v39  ;;  %v514_v49 = vrot.slane %v513_v31, 4  ;;  %v1990_v55 = vrot.slane %v1988_v32, 4  ;;  %v509_v56 = vsel %vm10143_vm5, %v504_v15, %v508_v12  ;;  %v10457_v31 = vld [vmem:[%s10061_s13 + $0x5c] sm:$0x1]  ;;  %v8647_v39 = vld [vmem:[%s10061_s13 + $0x54] sm:$0xe] }
  0x62   : > { %v865_v60 = vsel %vm10089_vm2, %v8486_v36, %v864_v40  ;;  %v866_v41 = vrot.slane %v864_v40, 4  ;;  %v2233_v61 = vshrl.u32 %v8683_v37, 16  ;;  %v2236_v62 = vshll.u32 %v8683_v37, 16 }
  0x63   : > { %2792 = vrot.lane.b32.xlu0 %v8773_v48, %s9942_s21  ;;  %v519_v18 = vsel %vm10143_vm5, %v514_v49, %v518_v19  ;;  %v1992_v52 = vsel %vm10089_vm2, %v1990_v55, %v1991_v33  ;;  %v2242_v63 = vshll.u32 %v8684_v46, 16  ;;  %v2246_v9 = vshrl.u32 %v8684_v46, 16  ;;  %v766_v48 = vld [vmem:[%s10061_s13 + $0x48] sm:$0xe] }
  0x64   : > { %v8550_v4 = vcombine.low %v509_v56, %v519_v18  ;;  %v8742_v5 = vcombine.low %v1989_v51, %v1992_v52  ;;  %v868_v23 = vsel %vm10089_vm2, %v866_v41, %v867_v43  ;;  %v2235_v57 = vrot.slane %v2233_v61, 4  ;;  %v9637_v55 = vld [vmem:[%s10061_s13 + $0x48] sm:$0xff]  }
  0x65   : > { %v8566_v6 = vcombine.low %v865_v60, %v868_v23  ;;  %v2238_v7 = vrot.slane %v2236_v62, 5  ;;  %v2244_v8 = vrot.slane %v2242_v63, 5  ;;  %v8758_v11 = vcombine.low %v8683_v37, %v8684_v46 }
  0x66   : > { %1094 = vrot.lane.b32.xlu1 %v8550_v4, %s9943_s22  ;;  %v2252_v12 = vshll.u32 %v8710_v54, 16  ;;  %v521_v13 = vshrl.u32 %v337_v0, 16  ;;  %v524_v14 = vshll.u32 %v337_v0, 16  ;;  %v2248_v19 = vrot.slane %v2246_v9, 4  ;;  %v8685_v4 = vld [vmem:[%s10061_s13 + $0x60] sm:$0xf] }
  0x67   : > { %2602 = vrot.lane.b32.xlu0 %v8742_v5, %s9943_s22  ;;  %v2239_v21 = vor.u32 %v2238_v7, %v2235_v57  ;;  %v530_v24 = vshll.u32 %v10442_v3, 16  ;;  %v534_v25 = vshrl.u32 %v10442_v3, 16  ;;  %v540_v37 = vshll.u32 %v10447_v10, 16  ;;  %v8686_v7 = vld [vmem:[%s10061_s13 + $0x64] sm:$0xf] }
  0x68   : > { %v2254_v32 = vrot.slane %v2252_v12, 5  ;;  %v523_v33 = vrot.slane %v521_v13, 4  ;;  %v526_v36 = vrot.slane %v524_v14, 5  ;;  %v2249_v40 = vor.u32 %v2248_v19, %v2244_v8  ;;  %v8711_v13 = vld [vmem:[%s10061_s13 + $0x68] sm:$0x1] }
  0x69   : > { %v2240_v15 = vrot.slane %v2239_v21, 4  ;;  %v532_v43 = vrot.slane %v530_v24, 5  ;;  %v536_v46 = vrot.slane %v534_v25, 4  ;;  %v542_v60 = vrot.slane %v540_v37, 5  ;;  %v339_v14 = vld [vmem:[%s10061_s13 + $0x54] sm:$0xf] }
  0x6a   : > { %1174 = vrot.lane.b32.xlu1 %v8566_v6, %s9941_s20  ;;  %v527_v56 = vor.u32 %v526_v36, %v523_v33  ;;  %v2250_v61 = vrot.slane %v2249_v40, 4  ;;  %v8663_v18 = vrot.slane %v8647_v39, 9  ;;  %v1995_v62 = vrot.slane %v10454_v53, 5  ;;  %v10489_v24 = vld [vmem:[%s10061_s13 + $0x58] sm:$0xf] }
  0x6b   : > { %2714 = vrot.lane.b32.xlu0 %v8758_v11, %s9941_s20  ;;  %v2245_v41 = vsel %vm10143_vm5, %v2240_v15, %v2244_v8  ;;  %v537_v54 = vor.u32 %v536_v46, %v532_v43  ;;  %v1998_v63 = vrot.slane %v10457_v31, 5  ;;  %v8487_v0 = vrot.slane %v766_v48, 9  ;;  %v10495_v37 = vld [vmem:[%s10061_s13 + $0x5c] sm:$0x1] }
  0x6c   : > { %v528_v52 = vrot.slane %v527_v56, 4  ;;  %v2255_v5 = vsel %vm10143_vm5, %v2250_v61, %v2254_v32  ;;  %v871_v57 = vrot.slane %v10442_v3, 5  ;;  %v874_v6 = vrot.slane %v10447_v10, 5 }
  0x6d   : > { %v538_v23 = vrot.slane %v537_v54, 4  ;;  %v8774_v8 = vcombine.low %v2245_v41, %v2255_v5  ;;  %v1996_v11 = vsel %vm10089_vm2, %v8663_v18, %v1995_v62  ;;  %v1997_v12 = vrot.slane %v1995_v62, 4  ;;  %v10501_v18 = vld [vmem:[%s10061_s13 + $0x64] sm:$0xf] }
  0x6e   : > { %1286 = vrot.lane.b32.xlu1 %v9637_v55, %s9942_s21  ;;  %v533_v9 = vsel %vm10143_vm5, %v528_v52, %v532_v43  ;;  %v872_v3 = vsel %vm10089_vm2, %v8487_v0, %v871_v57  ;;  %v873_v10 = vrot.slane %v871_v57, 4  ;;  %v2257_v21 = vshrl.u32 %v8685_v4, 16  ;;  %v8648_v52 = vld [vmem:[%s10061_s13 + $0x60] sm:$0xe]  ;;  %v9639_v57 = vld [vmem:[%s10061_s13 + $0x54] sm:$0xff]  }
  0x6f   : > { %v543_v19 = vsel %vm10143_vm5, %v538_v23, %v542_v60  ;;  %2794 = vrot.lane.b32.xlu0 %v8774_v8, %s9942_s21  ;;  %v1999_v32 = vsel %vm10089_vm2, %v1997_v12, %v1998_v63  ;;  %v2260_v33 = vshll.u32 %v8685_v4, 16  ;;  %v2266_v36 = vshll.u32 %v8686_v7, 16  ;;  %v10509_v23 = vld [vmem:[%s10061_s13 + $0x68] sm:$0x1] }
  0x70   : > { %v8551_v25 = vcombine.low %v533_v9, %v543_v19  ;;  %v8743_v39 = vcombine.low %v1996_v11, %v1999_v32  ;;  %v875_v15 = vsel %vm10089_vm2, %v873_v10, %v874_v6  ;;  %v2259_v40 = vrot.slane %v2257_v21, 4  ;;  %v10516_v19 = vld [vmem:[%s10061_s13 + $0x6c] sm:$0xf] }
  0x71   : > { %v2270_v43 = vshrl.u32 %v8686_v7, 16  ;;  %v8567_v46 = vcombine.low %v872_v3, %v875_v15  ;;  %v2262_v48 = vrot.slane %v2260_v33, 5  ;;  %v2268_v55 = vrot.slane %v2266_v36, 5 }
  0x72   : > { %1096 = vrot.lane.b32.xlu1 %v8551_v25, %s9943_s22  ;;  %v8759_v56 = vcombine.low %v8685_v4, %v8686_v7  ;;  %v2276_v41 = vshll.u32 %v8711_v13, 16  ;;  %v545_v61 = vshrl.u32 %v339_v14, 16  ;;  %v548_v54 = vshll.u32 %v339_v14, 16  ;;  %v767_v4 = vld [vmem:[%s10061_s13 + $0x54] sm:$0xe] }
  0x73   : > { %v2272_v60 = vrot.slane %v2270_v43, 4  ;;  %2604 = vrot.lane.b32.xlu0 %v8743_v39, %s9943_s22  ;;  %v2263_v62 = vor.u32 %v2262_v48, %v2259_v40  ;;  %v554_v63 = vshll.u32 %v10489_v24, 16  ;;  %v558_v0 = vshrl.u32 %v10489_v24, 16  ;;  %v8688_v25 = vld [vmem:[%s10061_s13 + $0x70] sm:$0xf] }
  0x74   : > { %v564_v5 = vshll.u32 %v10495_v37, 16  ;;  %v2278_v7 = vrot.slane %v2276_v41, 5  ;;  %v547_v8 = vrot.slane %v545_v61, 4  ;;  %v550_v9 = vrot.slane %v548_v54, 5  ;;  %v341_v61 = vld [vmem:[%s10061_s13 + $0x60] sm:$0xf] }
  0x75   : > { %v2273_v6 = vor.u32 %v2272_v60, %v2268_v55  ;;  %v2264_v12 = vrot.slane %v2263_v62, 4  ;;  %v556_v13 = vrot.slane %v554_v63, 5  ;;  %v560_v14 = vrot.slane %v558_v0, 4 }
  0x76   : > { %1176 = vrot.lane.b32.xlu1 %v8567_v46, %s9941_s20  ;;  %v551_v10 = vor.u32 %v550_v9, %v547_v8  ;;  %v566_v21 = vrot.slane %v564_v5, 5  ;;  %v8664_v36 = vrot.slane %v8648_v52, 9  ;;  %v2002_v39 = vrot.slane %v10501_v18, 5 }
  0x77   : > { %v2274_v3 = vrot.slane %v2273_v6, 4  ;;  %2716 = vrot.lane.b32.xlu0 %v8759_v56, %s9941_s20  ;;  %v2269_v32 = vsel %vm10143_vm5, %v2264_v12, %v2268_v55  ;;  %v561_v33 = vor.u32 %v560_v14, %v556_v13  ;;  %v2005_v43 = vrot.slane %v10509_v23, 5  ;;  %v8712_v55 = vld [vmem:[%s10061_s13 + $0x74] sm:$0x1]  ;;  %v342_v14 = vld [vmem:[%s10061_s13 + $0x64] sm:$0xf] }
  0x78   : > { %v552_v40 = vrot.slane %v551_v10, 4  ;;  %v8488_v46 = vrot.slane %v767_v4, 9  ;;  %v2003_v56 = vsel %vm10089_vm2, %v8664_v36, %v2002_v39  ;;  %v2004_v41 = vrot.slane %v2002_v39, 4 }
  0x79   : > { %v2279_v15 = vsel %vm10143_vm5, %v2274_v3, %v2278_v7  ;;  %v562_v60 = vrot.slane %v561_v33, 4  ;;  %v878_v52 = vrot.slane %v10489_v24, 5  ;;  %v881_v62 = vrot.slane %v10495_v37, 5 }
  0x7a   : > { %1288 = vrot.lane.b32.xlu1 %v9639_v57, %s9942_s21  ;;  %v8775_v48 = vcombine.low %v2269_v32, %v2279_v15  ;;  %v557_v54 = vsel %vm10143_vm5, %v552_v40, %v556_v13  ;;  %v2281_v63 = vshrl.u32 %v10516_v19, 16  ;;  %v2006_v5 = vsel %vm10089_vm2, %v2004_v41, %v2005_v43  ;;  %v365_v32 = vld [vmem:[%s10061_s13 + $0x68] sm:$0x1]  ;;  %v10552_v43 = vld [vmem:[%s10061_s13 + $0x70] sm:$0xf] }
  0x7b   : > { %v567_v0 = vsel %vm10143_vm5, %v562_v60, %v566_v21  ;;  %v2284_v4 = vshll.u32 %v10516_v19, 16  ;;  %v2290_v57 = vshll.u32 %v8688_v25, 16  ;;  %v8744_v7 = vcombine.low %v2003_v56, %v2006_v5  ;;  %v10555_v41 = vld [vmem:[%s10061_s13 + $0x74] sm:$0x1] }
  0x7c   : > { %2796 = vrot.lane.b32.xlu0 %v8775_v48, %s9942_s21  ;;  %v8552_v6 = vcombine.low %v557_v54, %v567_v0  ;;  %v879_v24 = vsel %vm10089_vm2, %v8488_v46, %v878_v52  ;;  %v880_v37 = vrot.slane %v878_v52, 4  ;;  %v2283_v8 = vrot.slane %v2281_v63, 4  ;;  %v768_v0 = vld [vmem:[%s10061_s13 + $0x60] sm:$0xe] }
  0x7d   : > { %v2286_v9 = vrot.slane %v2284_v4, 5  ;;  %v2292_v12 = vrot.slane %v2290_v57, 5  ;;  %v2294_v13 = vshrl.u32 %v8688_v25, 16  ;;  %v8760_v10 = vcombine.low %v10516_v19, %v8688_v25  ;;  %v9641_v19 = vld [vmem:[%s10061_s13 + $0x60] sm:$0xff]  }
  0x7e   : > { %1098 = vrot.lane.b32.xlu1 %v8552_v6, %s9943_s22  ;;  %v882_v3 = vsel %vm10089_vm2, %v880_v37, %v881_v62  ;;  %v2300_v21 = vshll.u32 %v8712_v55, 16  ;;  %v569_v33 = vshrl.u32 %v341_v61, 16  ;;  %v572_v40 = vshll.u32 %v341_v61, 16  ;;  %v8649_v62 = vld [vmem:[%s10061_s13 + $0x6c] sm:$0xe] }
  0x7f   : > { %v8568_v36 = vcombine.low %v879_v24, %v882_v3  ;;  %v2296_v39 = vrot.slane %v2294_v13, 4  ;;  %v2287_v15 = vor.u32 %v2286_v9, %v2283_v8  ;;  %v578_v60 = vshll.u32 %v342_v14, 16 }
  0x80   : > { %2606 = vrot.lane.b32.xlu0 %v8744_v7, %s9943_s22  ;;  %v2302_v46 = vrot.slane %v2300_v21, 5  ;;  %v571_v48 = vrot.slane %v569_v33, 4  ;;  %v582_v56 = vshrl.u32 %v342_v14, 16  ;;  %v574_v54 = vrot.slane %v572_v40, 5  ;;  %v10565_v7 = vld [vmem:[%s10061_s13 + $0x78] sm:$0xf] }
  0x81   : > { %v2288_v25 = vrot.slane %v2287_v15, 4  ;;  %v2297_v55 = vor.u32 %v2296_v39, %v2292_v12  ;;  %v588_v52 = vshll.u32 %v365_v32, 16  ;;  %v580_v63 = vrot.slane %v578_v60, 5  ;;  %v8690_v21 = vld [vmem:[%s10061_s13 + $0x7c] sm:$0xf] }
  0x82   : > { %1178 = vrot.lane.b32.xlu1 %v8568_v36, %s9941_s20  ;;  %v584_v61 = vrot.slane %v582_v56, 4  ;;  %v575_v57 = vor.u32 %v574_v54, %v571_v48  ;;  %v8665_v37 = vrot.slane %v8649_v62, 9  ;;  %v2009_v8 = vrot.slane %v10552_v43, 5  ;;  %v8713_v40 = vld [vmem:[%s10061_s13 + $0x80] sm:$0x1] }
  0x83   : > { %v2293_v5 = vsel %vm10143_vm5, %v2288_v25, %v2292_v12  ;;  %v2298_v4 = vrot.slane %v2297_v55, 4  ;;  %v590_v6 = vrot.slane %v588_v52, 5  ;;  %v2012_v9 = vrot.slane %v10555_v41, 5  ;;  %v343_v48 = vld [vmem:[%s10061_s13 + $0x6c] sm:$0xf] }
  0x84   : > { %2718 = vrot.lane.b32.xlu0 %v8760_v10, %s9941_s20  ;;  %v585_v24 = vor.u32 %v584_v61, %v580_v63  ;;  %v576_v3 = vrot.slane %v575_v57, 4  ;;  %v8489_v10 = vrot.slane %v768_v0, 9  ;;  %v885_v12 = vrot.slane %v342_v14, 5  ;;  %v10582_v25 = vld [vmem:[%s10061_s13 + $0x70] sm:$0xf] }
  0x85   : > { %v2303_v13 = vsel %vm10143_vm5, %v2298_v4, %v2302_v46  ;;  %v2010_v39 = vsel %vm10089_vm2, %v8665_v37, %v2009_v8  ;;  %v2011_v15 = vrot.slane %v2009_v8, 4  ;;  %v888_v14 = vrot.slane %v365_v32, 5  ;;  %v10592_v62 = vld [vmem:[%s10061_s13 + $0x74] sm:$0x1] }
  0x86   : > { %1290 = vrot.lane.b32.xlu1 %v9641_v19, %s9942_s21  ;;  %v8776_v33 = vcombine.low %v2293_v5, %v2303_v13  ;;  %v586_v36 = vrot.slane %v585_v24, 4  ;;  %v581_v60 = vsel %vm10143_vm5, %v576_v3, %v580_v63  ;;  %v886_v46 = vsel %vm10089_vm2, %v8489_v10, %v885_v12  ;;  %v8650_v13 = vld [vmem:[%s10061_s13 + $0x78] sm:$0xe] }
  0x87   : > { %v887_v56 = vrot.slane %v885_v12, 4  ;;  %v2013_v55 = vsel %vm10089_vm2, %v2011_v15, %v2012_v9  ;;  %v2305_v54 = vshrl.u32 %v10565_v7, 16  ;;  %v2308_v52 = vshll.u32 %v10565_v7, 16  ;;  %v769_v15 = vld [vmem:[%s10061_s13 + $0x6c] sm:$0xe] }
  0x88   : > { %2798 = vrot.lane.b32.xlu0 %v8776_v33, %s9942_s21  ;;  %v591_v19 = vsel %vm10143_vm5, %v586_v36, %v590_v6  ;;  %v8745_v61 = vcombine.low %v2010_v39, %v2013_v55  ;;  %v2314_v0 = vshll.u32 %v8690_v21, 16  ;;  %v2318_v6 = vshrl.u32 %v8690_v21, 16  ;;  %v10602_v36 = vld [vmem:[%s10061_s13 + $0x7c] sm:$0xf]  ;;  %v8622_v39 = vld [vmem:[%s10061_s13 + $0x80] sm:$0x1] }
  0x89   : > { %v8553_v63 = vcombine.low %v581_v60, %v591_v19  ;;  %v889_v32 = vsel %vm10089_vm2, %v887_v56, %v888_v14  ;;  %v2307_v4 = vrot.slane %v2305_v54, 4  ;;  %v2310_v57 = vrot.slane %v2308_v52, 5  ;;  %v8790_v54 = vld [vmem:[%s10061_s13 + $0x2c] sm:$0x1] }
  0x8a   : > { %v8569_v5 = vcombine.low %v886_v46, %v889_v32  ;;  %v2316_v24 = vrot.slane %v2314_v0, 5  ;;  %v8761_v37 = vcombine.low %v10565_v7, %v8690_v21  ;;  %v2324_v8 = vshll.u32 %v8713_v40, 16  ;;  %v9646_v40 = vld [vmem:[%s10061_s13 + $0x6c] sm:$0xff]  }
  0x8b   : > { %1100 = vrot.lane.b32.xlu1 %v8553_v63, %s9943_s22  ;;  %v593_v9 = vshrl.u32 %v343_v48, 16  ;;  %v2320_v3 = vrot.slane %v2318_v6, 4  ;;  %v2311_v10 = vor.u32 %v2310_v57, %v2307_v4  ;;  %v596_v12 = vshll.u32 %v343_v48, 16  ;;  %v10619_v6 = vld [vmem:[%s10061_s13 + $0x88] sm:$0xf] }
  0x8c   : > { %2608 = vrot.lane.b32.xlu0 %v8745_v61, %s9943_s22  ;;  %v602_v33 = vshll.u32 %v10582_v25, 16  ;;  %v2326_v60 = vrot.slane %v2324_v8, 5  ;;  %v606_v7 = vshrl.u32 %v10582_v25, 16  ;;  %v612_v21 = vshll.u32 %v10592_v62, 16  ;;  %v10613_v61 = vld [vmem:[%s10061_s13 + $0x84] sm:$0xf] }
  0x8d   : > { %v595_v46 = vrot.slane %v593_v9, 4  ;;  %v2312_v56 = vrot.slane %v2311_v10, 4  ;;  %v2321_v14 = vor.u32 %v2320_v3, %v2316_v24  ;;  %v598_v19 = vrot.slane %v596_v12, 5 }
  0x8e   : > { %v604_v55 = vrot.slane %v602_v33, 5  ;;  %v608_v52 = vrot.slane %v606_v7, 4  ;;  %v614_v63 = vrot.slane %v612_v21, 5  ;;  %v8666_v57 = vrot.slane %v8650_v13, 9 }
  0x8f   : > { %1180 = vrot.lane.b32.xlu1 %v8569_v5, %s9941_s20  ;;  %v2317_v32 = vsel %vm10143_vm5, %v2312_v56, %v2316_v24  ;;  %v2322_v0 = vrot.slane %v2321_v14, 4  ;;  %v599_v4 = vor.u32 %v598_v19, %v595_v46  ;;  %v2016_v9 = vrot.slane %v10602_v36, 5 }
  0x90   : > { %2720 = vrot.lane.b32.xlu0 %v8761_v37, %s9941_s20  ;;  %v609_v8 = vor.u32 %v608_v52, %v604_v55  ;;  %v2019_v3 = vrot.slane %v8622_v39, 5  ;;  %v8490_v10 = vrot.slane %v769_v15, 9  ;;  %v892_v33 = vrot.slane %v10582_v25, 5 }
  0x91   : > { %v2327_v5 = vsel %vm10143_vm5, %v2322_v0, %v2326_v60  ;;  %v600_v12 = vrot.slane %v599_v4, 4  ;;  %v895_v37 = vrot.slane %v10592_v62, 5  ;;  %v10626_v7 = vpop.permute.xlu1 %2704  ;;  %v2017_v46 = vsel %vm10089_vm2, %v8666_v57, %v2016_v9  ;;  %v8593_v57 = vld [vmem:[%s10061_s13 + $0xc] sm:$0xf] }
  0x92   : > { %v8777_v24 = vcombine.low %v2317_v32, %v2327_v5  ;;  %v610_v13 = vrot.slane %v609_v8, 4  ;;  %v2018_v39 = vrot.slane %v2016_v9, 4  ;;  %v893_v25 = vsel %vm10089_vm2, %v8490_v10, %v892_v33  ;;  %v10636_v21 = vpop.permute.xlu0 %2706 }
  0x93   : > { %1292 = vrot.lane.b32.xlu1 %v9646_v40, %s9942_s21  ;;  %v605_v15 = vsel %vm10143_vm5, %v600_v12, %v604_v55  ;;  %v894_v60 = vrot.slane %v892_v33, 4  ;;  %v2329_v62 = vshrl.u32 %v10613_v61, 16  ;;  %v2332_v14 = vshll.u32 %v10613_v61, 16  ;;  %v8714_v55 = vld [vmem:[%s10061_s13 + $0x8c] sm:$0x1] }
  0x94   : > { %2800 = vrot.lane.b32.xlu0 %v8777_v24, %s9942_s21  ;;  %v615_v40 = vsel %vm10143_vm5, %v610_v13, %v614_v63  ;;  %v2020_v56 = vsel %vm10089_vm2, %v2018_v39, %v2019_v3  ;;  %v2338_v19 = vshll.u32 %v10619_v6, 16  ;;  %v2342_v10 = vshrl.u32 %v10619_v6, 16  ;;  %v345_v3 = vld [vmem:[%s10061_s13 + $0x78] sm:$0xf] }
  0x95   : > { %v8554_v52 = vcombine.low %v605_v15, %v615_v40  ;;  %v8746_v32 = vcombine.low %v2017_v46, %v2020_v56  ;;  %v896_v0 = vsel %vm10089_vm2, %v894_v60, %v895_v37  ;;  %v2331_v4 = vrot.slane %v2329_v62, 4  ;;  %v10655_v24 = vpop.permute.xlu1 %1276  ;;  %v10663_v60 = vld [vmem:[%s10061_s13 + $0x7c] sm:$0xf] }
  0x96   : > { %v2334_v9 = vrot.slane %v2332_v14, 5  ;;  %v2340_v63 = vrot.slane %v2338_v19, 5  ;;  %v8570_v5 = vcombine.low %v893_v25, %v896_v0  ;;  %v8762_v12 = vcombine.low %v10613_v61, %v10619_v6  ;;  %v9757_v61 = vld [vmem:[%s10061_s13 + $0x10] sm:$0xf] }
  0x97   : > { %1102 = vrot.lane.b32.xlu1 %v8554_v52, %s9943_s22  ;;  %v2348_v33 = vshll.u32 %v8714_v55, 16  ;;  %v10659_v37 = vrot.slane %v1523_v44, 5  ;;  %v2344_v13 = vrot.slane %v2342_v10, 4  ;;  %v1504_v39 = vshrl.u32 %v8593_v57, 16  ;;  %v10671_v55 = vld [vmem:[%s10061_s13 + $0x80] sm:$0x1] }
  0x98   : > { %2610 = vrot.lane.b32.xlu0 %v8746_v32, %s9943_s22  ;;  %v2335_v46 = vor.u32 %v2334_v9, %v2331_v4  ;;  %v1507_v15 = vshll.u32 %v8593_v57, 16  ;;  %v1513_v6 = vshll.u32 %v9757_v61, 16  ;;  %v1519_v29 = vrot.slane %v1517_v22, 4  ;;  %v9657_v52 = vld [vmem:[%s10061_s13 + $0x78] sm:$0xff]  }
  0x99   : > { %v2350_v25 = vrot.slane %v2348_v33, 5  ;;  %v617_v44 = vshrl.u32 %v345_v3, 16  ;;  %v2345_v56 = vor.u32 %v2344_v13, %v2340_v63  ;;  %v1506_v14 = vrot.slane %v1504_v39, 4  ;;  %v8624_v33 = vld [vmem:[%s10061_s13 + $0x88] sm:$0xf] }
  0x9a   : > { %v10665_v62 = vpop.permute.xlu0 %2592  ;;  %v2336_v40 = vrot.slane %v2335_v46, 4  ;;  %v1509_v19 = vrot.slane %v1507_v15, 5  ;;  %v1515_v32 = vrot.slane %v1513_v6, 5  ;;  %v620_v4 = vshll.u32 %v345_v3, 16  ;;  %v8651_v13 = vld [vmem:[%s10061_s13 + $0x84] sm:$0xe] }
  0x9b   : > { %1182 = vrot.lane.b32.xlu1 %v8570_v5, %s9941_s20  ;;  %v619_v0 = vrot.slane %v617_v44, 4  ;;  %v626_v57 = vshll.u32 %v10663_v60, 16  ;;  %v2346_v22 = vrot.slane %v2345_v56, 4  ;;  %v630_v10 = vshrl.u32 %v10663_v60, 16 }
  0x9c   : > { %2722 = vrot.lane.b32.xlu0 %v8762_v12, %s9941_s20  ;;  %v2341_v26 = vsel %vm10143_vm5, %v2336_v40, %v2340_v63  ;;  %v1510_v9 = vor.u32 %v1509_v19, %v1506_v14  ;;  %v1520_v5 = vor.u32 %v1519_v29, %v1515_v32  ;;  %v622_v46 = vrot.slane %v620_v4, 5  ;;  %v8625_v63 = vld [vmem:[%s10061_s13 + $0x8c] sm:$0x1]  ;;  %v8596_v29 = vld [vmem:[%s10061_s13 + $0x18] sm:$0xf] }
  0x9d   : > { %v628_v39 = vrot.slane %v626_v57, 5  ;;  %v636_v3 = vshll.u32 %v10671_v55, 16  ;;  %v10683_v15 = vpop.permute.xlu1 %1164  ;;  %v2351_v12 = vsel %vm10143_vm5, %v2346_v22, %v2350_v25  ;;  %v632_v6 = vrot.slane %v630_v10, 4 }
  0x9e   : > { %v1511_v61 = vrot.slane %v1510_v9, 4  ;;  %v8778_v40 = vcombine.low %v2341_v26, %v2351_v12  ;;  %v1521_v56 = vrot.slane %v1520_v5, 4  ;;  %v623_v14 = vor.u32 %v622_v46, %v619_v0 }
  0x9f   : > { %1294 = vrot.lane.b32.xlu1 %v9657_v52, %s9942_s21  ;;  %v633_v57 = vor.u32 %v632_v6, %v628_v39  ;;  %v638_v8 = vrot.slane %v636_v3, 5  ;;  %v8667_v25 = vrot.slane %v8651_v13, 9  ;;  %v2023_v22 = vrot.slane %v8624_v33, 5  ;;  %v9758_v3 = vld [vmem:[%s10061_s13 + $0x1c] sm:$0xf] }
  0xa0   : > { %v10691_v19 = vpop.permute.xlu0 %2594  ;;  %v1516_v4 = vsel %vm10143_vm5, %v1511_v61, %v1515_v32  ;;  %2802 = vrot.lane.b32.xlu0 %v8778_v40, %s9942_s21  ;;  %v1526_v52 = vsel %vm10143_vm5, %v1521_v56, %v10659_v37  ;;  %v624_v26 = vrot.slane %v623_v14, 4  ;;  %v2026_v0 = vrot.slane %v8625_v63, 5  ;;  %v770_v61 = vld [vmem:[%s10061_s13 + $0x78] sm:$0xe]  ;;  %v8693_v56 = vld [vmem:[%s10061_s13 + $0x90] sm:$0xf] }
  0xa1   : > { %v634_v9 = vrot.slane %v633_v57, 4  ;;  %v1528_v10 = vshrl.u32 %v8596_v29, 16  ;;  %v1531_v5 = vshll.u32 %v8596_v29, 16  ;;  %v2024_v13 = vsel %vm10089_vm2, %v8667_v25, %v2023_v22  ;;  %v10705_v37 = vpop.permute.xlu1 %1166  ;;  %v8694_v25 = vld [vmem:[%s10061_s13 + $0x94] sm:$0xf] }
  0xa2   : > { %v629_v32 = vsel %vm10143_vm5, %v624_v26, %v628_v39  ;;  %v2025_v46 = vrot.slane %v2023_v22, 4  ;;  %v1537_v12 = vshll.u32 %v9758_v3, 16  ;;  %v8721_v33 = vcombine.low %v1516_v4, %v1526_v52 }
  0xa3   : > { %v639_v6 = vsel %vm10143_vm5, %v634_v9, %v638_v8  ;;  %v1530_v63 = vrot.slane %v1528_v10, 4  ;;  %v1533_v40 = vrot.slane %v1531_v5, 5  ;;  %v1543_v57 = vrot.slane %v1541_v30, 4 }
  0xa4   : > { %v8555_v14 = vcombine.low %v629_v32, %v639_v6  ;;  %v2027_v39 = vsel %vm10089_vm2, %v2025_v46, %v2026_v0  ;;  %v1539_v29 = vrot.slane %v1537_v12, 5  ;;  %v1549_v4 = vrot.slane %v1547_v58, 5  ;;  %v8715_v12 = vld [vmem:[%s10061_s13 + $0x98] sm:$0x1] }
  0xa5   : > { %v8747_v22 = vcombine.low %v2024_v13, %v2027_v39  ;;  %v1534_v3 = vor.u32 %v1533_v40, %v1530_v63  ;;  %v8491_v8 = vrot.slane %v770_v61, 9  ;;  %v899_v9 = vrot.slane %v10663_v60, 5 }
  0xa6   : > { %1104 = vrot.lane.b32.xlu1 %v8555_v14, %s9943_s22  ;;  %v1544_v52 = vor.u32 %v1543_v57, %v1539_v29  ;;  %v902_v0 = vrot.slane %v10671_v55, 5  ;;  %v2353_v10 = vshrl.u32 %v8693_v56, 16  ;;  %v2356_v30 = vshll.u32 %v8693_v56, 16 }
  0xa7   : > { %v1085_v26 = vpop.permute.xlu0 %1084  ;;  %2612 = vrot.lane.b32.xlu0 %v8747_v22, %s9943_s22  ;;  %v1535_v45 = vrot.slane %v1534_v3, 4  ;;  %v2362_v5 = vshll.u32 %v8694_v25, 16  ;;  %v2366_v32 = vshrl.u32 %v8694_v25, 16  ;;  %v900_v58 = vsel %vm10089_vm2, %v8491_v8, %v899_v9  ;;  %v9759_v22 = vld [vmem:[%s10061_s13 + $0x4] sm:$0xf] }
  0xa8   : > { %v1545_v50 = vrot.slane %v1544_v52, 4  ;;  %v901_v13 = vrot.slane %v899_v9, 4  ;;  %v2355_v46 = vrot.slane %v2353_v10, 4  ;;  %v2358_v6 = vrot.slane %v2356_v30, 5  ;;  %v9760_v3 = vld [vmem:[%s10061_s13] sm:$0xf] }
  0xa9   : > { %v1540_v61 = vsel %vm10143_vm5, %v1535_v45, %v1539_v29  ;;  %v2364_v63 = vrot.slane %v2362_v5, 5  ;;  %v2368_v40 = vrot.slane %v2366_v32, 4  ;;  %v8763_v57 = vcombine.low %v8693_v56, %v8694_v25  ;;  %v9669_v29 = vld [vmem:[%s10061_s13 + $0x84] sm:$0xff]   ;;  %v8785_v30 = vld [vmem:[%s10061_s13 + $0x18] sm:$0xe] }
  0xaa   : > { %v1550_v14 = vsel %vm10143_vm5, %v1545_v50, %v1549_v4  ;;  %v903_v39 = vsel %vm10089_vm2, %v901_v13, %v902_v0  ;;  %v8529_v8 = vcombine.low %v9760_v3, %v9759_v22  ;;  %v2359_v10 = vor.u32 %v2358_v6, %v2355_v46  ;;  %v8786_v5 = vld [vmem:[%s10061_s13 + $0x1c] sm:$0xf]  ;;  %v8787_v32 = vld [vmem:[%s10061_s13 + $0x20] sm:$0x1]  ;;  %v347_v50 = vld [vmem:[%s10061_s13 + $0x84] sm:$0xf] }
  0xab   : > { %v10724_v60 = vpop.permute.xlu1 %1086  ;;  %v10726_v55 = vpop.permute.xlu0 %2784  ;;  %v8571_v9 = vcombine.low %v900_v58, %v903_v39  ;;  %v2369_v45 = vor.u32 %v2368_v40, %v2364_v63  ;;  %v10743_v56 = vsel %vm1308_vm6, %v8721_v33, %v10665_v62  ;;  %v8722_v25 = vcombine.low %v1540_v61, %v1550_v14  ;;  %2724 = vrot.lane.b32.xlu0 %v8763_v57, %s9941_s20  ;;  %v10757_v33 = vld [vmem:[%s10061_s13 + $0x10] sm:$0xf]  ;;  %v10760_v61 = vld [vmem:[%s10061_s13 + $0xc] sm:$0xf]  ;;  %v10765_v40 = vld [vmem:[%s10061_s13 + $0x88] sm:$0xf] }
  0xac   : > { %v2372_v0 = vshll.u32 %v8715_v12, 16  ;;  %v10754_v46 = vsel %vm1308_vm6, %v8529_v8, %v1085_v26  ;;  %v2360_v6 = vrot.slane %v2359_v10, 4  ;;  %v8530_v12 = vcombine.low %v10760_v61, %v10757_v33  ;;  %v10768_v14 = vld [vmem:[%s10061_s13 + $0x8c] sm:$0x1]  ;;  %v8788_v22 = vld [vmem:[%s10061_s13 + $0x24] sm:$0xe] }
  0xad   : > { %1184 = vrot.lane.b32.xlu1 %v8571_v9, %s9941_s20  ;;  %v2370_v62 = vrot.slane %v2369_v45, 4  ;;  %v8833_v57 = vrot.slane %v8785_v30, 9  ;;  %v3058_v26 = vrot.slane %v8786_v5, 5  ;;  %v3061_v8 = vrot.slane %v8787_v32, 5  ;;  %v8789_v45 = vld [vmem:[%s10061_s13 + $0x28] sm:$0xf] }
  0xae   : > { %v2374_v39 = vrot.slane %v2372_v0, 5  ;;  %v2365_v3 = vsel %vm10143_vm5, %v2360_v6, %v2364_v63  ;;  %v641_v9 = vshrl.u32 %v347_v50, 16  ;;  %v644_v10 = vshll.u32 %v347_v50, 16  ;;  %v9676_v33 = vld [vmem:[%s10061_s13 + $0x90] sm:$0xff]  }
  0xaf   : > { %v10748_v58 = vpop.permute.xlu1 %1278  ;;  %v10750_v13 = vpop.permute.xlu0 %2786  ;;  %v3059_v52 = vsel %vm10089_vm2, %v8833_v57, %v3058_v26  ;;  %v3060_v44 = vrot.slane %v3058_v26, 4  ;;  %v650_v0 = vshll.u32 %v10765_v40, 16  ;;  %v654_v6 = vshrl.u32 %v10765_v40, 16 }
  0xb0   : > { %v2375_v4 = vsel %vm10143_vm5, %v2370_v62, %v2374_v39  ;;  %v643_v32 = vrot.slane %v641_v9, 4  ;;  %v646_v50 = vrot.slane %v644_v10, 5  ;;  %v660_v57 = vshll.u32 %v10768_v14, 16 }
  0xb1   : > { %1296 = vrot.lane.b32.xlu1 %v9669_v29, %s9942_s21  ;;  %v8779_v63 = vcombine.low %v2365_v3, %v2375_v4  ;;  %v3062_v62 = vsel %vm10089_vm2, %v3060_v44, %v3061_v8  ;;  %v652_v39 = vrot.slane %v650_v0, 5  ;;  %v8834_v26 = vrot.slane %v8788_v22, 9  ;;  %v8627_v29 = vld [vmem:[%s10061_s13 + $0x94] sm:$0xf]  ;;  %v8652_v4 = vld [vmem:[%s10061_s13 + $0x90] sm:$0xe] }
  0xb2   : > { %v8849_v48 = vcombine.low %v3059_v52, %v3062_v62  ;;  %v647_v11 = vor.u32 %v646_v50, %v643_v32  ;;  %v656_v51 = vrot.slane %v654_v6, 4  ;;  %v3065_v49 = vrot.slane %v8789_v45, 5  ;;  %v8628_v44 = vld [vmem:[%s10061_s13 + $0x98] sm:$0x1]  ;;  %v771_v6 = vld [vmem:[%s10061_s13 + $0x84] sm:$0xe] }
  0xb3   : > { %v10780_v30 = vpop.permute.xlu1 %1088  ;;  %v10782_v5 = vpop.permute.xlu0 %2596  ;;  %2804 = vrot.lane.b32.xlu0 %v8779_v63, %s9942_s21  ;;  %v2821_v3 = vsel %vm1308_vm6, %v8722_v25, %v10691_v19  ;;  %v662_v9 = vrot.slane %v660_v57, 5  ;;  %v3068_v10 = vrot.slane %v8790_v54, 5  ;;  %v8668_v19 = vrot.slane %v8652_v4, 9 }
  0xb4   : > { %v3218_v22 = vsel %vm1308_vm6, %v8849_v48, 0  ;;  %v648_v52 = vrot.slane %v647_v11, 4  ;;  %v657_v63 = vor.u32 %v656_v51, %v652_v39  ;;  %v3066_v45 = vsel %vm10089_vm2, %v8834_v26, %v3065_v49 }
  0xb5   : > { %v3249_v32 = vsel %vm1357_vm7, %v3218_v22, 0  ;;  %v3067_v50 = vrot.slane %v3065_v49, 4  ;;  %v2030_v25 = vrot.slane %v8627_v29, 5  ;;  %v2033_v57 = vrot.slane %v8628_v44, 5  ;;  %v8695_v29 = vld [vmem:[%s10061_s13 + $0x9c] sm:$0xf] }
  0xb6   : > { %9500 = vmatprep.mubr.msk.bf16.mxu1 %vm1390_vm8, %v3249_v32  ;;  %v653_v54 = vsel %vm10143_vm5, %v648_v52, %v652_v39  ;;  %v658_v62 = vrot.slane %v657_v63, 4  ;;  %v2865_v51 = vsel %vm1357_vm7, %v10743_v56, %v10626_v7  ;;  %v1359_v56 = vsel %vm1357_vm7, %v10754_v46, %v10683_v15  ;;  %v8696_v32 = vld [vmem:[%s10061_s13 + $0xa0] sm:$0xf] }
  0xb7   : > { %v10795_v8 = vpop.permute.xlu1 %1168  ;;  %v10797_v0 = vpop.permute.xlu0 %2708  ;;  %v3069_v11 = vsel %vm10089_vm2, %v3067_v50, %v3068_v10  ;;  %v2031_v49 = vsel %vm10089_vm2, %v8668_v19, %v2030_v25  ;;  %v2032_v48 = vrot.slane %v2030_v25, 4  ;;  %v2897_v26 = vsel %vm1390_vm8, %v2865_v51, %v10726_v55 }
  0xb8   : > { %v663_v44 = vsel %vm10143_vm5, %v658_v62, %v662_v9  ;;  %v8850_v7 = vcombine.low %v3066_v45, %v3069_v11  ;;  %3707 = vmatprep.mubr.bf16.mxu0 %v2897_v26  ;;  %v8492_v10 = vrot.slane %v771_v6, 9  ;;  %v1392_v52 = vsel %vm1390_vm8, %v1359_v56, %v10655_v24  ;;  %v9763_v26 = vld [vmem:[%s10061_s13 + $0x18] sm:$0xf] }
  0xb9   : > { %v8556_v22 = vcombine.low %v653_v54, %v663_v44  ;;  %v2034_v55 = vsel %vm10089_vm2, %v2032_v48, %v2033_v57  ;;  %v906_v63 = vrot.slane %v10765_v40, 5  ;;  %3708 = vmatmul.mubr.bf16.vlgmr.msra.gmra.mrb[0].mxu0 %v1392_v52  ;;  %v909_v50 = vrot.slane %v10768_v14, 5  ;;  %v8599_v40 = vld [vmem:[%s10061_s13 + $0x24] sm:$0xf]  ;;  %v9764_v44 = vld [vmem:[%s10061_s13 + $0x1c] sm:$0xf] }
  0xba   : > { %v3220_v9 = vsel %vm1308_vm6, %v8850_v7, 0  ;;  %v8748_v45 = vcombine.low %v2031_v49, %v2034_v55  ;;  %v2377_v19 = vshrl.u32 %v8695_v29, 16  ;;  %v2380_v25 = vshll.u32 %v8695_v29, 16  ;;  %v8716_v52 = vld [vmem:[%s10061_s13 + $0xa4] sm:$0x1] }
  0xbb   : > { %v10817_v4 = vpop.permute.xlu1 %1280  ;;  %v10819_v39 = vpop.permute.xlu0 %2788  ;;  %1106 = vrot.lane.b32.xlu1 %v8556_v22, %s9943_s22  ;;  %v3250_v15 = vsel %vm1357_vm7, %v3220_v9, 0  ;;  %v907_v46 = vsel %vm10089_vm2, %v8492_v10, %v906_v63  ;;  %v908_v24 = vrot.slane %v906_v63, 4  ;;  %v2386_v62 = vshll.u32 %v8696_v32, 16  ;;  %v9765_v63 = vld [vmem:[%s10061_s13 + $0x28] sm:$0xf] }
  0xbc   : > { %9501 = vmatmul.mubr.msk.bf16.vlgmr.msra.gmra.mrb[0].mxu1 %vm1390_vm8, %v3250_v15  ;;  %2614 = vrot.lane.b32.xlu0 %v8748_v45, %s9943_s22  ;;  %v2379_v14 = vrot.slane %v2377_v19, 4  ;;  %v2390_v57 = vshrl.u32 %v8696_v32, 16  ;;  %v8764_v51 = vcombine.low %v8695_v29, %v8696_v32  ;;  %v2382_v49 = vrot.slane %v2380_v25, 5  ;;  %v10873_v25 = vld [vmem:[%s10061_s13 + $0x94] sm:$0xf] }
  0xbd   : > { %v910_v11 = vsel %vm10089_vm2, %v908_v24, %v909_v50  ;;  %v2867_v48 = vsel %vm1357_vm7, %v2821_v3, %v10636_v21  ;;  %v8531_v7 = vcombine.low %v9763_v26, %v9764_v44  ;;  %v2388_v10 = vrot.slane %v2386_v62, 5  ;;  %v349_v50 = vld [vmem:[%s10061_s13 + $0x90] sm:$0xf]  ;;  %v8630_v26 = vld [vmem:[%s10061_s13 + $0xa0] sm:$0xf] }
  0xbe   : > { %v8572_v56 = vcombine.low %v907_v46, %v910_v11  ;;  %v2392_v22 = vrot.slane %v2390_v57, 4  ;;  %v2900_v55 = vsel %vm1390_vm8, %v2867_v48, %v10750_v13  ;;  %v1314_v29 = vsel %vm1308_vm6, %v8530_v12, %v10724_v60  ;;  %v10882_v11 = vld [vmem:[%s10061_s13 + $0x98] sm:$0x1] }
  0xbf   : > { %v10839_v6 = vpop.permute.xlu1 %1090  ;;  %v10841_v54 = vpop.permute.xlu0 %2598  ;;  %3715 = vmatprep.mubr.bf16.mxu0 %v2900_v55  ;;  %v1552_v21 = vshrl.u32 %v8599_v40, 16  ;;  %v1555_v3 = vshll.u32 %v8599_v40, 16  ;;  %v1561_v32 = vshll.u32 %v9765_v63, 16  ;;  %v1317_v13 = vsel %vm1308_vm6, %v8531_v7, %v10780_v30 }
  0xc0   : > { %1186 = vrot.lane.b32.xlu1 %v8572_v56, %s9941_s20  ;;  %2726 = vrot.lane.b32.xlu0 %v8764_v51, %s9941_s20  ;;  %v1567_v60 = vrot.slane %v1565_v59, 4  ;;  %v2383_v61 = vor.u32 %v2382_v49, %v2379_v14  ;;  %v2393_v12 = vor.u32 %v2392_v22, %v2388_v10  ;;  %v2396_v24 = vshll.u32 %v8716_v52, 16 }
  0xc1   : > { %v1554_v19 = vrot.slane %v1552_v21, 4  ;;  %v1557_v15 = vrot.slane %v1555_v3, 5  ;;  %v1563_v46 = vrot.slane %v1561_v32, 5  ;;  %v1573_v40 = vrot.slane %v1571_v16, 5  ;;  %v8653_v21 = vld [vmem:[%s10061_s13 + $0x9c] sm:$0xe] }
  0xc2   : > { %v2384_v62 = vrot.slane %v2383_v61, 4  ;;  %v2394_v30 = vrot.slane %v2393_v12, 4  ;;  %v1361_v20 = vsel %vm1357_vm7, %v1314_v29, %v10705_v37  ;;  %v2398_v57 = vrot.slane %v2396_v24, 5  ;;  %v772_v61 = vld [vmem:[%s10061_s13 + $0x90] sm:$0xe] }
  0xc3   : > { %v10860_v9 = vpop.permute.xlu1 %1170  ;;  %v10862_v45 = vpop.permute.xlu0 %2710  ;;  %v1558_v59 = vor.u32 %v1557_v15, %v1554_v19  ;;  %v1568_v14 = vor.u32 %v1567_v60, %v1563_v46  ;;  %v1395_v51 = vsel %vm1390_vm8, %v1361_v20, %v10748_v58  ;;  %v665_v16 = vshrl.u32 %v349_v50, 16  ;;  %v8791_v24 = vld [vmem:[%s10061_s13 + $0x30] sm:$0xe] }
  0xc4   : > { %1298 = vrot.lane.b32.xlu1 %v9676_v33, %s9942_s21  ;;  %v2389_v42 = vsel %vm10143_vm5, %v2384_v62, %v2388_v10  ;;  %3716 = vmatmul.mubr.bf16.gmra.mrb[4].mxu0 %v1395_v51  ;;  %v668_v48 = vshll.u32 %v349_v50, 16  ;;  %v674_v37 = vshll.u32 %v10873_v25, 16  ;;  %v2399_v56 = vsel %vm10143_vm5, %v2394_v30, %v2398_v57  ;;  %v8631_v33 = vld [vmem:[%s10061_s13 + $0xa4] sm:$0x1] }
  0xc5   : > { %v1559_v58 = vrot.slane %v1558_v59, 4  ;;  %v1569_v7 = vrot.slane %v1568_v14, 4  ;;  %v678_v22 = vshrl.u32 %v10873_v25, 16  ;;  %v8780_v55 = vcombine.low %v2389_v42, %v2399_v56  ;;  %v8792_v14 = vld [vmem:[%s10061_s13 + $0x34] sm:$0xf] }
  0xc6   : > { %v667_v52 = vrot.slane %v665_v16, 4  ;;  %v670_v10 = vrot.slane %v668_v48, 5  ;;  %v676_v29 = vrot.slane %v674_v37, 5  ;;  %v684_v60 = vshll.u32 %v10882_v11, 16  ;;  %v8793_v48 = vld [vmem:[%s10061_s13 + $0x38] sm:$0x1] }
  0xc7   : > { %v10884_v49 = vpop.permute.xlu1 %1282  ;;  %v1564_v3 = vsel %vm10143_vm5, %v1559_v58, %v1563_v46  ;;  %v1574_v63 = vsel %vm10143_vm5, %v1569_v7, %v1573_v40  ;;  %v680_v32 = vrot.slane %v678_v22, 4  ;;  %v1709_v50 = vshrl.u32 %v10552_v43, 16  ;;  %2806 = vrot.lane.b32.xlu0 %v8780_v55, %s9942_s21  ;;  %v8697_v55 = vld [vmem:[%s10061_s13 + $0xa8] sm:$0xf] }
  0xc8   : > { %v10891_v44 = vpop.permute.xlu0 %2790  ;;  %v8723_v19 = vcombine.low %v1564_v3, %v1574_v63  ;;  %v10910_v15 = vsel %vm1357_vm7, %v1317_v13, %v10795_v8  ;;  %v671_v46 = vor.u32 %v670_v10, %v667_v52  ;;  %v686_v30 = vrot.slane %v684_v60, 5  ;;  %v8698_v63 = vld [vmem:[%s10061_s13 + $0xac] sm:$0xf] }
  0xc9   : > { %v681_v62 = vor.u32 %v680_v32, %v676_v29  ;;  %v8669_v20 = vrot.slane %v8653_v21, 9  ;;  %v2037_v59 = vrot.slane %v8630_v26, 5  ;;  %v2040_v42 = vrot.slane %v8631_v33, 5 }
  0xca   : > { %v2824_v57 = vsel %vm1308_vm6, %v8723_v19, %v10782_v5  ;;  %v672_v51 = vrot.slane %v671_v46, 4  ;;  %v8493_v16 = vrot.slane %v772_v61, 9  ;;  %v913_v5 = vrot.slane %v10873_v25, 5  ;;  %v8794_v46 = vld [vmem:[%s10061_s13 + $0x3c] sm:$0xe] }
  0xcb   : > { %v10904_v12 = vpop.permute.xlu1 %1092  ;;  %v2869_v8 = vsel %vm1357_vm7, %v2824_v57, %v10797_v0  ;;  %v682_v13 = vrot.slane %v681_v62, 4  ;;  %v2038_v37 = vsel %vm10089_vm2, %v8669_v20, %v2037_v59  ;;  %v2039_v58 = vrot.slane %v2037_v59, 4  ;;  %v8796_v57 = vld [vmem:[%s10061_s13 + $0x44] sm:$0x1] }
  0xcc   : > { %v10913_v40 = vpop.permute.xlu0 %2600  ;;  %v677_v26 = vsel %vm10143_vm5, %v672_v51, %v676_v29  ;;  %v916_v56 = vrot.slane %v10882_v11, 5  ;;  %v8835_v22 = vrot.slane %v8791_v24, 9  ;;  %v3072_v21 = vrot.slane %v8792_v14, 5  ;;  %v8795_v14 = vld [vmem:[%s10061_s13 + $0x40] sm:$0xf] }
  0xcd   : > { %v687_v0 = vsel %vm10143_vm5, %v682_v13, %v686_v30  ;;  %v2041_v10 = vsel %vm10089_vm2, %v2039_v58, %v2040_v42  ;;  %v3075_v3 = vrot.slane %v8793_v48, 5  ;;  %v914_v25 = vsel %vm10089_vm2, %v8493_v16, %v913_v5  ;;  %v8602_v13 = vld [vmem:[%s10061_s13 + $0x30] sm:$0xf] }
  0xce   : > { %v8557_v32 = vcombine.low %v677_v26, %v687_v0  ;;  %v8749_v29 = vcombine.low %v2038_v37, %v2041_v10  ;;  %v915_v11 = vrot.slane %v913_v5, 4  ;;  %v3073_v60 = vsel %vm10089_vm2, %v8835_v22, %v3072_v21  ;;  %v9766_v10 = vld [vmem:[%s10061_s13 + $0x24] sm:$0xf] }
  0xcf   : > { %v10923_v7 = vpop.permute.xlu1 %1172  ;;  %v3074_v33 = vrot.slane %v3072_v21, 4  ;;  %v2401_v61 = vshrl.u32 %v8697_v55, 16  ;;  %v2404_v19 = vshll.u32 %v8697_v55, 16  ;;  %v2410_v30 = vshll.u32 %v8698_v63, 16  ;;  %v9767_v21 = vld [vmem:[%s10061_s13 + $0x28] sm:$0xf] }
  0xd0   : > { %v10930_v52 = vpop.permute.xlu0 %2712  ;;  %1108 = vrot.lane.b32.xlu1 %v8557_v32, %s9943_s22  ;;  %2616 = vrot.lane.b32.xlu0 %v8749_v29, %s9943_s22  ;;  %v917_v62 = vsel %vm10089_vm2, %v915_v11, %v916_v56  ;;  %v2414_v20 = vshrl.u32 %v8698_v63, 16  ;;  %v8765_v59 = vcombine.low %v8697_v55, %v8698_v63  ;;  %v2903_v56 = vsel %vm1390_vm8, %v2869_v8, %v10819_v39  ;;  %v9679_v29 = vld [vmem:[%s10061_s13 + $0x9c] sm:$0xff]  }
  0xd1   : > { %v8573_v51 = vcombine.low %v914_v25, %v917_v62  ;;  %v3076_v42 = vsel %vm10089_vm2, %v3074_v33, %v3075_v3  ;;  %v2403_v16 = vrot.slane %v2401_v61, 4  ;;  %v2406_v48 = vrot.slane %v2404_v19, 5  ;;  %3723 = vmatprep.mubr.bf16.mxu0 %v2903_v56  ;;  %v8717_v19 = vld [vmem:[%s10061_s13 + $0xb0] sm:$0x1]  ;;  %v9768_v62 = vld [vmem:[%s10061_s13 + $0x34] sm:$0xf] }
  0xd2   : > { %v8851_v58 = vcombine.low %v3073_v60, %v3076_v42  ;;  %v10955_v26 = vrot.slane %v2410_v30, 5  ;;  %v2416_v5 = vrot.slane %v2414_v20, 4  ;;  %v8836_v22 = vrot.slane %v8794_v46, 9 }
  0xd3   : > { %v10942_v24 = vpop.permute.xlu1 %1284  ;;  %v3079_v55 = vrot.slane %v8795_v14, 5  ;;  %v3082_v0 = vrot.slane %v8796_v57, 5  ;;  %v8532_v3 = vcombine.low %v9766_v10, %v9767_v21  ;;  %v1398_v32 = vsel %vm1390_vm8, %v10910_v15, %v10817_v4 }
  0xd4   : > { %1188 = vrot.lane.b32.xlu1 %v8573_v51, %s9941_s20  ;;  %v3222_v63 = vsel %vm1308_vm6, %v8851_v58, 0  ;;  %2728 = vrot.lane.b32.xlu0 %v8765_v59, %s9941_s20  ;;  %v1576_v39 = vshrl.u32 %v8602_v13, 16  ;;  %v1579_v8 = vshll.u32 %v8602_v13, 16  ;;  %v1715_v11 = vshll.u32 %v10555_v41, 16  ;;  %v351_v59 = vld [vmem:[%s10061_s13 + $0x9c] sm:$0xf] }
  0xd5   : > { %v10953_v37 = vpop.permute.xlu0 %2792  ;;  %v3251_v60 = vsel %vm1357_vm7, %v3222_v63, 0  ;;  %v3080_v33 = vsel %vm10089_vm2, %v8836_v22, %v3079_v55  ;;  %v3081_v61 = vrot.slane %v3079_v55, 4  ;;  %3724 = vmatmul.mubr.bf16.gmra.mrb[8].mxu0 %v1398_v32  ;;  %v1585_v30 = vshll.u32 %v9768_v62, 16  ;;  %v352_v55 = vld [vmem:[%s10061_s13 + $0xa0] sm:$0xf] }
  0xd6   : > { %9504 = vmatprep.mubr.msk.bf16.mxu1 %vm1390_vm8, %v3251_v60  ;;  %v1578_v4 = vrot.slane %v1576_v39, 4  ;;  %v1581_v15 = vrot.slane %v1579_v8, 5  ;;  %v1591_v20 = vrot.slane %v1589_v17, 4  ;;  %v1320_v57 = vsel %vm1308_vm6, %v8532_v3, %v10839_v6  ;;  %v8633_v60 = vld [vmem:[%s10061_s13 + $0xac] sm:$0xf] }
  0xd7   : > { %v3083_v14 = vsel %vm10089_vm2, %v3081_v61, %v3082_v0  ;;  %v2407_v51 = vor.u32 %v2406_v48, %v2403_v16  ;;  %v2417_v42 = vor.u32 %v2416_v5, %v10955_v26  ;;  %v1587_v56 = vrot.slane %v1585_v30, 5  ;;  %v10994_v16 = vld [vmem:[%s10061_s13 + $0xa4] sm:$0x1]  ;;  %v8654_v61 = vld [vmem:[%s10061_s13 + $0xa8] sm:$0xe] }
  0xd8   : > { %v10968_v25 = vpop.permute.xlu1 %1094  ;;  %v8852_v13 = vcombine.low %v3080_v33, %v3083_v14  ;;  %v1582_v58 = vor.u32 %v1581_v15, %v1578_v4  ;;  %1300 = vrot.lane.b32.xlu1 %v9679_v29, %s9942_s21  ;;  %v2420_v22 = vshll.u32 %v8717_v19, 16  ;;  %v13779_v17 = vshll.u32 %v10264_v28, 16  ;;  %v8634_v33 = vld [vmem:[%s10061_s13 + $0xb0] sm:$0x1]  ;;  %v773_v19 = vld [vmem:[%s10061_s13 + $0x9c] sm:$0xe] }
  0xd9   : > { %v10975_v46 = vpop.permute.xlu0 %2602  ;;  %v2408_v10 = vrot.slane %v2407_v51, 4  ;;  %v2418_v6 = vrot.slane %v2417_v42, 4  ;;  %v689_v48 = vshrl.u32 %v351_v59, 16  ;;  %v1592_v63 = vor.u32 %v1591_v20, %v1587_v56 }
  0xda   : > { %v1597_v0 = vrot.slane %v13779_v17, 5  ;;  %v3224_v21 = vsel %vm1308_vm6, %v8852_v13, 0  ;;  %v1583_v3 = vrot.slane %v1582_v58, 4  ;;  %v2422_v32 = vrot.slane %v2420_v22, 5 }
  0xdb   : > { %v3252_v39 = vsel %vm1357_vm7, %v3224_v21, 0  ;;  %v2413_v28 = vsel %vm10143_vm5, %v2408_v10, %v10955_v26  ;;  %v691_v8 = vrot.slane %v689_v48, 4  ;;  %v692_v29 = vshll.u32 %v351_v59, 16  ;;  %v8699_v21 = vld [vmem:[%s10061_s13 + $0xb4] sm:$0xf] }
  0xdc   : > { %v10989_v27 = vpop.permute.xlu1 %1174  ;;  %9505 = vmatmul.mubr.msk.bf16.gmra.mrb[4].mxu1 %vm1390_vm8, %v3252_v39  ;;  %v1588_v4 = vsel %vm10143_vm5, %v1583_v3, %v1587_v56  ;;  %v1593_v15 = vrot.slane %v1592_v63, 4  ;;  %v2423_v62 = vsel %vm10143_vm5, %v2418_v6, %v2422_v32  ;;  %v698_v30 = vshll.u32 %v352_v55, 16  ;;  %v8700_v3 = vld [vmem:[%s10061_s13 + $0xb8] sm:$0xf] }
  0xdd   : > { %v10996_v5 = vpop.permute.xlu0 %2714  ;;  %v8781_v26 = vcombine.low %v2413_v28, %v2423_v62  ;;  %v694_v59 = vrot.slane %v692_v29, 5  ;;  %v702_v14 = vshrl.u32 %v352_v55, 16  ;;  %v708_v51 = vshll.u32 %v10994_v16, 16 }
  0xde   : > { %v1598_v13 = vsel %vm10143_vm5, %v1593_v15, %v1597_v0  ;;  %v1365_v58 = vsel %vm1357_vm7, %v1320_v57, %v10860_v9  ;;  %v700_v56 = vrot.slane %v698_v30, 5  ;;  %v8670_v63 = vrot.slane %v8654_v61, 9  ;;  %v8605_v30 = vld [vmem:[%s10061_s13 + $0x3c] sm:$0xf] }
  0xdf   : > { %v8724_v17 = vcombine.low %v1588_v4, %v1598_v13  ;;  %2808 = vrot.lane.b32.xlu0 %v8781_v26, %s9942_s21  ;;  %v695_v10 = vor.u32 %v694_v59, %v691_v8  ;;  %v704_v6 = vrot.slane %v702_v14, 4  ;;  %v710_v48 = vrot.slane %v708_v51, 5 }
  0xe0   : > { %v11012_v20 = vpop.permute.xlu1 %1286  ;;  %v2044_v32 = vrot.slane %v8633_v60, 5  ;;  %v2047_v39 = vrot.slane %v8634_v33, 5  ;;  %v8494_v28 = vrot.slane %v773_v19, 9  ;;  %v920_v4 = vrot.slane %v352_v55, 5 }
  0xe1   : > { %v11020_v22 = vpop.permute.xlu0 %2794  ;;  %v2827_v9 = vsel %vm1308_vm6, %v8724_v17, %v10841_v54  ;;  %v696_v57 = vrot.slane %v695_v10, 4  ;;  %v705_v29 = vor.u32 %v704_v6, %v700_v56  ;;  %v923_v60 = vrot.slane %v10994_v16, 5 }
  0xe2   : > { %v2871_v8 = vsel %vm1357_vm7, %v2827_v9, %v10862_v45  ;;  %v2045_v15 = vsel %vm10089_vm2, %v8670_v63, %v2044_v32  ;;  %v2046_v62 = vrot.slane %v2044_v32, 4  ;;  %v921_v54 = vsel %vm10089_vm2, %v8494_v28, %v920_v4 }
  0xe3   : > { %v701_v61 = vsel %vm10143_vm5, %v696_v57, %v700_v56  ;;  %v706_v19 = vrot.slane %v705_v29, 4  ;;  %v922_v55 = vrot.slane %v920_v4, 4  ;;  %v2425_v26 = vshrl.u32 %v8699_v21, 16  ;;  %v353_v4 = vld [vmem:[%s10061_s13 + $0xa8] sm:$0xf] }
  0xe4   : > { %v11025_v0 = vpop.permute.xlu1 %1096  ;;  %v2048_v45 = vsel %vm10089_vm2, %v2046_v62, %v2047_v39  ;;  %v2428_v59 = vshll.u32 %v8699_v21, 16  ;;  %v2434_v14 = vshll.u32 %v8700_v3, 16  ;;  %v2438_v17 = vshrl.u32 %v8700_v3, 16  ;;  %v8718_v39 = vld [vmem:[%s10061_s13 + $0xbc] sm:$0x1] }
  0xe5   : > { %v11034_v33 = vpop.permute.xlu0 %2604  ;;  %v711_v16 = vsel %vm10143_vm5, %v706_v19, %v710_v48  ;;  %v8750_v13 = vcombine.low %v2045_v15, %v2048_v45  ;;  %v924_v56 = vsel %vm10089_vm2, %v922_v55, %v923_v60  ;;  %v2427_v63 = vrot.slane %v2425_v26, 4  ;;  %v9769_v15 = vld [vmem:[%s10061_s13 + $0x30] sm:$0xf]  ;;  %v9770_v62 = vld [vmem:[%s10061_s13 + $0x34] sm:$0xf] }
  0xe6   : > { %v8558_v10 = vcombine.low %v701_v61, %v711_v16  ;;  %v8574_v6 = vcombine.low %v921_v54, %v924_v56  ;;  %v2430_v32 = vrot.slane %v2428_v59, 5  ;;  %v2436_v9 = vrot.slane %v2434_v14, 5  ;;  %v11062_v55 = vld [vmem:[%s10061_s13 + $0xac] sm:$0xf] }
  0xe7   : > { %2618 = vrot.lane.b32.xlu0 %v8750_v13, %s9943_s22  ;;  %v2440_v48 = vrot.slane %v2438_v17, 4  ;;  %v8766_v57 = vcombine.low %v8699_v21, %v8700_v3  ;;  %v2906_v29 = vsel %vm1390_vm8, %v2871_v8, %v10891_v44  ;;  %v8533_v60 = vcombine.low %v9769_v15, %v9770_v62  ;;  %v9771_v21 = vld [vmem:[%s10061_s13 + $0x40] sm:$0xf] }
  0xe8   : > { %v11043_v51 = vpop.permute.xlu1 %1176  ;;  %1110 = vrot.lane.b32.xlu1 %v8558_v10, %s9943_s22  ;;  %3731 = vmatprep.mubr.bf16.mxu0 %v2906_v29  ;;  %v1401_v61 = vsel %vm1390_vm8, %v1365_v58, %v10884_v49  ;;  %v1600_v19 = vshrl.u32 %v8605_v30, 16  ;;  %v1603_v54 = vshll.u32 %v8605_v30, 16  ;;  %v1609_v44 = vshll.u32 %v9771_v21, 16  ;;  %v9682_v10 = vld [vmem:[%s10061_s13 + $0xa8] sm:$0xff]   ;;  %v8636_v21 = vld [vmem:[%s10061_s13 + $0xb8] sm:$0xf] }
  0xe9   : > { %v11050_v28 = vpop.permute.xlu0 %2716  ;;  %3732 = vmatmul.mubr.bf16.gmra.mrb[12].mxu0 %v1401_v61  ;;  %v13780_v3 = vshrl.u32 %v10318_v38, 16  ;;  %v13781_v26 = vshll.u32 %v10327_v47, 16  ;;  %v2431_v14 = vor.u32 %v2430_v32, %v2427_v63  ;;  %v2441_v58 = vor.u32 %v2440_v48, %v2436_v9  ;;  %v11079_v32 = vld [vmem:[%s10061_s13 + $0xb0] sm:$0x1] }
  0xea   : > { %v1602_v16 = vrot.slane %v1600_v19, 4  ;;  %v1605_v49 = vrot.slane %v1603_v54, 5  ;;  %v1323_v13 = vsel %vm1308_vm6, %v8533_v60, %v10904_v12  ;;  %v1611_v56 = vrot.slane %v1609_v44, 5  ;;  %v8637_v44 = vld [vmem:[%s10061_s13 + $0xbc] sm:$0x1] }
  0xeb   : > { %v1615_v8 = vrot.slane %v13780_v3, 4  ;;  %v1621_v59 = vrot.slane %v13781_v26, 5  ;;  %2730 = vrot.lane.b32.xlu0 %v8766_v57, %s9941_s20  ;;  %v2432_v17 = vrot.slane %v2431_v14, 4  ;;  %v2444_v38 = vshll.u32 %v8718_v39, 16  ;;  %v8655_v39 = vld [vmem:[%s10061_s13 + $0xb4] sm:$0xe] }
  0xec   : > { %v11064_v45 = vpop.permute.xlu1 %1288  ;;  %1190 = vrot.lane.b32.xlu1 %v8574_v6, %s9941_s20  ;;  %v1606_v47 = vor.u32 %v1605_v49, %v1602_v16  ;;  %v2442_v63 = vrot.slane %v2441_v58, 4  ;;  %v713_v48 = vshrl.u32 %v353_v4, 16  ;;  %v716_v29 = vshll.u32 %v353_v4, 16  ;;  %v774_v3 = vld [vmem:[%s10061_s13 + $0xa8] sm:$0xe] }
  0xed   : > { %v1616_v57 = vor.u32 %v1615_v8, %v1611_v56  ;;  %v2437_v15 = vsel %vm10143_vm5, %v2432_v17, %v2436_v9  ;;  %v2446_v12 = vrot.slane %v2444_v38, 5  ;;  %v722_v62 = vshll.u32 %v11062_v55, 16  ;;  %v11100_v38 = vld [vmem:[%s10061_s13 + $0x80] sm:$0x1] }
  0xee   : > { %v11071_v30 = vpop.permute.xlu0 %2796  ;;  %v1607_v6 = vrot.slane %v1606_v47, 4  ;;  %v715_v61 = vrot.slane %v713_v48, 4  ;;  %v718_v19 = vrot.slane %v716_v29, 5  ;;  %v726_v54 = vshrl.u32 %v11062_v55, 16 }
  0xef   : > { %v1617_v9 = vrot.slane %v1616_v57, 4  ;;  %v2447_v8 = vsel %vm10143_vm5, %v2442_v63, %v2446_v12  ;;  %v724_v26 = vrot.slane %v722_v62, 5  ;;  %v732_v14 = vshll.u32 %v11079_v32, 16  ;;  %v8798_v57 = vld [vmem:[%s10061_s13 + $0x4c] sm:$0xf] }
  0xf0   : > { %v11085_v60 = vpop.permute.xlu1 %1098  ;;  %v1612_v16 = vsel %vm10143_vm5, %v1607_v6, %v1611_v56  ;;  %1302 = vrot.lane.b32.xlu1 %v9682_v10, %s9942_s21  ;;  %v8782_v49 = vcombine.low %v2437_v15, %v2447_v8  ;;  %v719_v58 = vor.u32 %v718_v19, %v715_v61  ;;  %v728_v17 = vrot.slane %v726_v54, 4  ;;  %v8797_v56 = vld [vmem:[%s10061_s13 + $0x48] sm:$0xe]  ;;  %v8799_v61 = vld [vmem:[%s10061_s13 + $0x50] sm:$0x1] }
  0xf1   : > { %v1622_v63 = vsel %vm10143_vm5, %v1617_v9, %v1621_v59  ;;  %v11107_v48 = vsel %vm1357_vm7, %v1323_v13, %v10923_v7  ;;  %v734_v29 = vrot.slane %v732_v14, 5  ;;  %v8671_v6 = vrot.slane %v8655_v39, 9  ;;  %v11116_v19 = vld [vmem:[%s10061_s13 + $0xc0] sm:$0xf] }
  0xf2   : > { %v11091_v4 = vpop.permute.xlu0 %2606  ;;  %v8725_v15 = vcombine.low %v1612_v16, %v1622_v63  ;;  %2810 = vrot.lane.b32.xlu0 %v8782_v49, %s9942_s21  ;;  %v720_v12 = vrot.slane %v719_v58, 4  ;;  %v729_v62 = vor.u32 %v728_v17, %v724_v26  ;;  %v2051_v54 = vrot.slane %v8636_v21, 5  ;;  %v8702_v49 = vld [vmem:[%s10061_s13 + $0xc4] sm:$0xf] }
  0xf3   : > { %v2054_v7 = vrot.slane %v8637_v44, 5  ;;  %v8495_v13 = vrot.slane %v774_v3, 9  ;;  %v927_v9 = vrot.slane %v11062_v55, 5  ;;  %v930_v39 = vrot.slane %v11079_v32, 5  ;;  %v8800_v32 = vld [vmem:[%s10061_s13 + $0x54] sm:$0xe] }
  0xf4   : > { %v11111_v10 = vpop.permute.xlu1 %1178  ;;  %v2830_v8 = vsel %vm1308_vm6, %v8725_v15, %v10913_v40  ;;  %v725_v14 = vsel %vm10143_vm5, %v720_v12, %v724_v26  ;;  %v730_v16 = vrot.slane %v729_v62, 4  ;;  %v2052_v44 = vsel %vm10089_vm2, %v8671_v6, %v2051_v54  ;;  %v8801_v6 = vld [vmem:[%s10061_s13 + $0x58] sm:$0xf] }
  0xf5   : > { %v2873_v21 = vsel %vm1357_vm7, %v2830_v8, %v10930_v52  ;;  %v2053_v3 = vrot.slane %v2051_v54, 4  ;;  %v928_v55 = vsel %vm10089_vm2, %v8495_v13, %v927_v9  ;;  %v929_v26 = vrot.slane %v927_v9, 4  ;;  %v8802_v54 = vld [vmem:[%s10061_s13 + $0x5c] sm:$0x1] }
  0xf6   : > { %v11118_v59 = vpop.permute.xlu0 %2718  ;;  %v735_v40 = vsel %vm10143_vm5, %v730_v16, %v734_v29  ;;  %v8837_v58 = vrot.slane %v8797_v56, 9  ;;  %v3086_v17 = vrot.slane %v8798_v57, 5  ;;  %v3089_v12 = vrot.slane %v8799_v61, 5 }
  0xf7   : > { %v8559_v15 = vcombine.low %v725_v14, %v735_v40  ;;  %v2055_v52 = vsel %vm10089_vm2, %v2053_v3, %v2054_v7  ;;  %v2449_v62 = vshrl.u32 %v11116_v19, 16  ;;  %v931_v29 = vsel %vm10089_vm2, %v929_v26, %v930_v39  ;;  %v8608_v40 = vld [vmem:[%s10061_s13 + $0x48] sm:$0xf] }
  0xf8   : > { %v11136_v63 = vpop.permute.xlu1 %1290  ;;  %v8751_v8 = vcombine.low %v2052_v44, %v2055_v52  ;;  %v3087_v56 = vsel %vm10089_vm2, %v8837_v58, %v3086_v17  ;;  %v3088_v57 = vrot.slane %v3086_v17, 4  ;;  %v8575_v9 = vcombine.low %v928_v55, %v931_v29 }
  0xf9   : > { %1112 = vrot.lane.b32.xlu1 %v8559_v15, %s9943_s22  ;;  %v2451_v7 = vrot.slane %v2449_v62, 4  ;;  %v2452_v61 = vshll.u32 %v11116_v19, 16  ;;  %v2458_v14 = vshll.u32 %v8702_v49, 16  ;;  %v2462_v44 = vshrl.u32 %v8702_v49, 16 }
  0xfa   : > { %v11143_v13 = vpop.permute.xlu0 %2798  ;;  %2620 = vrot.lane.b32.xlu0 %v8751_v8, %s9943_s22  ;;  %v3090_v16 = vsel %vm10089_vm2, %v3088_v57, %v3089_v12  ;;  %v8767_v39 = vcombine.low %v11116_v19, %v8702_v49  ;;  %v2909_v3 = vsel %vm1390_vm8, %v2873_v21, %v10953_v37  ;;  %v8838_v17 = vrot.slane %v8800_v32, 9  ;;  %v9773_v8 = vld [vmem:[%s10061_s13 + $0x3c] sm:$0xf]  ;;  %v9774_v12 = vld [vmem:[%s10061_s13 + $0x40] sm:$0xf] }
  0xfb   : > { %v8853_v26 = vcombine.low %v3087_v56, %v3090_v16  ;;  %v2454_v55 = vrot.slane %v2452_v61, 5  ;;  %v11158_v58 = vrot.slane %v2458_v14, 5  ;;  %3739 = vmatprep.mubr.bf16.mxu0 %v2909_v3  ;;  %v2464_v15 = vrot.slane %v2462_v44, 4  ;;  %v9685_v56 = vld [vmem:[%s10061_s13 + $0xb4] sm:$0xff]   ;;  %v9776_v44 = vld [vmem:[%s10061_s13 + $0x4c] sm:$0xf] }
  0xfc   : > { %v3093_v52 = vrot.slane %v8801_v6, 5  ;;  %v3096_v62 = vrot.slane %v8802_v54, 5  ;;  %v8534_v29 = vcombine.low %v9773_v8, %v9774_v12  ;;  %v1404_v49 = vsel %vm1390_vm8, %v11107_v48, %v10942_v24  ;;  %v11173_v54 = vld [vmem:[%s10061_s13 + $0x88] sm:$0xf]  ;;  %v355_v8 = vld [vmem:[%s10061_s13 + $0xb4] sm:$0xf] }
  0xfd   : > { %v11162_v19 = vpop.permute.xlu1 %1100  ;;  %1192 = vrot.lane.b32.xlu1 %v8575_v9, %s9941_s20  ;;  %v3226_v37 = vsel %vm1308_vm6, %v8853_v26, 0  ;;  %v1624_v21 = vshrl.u32 %v8608_v40, 16  ;;  %v1627_v32 = vshll.u32 %v8608_v40, 16  ;;  %3740 = vmatmul.mubr.bf16.gmra.mrb[16].mxu0 %v1404_v49  ;;  %v8719_v24 = vld [vmem:[%s10061_s13 + $0xc8] sm:$0x1]  ;;  %v1633_v3 = vshll.u32 %v9776_v44, 16 }
  0xfe   : > { %v11170_v6 = vpop.permute.xlu0 %2608  ;;  %v3253_v61 = vsel %vm1357_vm7, %v3226_v37, 0  ;;  %2732 = vrot.lane.b32.xlu0 %v8767_v39, %s9941_s20  ;;  %v3094_v9 = vsel %vm10089_vm2, %v8838_v17, %v3093_v52  ;;  %v3095_v14 = vrot.slane %v3093_v52, 4  ;;  %v13782_v40 = vshrl.u32 %v10397_v1, 16 }
  0xff   : > { %9508 = vmatprep.mubr.msk.bf16.mxu1 %vm1390_vm8, %v3253_v61  ;;  %v1626_v48 = vrot.slane %v1624_v21, 4  ;;  %v1629_v16 = vrot.slane %v1627_v32, 5  ;;  %v1326_v17 = vsel %vm1308_vm6, %v8534_v29, %v10968_v25  ;;  %v2455_v52 = vor.u32 %v2454_v55, %v2451_v7  ;;  %v372_v29 = vld [vmem:[%s10061_s13 + $0xbc] sm:$0x1] }
 0x100   : > { %v1639_v26 = vrot.slane %v13782_v40, 4  ;;  %v3097_v39 = vsel %vm10089_vm2, %v3095_v14, %v3096_v62  ;;  %v2465_v12 = vor.u32 %v2464_v15, %v11158_v58  ;;  %v1635_v21 = vrot.slane %v1633_v3, 5  ;;  %v356_v62 = vld [vmem:[%s10061_s13 + $0xb8] sm:$0xf] }
 0x101   : > { %v8854_v37 = vcombine.low %v3094_v9, %v3097_v39  ;;  %v1630_v49 = vor.u32 %v1629_v16, %v1626_v48  ;;  %1304 = vrot.lane.b32.xlu1 %v9685_v56, %s9942_s21  ;;  %v2468_v32 = vshll.u32 %v8719_v24, 16  ;;  %v13783_v1 = vshll.u32 %v10400_v2, 16  ;;  %v11195_v57 = vpop.permute.xlu1 %1180  ;;  %v8639_v16 = vld [vmem:[%s10061_s13 + $0xc4] sm:$0xf] }
 0x102   : > { %v2456_v44 = vrot.slane %v2455_v52, 4  ;;  %v2466_v40 = vrot.slane %v2465_v12, 4  ;;  %v737_v14 = vshrl.u32 %v355_v8, 16  ;;  %v1640_v55 = vor.u32 %v1639_v26, %v1635_v21  ;;  %v11199_v56 = vpop.permute.xlu0 %2720  ;;  %v8640_v12 = vld [vmem:[%s10061_s13 + $0xc8] sm:$0x1] }
 0x103   : > { %v1645_v61 = vrot.slane %v13783_v1, 5  ;;  %v3228_v25 = vsel %vm1308_vm6, %v8854_v37, 0  ;;  %v1631_v7 = vrot.slane %v1630_v49, 4  ;;  %v2470_v15 = vrot.slane %v2468_v32, 5  ;;  %v8656_v37 = vld [vmem:[%s10061_s13 + $0xc0] sm:$0xe] }
 0x104   : > { %v3254_v2 = vsel %vm1357_vm7, %v3228_v25, 0  ;;  %v2461_v9 = vsel %vm10143_vm5, %v2456_v44, %v11158_v58  ;;  %v739_v24 = vrot.slane %v737_v14, 4  ;;  %v740_v48 = vshll.u32 %v355_v8, 16  ;;  %v775_v44 = vld [vmem:[%s10061_s13 + $0xb4] sm:$0xe] }
 0x105   : > { %9509 = vmatmul.mubr.msk.bf16.gmra.mrb[8].mxu1 %vm1390_vm8, %v3254_v2  ;;  %v1636_v3 = vsel %vm10143_vm5, %v1631_v7, %v1635_v21  ;;  %v1641_v26 = vrot.slane %v1640_v55, 4  ;;  %v2471_v39 = vsel %vm10143_vm5, %v2466_v40, %v2470_v15  ;;  %v746_v52 = vshll.u32 %v356_v62, 16  ;;  %v11215_v14 = vld [vmem:[%s10061_s13 + $0x8c] sm:$0x1] }
 0x106   : > { %v8783_v49 = vcombine.low %v2461_v9, %v2471_v39  ;;  %v742_v32 = vrot.slane %v740_v48, 5  ;;  %v750_v1 = vshrl.u32 %v356_v62, 16  ;;  %v756_v58 = vshll.u32 %v372_v29, 16  ;;  %v11223_v9 = vpop.permute.xlu1 %1292  ;;  %v11225_v42 = vpop.permute.xlu0 %2800 }
 0x107   : > { %v1646_v25 = vsel %vm10143_vm5, %v1641_v26, %v1645_v61  ;;  %v1369_v21 = vsel %vm1357_vm7, %v1326_v17, %v10989_v27  ;;  %v748_v7 = vrot.slane %v746_v52, 5  ;;  %v8672_v48 = vrot.slane %v8656_v37, 9  ;;  %v8703_v26 = vld [vmem:[%s10061_s13 + $0xcc] sm:$0xf]  ;;  %v8704_v52 = vld [vmem:[%s10061_s13 + $0xd0] sm:$0xf] }
 0x108   : > { %v8726_v40 = vcombine.low %v1636_v3, %v1646_v25  ;;  %2812 = vrot.lane.b32.xlu0 %v8783_v49, %s9942_s21  ;;  %v743_v55 = vor.u32 %v742_v32, %v739_v24  ;;  %v752_v15 = vrot.slane %v750_v1, 4  ;;  %v758_v2 = vrot.slane %v756_v58, 5 }
 0x109   : > { %v2058_v39 = vrot.slane %v8639_v16, 5  ;;  %v2061_v8 = vrot.slane %v8640_v12, 5  ;;  %v8496_v47 = vrot.slane %v775_v44, 9  ;;  %v934_v3 = vrot.slane %v356_v62, 5 }
 0x10a   : > { %v2833_v27 = vsel %vm1308_vm6, %v8726_v40, %v10975_v46  ;;  %v744_v17 = vrot.slane %v743_v55, 4  ;;  %v753_v61 = vor.u32 %v752_v15, %v748_v7  ;;  %v937_v12 = vrot.slane %v372_v29, 5  ;;  %v8611_v55 = vld [vmem:[%s10061_s13 + $0x54] sm:$0xf]  ;;  %v11246_v15 = vpop.permute.xlu1 %1102 }
 0x10b   : > { %v2875_v24 = vsel %vm1357_vm7, %v2833_v27, %v10996_v5  ;;  %v2059_v37 = vsel %vm10089_vm2, %v8672_v48, %v2058_v39  ;;  %v2060_v16 = vrot.slane %v2058_v39, 4  ;;  %v935_v46 = vsel %vm10089_vm2, %v8496_v47, %v934_v3  ;;  %v11248_v27 = vpop.permute.xlu0 %2610 }
 0x10c   : > { %v749_v49 = vsel %vm10143_vm5, %v744_v17, %v748_v7  ;;  %v754_v32 = vrot.slane %v753_v61, 4  ;;  %v936_v1 = vrot.slane %v934_v3, 4  ;;  %v2473_v58 = vshrl.u32 %v8703_v26, 16 }
 0x10d   : > { %v2062_v62 = vsel %vm10089_vm2, %v2060_v16, %v2061_v8  ;;  %v2476_v44 = vshll.u32 %v8703_v26, 16  ;;  %v2482_v5 = vshll.u32 %v8704_v52, 16  ;;  %v2486_v7 = vshrl.u32 %v8704_v52, 16  ;;  %v9779_v16 = vld [vmem:[%s10061_s13 + $0x4c] sm:$0xf] }
 0x10e   : > { %v759_v25 = vsel %vm10143_vm5, %v754_v32, %v758_v2  ;;  %v8752_v40 = vcombine.low %v2059_v37, %v2062_v62  ;;  %v938_v29 = vsel %vm10089_vm2, %v936_v1, %v937_v12  ;;  %v2475_v39 = vrot.slane %v2473_v58, 4  ;;  %v9778_v37 = vld [vmem:[%s10061_s13 + $0x48] sm:$0xf]  ;;  %v8720_v1 = vld [vmem:[%s10061_s13 + $0xd4] sm:$0x1] }
 0x10f   : > { %v8560_v47 = vcombine.low %v749_v49, %v759_v25  ;;  %v8576_v48 = vcombine.low %v935_v46, %v938_v29  ;;  %v2478_v8 = vrot.slane %v2476_v44, 5  ;;  %v2484_v2 = vrot.slane %v2482_v5, 5  ;;  %v8803_v62 = vld [vmem:[%s10061_s13 + $0x60] sm:$0xe]  ;;  %v8804_v44 = vld [vmem:[%s10061_s13 + $0x64] sm:$0xf] }
 0x110   : > { %2622 = vrot.lane.b32.xlu0 %v8752_v40, %s9943_s22  ;;  %v2488_v17 = vrot.slane %v2486_v7, 4  ;;  %v8768_v61 = vcombine.low %v8703_v26, %v8704_v52  ;;  %v2912_v3 = vsel %vm1390_vm8, %v2875_v24, %v11020_v22  ;;  %v8535_v12 = vcombine.low %v9778_v37, %v9779_v16  ;;  %v9780_v26 = vld [vmem:[%s10061_s13 + $0x58] sm:$0xf]  ;;  %v8805_v5 = vld [vmem:[%s10061_s13 + $0x68] sm:$0x1]  ;;  %v9688_v16 = vld [vmem:[%s10061_s13 + $0xc0] sm:$0xff]  }
 0x111   : > { %1114 = vrot.lane.b32.xlu1 %v8560_v47, %s9943_s22  ;;  %3747 = vmatprep.mubr.bf16.mxu0 %v2912_v3  ;;  %v1407_v49 = vsel %vm1390_vm8, %v1369_v21, %v11012_v20  ;;  %v1648_v32 = vshrl.u32 %v8611_v55, 16  ;;  %v1651_v46 = vshll.u32 %v8611_v55, 16  ;;  %v1657_v22 = vshll.u32 %v9780_v26, 16  ;;  %v8806_v7 = vld [vmem:[%s10061_s13 + $0x6c] sm:$0xe] }
 0x112   : > { %3748 = vmatmul.mubr.bf16.gmra.mrb[20].mxu0 %v1407_v49  ;;  %v13784_v52 = vshrl.u32 %v10454_v53, 16  ;;  %v2479_v58 = vor.u32 %v2478_v8, %v2475_v39  ;;  %v13785_v20 = vshll.u32 %v10457_v31, 16  ;;  %v2489_v29 = vor.u32 %v2488_v17, %v2484_v2  ;;  %v8807_v39 = vld [vmem:[%s10061_s13 + $0x70] sm:$0xf]  ;;  %v11272_v8 = vpop.permute.xlu1 %1182 }
 0x113   : > { %v1650_v25 = vrot.slane %v1648_v32, 4  ;;  %v1653_v40 = vrot.slane %v1651_v46, 5  ;;  %v1329_v55 = vsel %vm1308_vm6, %v8535_v12, %v11025_v0  ;;  %v1659_v47 = vrot.slane %v1657_v22, 5  ;;  %v8808_v32 = vld [vmem:[%s10061_s13 + $0x74] sm:$0x1]  ;;  %v11277_v46 = vpop.permute.xlu0 %2722 }
 0x114   : > { %v1663_v24 = vrot.slane %v13784_v52, 4  ;;  %v1669_v21 = vrot.slane %v13785_v20, 5  ;;  %2734 = vrot.lane.b32.xlu0 %v8768_v61, %s9941_s20  ;;  %v2480_v53 = vrot.slane %v2479_v58, 4  ;;  %v2492_v3 = vshll.u32 %v8720_v1, 16  ;;  %v9781_v20 = vld [vmem:[%s10061_s13 + $0x54] sm:$0xf] }
 0x115   : > { %1194 = vrot.lane.b32.xlu1 %v8576_v48, %s9941_s20  ;;  %v1654_v37 = vor.u32 %v1653_v40, %v1650_v25  ;;  %v2490_v31 = vrot.slane %v2489_v29, 4  ;;  %v8839_v49 = vrot.slane %v8803_v62, 9  ;;  %v3100_v17 = vrot.slane %v8804_v44, 5  ;;  %v9782_v29 = vld [vmem:[%s10061_s13 + $0x58] sm:$0xf] }
 0x116   : > { %v1664_v61 = vor.u32 %v1663_v24, %v1659_v47  ;;  %v2485_v0 = vsel %vm10143_vm5, %v2480_v53, %v2484_v2  ;;  %v2494_v12 = vrot.slane %v2492_v3, 5  ;;  %v3103_v1 = vrot.slane %v8805_v5, 5  ;;  %v8614_v24 = vld [vmem:[%s10061_s13 + $0x60] sm:$0xf] }
 0x117   : > { %v1655_v26 = vrot.slane %v1654_v37, 4  ;;  %v3101_v48 = vsel %vm10089_vm2, %v8839_v49, %v3100_v17  ;;  %v3102_v22 = vrot.slane %v3100_v17, 4  ;;  %v8840_v52 = vrot.slane %v8806_v7, 9 }
 0x118   : > { %v1665_v62 = vrot.slane %v1664_v61, 4  ;;  %v2495_v58 = vsel %vm10143_vm5, %v2490_v31, %v2494_v12  ;;  %v3107_v44 = vrot.slane %v8807_v39, 5  ;;  %v3110_v25 = vrot.slane %v8808_v32, 5  ;;  %v11297_v31 = vpop.permute.xlu1 %1294  ;;  %v11304_v32 = vpop.permute.xlu0 %2802  ;;  %v9783_v12 = vld [vmem:[%s10061_s13 + $0x64] sm:$0xf] }
 0x119   : > { %v1660_v2 = vsel %vm10143_vm5, %v1655_v26, %v1659_v47  ;;  %1306 = vrot.lane.b32.xlu1 %v9688_v16, %s9942_s21  ;;  %v8784_v40 = vcombine.low %v2485_v0, %v2495_v58  ;;  %v3104_v5 = vsel %vm10089_vm2, %v3102_v22, %v3103_v1  ;;  %v8536_v7 = vcombine.low %v9781_v20, %v9782_v29  ;;  %v9784_v20 = vld [vmem:[%s10061_s13 + $0x60] sm:$0xf]  ;;  %v9785_v29 = vld [vmem:[%s10061_s13 + $0x64] sm:$0xf] }
 0x11a   : > { %v1670_v53 = vsel %vm10143_vm5, %v1665_v62, %v1669_v21  ;;  %v8855_v3 = vcombine.low %v3101_v48, %v3104_v5  ;;  %v3108_v39 = vsel %vm10089_vm2, %v8840_v52, %v3107_v44  ;;  %v3109_v37 = vrot.slane %v3107_v44, 4 }
 0x11b   : > { %v8727_v47 = vcombine.low %v1660_v2, %v1670_v53  ;;  %2814 = vrot.lane.b32.xlu0 %v8784_v40, %s9942_s21  ;;  %v1371_v16 = vsel %vm1357_vm7, %v1329_v55, %v11043_v51  ;;  %v1332_v49 = vsel %vm1308_vm6, %v8536_v7, %v11085_v60  ;;  %v1672_v17 = vshrl.u32 %v8614_v24, 16  ;;  %v8810_v53 = vld [vmem:[%s10061_s13 + $0x7c] sm:$0xf] }
 0x11c   : > { %v3230_v21 = vsel %vm1308_vm6, %v8855_v3, 0  ;;  %v3111_v61 = vsel %vm10089_vm2, %v3109_v37, %v3110_v25  ;;  %v1675_v0 = vshll.u32 %v8614_v24, 16  ;;  %v1681_v1 = vshll.u32 %v9783_v12, 16  ;;  %v11331_v3 = vpop.permute.xlu1 %1104 }
 0x11d   : > { %v2836_v26 = vsel %vm1308_vm6, %v8727_v47, %v11034_v33  ;;  %v3255_v51 = vsel %vm1357_vm7, %v3230_v21, 0  ;;  %v8856_v55 = vcombine.low %v3108_v39, %v3111_v61  ;;  %v1674_v60 = vrot.slane %v1672_v17, 4  ;;  %v8617_v33 = vld [vmem:[%s10061_s13 + $0x6c] sm:$0xf]  ;;  %v9787_v47 = vld [vmem:[%s10061_s13 + $0x70] sm:$0xf]  ;;  %v11341_v61 = vpop.permute.xlu0 %2612 }
 0x11e   : > { %v2877_v48 = vsel %vm1357_vm7, %v2836_v26, %v11050_v28  ;;  %9512 = vmatprep.mubr.msk.bf16.mxu1 %vm1390_vm8, %v3255_v51  ;;  %v1677_v22 = vrot.slane %v1675_v0, 5  ;;  %v1683_v52 = vrot.slane %v1681_v1, 5  ;;  %v13786_v62 = vshrl.u32 %v10501_v18, 16  ;;  %v8811_v17 = vld [vmem:[%s10061_s13 + $0x80] sm:$0x1] }
 0x11f   : > { %v2915_v44 = vsel %vm1390_vm8, %v2877_v48, %v11071_v30  ;;  %v3232_v25 = vsel %vm1308_vm6, %v8856_v55, 0  ;;  %v1410_v24 = vsel %vm1390_vm8, %v1371_v16, %v11064_v45  ;;  %v13787_v28 = vshll.u32 %v10509_v23, 16  ;;  %v8809_v30 = vld [vmem:[%s10061_s13 + $0x78] sm:$0xe]  ;;  %v11334_v45 = vld [vmem:[%s10061_s13 + $0x94] sm:$0xf] }
 0x120   : > { %v1687_v58 = vrot.slane %v13786_v62, 4  ;;  %3755 = vmatprep.mubr.bf16.mxu0 %v2915_v44  ;;  %v3256_v40 = vsel %vm1357_vm7, %v3232_v25, 0  ;;  %v1678_v5 = vor.u32 %v1677_v22, %v1674_v60  ;;  %v8537_v7 = vcombine.low %v9784_v20, %v9785_v29  ;;  %v8812_v21 = vld [vmem:[%s10061_s13 + $0x84] sm:$0xe]  ;;  %v8813_v51 = vld [vmem:[%s10061_s13 + $0x88] sm:$0xf] }
 0x121   : > { %v1693_v2 = vrot.slane %v13787_v28, 5  ;;  %v1781_v23 = vshrl.u32 %v11334_v45, 16  ;;  %9513 = vmatmul.mubr.msk.bf16.gmra.mrb[12].mxu1 %vm1390_vm8, %v3256_v40  ;;  %3756 = vmatmul.mubr.bf16.gmra.mrb[24].mxu0 %v1410_v24  ;;  %v1696_v39 = vshrl.u32 %v8617_v33, 16  ;;  %v1699_v37 = vshll.u32 %v8617_v33, 16  ;;  %v8814_v62 = vld [vmem:[%s10061_s13 + $0x8c] sm:$0x1] }
 0x122   : > { %v1688_v18 = vor.u32 %v1687_v58, %v1683_v52  ;;  %v1705_v16 = vshll.u32 %v9787_v47, 16  ;;  %v1679_v0 = vrot.slane %v1678_v5, 4  ;;  %v1373_v1 = vsel %vm1357_vm7, %v1332_v49, %v11111_v10  ;;  %v11357_v5 = vpop.permute.xlu1 %1184 }
 0x123   : > { %v1711_v26 = vrot.slane %v1709_v50, 4  ;;  %v1335_v55 = vsel %vm1308_vm6, %v8537_v7, %v11162_v19  ;;  %v1698_v60 = vrot.slane %v1696_v39, 4  ;;  %v1701_v48 = vrot.slane %v1699_v37, 5 }
 0x124   : > { %v1689_v12 = vrot.slane %v1688_v18, 4  ;;  %v1707_v22 = vrot.slane %v1705_v16, 5  ;;  %v1684_v58 = vsel %vm10143_vm5, %v1679_v0, %v1683_v52  ;;  %v1717_v10 = vrot.slane %v1715_v11, 5  ;;  %v11363_v11 = vpop.permute.xlu0 %2724  ;;  %v9788_v0 = vld [vmem:[%s10061_s13 + $0x6c] sm:$0xf] }
 0x125   : > { %v8841_v49 = vrot.slane %v8809_v30, 9  ;;  %v1702_v50 = vor.u32 %v1701_v48, %v1698_v60  ;;  %v3114_v25 = vrot.slane %v8810_v53, 5  ;;  %v3117_v19 = vrot.slane %v8811_v17, 5  ;;  %v8620_v53 = vld [vmem:[%s10061_s13 + $0x78] sm:$0xf] }
 0x126   : > { %v1694_v33 = vsel %vm10143_vm5, %v1689_v12, %v1693_v2  ;;  %v1712_v44 = vor.u32 %v1711_v26, %v1707_v22  ;;  %v8842_v24 = vrot.slane %v8812_v21, 9  ;;  %v3121_v28 = vrot.slane %v8813_v51, 5  ;;  %v9789_v12 = vld [vmem:[%s10061_s13 + $0x70] sm:$0xf] }
 0x127   : > { %v8728_v43 = vcombine.low %v1684_v58, %v1694_v33  ;;  %v3124_v40 = vrot.slane %v8814_v62, 5  ;;  %v1703_v18 = vrot.slane %v1702_v50, 4  ;;  %v3115_v41 = vsel %vm10089_vm2, %v8841_v49, %v3114_v25  ;;  %v11391_v62 = vpop.permute.xlu1 %1296 }
 0x128   : > { %v1713_v2 = vrot.slane %v1712_v44, 4  ;;  %v3116_v29 = vrot.slane %v3114_v25, 4  ;;  %v3122_v7 = vsel %vm10089_vm2, %v8842_v24, %v3121_v28  ;;  %v3123_v30 = vrot.slane %v3121_v28, 4  ;;  %v11409_v24 = vld [vmem:[%s10061_s13 + $0xa0] sm:$0xf] }
 0x129   : > { %v2839_v52 = vsel %vm1308_vm6, %v8728_v43, %v11091_v4  ;;  %v1413_v39 = vsel %vm1390_vm8, %v1373_v1, %v11136_v63  ;;  %v1708_v37 = vsel %vm10143_vm5, %v1703_v18, %v1707_v22  ;;  %v1375_v16 = vsel %vm1357_vm7, %v1335_v55, %v11195_v57  ;;  %v9790_v57 = vld [vmem:[%s10061_s13 + $0x7c] sm:$0xf]  ;;  %v11398_v43 = vpop.permute.xlu0 %2804 }
 0x12a   : > { %v2879_v20 = vsel %vm1357_vm7, %v2839_v52, %v11118_v59  ;;  %v1718_v59 = vsel %vm10143_vm5, %v1713_v2, %v1717_v10  ;;  %v3118_v17 = vsel %vm10089_vm2, %v3116_v29, %v3117_v19  ;;  %v8538_v1 = vcombine.low %v9788_v0, %v9789_v12  ;;  %v8815_v52 = vld [vmem:[%s10061_s13 + $0x90] sm:$0xe]  ;;  %v8816_v29 = vld [vmem:[%s10061_s13 + $0x94] sm:$0xf] }
 0x12b   : > { %v2918_v4 = vsel %vm1390_vm8, %v2879_v20, %v11143_v13  ;;  %v8729_v47 = vcombine.low %v1708_v37, %v1718_v59  ;;  %v3125_v13 = vsel %vm10089_vm2, %v3123_v30, %v3124_v40  ;;  %v8857_v63 = vcombine.low %v3115_v41, %v3118_v17  ;;  %v8818_v59 = vld [vmem:[%s10061_s13 + $0x9c] sm:$0xe] }
 0x12c   : > { %3763 = vmatprep.mubr.bf16.mxu0 %v2918_v4  ;;  %v8858_v21 = vcombine.low %v3122_v7, %v3125_v13  ;;  %v1720_v26 = vshrl.u32 %v8620_v53, 16  ;;  %v1723_v60 = vshll.u32 %v8620_v53, 16  ;;  %v1729_v55 = vshll.u32 %v9790_v57, 16  ;;  %v8817_v7 = vld [vmem:[%s10061_s13 + $0x98] sm:$0x1] }
 0x12d   : > { %3764 = vmatmul.mubr.bf16.gmra.mrb[28].mxu0 %v1413_v39  ;;  %v2842_v51 = vsel %vm1308_vm6, %v8729_v47, %v11170_v6  ;;  %v13788_v48 = vshrl.u32 %v10602_v36, 16  ;;  %v3234_v33 = vsel %vm1308_vm6, %v8857_v63, 0  ;;  %v8623_v6 = vld [vmem:[%s10061_s13 + $0x84] sm:$0xf]  ;;  %v1805_v28 = vshrl.u32 %v11409_v24, 16  ;;  %v11430_v0 = vpop.permute.xlu1 %1106 }
 0x12e   : > { %v2881_v58 = vsel %vm1357_vm7, %v2842_v51, %v11199_v56  ;;  %v3236_v10 = vsel %vm1308_vm6, %v8858_v21, 0  ;;  %v1722_v49 = vrot.slane %v1720_v26, 4  ;;  %v3257_v36 = vsel %vm1357_vm7, %v3234_v33, 0  ;;  %v11405_v56 = vld [vmem:[%s10061_s13 + $0x98] sm:$0x1] }
 0x12f   : > { %v1735_v22 = vrot.slane %v13788_v48, 4  ;;  %v2921_v50 = vsel %vm1390_vm8, %v2881_v58, %v11225_v42  ;;  %v3258_v44 = vsel %vm1357_vm7, %v3236_v10, 0  ;;  %v1725_v25 = vrot.slane %v1723_v60, 5  ;;  %9516 = vmatprep.mubr.msk.bf16.mxu1 %vm1390_vm8, %v3257_v36  ;;  %v9794_v17 = vld [vmem:[%s10061_s13 + $0x7c] sm:$0xf] }
 0x130   : > { %v1787_v19 = vshll.u32 %v11405_v56, 16  ;;  %3771 = vmatprep.mubr.bf16.mxu0 %v2921_v50  ;;  %v1416_v42 = vsel %vm1390_vm8, %v1375_v16, %v11223_v9  ;;  %v1731_v40 = vrot.slane %v1729_v55, 5  ;;  %9517 = vmatmul.mubr.msk.bf16.gmra.mrb[16].mxu1 %vm1390_vm8, %v3258_v44  ;;  %v1338_v18 = vsel %vm1308_vm6, %v8538_v1, %v11246_v15  ;;  %v9793_v16 = vld [vmem:[%s10061_s13 + $0x78] sm:$0xf]  ;;  %v8819_v21 = vld [vmem:[%s10061_s13 + $0xa0] sm:$0xf] }
 0x131   : > { %v1726_v2 = vor.u32 %v1725_v25, %v1722_v49  ;;  %v1744_v41 = vshrl.u32 %v8623_v6, 16  ;;  %v1747_v20 = vshll.u32 %v8623_v6, 16  ;;  %v13789_v53 = vshll.u32 %v11100_v38, 16  ;;  %v8825_v56 = vld [vmem:[%s10061_s13 + $0xb8] sm:$0xf] }
 0x132   : > { %v1736_v30 = vor.u32 %v1735_v22, %v1731_v40  ;;  %v1753_v9 = vshll.u32 %v11173_v54, 16  ;;  %v13790_v39 = vshrl.u32 %v11173_v54, 16  ;;  %v8539_v15 = vcombine.low %v9793_v16, %v9794_v17  ;;  %v11434_v54 = vpop.permute.xlu0 %2614  ;;  %v8820_v22 = vld [vmem:[%s10061_s13 + $0xa4] sm:$0x1] }
 0x133   : > { %v1741_v4 = vrot.slane %v13789_v53, 5  ;;  %v1727_v47 = vrot.slane %v1726_v2, 4  ;;  %v1746_v13 = vrot.slane %v1744_v41, 4  ;;  %v1749_v63 = vrot.slane %v1747_v20, 5 }
 0x134   : > { %v1759_v37 = vrot.slane %v13790_v39, 4  ;;  %v1737_v12 = vrot.slane %v1736_v30, 4  ;;  %v1755_v38 = vrot.slane %v1753_v9, 5  ;;  %v13791_v1 = vshll.u32 %v11215_v14, 16 }
 0x135   : > { %3772 = vmatmul.mubr.bf16.gmra.mrb[32].mxu0 %v1416_v42  ;;  %v8843_v51 = vrot.slane %v8815_v52, 9  ;;  %v1732_v60 = vsel %vm10143_vm5, %v1727_v47, %v1731_v40  ;;  %v1750_v57 = vor.u32 %v1749_v63, %v1746_v13  ;;  %v3128_v55 = vrot.slane %v8816_v29, 5  ;;  %v8626_v29 = vld [vmem:[%s10061_s13 + $0x90] sm:$0xf]  ;;  %v8629_v63 = vld [vmem:[%s10061_s13 + $0x9c] sm:$0xf] }
 0x136   : > { %v1765_v26 = vrot.slane %v13791_v1, 5  ;;  %v3131_v48 = vrot.slane %v8817_v7, 5  ;;  %v1742_v58 = vsel %vm10143_vm5, %v1737_v12, %v1741_v4  ;;  %v1760_v33 = vor.u32 %v1759_v37, %v1755_v38  ;;  %v11454_v7 = vpop.permute.xlu1 %1186 }
 0x137   : > { %v8844_v10 = vrot.slane %v8818_v59, 9  ;;  %v3135_v49 = vrot.slane %v8819_v21, 5  ;;  %v8730_v6 = vcombine.low %v1732_v60, %v1742_v58  ;;  %v1751_v14 = vrot.slane %v1750_v57, 4  ;;  %v9796_v57 = vld [vmem:[%s10061_s13 + $0x84] sm:$0xf] }
 0x138   : > { %v3129_v50 = vsel %vm10089_vm2, %v8843_v51, %v3128_v55  ;;  %v3130_v36 = vrot.slane %v3128_v55, 4  ;;  %v1761_v44 = vrot.slane %v1760_v33, 4  ;;  %v3138_v40 = vrot.slane %v8820_v22, 5  ;;  %v9797_v55 = vld [vmem:[%s10061_s13 + $0x88] sm:$0xf] }
 0x139   : > { %v3136_v25 = vsel %vm10089_vm2, %v8844_v10, %v3135_v49  ;;  %v3137_v42 = vrot.slane %v3135_v49, 4  ;;  %v2845_v52 = vsel %vm1308_vm6, %v8730_v6, %v11248_v27  ;;  %v1377_v2 = vsel %vm1357_vm7, %v1338_v18, %v11272_v8  ;;  %v11462_v8 = vpop.permute.xlu0 %2726  ;;  %v8821_v33 = vld [vmem:[%s10061_s13 + $0xa8] sm:$0xe]  ;;  %v8822_v10 = vld [vmem:[%s10061_s13 + $0xac] sm:$0xf] }
 0x13a   : > { %v1756_v41 = vsel %vm10143_vm5, %v1751_v14, %v1755_v38  ;;  %v3132_v20 = vsel %vm10089_vm2, %v3130_v36, %v3131_v48  ;;  %v2883_v30 = vsel %vm1357_vm7, %v2845_v52, %v11277_v46  ;;  %v1766_v53 = vsel %vm10143_vm5, %v1761_v44, %v1765_v26  ;;  %v8823_v14 = vld [vmem:[%s10061_s13 + $0xb0] sm:$0x1] }
 0x13b   : > { %v8859_v4 = vcombine.low %v3129_v50, %v3132_v20  ;;  %v3139_v27 = vsel %vm10089_vm2, %v3137_v42, %v3138_v40  ;;  %v2924_v18 = vsel %vm1390_vm8, %v2883_v30, %v11304_v32  ;;  %v1419_v9 = vsel %vm1390_vm8, %v1377_v2, %v11297_v31 }
 0x13c   : > { %v8731_v39 = vcombine.low %v1756_v41, %v1766_v53  ;;  %v8860_v37 = vcombine.low %v3136_v25, %v3139_v27  ;;  %3779 = vmatprep.mubr.bf16.mxu0 %v2924_v18  ;;  %v1341_v46 = vsel %vm1308_vm6, %v8539_v15, %v11331_v3  ;;  %v1768_v47 = vshrl.u32 %v8626_v29, 16  ;;  %v8824_v25 = vld [vmem:[%s10061_s13 + $0xb4] sm:$0xe]  ;;  %v8826_v53 = vld [vmem:[%s10061_s13 + $0xbc] sm:$0x1]  ;;  %v9698_v27 = vld [vmem:[%s13769_s5 + $0x80] sm:$0xff]  }
 0x13d   : > { %v3238_v59 = vsel %vm1308_vm6, %v8859_v4, 0  ;;  %v1771_v16 = vshll.u32 %v8626_v29, 16  ;;  %3780 = vmatmul.mubr.bf16.gmra.mrb[36].mxu0 %v1419_v9  ;;  %v1777_v31 = vshll.u32 %v11334_v45, 16  ;;  %v1783_v51 = vrot.slane %v1781_v23, 4  ;;  %v2807_v58 = vpop.permute.xlu0 %2806  ;;  %v9699_v18 = vld [vmem:[%s13769_s5 + $0x88] sm:$0xff]   ;;  %9532 = vmatprep.subr.bf16.mxu0 %v9698_v27 }
 0x13e   : > { %v2848_v17 = vsel %vm1308_vm6, %v8731_v39, %v11341_v61  ;;  %v3259_v32 = vsel %vm1357_vm7, %v3238_v59, 0  ;;  %v3240_v13 = vsel %vm1308_vm6, %v8860_v37, 0  ;;  %v1770_v21 = vrot.slane %v1768_v47, 4  ;;  %v9795_v61 = vld [vmem:[%s10061_s13 + $0xa4] sm:$0x1]  ;;  %9533 = vmatpush3.bf16.msra.mxu0 %v9698_v27 }
 0x13f   : > { %v2885_v3 = vsel %vm1357_vm7, %v2848_v17, %v11363_v11  ;;  %9520 = vmatprep.mubr.msk.bf16.mxu1 %vm1390_vm8, %v3259_v32  ;;  %v3260_v15 = vsel %vm1357_vm7, %v3240_v13, 0  ;;  %v1773_v12 = vrot.slane %v1771_v16, 5  ;;  %v1811_v38 = vshll.u32 %v9795_v61, 16  ;;  %v11487_v11 = vpop.permute.xlu1 %1298  ;;  %9534 = vmatprep.subr.bf16.mxu0 %v9699_v18  ;;  %v8632_v61 = vld [vmem:[%s10061_s13 + $0xa8] sm:$0xf] }
 0x140   : > { %v2927_v1 = vsel %vm1390_vm8, %v2885_v3, %v11398_v43  ;;  %9521 = vmatmul.mubr.msk.bf16.gmra.mrb[20].mxu1 %vm1390_vm8, %v3260_v15  ;;  %v1779_v26 = vrot.slane %v1777_v31, 5  ;;  %v1379_v60 = vsel %vm1357_vm7, %v1341_v46, %v11357_v5  ;;  %v8540_v48 = vcombine.low %v9796_v57, %v9797_v55 }
 0x141   : > { %3787 = vmatprep.mubr.bf16.mxu0 %v2927_v1  ;;  %v1774_v22 = vor.u32 %v1773_v12, %v1770_v21  ;;  %v1792_v43 = vshrl.u32 %v8629_v63, 16  ;;  %v1789_v45 = vrot.slane %v1787_v19, 5  ;;  %v1795_v23 = vshll.u32 %v8629_v63, 16 }
 0x142   : > { %v1784_v49 = vor.u32 %v1783_v51, %v1779_v26  ;;  %v1801_v6 = vshll.u32 %v11409_v24, 16  ;;  %v1422_v5 = vsel %vm1390_vm8, %v1379_v60, %v11391_v62  ;;  %v1807_v44 = vrot.slane %v1805_v28, 4  ;;  %v2617_v39 = vpop.permute.xlu0 %2616  ;;  %v9800_v51 = vld [vmem:[%s10061_s13 + $0x94] sm:$0xf]  ;;  %9535 = vmatpush3.bf16.msra.mxu0 %v9699_v18 }
 0x143   : > { %v1775_v50 = vrot.slane %v1774_v22, 4  ;;  %v1794_v36 = vrot.slane %v1792_v43, 4  ;;  %v1797_v40 = vrot.slane %v1795_v23, 5  ;;  %v8845_v2 = vrot.slane %v8821_v33, 9  ;;  %v1109_v30 = vpop.permute.xlu1 %1108  ;;  %v8828_v23 = vld [vmem:[%s10061_s13 + $0xc4] sm:$0xf] }
 0x144   : > { %v1785_v42 = vrot.slane %v1784_v49, 4  ;;  %v1803_v52 = vrot.slane %v1801_v6, 5  ;;  %v1813_v41 = vrot.slane %v1811_v38, 5  ;;  %v3142_v20 = vrot.slane %v8822_v10, 5  ;;  %v9798_v38 = vld [vmem:[%s10061_s13 + $0xac] sm:$0xf] }
 0x145   : > { %v1780_v19 = vsel %vm10143_vm5, %v1775_v50, %v1779_v26  ;;  %v3145_v29 = vrot.slane %v8823_v14, 5  ;;  %3788 = vmatmul.mubr.bf16.gmra.mrb[40].mxu0 %v1422_v5  ;;  %v1798_v24 = vor.u32 %v1797_v40, %v1794_v36  ;;  %v8846_v4 = vrot.slane %v8824_v25, 9  ;;  %v9799_v26 = vld [vmem:[%s10061_s13 + $0x90] sm:$0xf]  ;;  %v8829_v14 = vld [vmem:[%s10061_s13 + $0xc8] sm:$0x1] }
 0x146   : > { %v1790_v62 = vsel %vm10143_vm5, %v1785_v42, %v1789_v45  ;;  %v1808_v28 = vor.u32 %v1807_v44, %v1803_v52  ;;  %v3143_v37 = vsel %vm10089_vm2, %v8845_v2, %v3142_v20  ;;  %v3144_v46 = vrot.slane %v3142_v20, 4  ;;  %v8830_v2 = vld [vmem:[%s10061_s13 + $0xcc] sm:$0xe] }
 0x147   : > { %v8732_v9 = vcombine.low %v1780_v19, %v1790_v62  ;;  %v3149_v59 = vrot.slane %v8825_v56, 5  ;;  %v1799_v47 = vrot.slane %v1798_v24, 4  ;;  %v1344_v17 = vsel %vm1308_vm6, %v8540_v48, %v11430_v0  ;;  %v1189_v57 = vpop.permute.xlu1 %1188  ;;  %v8831_v62 = vld [vmem:[%s10061_s13 + $0xd0] sm:$0xf] }
 0x148   : > { %v1809_v16 = vrot.slane %v1808_v28, 4  ;;  %v3146_v13 = vsel %vm10089_vm2, %v3144_v46, %v3145_v29  ;;  %v3152_v31 = vrot.slane %v8826_v53, 5  ;;  %v1829_v1 = vshrl.u32 %v9798_v38, 16  ;;  %v8832_v28 = vld [vmem:[%s10061_s13 + $0xd4] sm:$0x1] }
 0x149   : > { %v2851_v32 = vsel %vm1308_vm6, %v8732_v9, %v11434_v54  ;;  %v1804_v3 = vsel %vm10143_vm5, %v1799_v47, %v1803_v52  ;;  %v8861_v0 = vcombine.low %v3143_v37, %v3146_v13  ;;  %v3150_v21 = vsel %vm10089_vm2, %v8846_v4, %v3149_v59  ;;  %v9700_v9 = vld [vmem:[%s13769_s5 + $0x90] sm:$0xff]  }
 0x14a   : > { %v2887_v63 = vsel %vm1357_vm7, %v2851_v32, %v11462_v8  ;;  %v1814_v15 = vsel %vm10143_vm5, %v1809_v16, %v1813_v41  ;;  %v3151_v12 = vrot.slane %v3149_v59, 4  ;;  %v1381_v8 = vsel %vm1357_vm7, %v1344_v17, %v11454_v7  ;;  %v9801_v37 = vld [vmem:[%s10061_s13 + $0xb0] sm:$0x1]  ;;  %9536 = vmatprep.subr.bf16.mxu0 %v9700_v9 }
 0x14b   : > { %v2930_v54 = vsel %vm1390_vm8, %v2887_v63, %v2807_v58  ;;  %v8541_v60 = vcombine.low %v9799_v26, %v9800_v51  ;;  %v3242_v55 = vsel %vm1308_vm6, %v8861_v0, 0  ;;  %v1425_v48 = vsel %vm1390_vm8, %v1381_v8, %v11487_v11  ;;  %v2729_v58 = vpop.permute.xlu0 %2728  ;;  %v8827_v11 = vld [vmem:[%s10061_s13 + $0xc0] sm:$0xe]  ;;  %v1301_v25 = vpop.permute.xlu1 %1300  ;;  %9537 = vmatpush3.bf16.msra.mxu0 %v9700_v9  ;;  %v3328_v51 = vld [vmem:[#allocation3 + $0xc] sm:$0x1] }
 0x14c   : > { %3795 = vmatprep.mubr.bf16.mxu0 %v2930_v54  ;;  %v8733_v22 = vcombine.low %v1804_v3, %v1814_v15  ;;  %v3261_v43 = vsel %vm1357_vm7, %v3242_v55, 0  ;;  %v3153_v7 = vsel %vm10089_vm2, %v3151_v12, %v3152_v31  ;;  %v1816_v10 = vshrl.u32 %v8632_v61, 16  ;;  %v11582_v12 = vld [vmem:[%s10061_s13 + $0xb8] sm:$0xf] }
 0x14d   : > { %3796 = vmatmul.mubr.bf16.gmra.mrb[44].mxu0 %v1425_v48  ;;  %9524 = vmatprep.mubr.msk.bf16.mxu1 %vm1390_vm8, %v3261_v43  ;;  %v8862_v33 = vcombine.low %v3150_v21, %v3153_v7  ;;  %v1819_v49 = vshll.u32 %v8632_v61, 16  ;;  %v1825_v45 = vshll.u32 %v9798_v38, 16  ;;  %v1347_v5 = vsel %vm1308_vm6, %v8541_v60, %v1109_v30  ;;  %v9703_v21 = vld [vmem:[%s13769_s5 + $0xa0] sm:$0xff]   ;;  %v3331_v60 = vld [vmem:[#allocation3 + $0x18] sm:$0x1] }
 0x14e   : > { %v1831_v36 = vrot.slane %v1829_v1, 4  ;;  %v2854_v44 = vsel %vm1308_vm6, %v8733_v22, %v2617_v39  ;;  %v1818_v42 = vrot.slane %v1816_v10, 4  ;;  %v8847_v41 = vrot.slane %v8827_v11, 9  ;;  %v9702_v39 = vld [vmem:[%s13769_s5 + $0x98] sm:$0xff]   ;;  %v11588_v1 = vld [vmem:[%s10061_s13 + $0xb4] sm:$0xf] }
 0x14f   : > { %v3244_v6 = vsel %vm1308_vm6, %v8862_v33, 0  ;;  %v1821_v40 = vrot.slane %v1819_v49, 5  ;;  %v11554_v52 = vrot.slane %v1825_v45, 5  ;;  %v2889_v56 = vsel %vm1357_vm7, %v2854_v44, %v2729_v58  ;;  %9538 = vmatprep.subr.bf16.mxu0 %v9702_v39  ;;  %v3384_v48 = vld [vmem:[#allocation3 + $0x14] sm:$0x1] }
 0x150   : > { %v3262_v50 = vsel %vm1357_vm7, %v3244_v6, 0  ;;  %v3156_v20 = vrot.slane %v8828_v23, 5  ;;  %v3159_v29 = vrot.slane %v8829_v14, 5  ;;  %v1383_v30 = vsel %vm1357_vm7, %v1347_v5, %v1189_v57  ;;  %v3387_v22 = vld [vmem:[#allocation3 + $0x20] sm:$0x1]  ;;  %9539 = vmatpush3.bf16.msra.mxu0 %v9702_v39 }
 0x151   : > { %9525 = vmatmul.mubr.msk.bf16.gmra.mrb[24].mxu1 %vm1390_vm8, %v3262_v50  ;;  %v2809_v19 = vpop.permute.xlu0 %2808  ;;  %v1428_v53 = vsel %vm1390_vm8, %v1383_v30, %v1301_v25  ;;  %v8848_v18 = vrot.slane %v8830_v2, 9  ;;  %v1835_v46 = vshll.u32 %v9801_v37, 16  ;;  %v1822_v59 = vor.u32 %v1821_v40, %v1818_v42  ;;  %v3334_v58 = vld [vmem:[#allocation3 + $0x24] sm:$0x1]  ;;  %v3337_v43 = vld [vmem:[#allocation3 + $0x30] sm:$0x1]  ;;  %9540 = vmatprep.subr.bf16.mxu0 %v9703_v21 }
 0x152   : > { %v2933_v24 = vsel %vm1390_vm8, %v2889_v56, %v2809_v19  ;;  %v3157_v4 = vsel %vm10089_vm2, %v8847_v41, %v3156_v20  ;;  %v3158_v27 = vrot.slane %v3156_v20, 4  ;;  %v1832_v47 = vor.u32 %v1831_v36, %v11554_v52  ;;  %v3390_v45 = vld [vmem:[#allocation3 + $0x2c] sm:$0x1]  ;;  %v3393_v23 = vld [vmem:[#allocation3 + $0x38] sm:$0x1] }
 0x153   : > { %3803 = vmatprep.mubr.bf16.mxu0 %v2933_v24  ;;  %v3163_v16 = vrot.slane %v8831_v62, 5  ;;  %v3166_v32 = vrot.slane %v8832_v28, 5  ;;  %v1823_v3 = vrot.slane %v1822_v59, 4  ;;  %v1837_v0 = vrot.slane %v1835_v46, 5  ;;  %v9803_v6 = vld [vmem:[%s10061_s13 + $0x9c] sm:$0xf] }
 0x154   : > { %v3160_v17 = vsel %vm10089_vm2, %v3158_v27, %v3159_v29  ;;  %v1833_v15 = vrot.slane %v1832_v47, 4  ;;  %v1853_v61 = vshrl.u32 %v11582_v12, 16  ;;  %v9804_v11 = vld [vmem:[%s10061_s13 + $0xa0] sm:$0xf]  ;;  %v3329_v50 = vsel %vm11602_vm13, 0, %v3328_v51  ;;  %9541 = vmatpush3.bf16.msra.mxu0 %v9703_v21  ;;  %v9706_v59 = vld [vmem:[%s13769_s5 + $0xa8] sm:$0xff]  }
 0x155   : > { %3804 = vmatmul.mubr.bf16.gmra.mrb[48].mxu0 %v1428_v53  ;;  %v8863_v13 = vcombine.low %v3157_v4, %v3160_v17  ;;  %v3164_v31 = vsel %vm10089_vm2, %v8848_v18, %v3163_v16  ;;  %v3165_v63 = vrot.slane %v3163_v16, 4  ;;  %v1828_v7 = vsel %vm10143_vm5, %v1823_v3, %v11554_v52  ;;  %v3340_v25 = vld [vmem:[#allocation3 + $0x3c] sm:$0x1]  ;;  %3330 = vst [vmem:[#allocation3 + $0xc] sm:$0x1] %v3329_v50  ;;  %v9707_v51 = vld [vmem:[%s13769_s5 + $0xb0] sm:$0xff]  }
 0x156   : > { %v1838_v33 = vsel %vm10143_vm5, %v1833_v15, %v1837_v0  ;;  %v8542_v14 = vcombine.low %v9803_v6, %v9804_v11  ;;  %v3332_v36 = vsel %vm11602_vm13, 0, %v3331_v60  ;;  %v9944_v44 = vmov 0   ;;  %9542 = vmatprep.subr.bf16.mxu0 %v9706_v59 }
 0x157   : > { %v3246_v54 = vsel %vm1308_vm6, %v8863_v13, 0  ;;  %v3167_v26 = vsel %vm10089_vm2, %v3165_v63, %v3166_v32  ;;  %3314 = vst.msk [vmem:[#allocation3] sm:$0xf] %vm3313_vm9, %v9944_v44  ;;  %3315 = vst.msk [vmem:[#allocation3 + $0x4] sm:$0xf] %vm3313_vm9, %v9944_v44  ;;  %v1840_v52 = vshrl.u32 %v11588_v1, 16  ;;  %v8734_v20 = vcombine.low %v1828_v7, %v1838_v33 }
 0x158   : > { %v3263_v8 = vsel %vm1357_vm7, %v3246_v54, 0  ;;  %v8864_v55 = vcombine.low %v3164_v31, %v3167_v26  ;;  %3317 = vst.msk [vmem:[#allocation3 + $0x8] sm:$0x1] %vm3316_vm10, %v9944_v44  ;;  %3321 = vst.msk [vmem:[#allocation3 + $0xd4] sm:$0x1] %vm3316_vm10, %v9944_v44  ;;  %v1843_v2 = vshll.u32 %v11588_v1, 16  ;;  %9543 = vmatpush3.bf16.msra.mxu0 %v9706_v59 }
 0x159   : > { %v11585_v38 = vpop.permute.xlu0 %2618  ;;  %9528 = vmatprep.mubr.msk.bf16.mxu1 %vm1390_vm8, %v3263_v8  ;;  %3319 = vst.msk [vmem:[#allocation3 + $0xcc] sm:$0xf] %vm3313_vm9, %v9944_v44  ;;  %3320 = vst.msk [vmem:[#allocation3 + $0xd0] sm:$0xf] %vm3313_vm9, %v9944_v44  ;;  %v3335_v19 = vsel %vm11602_vm13, 0, %v3334_v58  ;;  %v3338_v41 = vsel %vm11602_vm13, 0, %v3337_v43  ;;  %9544 = vmatprep.subr.bf16.mxu0 %v9707_v51 }
 0x15a   : > { %v1111_v57 = vpop.permute.xlu1 %1110  ;;  %v3248_v10 = vsel %vm1308_vm6, %v8864_v55, 0  ;;  %3333 = vst [vmem:[#allocation3 + $0x18] sm:$0x1] %v3332_v36  ;;  %v1849_v29 = vshll.u32 %v11582_v12, 16  ;;  %v3385_v62 = vsel %vm11624_vm14, 0, %v3384_v48  ;;  %v3388_v30 = vsel %vm11624_vm14, 0, %v3387_v22 }
 0x15b   : > { %v3264_v5 = vsel %vm1357_vm7, %v3248_v10, 0  ;;  %3336 = vst [vmem:[#allocation3 + $0x24] sm:$0x1] %v3335_v19  ;;  %3339 = vst [vmem:[#allocation3 + $0x30] sm:$0x1] %v3338_v41  ;;  %v3391_v24 = vsel %vm11624_vm14, 0, %v3390_v45  ;;  %v1350_v4 = vsel %vm1308_vm6, %v8542_v14, %v1111_v57  ;;  %v2857_v18 = vsel %vm1308_vm6, %v8734_v20, %v11585_v38 }
 0x15c   : > { %9529 = vmatmul.mubr.msk.bf16.gmra.mrb[28].mxu1 %vm1390_vm8, %v3264_v5  ;;  %3386 = vst [vmem:[#allocation3 + $0x14] sm:$0x1] %v3385_v62  ;;  %3389 = vst [vmem:[#allocation3 + $0x20] sm:$0x1] %v3388_v30  ;;  %v3394_v28 = vsel %vm11624_vm14, 0, %v3393_v23  ;;  %v3341_v53 = vsel %vm11602_vm13, 0, %v3340_v25  ;;  %9545 = vmatpush3.bf16.msra.mxu0 %v9707_v51 }
 0x15d   : > { %v2731_v40 = vpop.permute.xlu0 %2730  ;;  %3392 = vst [vmem:[#allocation3 + $0x2c] sm:$0x1] %v3391_v24  ;;  %3395 = vst [vmem:[#allocation3 + $0x38] sm:$0x1] %v3394_v28  ;;  %v1842_v27 = vrot.slane %v1840_v52, 4  ;;  %v1845_v39 = vrot.slane %v1843_v2, 5 }
 0x15e   : > { %v1191_v42 = vpop.permute.xlu1 %1190  ;;  %3342 = vst [vmem:[#allocation3 + $0x3c] sm:$0x1] %v3341_v53  ;;  %v11646_v37 = vrot.slane %v1849_v29, 5  ;;  %v1855_v46 = vrot.slane %v1853_v61, 4  ;;  %v2891_v47 = vsel %vm1357_vm7, %v2857_v18, %v2731_v40  ;;  %v3325_v17 = vld [vmem:[#allocation3] sm:$0x1] }
 0x15f   : > { %v3381_v32 = vld [vmem:[#allocation3 + $0x8] sm:$0x1]  ;;  %v11654_v13 = vld [vmem:[#allocation3 + $0x4] sm:$0xf]  ;;  %v1385_v31 = vsel %vm1357_vm7, %v1350_v4, %v1191_v42  ;;  %v3326_v3 = vsel %vm11602_vm13, 0, %v3325_v17  ;;  %v1846_v38 = vor.u32 %v1845_v39, %v1842_v27  ;;  %v9709_v55 = vld [vmem:[%s13769_s5 + $0xb8] sm:$0xff]  }
 0x160   : > { %v3382_v15 = vsel %vm11624_vm14, 0, %v3381_v32  ;;  %3327 = vst [vmem:[#allocation3] sm:$0x1] %v3326_v3  ;;  %v4698_v54 = vshll.u32 %v11654_v13, 16  ;;  %v4702_v21 = vshrl.u32 %v11654_v13, 16  ;;  %v1856_v1 = vor.u32 %v1855_v46, %v11646_v37  ;;  %9546 = vmatprep.subr.bf16.mxu0 %v9709_v55 }
 0x161   : > { %3383 = vst [vmem:[#allocation3 + $0x8] sm:$0x1] %v3382_v15  ;;  %v9805_v12 = vld [vmem:[%s10061_s13 + $0xbc] sm:$0x1]  ;;  %v3396_v57 = vld [vmem:[#allocation3 + $0x44] sm:$0x1]  ;;  %9547 = vmatpush3.bf16.msra.mxu0 %v9709_v55 }
 0x162   : > { %v1303_v9 = vpop.permute.xlu1 %1302  ;;  %v1859_v61 = vshll.u32 %v9805_v12, 16  ;;  %v4700_v8 = vrot.slane %v4698_v54, 5  ;;  %v4704_v26 = vrot.slane %v4702_v21, 4  ;;  %v1847_v48 = vrot.slane %v1846_v38, 4  ;;  %v3343_v45 = vld [vmem:[#allocation3 + $0x48] sm:$0x1] }
 0x163   : > { %v1431_v0 = vsel %vm1390_vm8, %v1385_v31, %v1303_v9  ;;  %v1857_v22 = vrot.slane %v1856_v1, 4  ;;  %v3397_v43 = vsel %vm11624_vm14, 0, %v3396_v57  ;;  %v5138_v5 = vrot.slane %v11654_v13, 5  ;;  %v5072_v50 = vld [vmem:[#allocation3] sm:$0xe] }
 0x164   : > { %v2811_v16 = vpop.permute.xlu0 %2810  ;;  %v1861_v60 = vrot.slane %v1859_v61, 5  ;;  %v4705_v58 = vor.u32 %v4704_v26, %v4700_v8  ;;  %3398 = vst [vmem:[#allocation3 + $0x44] sm:$0x1] %v3397_v43  ;;  %v3344_v36 = vsel %vm11602_vm13, 0, %v3343_v45  ;;  %v1852_v52 = vsel %vm10143_vm5, %v1847_v48, %v11646_v37  ;;  %v8638_v19 = vld [vmem:[%s10061_s13 + $0xc0] sm:$0xf] }
 0x165   : > { %v2936_v63 = vsel %vm1390_vm8, %v2891_v47, %v2811_v16  ;;  %3345 = vst [vmem:[#allocation3 + $0x48] sm:$0x1] %v3344_v36  ;;  %v8923_v29 = vrot.slane %v5072_v50, 9  ;;  %v5140_v62 = vrot.slane %v5138_v5, 4  ;;  %v9806_v30 = vld [vmem:[%s10061_s13 + $0xc4] sm:$0xf] }
 0x166   : > { %3811 = vmatprep.mubr.bf16.mxu0 %v2936_v63  ;;  %v4706_v42 = vrot.slane %v4705_v58, 4  ;;  %v1862_v2 = vsel %vm10143_vm5, %v1857_v22, %v1861_v60  ;;  %v1877_v24 = vshrl.u32 %v9806_v30, 16  ;;  %v9807_v53 = vld [vmem:[%s10061_s13 + $0xa8] sm:$0xf]  ;;  %v9808_v4 = vld [vmem:[%s10061_s13 + $0xac] sm:$0xf] }
 0x167   : > { %3812 = vmatmul.mubr.bf16.gmra.mrb[52].mxu0 %v1431_v0  ;;  %v4640_v33 = vld [vmem:[#allocation3] sm:$0xf]  ;;  %v8543_v27 = vcombine.low %v9807_v53, %v9808_v4  ;;  %v1864_v9 = vshrl.u32 %v8638_v19, 16  ;;  %v8735_v46 = vcombine.low %v1852_v52, %v1862_v2  ;;  %v1867_v59 = vshll.u32 %v8638_v19, 16  ;;  %v3399_v61 = vld [vmem:[#allocation3 + $0x50] sm:$0x1] }
 0x168   : > { %v4672_v10 = vld [vmem:[#allocation3 + $0x8] sm:$0x1]  ;;  %v4689_v6 = vshrl.u32 %v4640_v33, 16  ;;  %v4692_v11 = vshll.u32 %v4640_v33, 16  ;;  %v1873_v47 = vshll.u32 %v9806_v30, 16  ;;  %v5139_v17 = vsel %vm10089_vm2, %v8923_v29, %v5138_v5 }
 0x169   : > { %v4708_v14 = vshll.u32 %v4672_v10, 16  ;;  %v5141_v20 = vrot.slane %v4672_v10, 5  ;;  %v1866_v63 = vrot.slane %v1864_v9, 4  ;;  %v1879_v3 = vrot.slane %v1877_v24, 4  ;;  %v3346_v57 = vld [vmem:[#allocation3 + $0x54] sm:$0x1] }
 0x16a   : > { %v4691_v44 = vrot.slane %v4689_v6, 4  ;;  %v4694_v25 = vrot.slane %v4692_v11, 5  ;;  %v1869_v54 = vrot.slane %v1867_v59, 5  ;;  %v1875_v21 = vrot.slane %v1873_v47, 5  ;;  %v9809_v55 = vld [vmem:[%s10061_s13 + $0xc8] sm:$0x1] }
 0x16b   : > { %v1113_v7 = vpop.permute.xlu1 %1112  ;;  %v4710_v40 = vrot.slane %v4708_v14, 5  ;;  %v5142_v32 = vsel %vm10089_vm2, %v5140_v62, %v5141_v20  ;;  %v1883_v48 = vshll.u32 %v9809_v55, 16  ;;  %v3347_v43 = vsel %vm11602_vm13, 0, %v3346_v57  ;;  %v3402_v14 = vld [vmem:[#allocation3 + $0x5c] sm:$0x1] }
 0x16c   : > { %v2621_v23 = vpop.permute.xlu0 %2620  ;;  %v4695_v41 = vor.u32 %v4694_v25, %v4691_v44  ;;  %v1353_v31 = vsel %vm1308_vm6, %v8543_v27, %v1113_v7  ;;  %v8971_v12 = vcombine.low %v5139_v17, %v5142_v32  ;;  %v1870_v22 = vor.u32 %v1869_v54, %v1866_v63  ;;  %3348 = vst [vmem:[#allocation3 + $0x54] sm:$0x1] %v3347_v43  ;;  %v9810_v50 = vld [vmem:[%s10061_s13 + $0xb4] sm:$0xf]  ;;  %v9811_v36 = vld [vmem:[%s10061_s13 + $0xb8] sm:$0xf] }
 0x16d   : > { %v4711_v37 = vsel %vm10143_vm5, %v4706_v42, %v4710_v40  ;;  %v2860_v15 = vsel %vm1308_vm6, %v8735_v46, %v2621_v23  ;;  %v1880_v58 = vor.u32 %v1879_v3, %v1875_v21  ;;  %v1885_v10 = vrot.slane %v1883_v48, 5  ;;  %v3349_v2 = vld [vmem:[#allocation3 + $0x60] sm:$0x1]  ;;  %v3405_v63 = vld [vmem:[#allocation3 + $0x68] sm:$0x1] }
 0x16e   : > { %v4696_v39 = vrot.slane %v4695_v41, 4  ;;  %v1871_v7 = vrot.slane %v1870_v22, 4  ;;  %v3403_v5 = vsel %vm11624_vm14, 0, %v3402_v14  ;;  %v8544_v44 = vcombine.low %v9810_v50, %v9811_v36  ;;  %v11732_v17 = vld [vmem:[%s13768_s4] ss:$0 sm:$0xff] }
 0x16f   : > { %v1193_v28 = vpop.permute.xlu1 %1192  ;;  %v1881_v33 = vrot.slane %v1880_v58, 4  ;;  %3404 = vst [vmem:[#allocation3 + $0x5c] sm:$0x1] %v3403_v5  ;;  %v3350_v20 = vsel %vm11602_vm13, 0, %v3349_v2  ;;  %v3406_v3 = vsel %vm11624_vm14, 0, %v3405_v63 }
 0x170   : > { %v2733_v18 = vpop.permute.xlu0 %2732  ;;  %v4701_v16 = vsel %vm10143_vm5, %v4696_v39, %v4700_v8  ;;  %v3400_v8 = vsel %vm11624_vm14, 0, %v3399_v61  ;;  %v1387_v26 = vsel %vm1357_vm7, %v1353_v31, %v1193_v28  ;;  %v1876_v6 = vsel %vm10143_vm5, %v1871_v7, %v1875_v21  ;;  %3351 = vst [vmem:[#allocation3 + $0x60] sm:$0x1] %v3350_v20  ;;  %3407 = vst [vmem:[#allocation3 + $0x68] sm:$0x1] %v3406_v3 }
 0x171   : > { %v8955_v13 = vcombine.low %v4701_v16, %v4711_v37  ;;  %v2893_v38 = vsel %vm1357_vm7, %v2860_v15, %v2733_v18  ;;  %3401 = vst [vmem:[#allocation3 + $0x50] sm:$0x1] %v3400_v8  ;;  %v1886_v11 = vsel %vm10143_vm5, %v1881_v33, %v1885_v10  ;;  %v11727_v37 = vld [vmem:[%s13767_s3] ss:$0 sm:$0xff]  ;;  %v3352_v54 = vld [vmem:[#allocation3 + $0x6c] sm:$0x1] }
 0x172   : > { %v8736_v40 = vcombine.low %v1876_v6, %v1886_v11  ;;  %v3408_v20 = vld [vmem:[#allocation3 + $0x74] sm:$0x1] }
 0x173   : > { %v1305_v0 = vpop.permute.xlu1 %1304  ;;  %5392 = vrot.lane.b32.xlu1 %v8955_v13, %s9943_s22 }
 0x174   : > { %v1434_v60 = vsel %vm1390_vm8, %v1387_v26, %v1305_v0 }
 0x177   : > { %5472 = vrot.lane.b32.xlu1 %v8971_v12, %s9941_s20 }
 0x17a   : > { %v2813_v1 = vpop.permute.xlu0 %2812 }
 0x17b   : > { %v2939_v51 = vsel %vm1390_vm8, %v2893_v38, %v2813_v1  ;;  %v3353_v38 = vsel %vm11602_vm13, 0, %v3352_v54 }
 0x17c   : > { %3819 = vmatprep.mubr.bf16.mxu0 %v2939_v51  ;;  %3354 = vst [vmem:[#allocation3 + $0x6c] sm:$0x1] %v3353_v38 }
 0x17d   : > { %3820 = vmatmul.mubr.bf16.gmra.mrb[56].mxu0 %v1434_v60 }
 0x182   : > { %v2623_v45 = vpop.permute.xlu0 %2622 }
 0x183   : > { %v1115_v23 = vpop.permute.xlu1 %1114  ;;  %v2863_v19 = vsel %vm1308_vm6, %v8736_v40, %v2623_v45 }
 0x184   : > { %v1356_v52 = vsel %vm1308_vm6, %v8544_v44, %v1115_v23  ;;  %v4528_v23 = vld [vmem:[#allocation3 + $0xc] sm:$0xf] }
 0x186   : > { %v2735_v42 = vpop.permute.xlu0 %2734 }
 0x187   : > { %v1195_v25 = vpop.permute.xlu1 %1194  ;;  %v2895_v29 = vsel %vm1357_vm7, %v2863_v19, %v2735_v42 }
 0x188   : > { %v1389_v24 = vsel %vm1357_vm7, %v1356_v52, %v1195_v25  ;;  %v4532_v25 = vld [vmem:[#allocation3 + $0x14] sm:$0x1] }
 0x18b   : > { %v1307_v41 = vpop.permute.xlu1 %1306 }
 0x18c   : > { %v9228_v30 = vpop.f32.mrb[0].mxu0  ;;  %v1437_v4 = vsel %vm1390_vm8, %v1389_v24, %v1307_v41  ;;  %v3409_v24 = vsel %vm11624_vm14, 0, %v3408_v20 }
 0x18d   : > { %v2815_v62 = vpop.permute.xlu0 %2814  ;;  %v9229_v53 = vpop.f32.mrb[1].mxu0  ;;  %3410 = vst [vmem:[#allocation3 + $0x74] sm:$0x1] %v3409_v24 }
 0x18e   : > { %v2942_v28 = vsel %vm1390_vm8, %v2895_v29, %v2815_v62  ;;  %v9230_v18 = vadd.f32 %v9229_v53, %v9228_v30  ;;  %v9231_v9 = vpop.f32.mrb[2].mxu0 }
 0x18f   : > { %3827 = vmatprep.mubr.bf16.mxu0 %v2942_v28  ;;  %v9502_v27 = vpop.f32.mrb[0].mxu1  ;;  %v9232_v46 = vpop.f32.mrb[3].mxu0 }
 0x190   : > { %3828 = vmatmul.mubr.bf16.gmra.mrb[60].mxu0 %v1437_v4  ;;  %v3870_v39 = vpop.f32.mrb[1].mxu1  ;;  %v9233_v16 = vadd.f32 %v9232_v46, %v9231_v9  ;;  %v4535_v9 = vld [vmem:[#allocation3 + $0x18] sm:$0xf] }
 0x191   : > { %v3871_v59 = vadd.f32 %v9230_v18, %v3870_v39  ;;  %v9503_v47 = vpop.f32.mrb[2].mxu1 }
 0x192   : > { %v3873_v32 = vpop.f32.mrb[3].mxu1 }
 0x193   : > { %v4004_v13 = vmul.f32 %v11727_v37, %v3871_v59  ;;  %v3874_v31 = vadd.f32 %v9233_v16, %v3873_v32  ;;  %v4539_v16 = vld [vmem:[#allocation3 + $0x20] sm:$0x1] }
 0x195   : > { %v4043_v15 = vadd.f32 %v11732_v17, %v4004_v13  ;;  %v4005_v0 = vmul.f32 %v11727_v37, %v3874_v31 }
 0x197   : > { %v4075_v21 = vmax.f32 %v4043_v15, 0.0  ;;  %v4044_v12 = vadd.f32 %v11732_v17, %v4005_v0  ;;  %v9234_v61 = vpop.f32.mrb[4].mxu0 }
 0x198   : > { %v9235_v1 = vpop.f32.mrb[5].mxu0 }
 0x199   : > { %v9147_v8 = vpack.c.bf16 %v4075_v21, %v4075_v21  ;;  %v4076_v26 = vmax.f32 %v4044_v12, 0.0  ;;  %v9236_v51 = vadd.f32 %v9235_v1, %v9234_v61  ;;  %v9237_v60 = vpop.f32.mrb[6].mxu0 }
 0x19a   : > { %v9238_v57 = vpop.f32.mrb[7].mxu0 }
 0x19b   : > { %v4206_v55 = vshrl.u32 %v9147_v8, 16  ;;  %v9148_v48 = vpack.c.bf16 %v4076_v26, %v4076_v26  ;;  %v3879_v22 = vadd.f32 %v9502_v27, %v9236_v51  ;;  %v9239_v58 = vadd.f32 %v9238_v57, %v9237_v60 }
 0x19c   : > { %v4209_v7 = vshll.u32 %v9147_v8, 16 }
 0x19d   : > { %v4208_v43 = vrot.slane %v4206_v55, 7  ;;  %v4214_v33 = vshrl.u32 %v9148_v48, 16  ;;  %v4006_v10 = vmul.f32 %v11727_v37, %v3879_v22  ;;  %v3882_v6 = vadd.f32 %v9503_v47, %v9239_v58 }
 0x19e   : > { %v4217_v5 = vshll.u32 %v9148_v48, 16 }
 0x19f   : > { %v4211_v11 = vor.u32 %v4209_v7, %v4208_v43  ;;  %v4216_v14 = vrot.slane %v4214_v33, 7  ;;  %v4045_v50 = vadd.f32 %v11732_v17, %v4006_v10  ;;  %v4212_v36 = vrot.slane %v4208_v43, 4 }
 0x1a0   : > { %v4007_v42 = vmul.f32 %v11727_v37, %v3882_v6 }
 0x1a1   : > { %v4529_v40 = vsel %vm11745_vm0, %v4211_v11, %v4528_v23  ;;  %v4219_v52 = vor.u32 %v4217_v5, %v4216_v14  ;;  %v4221_v2 = vrot.slane %v4216_v14, 4  ;;  %v4077_v19 = vmax.f32 %v4045_v50, 0.0 }
 0x1a2   : > { %4530 = vst [vmem:[#allocation3 + $0xc] sm:$0xf] %v4529_v40  ;;  %v4046_v41 = vadd.f32 %v11732_v17, %v4007_v42 }
 0x1a3   : > { %v4220_v29 = vsel %vm11751_vm1, %v4212_v36, %v4219_v52  ;;  %v4533_v62 = vsel %vm11602_vm13, %v4221_v2, %v4532_v25  ;;  %v9149_v30 = vpack.c.bf16 %v4077_v19, %v4077_v19 }
 0x1a4   : > { %4531 = vst.msk [vmem:[#allocation3 + $0x10] sm:$0xf] %vm3313_vm9, %v4220_v29  ;;  %4534 = vst [vmem:[#allocation3 + $0x14] sm:$0x1] %v4533_v62  ;;  %v4078_v28 = vmax.f32 %v4046_v41, 0.0 }
 0x1a5   : > { %v4223_v53 = vshrl.u32 %v9149_v30, 16  ;;  %v4226_v18 = vshll.u32 %v9149_v30, 16 }
 0x1a6   : > { %v9150_v4 = vpack.c.bf16 %v4078_v28, %v4078_v28 }
 0x1a7   : > { %v4225_v27 = vrot.slane %v4223_v53, 7 }
 0x1a8   : > { %v4231_v39 = vshrl.u32 %v9150_v4, 16  ;;  %v9240_v46 = vpop.f32.mrb[8].mxu0  ;;  %v4234_v47 = vshll.u32 %v9150_v4, 16 }
 0x1a9   : > { %v4228_v59 = vor.u32 %v4226_v18, %v4225_v27  ;;  %v9241_v32 = vpop.f32.mrb[9].mxu0  ;;  %v6192_v3 = vld [vmem:[#allocation3 + $0xc] sm:$0xe]  ;;  %v4229_v61 = vrot.slane %v4225_v27, 4 }
 0x1aa   : > { %v4233_v13 = vrot.slane %v4231_v39, 7  ;;  %v9242_v31 = vadd.f32 %v9241_v32, %v9240_v46  ;;  %v9243_v63 = vpop.f32.mrb[10].mxu0  ;;  %v5073_v15 = vld [vmem:[#allocation3 + $0xc] sm:$0xe]  ;;  %v9003_v60 = vrot.slane %v6192_v3, 9 }
 0x1ab   : > { %v4536_v0 = vsel %vm11745_vm0, %v4228_v59, %v4535_v9  ;;  %v9244_v54 = vpop.f32.mrb[11].mxu0  ;;  %v9701_v21 = vld [vmem:[#allocation3 + $0xc] sm:$0xff]   ;;  %v11770_v26 = vld [vmem:[#allocation3 + $0x14] sm:$0x1]  ;;  %v8924_v22 = vrot.slane %v5073_v15, 9 }
 0x1ac   : > { %v11768_v12 = vld [vmem:[#allocation3 + $0x10] sm:$0xf]  ;;  %4537 = vst [vmem:[#allocation3 + $0x18] sm:$0xf] %v4536_v0  ;;  %v4236_v38 = vor.u32 %v4234_v47, %v4233_v13  ;;  %v4238_v1 = vrot.slane %v4233_v13, 4  ;;  %v9245_v8 = vadd.f32 %v9244_v54, %v9243_v63  ;;  %5584 = vrot.lane.b32.xlu1 %v9701_v21, %s9942_s21  ;;  %v6261_v55 = vrot.slane %v11770_v26, 5 }
 0x1ad   : > { %v4643_v51 = vld [vmem:[#allocation3 + $0x10] sm:$0xf]  ;;  %v6258_v57 = vrot.slane %v11768_v12, 5  ;;  %v11775_v48 = vld [vmem:[#allocation3 + $0x14] sm:$0x1] }
 0x1ae   : > { %v4237_v58 = vsel %vm11751_vm1, %v4229_v61, %v4236_v38  ;;  %v4540_v43 = vsel %vm11602_vm13, %v4238_v1, %v4539_v16  ;;  %v5145_v7 = vrot.slane %v4643_v51, 5  ;;  %v5148_v33 = vrot.slane %v11775_v48, 5  ;;  %v4642_v10 = vld [vmem:[#allocation3 + $0xc] sm:$0xf] }
 0x1af   : > { %4538 = vst.msk [vmem:[#allocation3 + $0x1c] sm:$0xf] %vm3313_vm9, %v4237_v58  ;;  %4541 = vst [vmem:[#allocation3 + $0x20] sm:$0x1] %v4540_v43  ;;  %v11783_v23 = vpop.f32.mrb[4].mxu1  ;;  %v6259_v6 = vsel %vm10089_vm2, %v9003_v60, %v6258_v57  ;;  %v6260_v11 = vrot.slane %v6258_v57, 4 }
 0x1b0   : > { %v4713_v14 = vshrl.u32 %v4642_v10, 16  ;;  %v4716_v5 = vshll.u32 %v4642_v10, 16  ;;  %v3886_v50 = vpop.f32.mrb[5].mxu1  ;;  %v5146_v36 = vsel %vm10089_vm2, %v8924_v22, %v5145_v7  ;;  %v5147_v25 = vrot.slane %v5145_v7, 4 }
 0x1b1   : > { %v4722_v42 = vshll.u32 %v4643_v51, 16  ;;  %v4726_v40 = vshrl.u32 %v4643_v51, 16  ;;  %v3887_v52 = vadd.f32 %v9242_v31, %v3886_v50  ;;  %v11789_v2 = vpop.f32.mrb[6].mxu1  ;;  %v6262_v19 = vsel %vm10089_vm2, %v6260_v11, %v6261_v55 }
 0x1b2   : > { %v4715_v41 = vrot.slane %v4713_v14, 4  ;;  %v4718_v20 = vrot.slane %v4716_v5, 5  ;;  %v3889_v29 = vpop.f32.mrb[7].mxu1  ;;  %v9035_v62 = vcombine.low %v6259_v6, %v6262_v19  ;;  %v5149_v30 = vsel %vm10089_vm2, %v5147_v25, %v5148_v33 }
 0x1b3   : > { %v11795_v24 = vrot.slane %v4722_v42, 5  ;;  %v4728_v28 = vrot.slane %v4726_v40, 4  ;;  %v4008_v53 = vmul.f32 %v11727_v37, %v3887_v52  ;;  %v3890_v4 = vadd.f32 %v9245_v8, %v3889_v29  ;;  %v6369_v18 = vld [vmem:[#allocation3 + $0x18] sm:$0xf] }
 0x1b4   : > { %v8972_v27 = vcombine.low %v5146_v36, %v5149_v30  ;;  %v6193_v9 = vld [vmem:[#allocation3 + $0x18] sm:$0xe]  ;;  %v4719_v39 = vor.u32 %v4718_v20, %v4715_v41  ;;  %6897 = vrot.lane.b32.xlu0 %v9035_v62, %s9943_s22  ;;  %v6418_v46 = vshrl.u32 %v6369_v18, 16  ;;  %v6421_v59 = vshll.u32 %v6369_v18, 16 }
 0x1b5   : > { %v9004_v47 = vrot.slane %v6193_v9, 9  ;;  %v4729_v16 = vor.u32 %v4728_v28, %v11795_v24  ;;  %v4047_v32 = vadd.f32 %v11732_v17, %v4008_v53  ;;  %v4009_v13 = vmul.f32 %v11727_v37, %v3890_v4  ;;  %v7265_v54 = vld [vmem:[#allocation3 + $0x18] sm:$0xe] }
 0x1b6   : > { %5474 = vrot.lane.b32.xlu1 %v8972_v27, %s9941_s20  ;;  %v4720_v31 = vrot.slane %v4719_v39, 4  ;;  %v4732_v63 = vshll.u32 %v11775_v48, 16  ;;  %v6370_v3 = vld [vmem:[#allocation3 + $0x1c] sm:$0xf]  ;;  %v11804_v15 = vrot.slane %v6418_v46, 4  ;;  %v11806_v0 = vrot.slane %v6421_v59, 5 }
 0x1b7   : > { %v4079_v21 = vmax.f32 %v4047_v32, 0.0  ;;  %v4048_v61 = vadd.f32 %v11732_v17, %v4009_v13  ;;  %v6427_v38 = vshll.u32 %v6370_v3, 16  ;;  %v6431_v1 = vshrl.u32 %v6370_v3, 16  ;;  %v9705_v8 = vld [vmem:[#allocation3 + $0x18] sm:$0xff]   ;;  %v5765_v57 = vld [vmem:[#allocation3 + $0x20] sm:$0x1] }
 0x1b8   : > { %v5764_v51 = vld [vmem:[#allocation3 + $0x1c] sm:$0xf]  ;;  %v9051_v60 = vcombine.low %v6369_v18, %v6370_v3  ;;  %v4725_v48 = vsel %vm10143_vm5, %v4720_v31, %v11795_v24  ;;  %v4730_v22 = vrot.slane %v4729_v16, 4  ;;  %v7267_v6 = vld [vmem:[#allocation3 + $0x20] sm:$0x1]  ;;  %v6268_v5 = vrot.slane %v5765_v57, 5 }
 0x1b9   : > { %v6265_v55 = vrot.slane %v5764_v51, 5  ;;  %v7266_v58 = vld [vmem:[#allocation3 + $0x1c] sm:$0xf]  ;;  %v9151_v43 = vpack.c.bf16 %v4079_v21, %v4079_v21  ;;  %v4080_v7 = vmax.f32 %v4048_v61, 0.0  ;;  %v11812_v33 = vrot.slane %v6427_v38, 5 }
 0x1ba   : > { %v11814_v10 = vrot.slane %v6431_v1, 4  ;;  %5586 = vrot.lane.b32.xlu1 %v9705_v8, %s9942_s21  ;;  %7009 = vrot.lane.b32.xlu0 %v9051_v60, %s9941_s20  ;;  %v4734_v50 = vrot.slane %v4732_v63, 5  ;;  %v9083_v40 = vrot.slane %v7265_v54, 9  ;;  %v7363_v20 = vrot.slane %v7266_v58, 5  ;;  %v5074_v62 = vld [vmem:[#allocation3 + $0x18] sm:$0xe] }
 0x1bb   : > { %v6266_v11 = vsel %vm10089_vm2, %v9004_v47, %v6265_v55  ;;  %v6267_v14 = vrot.slane %v6265_v55, 4  ;;  %v4240_v36 = vshrl.u32 %v9151_v43, 16  ;;  %v4243_v25 = vshll.u32 %v9151_v43, 16  ;;  %v11824_v27 = vld [vmem:[#allocation3 + $0x1c] sm:$0xf] }
 0x1bc   : > { %v9152_v42 = vpack.c.bf16 %v4080_v7, %v4080_v7  ;;  %v9246_v52 = vpop.f32.mrb[12].mxu0  ;;  %v4735_v41 = vsel %vm10143_vm5, %v4730_v22, %v4734_v50  ;;  %v7366_v29 = vrot.slane %v7267_v6, 5  ;;  %v4542_v18 = vld [vmem:[#allocation3 + $0x24] sm:$0xf]  ;;  %v7364_v59 = vsel %vm10089_vm2, %v9083_v40, %v7363_v20  ;;  %v4546_v3 = vld [vmem:[#allocation3 + $0x2c] sm:$0x1] }
 0x1bd   : > { %v6269_v19 = vsel %vm10089_vm2, %v6267_v14, %v6268_v5  ;;  %v4242_v30 = vrot.slane %v4240_v36, 7  ;;  %v9247_v53 = vpop.f32.mrb[13].mxu0  ;;  %v8956_v46 = vcombine.low %v4725_v48, %v4735_v41  ;;  %v7365_v47 = vrot.slane %v7363_v20, 4  ;;  %v11833_v38 = vld [vmem:[#allocation3 + $0x20] sm:$0x1] }
 0x1be   : > { %v4248_v24 = vshrl.u32 %v9152_v42, 16  ;;  %v4251_v28 = vshll.u32 %v9152_v42, 16  ;;  %v9036_v4 = vcombine.low %v6266_v11, %v6269_v19  ;;  %v9248_v9 = vadd.f32 %v9247_v53, %v9246_v52  ;;  %v9249_v39 = vpop.f32.mrb[14].mxu0  ;;  %v6401_v58 = vld [vmem:[#allocation3 + $0x20] sm:$0x1] }
 0x1bf   : > { %v4245_v16 = vor.u32 %v4243_v25, %v4242_v30  ;;  %v4246_v32 = vrot.slane %v4242_v30, 4  ;;  %v9250_v31 = vpop.f32.mrb[15].mxu0  ;;  %v8925_v63 = vrot.slane %v5074_v62, 9  ;;  %5394 = vrot.lane.b32.xlu1 %v8956_v46, %s9943_s22  ;;  %v7367_v61 = vsel %vm10089_vm2, %v7365_v47, %v7366_v29  ;;  %v11842_v43 = vld [vmem:[#allocation3 + $0x18] sm:$0xf] }
 0x1c0   : > { %v4250_v13 = vrot.slane %v4248_v24, 7  ;;  %6899 = vrot.lane.b32.xlu0 %v9036_v4, %s9943_s22  ;;  %v3895_v54 = vadd.f32 %v11783_v23, %v9248_v9  ;;  %v9251_v21 = vadd.f32 %v9250_v31, %v9249_v39  ;;  %v5152_v1 = vrot.slane %v11824_v27, 5 }
 0x1c1   : > { %v4543_v8 = vsel %vm11745_vm0, %v4245_v16, %v4542_v18  ;;  %v9099_v57 = vcombine.low %v7364_v59, %v7367_v61  ;;  %v5155_v14 = vrot.slane %v11833_v38, 5  ;;  %v6424_v36 = vor.u32 %v11806_v0, %v11804_v15 }
 0x1c2   : > { %v4253_v51 = vor.u32 %v4251_v28, %v4250_v13  ;;  %v4255_v60 = vrot.slane %v4250_v13, 4  ;;  %4544 = vst [vmem:[#allocation3 + $0x24] sm:$0xf] %v4543_v8  ;;  %v4010_v55 = vmul.f32 %v11727_v37, %v3895_v54  ;;  %v3898_v23 = vadd.f32 %v11789_v2, %v9251_v21 }
 0x1c3   : > { %v5153_v48 = vsel %vm10089_vm2, %v8925_v63, %v5152_v1  ;;  %v5154_v22 = vrot.slane %v5152_v1, 4  ;;  %v7522_v11 = vsel %vm1308_vm6, %v9099_v57, 0  ;;  %v6434_v42 = vor.u32 %v11814_v10, %v11812_v33 }
 0x1c4   : > { %v4254_v7 = vsel %vm11751_vm1, %v4246_v32, %v4253_v51  ;;  %v4547_v6 = vsel %vm11602_vm13, %v4255_v60, %v4546_v3  ;;  %v4049_v2 = vadd.f32 %v11732_v17, %v4010_v55  ;;  %v4011_v5 = vmul.f32 %v11727_v37, %v3898_v23  ;;  %v4549_v32 = vld [vmem:[#allocation3 + $0x30] sm:$0xf]  ;;  %v4553_v51 = vld [vmem:[#allocation3 + $0x38] sm:$0x1] }
 0x1c5   : > { %4545 = vst.msk [vmem:[#allocation3 + $0x28] sm:$0xf] %vm3313_vm9, %v4254_v7  ;;  %4548 = vst [vmem:[#allocation3 + $0x2c] sm:$0x1] %v4547_v6  ;;  %v7553_v50 = vsel %vm1357_vm7, %v7522_v11, 0  ;;  %v5156_v25 = vsel %vm10089_vm2, %v5154_v22, %v5155_v14  ;;  %v6437_v40 = vshll.u32 %v6401_v58, 16 }
 0x1c6   : > { %9548 = vmatprep.mubr.msk.bf16.mxu0 %vm1390_vm8, %v7553_v50  ;;  %v4737_v52 = vshrl.u32 %v11842_v43, 16  ;;  %v4081_v19 = vmax.f32 %v4049_v2, 0.0  ;;  %v4050_v41 = vadd.f32 %v11732_v17, %v4011_v5  ;;  %v8973_v20 = vcombine.low %v5153_v48, %v5156_v25 }
 0x1c7   : > { %v6425_v29 = vrot.slane %v6424_v36, 4  ;;  %v6435_v62 = vrot.slane %v6434_v42, 4  ;;  %v6439_v30 = vrot.slane %v6437_v40, 5  ;;  %v4740_v18 = vshll.u32 %v11842_v43, 16 }
 0x1c8   : > { %v9153_v24 = vpack.c.bf16 %v4081_v19, %v4081_v19  ;;  %v4082_v15 = vmax.f32 %v4050_v41, 0.0  ;;  %5476 = vrot.lane.b32.xlu1 %v8973_v20, %s9941_s20  ;;  %v11865_v28 = vrot.slane %v4737_v52, 4  ;;  %v4746_v9 = vshll.u32 %v11824_v27, 16 }
 0x1c9   : > { %v6371_v53 = vld [vmem:[#allocation3 + $0x24] sm:$0xf]  ;;  %v6430_v10 = vsel %vm10143_vm5, %v6425_v29, %v11812_v33  ;;  %v6440_v4 = vsel %vm10143_vm5, %v6435_v62, %v6439_v30 }
 0x1ca   : > { %v4257_v39 = vshrl.u32 %v9153_v24, 16  ;;  %v4260_v46 = vshll.u32 %v9153_v24, 16  ;;  %v9154_v59 = vpack.c.bf16 %v4082_v15, %v4082_v15  ;;  %v6442_v47 = vshrl.u32 %v6371_v53, 16  ;;  %v7268_v16 = vld [vmem:[#allocation3 + $0x24] sm:$0xe] }
 0x1cb   : > { %v6445_v31 = vshll.u32 %v6371_v53, 16  ;;  %v9067_v63 = vcombine.low %v6430_v10, %v6440_v4  ;;  %v6194_v54 = vld [vmem:[#allocation3 + $0x24] sm:$0xe]  ;;  %v9084_v14 = vrot.slane %v7268_v16, 9  ;;  %v4748_v10 = vrot.slane %v4746_v9, 5 }
 0x1cc   : > { %v6372_v13 = vld [vmem:[#allocation3 + $0x28] sm:$0xf]  ;;  %v4259_v21 = vrot.slane %v4257_v39, 7  ;;  %v4265_v33 = vshrl.u32 %v9154_v59, 16  ;;  %v4268_v61 = vshll.u32 %v9154_v59, 16  ;;  %v11874_v55 = vrot.slane %v6442_v47, 4 }
 0x1cd   : > { %v9710_v3 = vld [vmem:[#allocation3 + $0x24] sm:$0xff]   ;;  %v6451_v1 = vshll.u32 %v6372_v13, 16  ;;  %v6455_v60 = vshrl.u32 %v6372_v13, 16  ;;  %v9052_v57 = vcombine.low %v6371_v53, %v6372_v13  ;;  %v11876_v23 = vrot.slane %v6445_v31, 5  ;;  %v7270_v48 = vld [vmem:[#allocation3 + $0x2c] sm:$0x1] }
 0x1ce   : > { %v7269_v8 = vld [vmem:[#allocation3 + $0x28] sm:$0xf]  ;;  %5588 = vrot.lane.b32.xlu1 %v9710_v3, %s9942_s21  ;;  %v4262_v22 = vor.u32 %v4260_v46, %v4259_v21  ;;  %v4263_v58 = vrot.slane %v4259_v21, 4  ;;  %v4267_v43 = vrot.slane %v4265_v33, 7  ;;  %v7373_v5 = vrot.slane %v7270_v48, 5 }
 0x1cf   : > { %v11879_v7 = vrot.slane %v6451_v1, 5  ;;  %v5767_v6 = vld [vmem:[#allocation3 + $0x28] sm:$0xf]  ;;  %v11881_v11 = vrot.slane %v6455_v60, 4  ;;  %7011 = vrot.lane.b32.xlu0 %v9052_v57, %s9941_s20  ;;  %v7370_v2 = vrot.slane %v7269_v8, 5  ;;  %v9005_v40 = vrot.slane %v6194_v54, 9 }
 0x1d0   : > { %v5768_v50 = vld [vmem:[#allocation3 + $0x2c] sm:$0x1]  ;;  %v4550_v36 = vsel %vm11745_vm0, %v4262_v22, %v4549_v32  ;;  %v4270_v25 = vor.u32 %v4268_v61, %v4267_v43  ;;  %v4272_v42 = vrot.slane %v4267_v43, 4  ;;  %v9252_v52 = vpop.f32.mrb[16].mxu0  ;;  %v6272_v20 = vrot.slane %v5767_v6, 5 }
 0x1d1   : > { %4551 = vst [vmem:[#allocation3 + $0x30] sm:$0xf] %v4550_v36  ;;  %v7371_v19 = vsel %vm10089_vm2, %v9084_v14, %v7370_v2  ;;  %v7372_v41 = vrot.slane %v7370_v2, 4  ;;  %v6275_v29 = vrot.slane %v5768_v50, 5  ;;  %v11888_v62 = vld [vmem:[#allocation3 + $0x28] sm:$0xf]  ;;  %v6448_v14 = vor.u32 %v11876_v23, %v11874_v55 }
 0x1d2   : > { %v4271_v30 = vsel %vm11751_vm1, %v4263_v58, %v4270_v25  ;;  %v4554_v24 = vsel %vm11602_vm13, %v4272_v42, %v4553_v51  ;;  %v9253_v15 = vpop.f32.mrb[17].mxu0  ;;  %v4742_v53 = vrot.slane %v4740_v18, 5  ;;  %v5075_v4 = vld [vmem:[#allocation3 + $0x24] sm:$0xe]  ;;  %v6273_v47 = vsel %vm10089_vm2, %v9005_v40, %v6272_v20  ;;  %v6402_v60 = vld [vmem:[#allocation3 + $0x2c] sm:$0x1] }
 0x1d3   : > { %4552 = vst.msk [vmem:[#allocation3 + $0x34] sm:$0xf] %vm3313_vm9, %v4271_v30  ;;  %4555 = vst [vmem:[#allocation3 + $0x38] sm:$0x1] %v4554_v24  ;;  %v9254_v39 = vadd.f32 %v9253_v15, %v9252_v52  ;;  %v9255_v46 = vpop.f32.mrb[18].mxu0  ;;  %7089 = vrot.lane.b32.xlu0 %v9067_v63, %s9942_s21  ;;  %v7374_v59 = vsel %vm10089_vm2, %v7372_v41, %v7373_v5  ;;  %v6274_v16 = vrot.slane %v6272_v20, 4 }
 0x1d4   : > { %v9256_v32 = vpop.f32.mrb[19].mxu0  ;;  %v9100_v13 = vcombine.low %v7371_v19, %v7374_v59  ;;  %v4743_v18 = vor.u32 %v4742_v53, %v11865_v28  ;;  %v4750_v9 = vshrl.u32 %v11824_v27, 16  ;;  %v4756_v31 = vshll.u32 %v11833_v38, 16  ;;  %v11905_v63 = vld [vmem:[#allocation3 + $0x2c] sm:$0x1] }
 0x1d5   : > { %v9257_v3 = vadd.f32 %v9256_v32, %v9255_v46  ;;  %v6276_v54 = vsel %vm10089_vm2, %v6274_v16, %v6275_v29  ;;  %v8926_v21 = vrot.slane %v5075_v4, 9  ;;  %v5159_v33 = vrot.slane %v11888_v62, 5 }
 0x1d6   : > { %v7524_v61 = vsel %vm1308_vm6, %v9100_v13, 0  ;;  %v9037_v1 = vcombine.low %v6273_v47, %v6276_v54  ;;  %v4744_v8 = vrot.slane %v4743_v18, 4  ;;  %v4752_v51 = vrot.slane %v4750_v9, 4 }
 0x1d7   : > { %v7554_v28 = vsel %vm1357_vm7, %v7524_v61, 0  ;;  %v4758_v27 = vrot.slane %v4756_v31, 5  ;;  %v11912_v38 = vsel %vm10089_vm2, %v8926_v21, %v5159_v33  ;;  %v5161_v57 = vrot.slane %v5159_v33, 4 }
 0x1d8   : > { %v11914_v48 = vpop.f32.mrb[8].mxu1  ;;  %9549 = vmatmul.mubr.msk.bf16.vlgmr.msra.gmra.mrb[64].mxu0 %vm1390_vm8, %v7554_v28  ;;  %6901 = vrot.lane.b32.xlu0 %v9037_v1, %s9943_s22  ;;  %v4749_v22 = vsel %vm10143_vm5, %v4744_v8, %v4748_v10  ;;  %v4753_v58 = vor.u32 %v4752_v51, %v4748_v10  ;;  %v5162_v43 = vrot.slane %v11905_v63, 5  ;;  %v6373_v6 = vld [vmem:[#allocation3 + $0x30] sm:$0xf]  ;;  %v6458_v36 = vor.u32 %v11881_v11, %v11879_v7 }
 0x1d9   : > { %v3902_v2 = vpop.f32.mrb[9].mxu1  ;;  %v6466_v5 = vshrl.u32 %v6373_v6, 16  ;;  %v6469_v50 = vshll.u32 %v6373_v6, 16  ;;  %v6461_v25 = vshll.u32 %v6402_v60, 16  ;;  %v6449_v20 = vrot.slane %v6448_v14, 4 }
 0x1da   : > { %v3903_v42 = vadd.f32 %v9254_v39, %v3902_v2  ;;  %v11925_v40 = vpop.f32.mrb[10].mxu1  ;;  %v4754_v52 = vrot.slane %v4753_v58, 4  ;;  %v5163_v19 = vsel %vm10089_vm2, %v5161_v57, %v5162_v43  ;;  %v6374_v41 = vld [vmem:[#allocation3 + $0x34] sm:$0xf]  ;;  %v7271_v29 = vld [vmem:[#allocation3 + $0x30] sm:$0xe] }
 0x1db   : > { %v3905_v30 = vpop.f32.mrb[11].mxu1  ;;  %v8974_v55 = vcombine.low %v11912_v38, %v5163_v19  ;;  %v6475_v23 = vshll.u32 %v6374_v41, 16  ;;  %v6479_v24 = vshrl.u32 %v6374_v41, 16  ;;  %v9053_v15 = vcombine.low %v6373_v6, %v6374_v41  ;;  %v7272_v39 = vld [vmem:[#allocation3 + $0x34] sm:$0xf] }
 0x1dc   : > { %v4012_v53 = vmul.f32 %v11727_v37, %v3903_v42  ;;  %v3906_v11 = vadd.f32 %v9257_v3, %v3905_v30  ;;  %v4759_v10 = vsel %vm10143_vm5, %v4754_v52, %v4758_v27  ;;  %v11933_v4 = vrot.slane %v6466_v5, 4  ;;  %v7273_v46 = vld [vmem:[#allocation3 + $0x38] sm:$0x1]  ;;  %v5770_v13 = vld [vmem:[#allocation3 + $0x34] sm:$0xf] }
 0x1dd   : > { %v8957_v59 = vcombine.low %v4749_v22, %v4759_v10  ;;  %v11935_v47 = vrot.slane %v6475_v23, 5  ;;  %v11937_v16 = vrot.slane %v6479_v24, 4  ;;  %7013 = vrot.lane.b32.xlu0 %v9053_v15, %s9941_s20  ;;  %v11940_v32 = vrot.slane %v6469_v50, 5  ;;  %v5771_v54 = vld [vmem:[#allocation3 + $0x38] sm:$0x1] }
 0x1de   : > { %v4051_v18 = vadd.f32 %v11732_v17, %v4012_v53  ;;  %v4013_v9 = vmul.f32 %v11727_v37, %v3906_v11  ;;  %v6454_v31 = vsel %vm10143_vm5, %v6449_v20, %v11879_v7  ;;  %v6459_v3 = vrot.slane %v6458_v36, 4  ;;  %v6195_v21 = vld [vmem:[#allocation3 + $0x30] sm:$0xe]  ;;  %v4646_v38 = vld [vmem:[#allocation3 + $0x24] sm:$0xf] }
 0x1df   : > { %5396 = vrot.lane.b32.xlu1 %v8957_v59, %s9943_s22  ;;  %v6463_v33 = vrot.slane %v6461_v25, 5  ;;  %v9085_v61 = vrot.slane %v7271_v29, 9  ;;  %v7377_v1 = vrot.slane %v7272_v39, 5  ;;  %v7380_v8 = vrot.slane %v7273_v46, 5  ;;  %v9712_v29 = vld [vmem:[#allocation3 + $0x30] sm:$0xff]  }
 0x1e0   : > { %v4083_v51 = vmax.f32 %v4051_v18, 0.0  ;;  %v4052_v60 = vadd.f32 %v11732_v17, %v4013_v9  ;;  %v9006_v28 = vrot.slane %v6195_v21, 9  ;;  %v6279_v27 = vrot.slane %v5770_v13, 5  ;;  %v4556_v46 = vld [vmem:[#allocation3 + $0x3c] sm:$0xf] }
 0x1e1   : > { %v6464_v57 = vsel %vm10143_vm5, %v6459_v3, %v6463_v33  ;;  %v7378_v7 = vsel %vm10089_vm2, %v9085_v61, %v7377_v1  ;;  %v7379_v22 = vrot.slane %v7377_v1, 4  ;;  %v6282_v58 = vrot.slane %v5771_v54, 5  ;;  %v4560_v1 = vld [vmem:[#allocation3 + $0x44] sm:$0x1]  ;;  %v5769_v44 = vld [vmem:[#allocation3 + $0x30] sm:$0xf] }
 0x1e2   : > { %v9155_v43 = vpack.c.bf16 %v4083_v51, %v4083_v51  ;;  %v4084_v6 = vmax.f32 %v4052_v60, 0.0  ;;  %v9068_v14 = vcombine.low %v6454_v31, %v6464_v57  ;;  %v6280_v2 = vsel %vm10089_vm2, %v9006_v28, %v6279_v27 }
 0x1e3   : > { %5478 = vrot.lane.b32.xlu1 %v8974_v55, %s9941_s20  ;;  %v7381_v5 = vsel %vm10089_vm2, %v7379_v22, %v7380_v8  ;;  %v6281_v50 = vrot.slane %v6279_v27, 4  ;;  %v4761_v36 = vshrl.u32 %v4646_v38, 16  ;;  %v4764_v25 = vshll.u32 %v4646_v38, 16  ;;  %v11972_v22 = vld [vmem:[#allocation3 + $0x34] sm:$0xf] }
 0x1e4   : > { %v4274_v42 = vshrl.u32 %v9155_v43, 16  ;;  %v4277_v52 = vshll.u32 %v9155_v43, 16  ;;  %v9156_v19 = vpack.c.bf16 %v4084_v6, %v4084_v6  ;;  %7091 = vrot.lane.b32.xlu0 %v9068_v14, %s9942_s21  ;;  %v9101_v41 = vcombine.low %v7378_v7, %v7381_v5  ;;  %v5076_v14 = vld [vmem:[#allocation3 + $0x30] sm:$0xe] }
 0x1e5   : > { %v9258_v20 = vpop.f32.mrb[20].mxu0  ;;  %v6283_v30 = vsel %vm10089_vm2, %v6281_v50, %v6282_v58  ;;  %v4763_v23 = vrot.slane %v4761_v36, 4  ;;  %v4766_v24 = vrot.slane %v4764_v25, 5  ;;  %v4770_v55 = vshll.u32 %v11888_v62, 16  ;;  %v11983_v36 = vld [vmem:[#allocation3 + $0x38] sm:$0x1] }
 0x1e6   : > { %v4276_v15 = vrot.slane %v4274_v42, 7  ;;  %v4282_v53 = vshrl.u32 %v9156_v19, 16  ;;  %v4285_v11 = vshll.u32 %v9156_v19, 16  ;;  %v9259_v10 = vpop.f32.mrb[21].mxu0  ;;  %v7526_v39 = vsel %vm1308_vm6, %v9101_v41, 0 }
 0x1e7   : > { %v9260_v59 = vadd.f32 %v9259_v10, %v9258_v20  ;;  %v9261_v13 = vpop.f32.mrb[22].mxu0  ;;  %5590 = vrot.lane.b32.xlu1 %v9712_v29, %s9942_s21  ;;  %v7555_v18 = vsel %vm1357_vm7, %v7526_v39, 0  ;;  %v9038_v9 = vcombine.low %v6280_v2, %v6283_v30  ;;  %v4767_v31 = vor.u32 %v4766_v24, %v4763_v23  ;;  %v6403_v2 = vld [vmem:[#allocation3 + $0x38] sm:$0x1] }
 0x1e8   : > { %v4279_v3 = vor.u32 %v4277_v52, %v4276_v15  ;;  %v4280_v54 = vrot.slane %v4276_v15, 4  ;;  %v4284_v21 = vrot.slane %v4282_v53, 7  ;;  %v9262_v33 = vpop.f32.mrb[23].mxu0  ;;  %9552 = vmatprep.mubr.msk.bf16.mxu0 %vm1390_vm8, %v7555_v18  ;;  %v4772_v61 = vrot.slane %v4770_v55, 5  ;;  %v11995_v15 = vld [vmem:[#allocation3 + $0x30] sm:$0xf] }
 0x1e9   : > { %v3911_v8 = vadd.f32 %v11914_v48, %v9260_v59  ;;  %v9263_v51 = vadd.f32 %v9262_v33, %v9261_v13  ;;  %6903 = vrot.lane.b32.xlu0 %v9038_v9, %s9943_s22  ;;  %v4768_v60 = vrot.slane %v4767_v31, 4  ;;  %v4774_v28 = vshrl.u32 %v11888_v62, 16 }
 0x1ea   : > { %v4557_v27 = vsel %vm11745_vm0, %v4279_v3, %v4556_v46  ;;  %v4287_v38 = vor.u32 %v4285_v11, %v4284_v21  ;;  %v4289_v57 = vrot.slane %v4284_v21, 4  ;;  %v4780_v7 = vshll.u32 %v11905_v63, 16  ;;  %v4563_v21 = vld [vmem:[#allocation3 + $0x48] sm:$0xf] }
 0x1eb   : > { %4558 = vst [vmem:[#allocation3 + $0x3c] sm:$0xf] %v4557_v27  ;;  %v4014_v48 = vmul.f32 %v11727_v37, %v3911_v8  ;;  %v3914_v43 = vadd.f32 %v11925_v40, %v9263_v51  ;;  %v4776_v6 = vrot.slane %v4774_v28, 4  ;;  %v4773_v63 = vsel %vm10143_vm5, %v4768_v60, %v4772_v61 }
 0x1ec   : > { %v4288_v62 = vsel %vm11751_vm1, %v4280_v54, %v4287_v38  ;;  %v4561_v5 = vsel %vm11602_vm13, %v4289_v57, %v4560_v1  ;;  %v4782_v50 = vrot.slane %v4780_v7, 5  ;;  %v5166_v52 = vrot.slane %v11972_v22, 5 }
 0x1ed   : > { %4559 = vst.msk [vmem:[#allocation3 + $0x40] sm:$0xf] %vm3313_vm9, %v4288_v62  ;;  %4562 = vst [vmem:[#allocation3 + $0x44] sm:$0x1] %v4561_v5  ;;  %v4053_v40 = vadd.f32 %v11732_v17, %v4014_v48  ;;  %v4015_v25 = vmul.f32 %v11727_v37, %v3914_v43  ;;  %v4777_v42 = vor.u32 %v4776_v6, %v4772_v61  ;;  %v8927_v19 = vrot.slane %v5076_v14, 9 }
 0x1ee   : > { %v6472_v41 = vor.u32 %v11940_v32, %v11933_v4  ;;  %v6482_v20 = vor.u32 %v11937_v16, %v11935_v47  ;;  %v6485_v29 = vshll.u32 %v6403_v2, 16  ;;  %v5169_v55 = vrot.slane %v11983_v36, 5  ;;  %v4567_v14 = vld [vmem:[#allocation3 + $0x50] sm:$0x1] }
 0x1ef   : > { %v4085_v30 = vmax.f32 %v4053_v40, 0.0  ;;  %v4054_v23 = vadd.f32 %v11732_v17, %v4015_v25  ;;  %v4778_v24 = vrot.slane %v4777_v42, 4  ;;  %v5168_v37 = vrot.slane %v5166_v52, 4 }
 0x1f0   : > { %v6473_v53 = vrot.slane %v6472_v41, 4  ;;  %v6483_v11 = vrot.slane %v6482_v20, 4  ;;  %v6487_v10 = vrot.slane %v6485_v29, 5  ;;  %v5167_v16 = vsel %vm10089_vm2, %v8927_v19, %v5166_v52 }
 0x1f1   : > { %v9157_v39 = vpack.c.bf16 %v4085_v30, %v4085_v30  ;;  %v4086_v46 = vmax.f32 %v4054_v23, 0.0  ;;  %v4783_v4 = vsel %vm10143_vm5, %v4778_v24, %v4782_v50  ;;  %v5170_v17 = vsel %vm10089_vm2, %v5168_v37, %v5169_v55 }
 0x1f2   : > { %v8958_v32 = vcombine.low %v4773_v63, %v4783_v4  ;;  %v6375_v59 = vld [vmem:[#allocation3 + $0x3c] sm:$0xf]  ;;  %v6488_v13 = vsel %vm10143_vm5, %v6483_v11, %v6487_v10  ;;  %v4785_v18 = vshrl.u32 %v11995_v15, 16  ;;  %v6478_v54 = vsel %vm10143_vm5, %v6473_v53, %v11935_v47  ;;  %v12029_v4 = vld [vmem:[%s13767_s3] ss:$0 sm:$0xff] }
 0x1f3   : > { %v4291_v9 = vshrl.u32 %v9157_v39, 16  ;;  %v4294_v31 = vshll.u32 %v9157_v39, 16  ;;  %v9158_v3 = vpack.c.bf16 %v4086_v46, %v4086_v46  ;;  %v8975_v1 = vcombine.low %v5167_v16, %v5170_v17  ;;  %v7274_v27 = vld [vmem:[#allocation3 + $0x3c] sm:$0xe] }
 0x1f4   : > { %v9264_v33 = vpop.f32.mrb[24].mxu0  ;;  %v12009_v61 = vpop.f32.mrb[12].mxu1  ;;  %5398 = vrot.lane.b32.xlu1 %v8958_v32, %s9943_s22  ;;  %v6376_v8 = vld [vmem:[#allocation3 + $0x40] sm:$0xf]  ;;  %v6490_v51 = vshrl.u32 %v6375_v59, 16  ;;  %v6493_v60 = vshll.u32 %v6375_v59, 16  ;;  %v9069_v28 = vcombine.low %v6478_v54, %v6488_v13 }
 0x1f5   : > { %v4293_v38 = vrot.slane %v4291_v9, 7  ;;  %v4299_v57 = vshrl.u32 %v9158_v3, 16  ;;  %v4302_v7 = vshll.u32 %v9158_v3, 16  ;;  %v9265_v48 = vpop.f32.mrb[25].mxu0  ;;  %v3918_v43 = vpop.f32.mrb[13].mxu1  ;;  %v6499_v6 = vshll.u32 %v6376_v8, 16 }
 0x1f6   : > { %v9266_v47 = vadd.f32 %v9265_v48, %v9264_v33  ;;  %v12012_v2 = vpop.f32.mrb[14].mxu1  ;;  %v9267_v62 = vpop.f32.mrb[26].mxu0  ;;  %v6503_v5 = vshrl.u32 %v6376_v8, 16  ;;  %v9054_v63 = vcombine.low %v6375_v59, %v6376_v8  ;;  %v12014_v50 = vrot.slane %v6490_v51, 4  ;;  %v6196_v40 = vld [vmem:[#allocation3 + $0x3c] sm:$0xe] }
 0x1f7   : > { %v4296_v25 = vor.u32 %v4294_v31, %v4293_v38  ;;  %v4297_v42 = vrot.slane %v4293_v38, 4  ;;  %v4301_v52 = vrot.slane %v4299_v57, 7  ;;  %v9268_v19 = vpop.f32.mrb[27].mxu0  ;;  %v3921_v41 = vpop.f32.mrb[15].mxu1  ;;  %v12016_v20 = vrot.slane %v6499_v6, 5  ;;  %v9714_v17 = vld [vmem:[#allocation3 + $0x3c] sm:$0xff]  }
 0x1f8   : > { %v3919_v29 = vadd.f32 %v9266_v47, %v3918_v43  ;;  %v9269_v30 = vadd.f32 %v9268_v19, %v9267_v62  ;;  %5480 = vrot.lane.b32.xlu1 %v8975_v1, %s9941_s20  ;;  %v12019_v23 = vrot.slane %v6503_v5, 4  ;;  %7015 = vrot.lane.b32.xlu0 %v9054_v63, %s9941_s20  ;;  %v12022_v24 = vrot.slane %v6493_v60, 5  ;;  %v7275_v55 = vld [vmem:[#allocation3 + $0x40] sm:$0xf]  ;;  %v7276_v37 = vld [vmem:[#allocation3 + $0x44] sm:$0x1] }
 0x1f9   : > { %v4564_v53 = vsel %vm11745_vm0, %v4296_v25, %v4563_v21  ;;  %v4304_v11 = vor.u32 %v4302_v7, %v4301_v52  ;;  %v4306_v10 = vrot.slane %v4301_v52, 4  ;;  %v9086_v39 = vrot.slane %v7274_v27, 9  ;;  %v5773_v46 = vld [vmem:[#allocation3 + $0x40] sm:$0xf]  ;;  %v5774_v9 = vld [vmem:[#allocation3 + $0x44] sm:$0x1] }
 0x1fa   : > { %4565 = vst [vmem:[#allocation3 + $0x48] sm:$0xf] %v4564_v53  ;;  %v4016_v16 = vmul.f32 %v12029_v4, %v3919_v29  ;;  %v3922_v32 = vadd.f32 %v9269_v30, %v3921_v41  ;;  %v7384_v59 = vrot.slane %v7275_v55, 5  ;;  %v7387_v13 = vrot.slane %v7276_v37, 5  ;;  %v12040_v33 = vld [vmem:[%s13768_s4] ss:$0 sm:$0xff] }
 0x1fb   : > { %v4305_v31 = vsel %vm11751_vm1, %v4297_v42, %v4304_v11  ;;  %v4568_v3 = vsel %vm11602_vm13, %v4306_v10, %v4567_v14  ;;  %v9007_v54 = vrot.slane %v6196_v40, 9  ;;  %v6286_v21 = vrot.slane %v5773_v46, 5  ;;  %v9725_v27 = vld [vmem:[%s13769_s5 + $0x40] sm:$0xff]   ;;  %v9727_v43 = vld [vmem:[%s13769_s5 + $0x48] sm:$0xff]   ;;  %v9730_v55 = vld [vmem:[%s13769_s5 + $0x50] sm:$0xff]  }
 0x1fc   : > { %4566 = vst.msk [vmem:[#allocation3 + $0x4c] sm:$0xf] %vm3313_vm9, %v4305_v31  ;;  %4569 = vst [vmem:[#allocation3 + $0x50] sm:$0x1] %v4568_v3  ;;  %v4055_v1 = vadd.f32 %v12040_v33, %v4016_v16  ;;  %v4017_v8 = vmul.f32 %v12029_v4, %v3922_v32  ;;  %7093 = vrot.lane.b32.xlu0 %v9069_v28, %s9942_s21  ;;  %5592 = vrot.lane.b32.xlu1 %v9714_v17, %s9942_s21  ;;  %v7386_v60 = vrot.slane %v7384_v59, 4  ;;  %v9726_v38 = vld [vmem:[%s13769_s5] sm:$0xff]  }
 0x1fd   : > { %v7385_v51 = vsel %vm10089_vm2, %v9086_v39, %v7384_v59  ;;  %v6287_v57 = vsel %vm10089_vm2, %v9007_v54, %v6286_v21  ;;  %v6288_v7 = vrot.slane %v6286_v21, 4  ;;  %v6289_v48 = vrot.slane %v5774_v9, 5  ;;  %9348 = vmatprep.subr.bf16.mxu1 %v9725_v27  ;;  %v9728_v52 = vld [vmem:[%s13769_s5 + $0x8] sm:$0xff]   ;;  %v4570_v17 = vld [vmem:[#allocation3 + $0x54] sm:$0xf] }
 0x1fe   : > { %v4787_v28 = vrot.slane %v4785_v18, 4  ;;  %v4087_v6 = vmax.f32 %v4055_v1, 0.0  ;;  %v4056_v14 = vadd.f32 %v12040_v33, %v4017_v8  ;;  %v7388_v62 = vsel %vm10089_vm2, %v7386_v60, %v7387_v13  ;;  %9349 = vmatpush3.bf16.msra.mxu1 %v9726_v38  ;;  %v9731_v54 = vld [vmem:[%s13769_s5 + $0x10] sm:$0xff]  }
 0x1ff   : > { %v4788_v5 = vshll.u32 %v11995_v15, 16  ;;  %v9102_v40 = vcombine.low %v7385_v51, %v7388_v62  ;;  %v6290_v25 = vsel %vm10089_vm2, %v6288_v7, %v6289_v48  ;;  %v4794_v18 = vshll.u32 %v11972_v22, 16  ;;  %9350 = vmatprep.subr.bf16.mxu1 %v9727_v43  ;;  %v5077_v51 = vld [vmem:[#allocation3 + $0x3c] sm:$0xe]  ;;  %v12090_v48 = vld [vmem:[#allocation3 + $0x40] sm:$0xf] }
 0x200   : > { %v9270_v47 = vpop.f32.mrb[28].mxu0  ;;  %v4798_v42 = vshrl.u32 %v11972_v22, 16  ;;  %v9159_v19 = vpack.c.bf16 %v4087_v6, %v4087_v6  ;;  %v4088_v41 = vmax.f32 %v4056_v14, 0.0  ;;  %v9039_v15 = vcombine.low %v6287_v57, %v6290_v25  ;;  %v12095_v62 = vld [vmem:[#allocation3 + $0x44] sm:$0x1] }
 0x201   : > { %v9271_v63 = vpop.f32.mrb[29].mxu0  ;;  %v7528_v53 = vsel %vm1308_vm6, %v9102_v40, 0  ;;  %v4790_v11 = vrot.slane %v4788_v5, 5  ;;  %v4796_v22 = vrot.slane %v4794_v18, 5  ;;  %v4804_v7 = vshll.u32 %v11983_v36, 16 }
 0x202   : > { %v9272_v29 = vadd.f32 %v9271_v63, %v9270_v47  ;;  %v9273_v30 = vpop.f32.mrb[30].mxu0  ;;  %v4800_v10 = vrot.slane %v4798_v42, 4  ;;  %v4308_v39 = vshrl.u32 %v9159_v19, 16  ;;  %v4311_v46 = vshll.u32 %v9159_v19, 16  ;;  %6905 = vrot.lane.b32.xlu0 %v9039_v15, %s9943_s22  ;;  %9351 = vmatpush3.bf16.msra.mxu1 %v9728_v52  ;;  %v4574_v40 = vld [vmem:[#allocation3 + $0x5c] sm:$0x1] }
 0x203   : > { %v9274_v37 = vpop.f32.mrb[31].mxu0  ;;  %v9160_v16 = vpack.c.bf16 %v4088_v41, %v4088_v41  ;;  %v7556_v13 = vsel %vm1357_vm7, %v7528_v53, 0  ;;  %v4791_v9 = vor.u32 %v4790_v11, %v4787_v28  ;;  %v12079_v3 = vpop.f32.mrb[16].mxu1  ;;  %9352 = vmatprep.subr.bf16.mxu1 %v9730_v55  ;;  %v4806_v25 = vrot.slane %v4804_v7, 5 }
 0x204   : > { %v3927_v32 = vadd.f32 %v12009_v61, %v9272_v29  ;;  %v9275_v59 = vadd.f32 %v9274_v37, %v9273_v30  ;;  %v4801_v31 = vor.u32 %v4800_v10, %v4796_v22  ;;  %v4310_v21 = vrot.slane %v4308_v39, 7  ;;  %9553 = vmatmul.mubr.msk.bf16.gmra.mrb[68].mxu0 %vm1390_vm8, %v7556_v13  ;;  %v12086_v60 = vpop.f32.mrb[17].mxu1  ;;  %v6378_v30 = vld [vmem:[#allocation3 + $0x4c] sm:$0xf] }
 0x205   : > { %v4316_v1 = vshrl.u32 %v9160_v16, 16  ;;  %v4319_v8 = vshll.u32 %v9160_v16, 16  ;;  %v4792_v38 = vrot.slane %v4791_v9, 4  ;;  %v12092_v28 = vpop.f32.mrb[18].mxu1  ;;  %v8928_v18 = vrot.slane %v5077_v51, 9 }
 0x206   : > { %v4018_v61 = vmul.f32 %v12029_v4, %v3927_v32  ;;  %v3930_v27 = vadd.f32 %v12012_v2, %v9275_v59  ;;  %v4802_v57 = vrot.slane %v4801_v31, 4  ;;  %v4313_v43 = vor.u32 %v4311_v46, %v4310_v21  ;;  %v12097_v63 = vpop.f32.mrb[19].mxu1  ;;  %9353 = vmatpush3.bf16.msra.mxu1 %v9731_v54  ;;  %v6377_v32 = vld [vmem:[#allocation3 + $0x48] sm:$0xf] }
 0x207   : > { %v4314_v6 = vrot.slane %v4310_v21, 4  ;;  %v4318_v14 = vrot.slane %v4316_v1, 7  ;;  %v4797_v36 = vsel %vm10143_vm5, %v4792_v38, %v4796_v22  ;;  %v5173_v53 = vrot.slane %v12090_v48, 5 }
 0x208   : > { %v4057_v47 = vadd.f32 %v12040_v33, %v4018_v61  ;;  %v9276_v5 = vpop.f32.mrb[32].mxu0  ;;  %v4019_v2 = vmul.f32 %v12029_v4, %v3930_v27  ;;  %v4571_v52 = vsel %vm11745_vm0, %v4313_v43, %v4570_v17  ;;  %v4807_v37 = vsel %vm10143_vm5, %v4802_v57, %v4806_v25  ;;  %v7277_v25 = vld [vmem:[#allocation3 + $0x48] sm:$0xe] }
 0x209   : > { %v9277_v42 = vpop.f32.mrb[33].mxu0  ;;  %v4321_v19 = vor.u32 %v4319_v8, %v4318_v14  ;;  %v4323_v41 = vrot.slane %v4318_v14, 4  ;;  %4572 = vst [vmem:[#allocation3 + $0x54] sm:$0xf] %v4571_v52  ;;  %v5176_v11 = vrot.slane %v12095_v62, 5  ;;  %v8959_v16 = vcombine.low %v4797_v36, %v4807_v37 }
 0x20a   : > { %v4089_v29 = vmax.f32 %v4057_v47, 0.0  ;;  %v9279_v15 = vpop.f32.mrb[34].mxu0  ;;  %v4058_v55 = vadd.f32 %v12040_v33, %v4019_v2  ;;  %v5174_v59 = vsel %vm10089_vm2, %v8928_v18, %v5173_v53  ;;  %v5175_v13 = vrot.slane %v5173_v53, 4  ;;  %v4577_v8 = vld [vmem:[#allocation3 + $0x60] sm:$0xf] }
 0x20b   : > { %v9280_v22 = vpop.f32.mrb[35].mxu0  ;;  %v4322_v10 = vsel %vm11751_vm1, %v4314_v6, %v4321_v19  ;;  %v4575_v39 = vsel %vm11602_vm13, %v4323_v41, %v4574_v40  ;;  %v6523_v9 = vshll.u32 %v6378_v30, 16  ;;  %5400 = vrot.lane.b32.xlu1 %v8959_v16, %s9943_s22  ;;  %v6527_v21 = vshrl.u32 %v6378_v30, 16  ;;  %v6404_v14 = vld [vmem:[#allocation3 + $0x44] sm:$0x1] }
 0x20c   : > { %v9161_v46 = vpack.c.bf16 %v4089_v29, %v4089_v29  ;;  %4573 = vst.msk [vmem:[#allocation3 + $0x58] sm:$0xf] %vm3313_vm9, %v4322_v10  ;;  %4576 = vst [vmem:[#allocation3 + $0x5c] sm:$0x1] %v4575_v39  ;;  %v4090_v17 = vmax.f32 %v4058_v55, 0.0  ;;  %v9055_v1 = vcombine.low %v6377_v32, %v6378_v30  ;;  %v5177_v51 = vsel %vm10089_vm2, %v5175_v13, %v5176_v11  ;;  %v9716_v55 = vld [vmem:[#allocation3 + $0x48] sm:$0xff]  }
 0x20d   : > { %v12119_v27 = vrot.slane %v6523_v9, 5  ;;  %v6514_v38 = vshrl.u32 %v6377_v32, 16  ;;  %v8976_v7 = vcombine.low %v5174_v59, %v5177_v51  ;;  %v12121_v43 = vrot.slane %v6527_v21, 4  ;;  %v4581_v41 = vld [vmem:[#allocation3 + $0x68] sm:$0x1] }
 0x20e   : > { %v4325_v31 = vshrl.u32 %v9161_v46, 16  ;;  %v4328_v54 = vshll.u32 %v9161_v46, 16  ;;  %v9162_v61 = vpack.c.bf16 %v4090_v17, %v4090_v17  ;;  %7017 = vrot.lane.b32.xlu0 %v9055_v1, %s9941_s20  ;;  %v6517_v6 = vshll.u32 %v6377_v32, 16  ;;  %v7278_v37 = vld [vmem:[#allocation3 + $0x4c] sm:$0xf] }
 0x20f   : > { %v12124_v2 = vrot.slane %v6514_v38, 4  ;;  %v9278_v36 = vadd.f32 %v9277_v42, %v9276_v5  ;;  %5482 = vrot.lane.b32.xlu1 %v8976_v7, %s9941_s20  ;;  %v6496_v30 = vor.u32 %v12022_v24, %v12014_v50  ;;  %v6506_v42 = vor.u32 %v12019_v23, %v12016_v20  ;;  %v7279_v24 = vld [vmem:[#allocation3 + $0x50] sm:$0x1]  ;;  %v6197_v1 = vld [vmem:[#allocation3 + $0x48] sm:$0xe] }
 0x210   : > { %v4327_v57 = vrot.slane %v4325_v31, 7  ;;  %v4333_v47 = vshrl.u32 %v9162_v61, 16  ;;  %v4336_v40 = vshll.u32 %v9162_v61, 16  ;;  %v12126_v18 = vpop.f32.mrb[36].mxu0  ;;  %v12129_v29 = vrot.slane %v6517_v6, 5 }
 0x211   : > { %v12133_v53 = vpop.f32.mrb[37].mxu0  ;;  %v3935_v5 = vadd.f32 %v9278_v36, %v12086_v60  ;;  %v6509_v10 = vshll.u32 %v6404_v14, 16  ;;  %v6497_v32 = vrot.slane %v6496_v30, 4  ;;  %v9281_v50 = vadd.f32 %v9280_v22, %v9279_v15  ;;  %v5776_v22 = vld [vmem:[#allocation3 + $0x4c] sm:$0xf] }
 0x212   : > { %v4330_v52 = vor.u32 %v4328_v54, %v4327_v57  ;;  %v4331_v19 = vrot.slane %v4327_v57, 4  ;;  %v4335_v11 = vrot.slane %v4333_v47, 7  ;;  %v12138_v39 = vpop.f32.mrb[38].mxu0  ;;  %v9087_v17 = vrot.slane %v7277_v25, 9  ;;  %v5777_v57 = vld [vmem:[#allocation3 + $0x50] sm:$0x1] }
 0x213   : > { %v12140_v46 = vpop.f32.mrb[20].mxu1  ;;  %v4020_v60 = vmul.f32 %v12029_v4, %v3935_v5  ;;  %v6507_v9 = vrot.slane %v6506_v42, 4  ;;  %v12145_v31 = vpop.f32.mrb[39].mxu0  ;;  %v6502_v23 = vsel %vm10143_vm5, %v6497_v32, %v12016_v20  ;;  %v6511_v54 = vrot.slane %v6509_v10, 5  ;;  %5594 = vrot.lane.b32.xlu1 %v9716_v55, %s9942_s21  ;;  %v4650_v7 = vld [vmem:[#allocation3 + $0x3c] sm:$0xf] }
 0x214   : > { %v4578_v16 = vsel %vm11745_vm0, %v4330_v52, %v4577_v8  ;;  %v4338_v59 = vor.u32 %v4336_v40, %v4335_v11  ;;  %v4340_v13 = vrot.slane %v4335_v11, 4  ;;  %v3938_v21 = vadd.f32 %v9281_v50, %v12097_v63  ;;  %v12157_v20 = vpop.f32.mrb[21].mxu1 }
 0x215   : > { %4579 = vst [vmem:[#allocation3 + $0x60] sm:$0xf] %v4578_v16  ;;  %v7391_v15 = vrot.slane %v7278_v37, 5  ;;  %v4059_v51 = vadd.f32 %v12040_v33, %v4020_v60  ;;  %v7394_v38 = vrot.slane %v7279_v24, 5  ;;  %v6512_v63 = vsel %vm10143_vm5, %v6507_v9, %v6511_v54  ;;  %v12165_v40 = vpop.f32.mrb[22].mxu1 }
 0x216   : > { %v4339_v8 = vsel %vm11751_vm1, %v4331_v19, %v4338_v59  ;;  %v4582_v61 = vsel %vm11602_vm13, %v4340_v13, %v4581_v41  ;;  %v4021_v6 = vmul.f32 %v12029_v4, %v3938_v21  ;;  %v9070_v25 = vcombine.low %v6502_v23, %v6512_v63  ;;  %v12174_v42 = vpop.f32.mrb[23].mxu1 }
 0x217   : > { %4580 = vst.msk [vmem:[#allocation3 + $0x64] sm:$0xf] %vm3313_vm9, %v4339_v8  ;;  %4583 = vst [vmem:[#allocation3 + $0x68] sm:$0x1] %v4582_v61  ;;  %v7392_v14 = vsel %vm10089_vm2, %v9087_v17, %v7391_v15  ;;  %v7393_v47 = vrot.slane %v7391_v15, 4  ;;  %v4091_v36 = vmax.f32 %v4059_v51, 0.0 }
 0x218   : > { %v9008_v52 = vrot.slane %v6197_v1, 9  ;;  %v6293_v19 = vrot.slane %v5776_v22, 5  ;;  %v12167_v41 = vpop.f32.mrb[40].mxu0  ;;  %v4060_v30 = vadd.f32 %v12040_v33, %v4021_v6  ;;  %v6296_v37 = vrot.slane %v5777_v57, 5  ;;  %7095 = vrot.lane.b32.xlu0 %v9070_v25, %s9942_s21  ;;  %v4584_v22 = vld [vmem:[#allocation3 + $0x6c] sm:$0xf] }
 0x219   : > { %v7395_v55 = vsel %vm10089_vm2, %v7393_v47, %v7394_v38  ;;  %v4809_v11 = vshrl.u32 %v4650_v7, 16  ;;  %v12172_v5 = vpop.f32.mrb[41].mxu0  ;;  %v9163_v10 = vpack.c.bf16 %v4091_v36, %v4091_v36  ;;  %v4812_v13 = vshll.u32 %v4650_v7, 16  ;;  %v5078_v38 = vld [vmem:[#allocation3 + $0x48] sm:$0xe] }
 0x21a   : > { %v9103_v16 = vcombine.low %v7392_v14, %v7395_v55  ;;  %v6294_v32 = vsel %vm10089_vm2, %v9008_v52, %v6293_v19  ;;  %v6295_v50 = vrot.slane %v6293_v19, 4  ;;  %v12179_v24 = vpop.f32.mrb[42].mxu0  ;;  %v4092_v17 = vmax.f32 %v4060_v30, 0.0  ;;  %v12191_v14 = vld [vmem:[#allocation3 + $0x4c] sm:$0xf] }
 0x21b   : > { %v4811_v59 = vrot.slane %v4809_v11, 4  ;;  %v4818_v60 = vshll.u32 %v12090_v48, 16  ;;  %v4342_v9 = vshrl.u32 %v9163_v10, 16  ;;  %v4345_v23 = vshll.u32 %v9163_v10, 16  ;;  %v12185_v15 = vpop.f32.mrb[43].mxu0 }
 0x21c   : > { %v7530_v54 = vsel %vm1308_vm6, %v9103_v16, 0  ;;  %v6297_v21 = vsel %vm10089_vm2, %v6295_v50, %v6296_v37  ;;  %v9164_v1 = vpack.c.bf16 %v4092_v17, %v4092_v17  ;;  %v4814_v51 = vrot.slane %v4812_v13, 5  ;;  %v6380_v52 = vld [vmem:[#allocation3 + $0x58] sm:$0xf]  ;;  %v12194_v37 = vld [vmem:[#allocation3 + $0x50] sm:$0x1] }
 0x21d   : > { %v7557_v8 = vsel %vm1357_vm7, %v7530_v54, 0  ;;  %v9040_v61 = vcombine.low %v6294_v32, %v6297_v21  ;;  %v4344_v57 = vrot.slane %v4342_v9, 7  ;;  %v4820_v7 = vrot.slane %v4818_v60, 5  ;;  %v4588_v17 = vld [vmem:[#allocation3 + $0x74] sm:$0x1] }
 0x21e   : > { %9556 = vmatprep.mubr.msk.bf16.mxu0 %vm1390_vm8, %v7557_v8  ;;  %v4822_v63 = vshrl.u32 %v12090_v48, 16  ;;  %v4828_v6 = vshll.u32 %v12095_v62, 16  ;;  %v4350_v47 = vshrl.u32 %v9164_v1, 16  ;;  %v4353_v36 = vshll.u32 %v9164_v1, 16  ;;  %v3355_v8 = vld [vmem:[#allocation3 + $0x78] sm:$0x1] }
 0x21f   : > { %6907 = vrot.lane.b32.xlu0 %v9040_v61, %s9943_s22  ;;  %v4815_v25 = vor.u32 %v4814_v51, %v4811_v59  ;;  %v4347_v19 = vor.u32 %v4345_v23, %v4344_v57  ;;  %v4348_v30 = vrot.slane %v4344_v57, 4  ;;  %v8929_v11 = vrot.slane %v5078_v38, 9  ;;  %v12201_v59 = vld [vmem:[#allocation3 + $0x54] sm:$0xf] }
 0x220   : > { %v4824_v55 = vrot.slane %v4822_v63, 4  ;;  %v12196_v10 = vpop.f32.mrb[44].mxu0  ;;  %v4352_v16 = vrot.slane %v4350_v47, 7  ;;  %v4830_v32 = vrot.slane %v4828_v6, 5  ;;  %v5180_v62 = vrot.slane %v12191_v14, 5 }
 0x221   : > { %v4816_v48 = vrot.slane %v4815_v25, 4  ;;  %v4585_v50 = vsel %vm11745_vm0, %v4347_v19, %v4584_v22  ;;  %v6547_v60 = vshll.u32 %v6380_v52, 16  ;;  %v6551_v9 = vshrl.u32 %v6380_v52, 16  ;;  %v12206_v61 = vpop.f32.mrb[45].mxu0  ;;  %v6405_v63 = vld [vmem:[#allocation3 + $0x50] sm:$0x1] }
 0x222   : > { %v4825_v13 = vor.u32 %v4824_v55, %v4820_v7  ;;  %4586 = vst [vmem:[#allocation3 + $0x6c] sm:$0xf] %v4585_v50  ;;  %v4355_v23 = vor.u32 %v4353_v36, %v4352_v16  ;;  %v4357_v54 = vrot.slane %v4352_v16, 4  ;;  %v5183_v1 = vrot.slane %v12194_v37, 5  ;;  %v3411_v6 = vld [vmem:[#allocation3 + $0x80] sm:$0x1] }
 0x223   : > { %v4821_v21 = vsel %vm10143_vm5, %v4816_v48, %v4820_v7  ;;  %v12210_v22 = vsel %vm10089_vm2, %v8929_v11, %v5180_v62  ;;  %v5182_v38 = vrot.slane %v5180_v62, 4  ;;  %v12212_v57 = vrot.slane %v6547_v60, 5  ;;  %v7280_v19 = vld [vmem:[#allocation3 + $0x54] sm:$0xe]  ;;  %v7281_v55 = vld [vmem:[#allocation3 + $0x58] sm:$0xf] }
 0x224   : > { %v4826_v51 = vrot.slane %v4825_v13, 4  ;;  %v4356_v47 = vsel %vm11751_vm1, %v4348_v30, %v4355_v23  ;;  %v4589_v7 = vsel %vm11602_vm13, %v4357_v54, %v4588_v17  ;;  %v9056_v36 = vcombine.low %v12201_v59, %v6380_v52  ;;  %v12220_v16 = vpop.f32.mrb[46].mxu0  ;;  %v12233_v50 = vpop.f32.mrb[24].mxu1  ;;  %v9733_v17 = vld [vmem:[%s13769_s5 + $0x58] sm:$0xff]  }
 0x225   : > { %v6538_v25 = vshrl.u32 %v12201_v59, 16  ;;  %4587 = vst.msk [vmem:[#allocation3 + $0x70] sm:$0xf] %vm3313_vm9, %v4356_v47  ;;  %4590 = vst [vmem:[#allocation3 + $0x74] sm:$0x1] %v4589_v7  ;;  %v5184_v30 = vsel %vm10089_vm2, %v5182_v38, %v5183_v1  ;;  %v12227_v48 = vrot.slane %v6551_v9, 4  ;;  %v9284_v23 = vadd.f32 %v12133_v53, %v12126_v18  ;;  %9354 = vmatprep.subr.bf16.mxu1 %v9733_v17 }
 0x226   : > { %v4831_v11 = vsel %vm10143_vm5, %v4826_v51, %v4830_v32  ;;  %v3356_v52 = vsel %vm11602_vm13, 0, %v3355_v8  ;;  %v12231_v62 = vpop.f32.mrb[47].mxu0  ;;  %v9734_v32 = vld [vmem:[%s13769_s5 + $0x18] sm:$0xff]   ;;  %v8977_v60 = vcombine.low %v12210_v22, %v5184_v30  ;;  %7019 = vrot.lane.b32.xlu0 %v9056_v36, %s9941_s20  ;;  %v6541_v9 = vshll.u32 %v12201_v59, 16  ;;  %v12246_v1 = vpop.f32.mrb[25].mxu1  ;;  %v9735_v8 = vld [vmem:[%s13769_s5 + $0x60] sm:$0xff]  }
 0x227   : > { %v8960_v13 = vcombine.low %v4821_v21, %v4831_v11  ;;  %3357 = vst [vmem:[#allocation3 + $0x78] sm:$0x1] %v3356_v52  ;;  %v7282_v54 = vld [vmem:[#allocation3 + $0x5c] sm:$0x1]  ;;  %v12251_v51 = vrot.slane %v6538_v25, 4  ;;  %v6520_v21 = vor.u32 %v12129_v29, %v12124_v2  ;;  %v6530_v22 = vor.u32 %v12121_v43, %v12119_v27  ;;  %v12259_v18 = vpop.f32.mrb[26].mxu1  ;;  %9355 = vmatpush3.bf16.msra.mxu1 %v9734_v32 }
 0x228   : > { %v6533_v38 = vshll.u32 %v6405_v63, 16  ;;  %v5779_v47 = vld [vmem:[#allocation3 + $0x58] sm:$0xf]  ;;  %v6198_v7 = vld [vmem:[#allocation3 + $0x54] sm:$0xe]  ;;  %v12257_v36 = vpop.f32.mrb[48].mxu0  ;;  %v3943_v53 = vadd.f32 %v12079_v3, %v9284_v23  ;;  %v9287_v2 = vadd.f32 %v12145_v31, %v12138_v39  ;;  %9356 = vmatprep.subr.bf16.mxu1 %v9735_v8 }
 0x229   : > { %5402 = vrot.lane.b32.xlu1 %v8960_v13, %s9943_s22  ;;  %v3412_v25 = vsel %vm11624_vm14, 0, %v3411_v6  ;;  %v9088_v29 = vrot.slane %v7280_v19, 9  ;;  %v4652_v43 = vld [vmem:[#allocation3 + $0x48] sm:$0xf]  ;;  %v12267_v63 = vpop.f32.mrb[49].mxu0  ;;  %v12269_v11 = vpop.f32.mrb[27].mxu1 }
 0x22a   : > { %v9736_v30 = vld [vmem:[%s13769_s5 + $0x20] sm:$0xff]   ;;  %v6521_v52 = vrot.slane %v6520_v21, 4  ;;  %v6531_v17 = vrot.slane %v6530_v22, 4  ;;  %v6535_v3 = vrot.slane %v6533_v38, 5  ;;  %3413 = vst [vmem:[#allocation3 + $0x80] sm:$0x1] %v3412_v25  ;;  %v4022_v31 = vmul.f32 %v12029_v4, %v3943_v53 }
 0x22b   : > { %v7398_v13 = vrot.slane %v7281_v55, 5  ;;  %v9738_v39 = vld [vmem:[%s13769_s5 + $0x68] sm:$0xff]   ;;  %v3946_v6 = vadd.f32 %v12092_v28, %v9287_v2  ;;  %v7401_v19 = vrot.slane %v7282_v54, 5  ;;  %v5780_v32 = vld [vmem:[#allocation3 + $0x5c] sm:$0x1]  ;;  %v9009_v23 = vrot.slane %v6198_v7, 9  ;;  %9357 = vmatpush3.bf16.msra.mxu1 %v9736_v30 }
 0x22c   : > { %v6526_v21 = vsel %vm10143_vm5, %v6521_v52, %v12119_v27  ;;  %v6536_v22 = vsel %vm10143_vm5, %v6531_v17, %v6535_v3  ;;  %v12286_v38 = vpop.f32.mrb[50].mxu0  ;;  %v4061_v28 = vadd.f32 %v12040_v33, %v4022_v31  ;;  %v6300_v53 = vrot.slane %v5779_v47, 5  ;;  %v9739_v27 = vld [vmem:[%s13769_s5 + $0x28] sm:$0xff]   ;;  %9358 = vmatprep.subr.bf16.mxu1 %v9738_v39  ;;  %v9718_v3 = vld [vmem:[#allocation3 + $0x54] sm:$0xff]  }
 0x22d   : > { %v7399_v55 = vsel %vm10089_vm2, %v9088_v29, %v7398_v13  ;;  %v7400_v8 = vrot.slane %v7398_v13, 4  ;;  %5484 = vrot.lane.b32.xlu1 %v8977_v60, %s9941_s20  ;;  %v9071_v54 = vcombine.low %v6526_v21, %v6536_v22  ;;  %v4023_v7 = vmul.f32 %v12029_v4, %v3946_v6  ;;  %v12296_v17 = vpop.f32.mrb[51].mxu0  ;;  %v9741_v31 = vld [vmem:[%s13769_s5 + $0x70] sm:$0xff]  }
 0x22e   : > { %v6303_v2 = vrot.slane %v5780_v32, 5  ;;  %v4833_v29 = vshrl.u32 %v4652_v43, 16  ;;  %v4836_v52 = vshll.u32 %v4652_v43, 16  ;;  %v4093_v60 = vmax.f32 %v4061_v28, 0.0 }
 0x22f   : > { %v7402_v25 = vsel %vm10089_vm2, %v7400_v8, %v7401_v19  ;;  %7097 = vrot.lane.b32.xlu0 %v9071_v54, %s9942_s21  ;;  %v4062_v47 = vadd.f32 %v12040_v33, %v4023_v7  ;;  %v6301_v13 = vsel %vm10089_vm2, %v9009_v23, %v6300_v53  ;;  %v6302_v6 = vrot.slane %v6300_v53, 4  ;;  %9359 = vmatpush3.bf16.msra.mxu1 %v9739_v27  ;;  %v9742_v23 = vld [vmem:[%s13769_s5 + $0x30] sm:$0xff]   ;;  %v12315_v53 = vld [vmem:[#allocation3 + $0x58] sm:$0xf] }
 0x230   : > { %v9104_v30 = vcombine.low %v7399_v55, %v7402_v25  ;;  %v4835_v19 = vrot.slane %v4833_v29, 4  ;;  %v4838_v43 = vrot.slane %v4836_v52, 5  ;;  %v4842_v32 = vshll.u32 %v12191_v14, 16  ;;  %v5079_v25 = vld [vmem:[#allocation3 + $0x54] sm:$0xe]  ;;  %9360 = vmatprep.subr.bf16.mxu1 %v9741_v31  ;;  %v12327_v31 = vpop.f32.mrb[28].mxu1 }
 0x231   : > { %v9165_v39 = vpack.c.bf16 %v4093_v60, %v4093_v60  ;;  %5596 = vrot.lane.b32.xlu1 %v9718_v3, %s9942_s21  ;;  %v4094_v21 = vmax.f32 %v4062_v47, 0.0  ;;  %v4846_v55 = vshrl.u32 %v12191_v14, 16  ;;  %v6304_v28 = vsel %vm10089_vm2, %v6302_v6, %v6303_v2  ;;  %v12322_v60 = vld [vmem:[#allocation3 + $0x5c] sm:$0x1]  ;;  %v6382_v6 = vld [vmem:[#allocation3 + $0x64] sm:$0xf] }
 0x232   : > { %v7532_v22 = vsel %vm1308_vm6, %v9104_v30, 0  ;;  %v4839_v54 = vor.u32 %v4838_v43, %v4835_v19  ;;  %v4844_v7 = vrot.slane %v4842_v32, 5  ;;  %v12319_v29 = vrot.slane %v6541_v9, 5  ;;  %13800 = vst [vmem:[#allocation8_spill] sm:$0xff] %v12327_v31  ;;  %v4591_v32 = vld [vmem:[#allocation3 + $0x78] sm:$0xf] }
 0x233   : > { %v7558_v8 = vsel %vm1357_vm7, %v7532_v22, 0  ;;  %v4359_v14 = vshrl.u32 %v9165_v39, 16  ;;  %v9166_v27 = vpack.c.bf16 %v4094_v21, %v4094_v21  ;;  %v9041_v52 = vcombine.low %v6301_v13, %v6304_v28  ;;  %9361 = vmatpush3.bf16.msra.mxu1 %v9742_v23  ;;  %v9743_v13 = vld [vmem:[%s13769_s5 + $0x78] sm:$0xff]  }
 0x234   : > { %9557 = vmatmul.mubr.msk.bf16.gmra.mrb[72].mxu0 %vm1390_vm8, %v7558_v8  ;;  %v4362_v3 = vshll.u32 %v9165_v39, 16  ;;  %v4840_v47 = vrot.slane %v4839_v54, 4  ;;  %v4848_v2 = vrot.slane %v4846_v55, 4  ;;  %v4852_v30 = vshll.u32 %v12194_v37, 16  ;;  %v12334_v55 = vld [vmem:[#allocation3 + $0x60] sm:$0xf]  ;;  %9362 = vmatprep.subr.bf16.mxu1 %v9743_v13 }
 0x235   : > { %v4361_v19 = vrot.slane %v4359_v14, 7  ;;  %v4367_v43 = vshrl.u32 %v9166_v27, 16  ;;  %6909 = vrot.lane.b32.xlu0 %v9041_v52, %s9943_s22  ;;  %v8930_v59 = vrot.slane %v5079_v25, 9  ;;  %v5187_v9 = vrot.slane %v12315_v53, 5  ;;  %v12336_v8 = vpop.f32.mrb[29].mxu1  ;;  %v9744_v28 = vld [vmem:[%s13769_s5 + $0x38] sm:$0xff]  }
 0x236   : > { %v4370_v39 = vshll.u32 %v9166_v27, 16  ;;  %v4845_v37 = vsel %vm10143_vm5, %v4840_v47, %v4844_v7  ;;  %v4849_v21 = vor.u32 %v4848_v2, %v4844_v7  ;;  %v4854_v22 = vrot.slane %v4852_v30, 5  ;;  %13801 = vst [vmem:[#allocation9_spill] sm:$0xff] %v12336_v8  ;;  %v4595_v14 = vld [vmem:[#allocation3 + $0x80] sm:$0x1]  ;;  %v12342_v27 = vpop.f32.mrb[30].mxu1 }
 0x237   : > { %v4364_v23 = vor.u32 %v4362_v3, %v4361_v19  ;;  %v4365_v54 = vrot.slane %v4361_v19, 4  ;;  %v4369_v25 = vrot.slane %v4367_v43, 7  ;;  %v5190_v52 = vrot.slane %v12322_v60, 5  ;;  %13802 = vst [vmem:[#allocation10_spill] sm:$0xff] %v12342_v27  ;;  %v12344_v58 = vpop.f32.mrb[31].mxu1  ;;  %9363 = vmatpush3.bf16.msra.mxu1 %v9744_v28 }
 0x238   : > { %v4850_v47 = vrot.slane %v4849_v21, 4  ;;  %v5189_v7 = vrot.slane %v5187_v9, 4  ;;  %v6571_v2 = vshll.u32 %v6382_v6, 16  ;;  %v6575_v30 = vshrl.u32 %v6382_v6, 16  ;;  %13803 = vst [vmem:[#allocation11_spill] sm:$0xff] %v12344_v58 }
 0x239   : > { %v4592_v0 = vsel %vm11745_vm0, %v4364_v23, %v4591_v32  ;;  %v4372_v31 = vor.u32 %v4370_v39, %v4369_v25  ;;  %v4374_v8 = vrot.slane %v4369_v25, 4  ;;  %v9057_v3 = vcombine.low %v12334_v55, %v6382_v6  ;;  %v3358_v19 = vld [vmem:[#allocation3 + $0x84] sm:$0x1]  ;;  %v6406_v58 = vld [vmem:[#allocation3 + $0x5c] sm:$0x1] }
 0x23a   : > { %4593 = vst [vmem:[#allocation3 + $0x78] sm:$0xf] %v4592_v0  ;;  %v4855_v43 = vsel %vm10143_vm5, %v4850_v47, %v4854_v22  ;;  %v5188_v13 = vsel %vm10089_vm2, %v8930_v59, %v5187_v9  ;;  %v5191_v21 = vsel %vm10089_vm2, %v5189_v7, %v5190_v52  ;;  %v12355_v27 = vrot.slane %v6571_v2, 5  ;;  %v3414_v22 = vld [vmem:[#allocation3 + $0x8c] sm:$0x1]  ;;  %v12364_v28 = vpop.f32.mrb[52].mxu0 }
 0x23b   : > { %v4373_v32 = vsel %vm11751_vm1, %v4365_v54, %v4372_v31  ;;  %v4596_v6 = vsel %vm11602_vm13, %v4374_v8, %v4595_v14  ;;  %v8961_v39 = vcombine.low %v4845_v37, %v4855_v43  ;;  %v12361_v0 = vrot.slane %v6575_v30, 4  ;;  %7021 = vrot.lane.b32.xlu0 %v9057_v3, %s9941_s20  ;;  %v7283_v37 = vld [vmem:[#allocation3 + $0x60] sm:$0xe]  ;;  %v12372_v23 = vpop.f32.mrb[53].mxu0  ;;  %v4654_v3 = vld [vmem:[#allocation3 + $0x54] sm:$0xf] }
 0x23c   : > { %4594 = vst.msk [vmem:[#allocation3 + $0x7c] sm:$0xf] %vm3313_vm9, %v4373_v32  ;;  %4597 = vst [vmem:[#allocation3 + $0x80] sm:$0x1] %v4596_v6  ;;  %v8978_v59 = vcombine.low %v5188_v13, %v5191_v21  ;;  %v6562_v9 = vshrl.u32 %v12334_v55, 16  ;;  %v9290_v31 = vadd.f32 %v12172_v5, %v12167_v41  ;;  %v3359_v8 = vsel %vm11602_vm13, 0, %v3358_v19 }
 0x23d   : > { %5404 = vrot.lane.b32.xlu1 %v8961_v39, %s9943_s22  ;;  %3360 = vst [vmem:[#allocation3 + $0x84] sm:$0x1] %v3359_v8  ;;  %v6544_v54 = vor.u32 %v12319_v29, %v12251_v51  ;;  %v6554_v25 = vor.u32 %v12227_v48, %v12212_v57  ;;  %v6557_v14 = vshll.u32 %v6406_v58, 16  ;;  %v9293_v52 = vadd.f32 %v12185_v15, %v12179_v24  ;;  %v7284_v41 = vld [vmem:[#allocation3 + $0x64] sm:$0xf]  ;;  %v12381_v47 = vpop.f32.mrb[54].mxu0 }
 0x23e   : > { %v7285_v5 = vld [vmem:[#allocation3 + $0x68] sm:$0x1]  ;;  %v12383_v7 = vrot.slane %v6562_v9, 4  ;;  %v6565_v2 = vshll.u32 %v12334_v55, 16  ;;  %v3951_v30 = vadd.f32 %v9290_v31, %v12157_v20  ;;  %v3415_v51 = vsel %vm11624_vm14, 0, %v3414_v22  ;;  %v12389_v48 = vpop.f32.mrb[55].mxu0 }
 0x23f   : > { %v6199_v29 = vld [vmem:[#allocation3 + $0x60] sm:$0xe]  ;;  %v6545_v58 = vrot.slane %v6544_v54, 4  ;;  %v6555_v19 = vrot.slane %v6554_v25, 4  ;;  %v6559_v24 = vrot.slane %v6557_v14, 5  ;;  %v3954_v15 = vadd.f32 %v9293_v52, %v12174_v42 }
 0x240   : > { %3416 = vst [vmem:[#allocation3 + $0x8c] sm:$0x1] %v3415_v51  ;;  %v5782_v43 = vld [vmem:[#allocation3 + $0x64] sm:$0xf]  ;;  %v4024_v13 = vmul.f32 %v12029_v4, %v3951_v30  ;;  %v9089_v21 = vrot.slane %v7283_v37, 9  ;;  %v7405_v55 = vrot.slane %v7284_v41, 5 }
 0x241   : > { %v7408_v32 = vrot.slane %v7285_v5, 5  ;;  %v5783_v20 = vld [vmem:[#allocation3 + $0x68] sm:$0x1]  ;;  %5486 = vrot.lane.b32.xlu1 %v8978_v59, %s9941_s20  ;;  %v6550_v6 = vsel %vm10143_vm5, %v6545_v58, %v12212_v57  ;;  %v6560_v39 = vsel %vm10143_vm5, %v6555_v19, %v6559_v24  ;;  %v4025_v22 = vmul.f32 %v12029_v4, %v3954_v15  ;;  %v9720_v54 = vld [vmem:[#allocation3 + $0x60] sm:$0xff]  }
 0x242   : > { %v9010_v9 = vrot.slane %v6199_v29, 9  ;;  %v4063_v42 = vadd.f32 %v12040_v33, %v4024_v13  ;;  %v9072_v31 = vcombine.low %v6550_v6, %v6560_v39  ;;  %v7406_v8 = vsel %vm10089_vm2, %v9089_v21, %v7405_v55 }
 0x243   : > { %v7407_v37 = vrot.slane %v7405_v55, 4  ;;  %v4064_v59 = vadd.f32 %v12040_v33, %v4025_v22  ;;  %v6307_v25 = vrot.slane %v5782_v43, 5  ;;  %v6310_v14 = vrot.slane %v5783_v20, 5  ;;  %v12415_v55 = vld [vmem:[#allocation3 + $0x64] sm:$0xf] }
 0x244   : > { %v4857_v52 = vshrl.u32 %v4654_v3, 16  ;;  %v4095_v57 = vmax.f32 %v4063_v42, 0.0  ;;  %7099 = vrot.lane.b32.xlu0 %v9072_v31, %s9942_s21  ;;  %v4860_v41 = vshll.u32 %v4654_v3, 16  ;;  %v4866_v5 = vshll.u32 %v12315_v53, 16  ;;  %v5080_v22 = vld [vmem:[#allocation3 + $0x60] sm:$0xe] }
 0x245   : > { %v7409_v4 = vsel %vm10089_vm2, %v7407_v37, %v7408_v32  ;;  %5598 = vrot.lane.b32.xlu1 %v9720_v54, %s9942_s21  ;;  %v4096_v30 = vmax.f32 %v4064_v59, 0.0  ;;  %v6308_v29 = vsel %vm10089_vm2, %v9010_v9, %v6307_v25  ;;  %v6309_v33 = vrot.slane %v6307_v25, 4  ;;  %v12421_v37 = vld [vmem:[#allocation3 + $0x68] sm:$0x1]  ;;  %v6384_v25 = vld [vmem:[#allocation3 + $0x70] sm:$0xf] }
 0x246   : > { %v9105_v51 = vcombine.low %v7406_v8, %v7409_v4  ;;  %v9167_v58 = vpack.c.bf16 %v4095_v57, %v4095_v57  ;;  %v4859_v19 = vrot.slane %v4857_v52, 4  ;;  %v4862_v24 = vrot.slane %v4860_v41, 5 }
 0x247   : > { %v4868_v15 = vrot.slane %v4866_v5, 5  ;;  %v9168_v43 = vpack.c.bf16 %v4096_v30, %v4096_v30  ;;  %v6311_v3 = vsel %vm10089_vm2, %v6309_v33, %v6310_v14  ;;  %v4870_v21 = vshrl.u32 %v12315_v53, 16  ;;  %v4598_v14 = vld [vmem:[#allocation3 + $0x84] sm:$0xf] }
 0x248   : > { %v7534_v13 = vsel %vm1308_vm6, %v9105_v51, 0  ;;  %v12417_v32 = vrot.slane %v6565_v2, 5  ;;  %v4376_v20 = vshrl.u32 %v9167_v58, 16  ;;  %v9042_v39 = vcombine.low %v6308_v29, %v6311_v3  ;;  %v4602_v51 = vld [vmem:[#allocation3 + $0x8c] sm:$0x1] }
 0x249   : > { %v7559_v6 = vsel %vm1357_vm7, %v7534_v13, 0  ;;  %v4379_v9 = vshll.u32 %v9167_v58, 16  ;;  %v4384_v42 = vshrl.u32 %v9168_v43, 16  ;;  %v4863_v31 = vor.u32 %v4862_v24, %v4859_v19 }
 0x24a   : > { %9560 = vmatprep.mubr.msk.bf16.mxu0 %vm1390_vm8, %v7559_v6  ;;  %v4872_v8 = vrot.slane %v4870_v21, 4  ;;  %v4378_v54 = vrot.slane %v4376_v20, 7  ;;  %v4387_v59 = vshll.u32 %v9168_v43, 16  ;;  %6911 = vrot.lane.b32.xlu0 %v9042_v39, %s9943_s22  ;;  %v4876_v53 = vshll.u32 %v12322_v60, 16  ;;  %v3361_v43 = vld [vmem:[#allocation3 + $0x90] sm:$0x1] }
 0x24b   : > { %v5194_v2 = vrot.slane %v12415_v55, 5  ;;  %v4386_v52 = vrot.slane %v4384_v42, 7  ;;  %v4864_v57 = vrot.slane %v4863_v31, 4  ;;  %v8931_v41 = vrot.slane %v5080_v22, 9  ;;  %v12431_v21 = vld [vmem:[#allocation3 + $0x6c] sm:$0xf] }
 0x24c   : > { %v4873_v4 = vor.u32 %v4872_v8, %v4868_v15  ;;  %v4381_v5 = vor.u32 %v4379_v9, %v4378_v54  ;;  %v4382_v30 = vrot.slane %v4378_v54, 4  ;;  %v4878_v29 = vrot.slane %v4876_v53, 5  ;;  %v6407_v42 = vld [vmem:[#allocation3 + $0x68] sm:$0x1]  ;;  %v3417_v53 = vld [vmem:[#allocation3 + $0x98] sm:$0x1] }
 0x24d   : > { %v5197_v33 = vrot.slane %v12421_v37, 5  ;;  %v4389_v58 = vor.u32 %v4387_v59, %v4386_v52  ;;  %v4391_v19 = vrot.slane %v4386_v52, 4  ;;  %v4869_v24 = vsel %vm10143_vm5, %v4864_v57, %v4868_v15 }
 0x24e   : > { %v4874_v60 = vrot.slane %v4873_v4, 4  ;;  %v4599_v13 = vsel %vm11745_vm0, %v4381_v5, %v4598_v14  ;;  %v5196_v3 = vrot.slane %v5194_v2, 4  ;;  %v6595_v20 = vshll.u32 %v6384_v25, 16  ;;  %v7286_v4 = vld [vmem:[#allocation3 + $0x6c] sm:$0xe] }
 0x24f   : > { %v6599_v6 = vshrl.u32 %v6384_v25, 16  ;;  %4600 = vst [vmem:[#allocation3 + $0x84] sm:$0xf] %v4599_v13  ;;  %v4390_v39 = vsel %vm11751_vm1, %v4382_v30, %v4389_v58  ;;  %v4603_v22 = vsel %vm11602_vm13, %v4391_v19, %v4602_v51  ;;  %v9058_v9 = vcombine.low %v12431_v21, %v6384_v25 }
 0x250   : > { %v4879_v15 = vsel %vm10143_vm5, %v4874_v60, %v4878_v29  ;;  %4601 = vst.msk [vmem:[#allocation3 + $0x88] sm:$0xf] %vm3313_vm9, %v4390_v39  ;;  %4604 = vst [vmem:[#allocation3 + $0x8c] sm:$0x1] %v4603_v22  ;;  %v5195_v8 = vsel %vm10089_vm2, %v8931_v41, %v5194_v2  ;;  %v5198_v54 = vsel %vm10089_vm2, %v5196_v3, %v5197_v33  ;;  %v12445_v59 = vrot.slane %v6595_v20, 5  ;;  %v12453_v5 = vpop.f32.mrb[56].mxu0 }
 0x251   : > { %v8962_v31 = vcombine.low %v4869_v24, %v4879_v15  ;;  %v8979_v14 = vcombine.low %v5195_v8, %v5198_v54  ;;  %v12447_v52 = vrot.slane %v6599_v6, 4  ;;  %7023 = vrot.lane.b32.xlu0 %v9058_v9, %s9941_s20  ;;  %v6586_v25 = vshrl.u32 %v12431_v21, 16  ;;  %v7287_v29 = vld [vmem:[#allocation3 + $0x70] sm:$0xf]  ;;  %v7288_v33 = vld [vmem:[#allocation3 + $0x74] sm:$0x1] }
 0x252   : > { %v3362_v57 = vsel %vm11602_vm13, 0, %v3361_v43  ;;  %v9296_v2 = vadd.f32 %v12206_v61, %v12196_v10  ;;  %v6568_v41 = vor.u32 %v12417_v32, %v12383_v7  ;;  %v6578_v30 = vor.u32 %v12361_v0, %v12355_v27  ;;  %v12462_v58 = vpop.f32.mrb[57].mxu0  ;;  %v6200_v61 = vld [vmem:[#allocation3 + $0x6c] sm:$0xe]  ;;  %v4656_v7 = vld [vmem:[#allocation3 + $0x60] sm:$0xf] }
 0x253   : > { %5406 = vrot.lane.b32.xlu1 %v8962_v31, %s9943_s22  ;;  %3363 = vst [vmem:[#allocation3 + $0x90] sm:$0x1] %v3362_v57  ;;  %v6581_v51 = vshll.u32 %v6407_v42, 16  ;;  %v12464_v19 = vrot.slane %v6586_v25, 4  ;;  %v6589_v24 = vshll.u32 %v12431_v21, 16  ;;  %v3418_v60 = vsel %vm11624_vm14, 0, %v3417_v53 }
 0x254   : > { %v9299_v10 = vadd.f32 %v12231_v62, %v12220_v16  ;;  %v12471_v32 = vpop.f32.mrb[58].mxu0  ;;  %v3959_v0 = vadd.f32 %v12140_v46, %v9296_v2  ;;  %v6569_v43 = vrot.slane %v6568_v41, 4  ;;  %v6579_v13 = vrot.slane %v6578_v30, 4  ;;  %3419 = vst [vmem:[#allocation3 + $0x98] sm:$0x1] %v3418_v60  ;;  %v9722_v57 = vld [vmem:[#allocation3 + $0x6c] sm:$0xff]  }
 0x255   : > { %v6583_v3 = vrot.slane %v6581_v51, 5  ;;  %v5785_v20 = vld [vmem:[#allocation3 + $0x70] sm:$0xf]  ;;  %v12474_v6 = vpop.f32.mrb[59].mxu0  ;;  %v9090_v39 = vrot.slane %v7286_v4, 9  ;;  %v7412_v22 = vrot.slane %v7287_v29, 5 }
 0x256   : > { %v3962_v21 = vadd.f32 %v12165_v40, %v9299_v10  ;;  %v7415_v15 = vrot.slane %v7288_v33, 5  ;;  %v5786_v9 = vld [vmem:[#allocation3 + $0x74] sm:$0x1]  ;;  %v12481_v16 = vld [vmem:[%s13767_s3] ss:$0 sm:$0xff]  ;;  %v6574_v62 = vsel %vm10143_vm5, %v6569_v43, %v12355_v27  ;;  %v9011_v42 = vrot.slane %v6200_v61, 9 }
 0x257   : > { %5488 = vrot.lane.b32.xlu1 %v8979_v14, %s9941_s20  ;;  %v4026_v46 = vmul.f32 %v12481_v16, %v3959_v0  ;;  %v6584_v40 = vsel %vm10143_vm5, %v6579_v13, %v6583_v3  ;;  %v7413_v54 = vsel %vm10089_vm2, %v9090_v39, %v7412_v22  ;;  %v7414_v53 = vrot.slane %v7412_v22, 4  ;;  %v12495_v14 = vld [vmem:[%s13768_s4] ss:$0 sm:$0xff] }
 0x258   : > { %v9073_v31 = vcombine.low %v6574_v62, %v6584_v40  ;;  %v4027_v8 = vmul.f32 %v12481_v16, %v3962_v21  ;;  %v6314_v27 = vrot.slane %v5785_v20, 5  ;;  %v6317_v4 = vrot.slane %v5786_v9, 5  ;;  %v12511_v62 = vld [vmem:[#allocation3 + $0x70] sm:$0xf]  ;;  %v5081_v40 = vld [vmem:[#allocation3 + $0x6c] sm:$0xe] }
 0x259   : > { %v4065_v25 = vadd.f32 %v12495_v14, %v4026_v46  ;;  %v4881_v2 = vshrl.u32 %v4656_v7, 16  ;;  %v7416_v30 = vsel %vm10089_vm2, %v7414_v53, %v7415_v15  ;;  %v4884_v51 = vshll.u32 %v4656_v7, 16  ;;  %v12517_v53 = vld [vmem:[#allocation3 + $0x74] sm:$0x1] }
 0x25a   : > { %7101 = vrot.lane.b32.xlu0 %v9073_v31, %s9942_s21  ;;  %v4066_v41 = vadd.f32 %v12495_v14, %v4027_v8  ;;  %v4890_v29 = vshll.u32 %v12415_v55, 16  ;;  %v9106_v60 = vcombine.low %v7413_v54, %v7416_v30  ;;  %v6315_v10 = vsel %vm10089_vm2, %v9011_v42, %v6314_v27 }
 0x25b   : > { %v4097_v33 = vmax.f32 %v4065_v25, 0.0  ;;  %5600 = vrot.lane.b32.xlu1 %v9722_v57, %s9942_s21  ;;  %v6316_v61 = vrot.slane %v6314_v27, 4  ;;  %v4883_v43 = vrot.slane %v4881_v2, 4  ;;  %v4886_v13 = vrot.slane %v4884_v51, 5  ;;  %v4605_v51 = vld [vmem:[#allocation3 + $0x90] sm:$0xf] }
 0x25c   : > { %v4098_v0 = vmax.f32 %v4066_v41, 0.0  ;;  %v4892_v3 = vrot.slane %v4890_v29, 5  ;;  %v7536_v21 = vsel %vm1308_vm6, %v9106_v60, 0  ;;  %v4894_v39 = vshrl.u32 %v12415_v55, 16 }
 0x25d   : > { %v9169_v20 = vpack.c.bf16 %v4097_v33, %v4097_v33  ;;  %v6318_v7 = vsel %vm10089_vm2, %v6316_v61, %v6317_v4  ;;  %v7560_v15 = vsel %vm1357_vm7, %v7536_v21, 0  ;;  %v4887_v46 = vor.u32 %v4886_v13, %v4883_v43  ;;  %v6386_v4 = vld [vmem:[#allocation3 + $0x7c] sm:$0xf] }
 0x25e   : > { %v9170_v22 = vpack.c.bf16 %v4098_v0, %v4098_v0  ;;  %v9043_v9 = vcombine.low %v6315_v10, %v6318_v7  ;;  %v12513_v42 = vrot.slane %v6589_v24, 5  ;;  %9561 = vmatmul.mubr.msk.bf16.gmra.mrb[76].mxu0 %vm1390_vm8, %v7560_v15  ;;  %v4896_v8 = vrot.slane %v4894_v39, 4  ;;  %v4609_v0 = vld [vmem:[#allocation3 + $0x98] sm:$0x1] }
 0x25f   : > { %v4393_v31 = vshrl.u32 %v9169_v20, 16  ;;  %v4900_v54 = vshll.u32 %v12421_v37, 16  ;;  %v4396_v25 = vshll.u32 %v9169_v20, 16  ;;  %v4888_v27 = vrot.slane %v4887_v46, 4 }
 0x260   : > { %v4401_v55 = vshrl.u32 %v9170_v22, 16  ;;  %v4404_v57 = vshll.u32 %v9170_v22, 16  ;;  %6913 = vrot.lane.b32.xlu0 %v9043_v9, %s9943_s22  ;;  %v4897_v41 = vor.u32 %v4896_v8, %v4892_v3  ;;  %v8932_v30 = vrot.slane %v5081_v40, 9  ;;  %v6385_v22 = vld [vmem:[#allocation3 + $0x78] sm:$0xf] }
 0x261   : > { %v4395_v2 = vrot.slane %v4393_v31, 7  ;;  %v5201_v24 = vrot.slane %v12511_v62, 5  ;;  %v4893_v33 = vsel %vm10143_vm5, %v4888_v27, %v4892_v3  ;;  %v4902_v37 = vrot.slane %v4900_v54, 5  ;;  %v3364_v40 = vld [vmem:[#allocation3 + $0x9c] sm:$0x1]  ;;  %v12530_v31 = vpop.permute.xlu0 %6897 }
 0x262   : > { %v4403_v29 = vrot.slane %v4401_v55, 7  ;;  %v5204_v60 = vrot.slane %v12517_v53, 5  ;;  %v4898_v43 = vrot.slane %v4897_v41, 4  ;;  %v6619_v13 = vshll.u32 %v6386_v4, 16  ;;  %v6408_v27 = vld [vmem:[#allocation3 + $0x74] sm:$0x1] }
 0x263   : > { %v4398_v10 = vor.u32 %v4396_v25, %v4395_v2  ;;  %v4399_v61 = vrot.slane %v4395_v2, 4  ;;  %v5202_v7 = vsel %vm10089_vm2, %v8932_v30, %v5201_v24  ;;  %v5203_v39 = vrot.slane %v5201_v24, 4  ;;  %v12532_v8 = vpop.f32.mrb[60].mxu0  ;;  %v3420_v2 = vld [vmem:[#allocation3 + $0xa4] sm:$0x1] }
 0x264   : > { %v4406_v20 = vor.u32 %v4404_v57, %v4403_v29  ;;  %v4408_v21 = vrot.slane %v4403_v29, 4  ;;  %v4903_v3 = vsel %vm10143_vm5, %v4898_v43, %v4902_v37  ;;  %v6623_v9 = vshrl.u32 %v6386_v4, 16  ;;  %v12540_v41 = vpop.f32.mrb[61].mxu0  ;;  %v7289_v29 = vld [vmem:[#allocation3 + $0x78] sm:$0xe] }
 0x265   : > { %v4606_v15 = vsel %vm11745_vm0, %v4398_v10, %v4605_v51  ;;  %v9059_v46 = vcombine.low %v6385_v22, %v6386_v4  ;;  %v8963_v55 = vcombine.low %v4893_v33, %v4903_v3  ;;  %v5205_v57 = vsel %vm10089_vm2, %v5203_v39, %v5204_v60  ;;  %v12546_v37 = vpop.f32.mrb[62].mxu0  ;;  %v6201_v43 = vld [vmem:[#allocation3 + $0x78] sm:$0xe]  ;;  %v9816_v3 = vld [vmem:[#allocation3 + $0x4] sm:$0xf] }
 0x266   : > { %4607 = vst [vmem:[#allocation3 + $0x90] sm:$0xf] %v4606_v15  ;;  %v4407_v54 = vsel %vm11751_vm1, %v4399_v61, %v4406_v20  ;;  %v4610_v25 = vsel %vm11602_vm13, %v4408_v21, %v4609_v0  ;;  %v8980_v4 = vcombine.low %v5202_v7, %v5205_v57  ;;  %v12543_v30 = vrot.slane %v6619_v13, 5  ;;  %v7290_v0 = vld [vmem:[#allocation3 + $0x7c] sm:$0xf]  ;;  %v12557_v13 = vpop.f32.mrb[63].mxu0 }
 0x267   : > { %4608 = vst.msk [vmem:[#allocation3 + $0x94] sm:$0xf] %vm3313_vm9, %v4407_v54  ;;  %4611 = vst [vmem:[#allocation3 + $0x98] sm:$0x1] %v4610_v25  ;;  %7025 = vrot.lane.b32.xlu0 %v9059_v46, %s9941_s20  ;;  %v6610_v24 = vshrl.u32 %v6385_v22, 16  ;;  %v6613_v51 = vshll.u32 %v6385_v22, 16  ;;  %5408 = vrot.lane.b32.xlu1 %v8963_v55, %s9943_s22  ;;  %v9302_v33 = vadd.f32 %v12267_v63, %v12257_v36  ;;  %v12570_v25 = vpop.permute.xlu0 %7009 }
 0x268   : > { %v3365_v60 = vsel %vm11602_vm13, 0, %v3364_v40  ;;  %v6592_v10 = vor.u32 %v12513_v42, %v12464_v19  ;;  %v6602_v61 = vor.u32 %v12447_v52, %v12445_v59  ;;  %v12559_v20 = vrot.slane %v6623_v9, 4  ;;  %v7291_v63 = vld [vmem:[#allocation3 + $0x80] sm:$0x1]  ;;  %v5788_v42 = vld [vmem:[#allocation3 + $0x7c] sm:$0xf] }
 0x269   : > { %v12561_v21 = vrot.slane %v6610_v24, 4  ;;  %v12563_v7 = vrot.slane %v6613_v51, 5  ;;  %3366 = vst [vmem:[#allocation3 + $0x9c] sm:$0x1] %v3365_v60  ;;  %v6605_v36 = vshll.u32 %v6408_v27, 16  ;;  %v3967_v39 = vadd.f32 %v9302_v33, %v12246_v1  ;;  %v9724_v60 = vld [vmem:[#allocation3 + $0x78] sm:$0xff]  }
 0x26a   : > { %v6593_v22 = vrot.slane %v6592_v10, 4  ;;  %v6603_v19 = vrot.slane %v6602_v61, 4  ;;  %v3421_v52 = vsel %vm11624_vm14, 0, %v3420_v2  ;;  %v9817_v46 = vld [vmem:[#allocation3] sm:$0xf]  ;;  %v9305_v40 = vadd.f32 %v12296_v17, %v12286_v38 }
 0x26b   : > { %v6607_v15 = vrot.slane %v6605_v36, 5  ;;  %v8939_v9 = vcombine.low %v9817_v46, %v9816_v3  ;;  %3422 = vst [vmem:[#allocation3 + $0xa4] sm:$0x1] %v3421_v52  ;;  %v9091_v54 = vrot.slane %v7289_v29, 9  ;;  %5490 = vrot.lane.b32.xlu1 %v8980_v4, %s9941_s20  ;;  %v4028_v1 = vmul.f32 %v12481_v16, %v3967_v39  ;;  %v5789_v2 = vld [vmem:[#allocation3 + $0x80] sm:$0x1]  ;;  %v12594_v46 = vpop.permute.xlu0 %6899 }
 0x26c   : > { %v6598_v55 = vsel %vm10143_vm5, %v6593_v22, %v12445_v59  ;;  %v7419_v57 = vrot.slane %v7290_v0, 5  ;;  %v7422_v27 = vrot.slane %v7291_v63, 5  ;;  %v3970_v51 = vadd.f32 %v9305_v40, %v12269_v11  ;;  %v4658_v29 = vld [vmem:[#allocation3 + $0x6c] sm:$0xf]  ;;  %v5393_v11 = vpop.permute.xlu1 %5392 }
 0x26d   : > { %v6608_v24 = vsel %vm10143_vm5, %v6603_v19, %v6607_v15  ;;  %v9012_v38 = vrot.slane %v6201_v43, 9  ;;  %v6321_v17 = vrot.slane %v5788_v42, 5  ;;  %v4067_v33 = vadd.f32 %v12495_v14, %v4028_v1 }
 0x26e   : > { %v9074_v4 = vcombine.low %v6598_v55, %v6608_v24  ;;  %v7420_v10 = vsel %vm10089_vm2, %v9091_v54, %v7419_v57  ;;  %v7421_v61 = vrot.slane %v7419_v57, 4  ;;  %v4029_v59 = vmul.f32 %v12481_v16, %v3970_v51  ;;  %v12596_v57 = vld [vmem:[#allocation3 + $0x7c] sm:$0xf] }
 0x26f   : > { %v6322_v0 = vsel %vm10089_vm2, %v9012_v38, %v6321_v17  ;;  %v6323_v36 = vrot.slane %v6321_v17, 4  ;;  %v6324_v63 = vrot.slane %v5789_v2, 5  ;;  %v4099_v39 = vmax.f32 %v4067_v33, 0.0  ;;  %5602 = vrot.lane.b32.xlu1 %v9724_v60, %s9942_s21  ;;  %v5082_v38 = vld [vmem:[#allocation3 + $0x78] sm:$0xe] }
 0x270   : > { %7103 = vrot.lane.b32.xlu0 %v9074_v4, %s9942_s21  ;;  %v7423_v43 = vsel %vm10089_vm2, %v7421_v61, %v7422_v27  ;;  %v4905_v22 = vshrl.u32 %v4658_v29, 16  ;;  %v4908_v19 = vshll.u32 %v4658_v29, 16  ;;  %v4068_v52 = vadd.f32 %v12495_v14, %v4029_v59 }
 0x271   : > { %v9107_v42 = vcombine.low %v7420_v10, %v7423_v43  ;;  %v6325_v15 = vsel %vm10089_vm2, %v6323_v36, %v6324_v63  ;;  %v4914_v3 = vshll.u32 %v12511_v62, 16  ;;  %v9171_v40 = vpack.c.bf16 %v4099_v39, %v4099_v39  ;;  %v5473_v63 = vpop.permute.xlu1 %5472  ;;  %v4612_v43 = vld [vmem:[#allocation3 + $0x9c] sm:$0xf] }
 0x272   : > { %v9044_v54 = vcombine.low %v6322_v0, %v6325_v15  ;;  %v4907_v1 = vrot.slane %v4905_v22, 4  ;;  %v4910_v55 = vrot.slane %v4908_v19, 5  ;;  %v4100_v2 = vmax.f32 %v4068_v52, 0.0  ;;  %v12605_v0 = vld [vmem:[#allocation3 + $0x80] sm:$0x1]  ;;  %v12608_v15 = vpop.permute.xlu0 %7011 }
 0x273   : > { %v7538_v27 = vsel %vm1308_vm6, %v9107_v42, 0  ;;  %v4916_v24 = vrot.slane %v4914_v3, 5  ;;  %v4918_v51 = vshrl.u32 %v12511_v62, 16  ;;  %v4410_v17 = vshrl.u32 %v9171_v40, 16 }
 0x274   : > { %v5618_v29 = vsel %vm1308_vm6, %v8939_v9, %v5393_v11  ;;  %v7561_v33 = vsel %vm1357_vm7, %v7538_v27, 0  ;;  %6915 = vrot.lane.b32.xlu0 %v9044_v54, %s9943_s22  ;;  %v4911_v4 = vor.u32 %v4910_v55, %v4907_v1  ;;  %v4413_v60 = vshll.u32 %v9171_v40, 16  ;;  %v6388_v11 = vld [vmem:[#allocation3 + $0x88] sm:$0xf] }
 0x275   : > { %v9172_v10 = vpack.c.bf16 %v4100_v2, %v4100_v2  ;;  %9564 = vmatprep.mubr.msk.bf16.mxu0 %vm1390_vm8, %v7561_v33  ;;  %v4920_v61 = vrot.slane %v4918_v51, 4  ;;  %v4924_v59 = vshll.u32 %v12517_v53, 16  ;;  %v4412_v36 = vrot.slane %v4410_v17, 7  ;;  %v12615_v51 = vld [vmem:[#allocation3 + $0x84] sm:$0xf] }
 0x276   : > { %v4912_v62 = vrot.slane %v4911_v4, 4  ;;  %v8933_v39 = vrot.slane %v5082_v38, 9  ;;  %v5208_v9 = vrot.slane %v12596_v57, 5  ;;  %v5211_v27 = vrot.slane %v12605_v0, 5  ;;  %v4616_v17 = vld [vmem:[#allocation3 + $0xa4] sm:$0x1] }
 0x277   : > { %v4418_v22 = vshrl.u32 %v9172_v10, 16  ;;  %v4421_v19 = vshll.u32 %v9172_v10, 16  ;;  %v4921_v52 = vor.u32 %v4920_v61, %v4916_v24  ;;  %v4926_v42 = vrot.slane %v4924_v59, 5 }
 0x278   : > { %v4415_v3 = vor.u32 %v4413_v60, %v4412_v36  ;;  %v4416_v40 = vrot.slane %v4412_v36, 4  ;;  %v4917_v53 = vsel %vm10143_vm5, %v4912_v62, %v4916_v24  ;;  %v5209_v54 = vsel %vm10089_vm2, %v8933_v39, %v5208_v9  ;;  %v3367_v36 = vld [vmem:[#allocation3 + $0xa8] sm:$0x1] }
 0x279   : > { %v4420_v1 = vrot.slane %v4418_v22, 7  ;;  %v4922_v55 = vrot.slane %v4921_v52, 4  ;;  %v5210_v2 = vrot.slane %v5208_v9, 4  ;;  %v6643_v33 = vshll.u32 %v6388_v11, 16  ;;  %v5585_v22 = vpop.permute.xlu1 %5584 }
 0x27a   : > { %v4613_v38 = vsel %vm11745_vm0, %v4415_v3, %v4612_v43  ;;  %v6647_v4 = vshrl.u32 %v6388_v11, 16  ;;  %v9060_v60 = vcombine.low %v12615_v51, %v6388_v11  ;;  %v5665_v39 = vsel %vm1357_vm7, %v5618_v29, %v5473_v63  ;;  %v6409_v11 = vld [vmem:[#allocation3 + $0x80] sm:$0x1] }
 0x27b   : > { %4614 = vst [vmem:[#allocation3 + $0x9c] sm:$0xf] %v4613_v38  ;;  %v4423_v24 = vor.u32 %v4421_v19, %v4420_v1  ;;  %v4425_v10 = vrot.slane %v4420_v1, 4  ;;  %v4927_v61 = vsel %vm10143_vm5, %v4922_v55, %v4926_v42  ;;  %v5212_v59 = vsel %vm10089_vm2, %v5210_v2, %v5211_v27  ;;  %v12635_v1 = vpop.permute.xlu0 %7089  ;;  %v7292_v55 = vld [vmem:[#allocation3 + $0x84] sm:$0xe] }
 0x27c   : > { %v8964_v62 = vcombine.low %v4917_v53, %v4927_v61  ;;  %v8981_v9 = vcombine.low %v5209_v54, %v5212_v59  ;;  %v12625_v43 = vrot.slane %v6643_v33, 5  ;;  %7027 = vrot.lane.b32.xlu0 %v9060_v60, %s9941_s20  ;;  %v12632_v42 = vrot.slane %v6647_v4, 4  ;;  %v3423_v53 = vld [vmem:[#allocation3 + $0xb0] sm:$0x1]  ;;  %v7293_v2 = vld [vmem:[#allocation3 + $0x88] sm:$0xf] }
 0x27d   : > { %v4424_v19 = vsel %vm11751_vm1, %v4416_v40, %v4423_v24  ;;  %v4617_v52 = vsel %vm11602_vm13, %v4425_v10, %v4616_v17  ;;  %v6634_v3 = vshrl.u32 %v12615_v51, 16  ;;  %v6637_v29 = vshll.u32 %v12615_v51, 16  ;;  %v7294_v4 = vld [vmem:[#allocation3 + $0x8c] sm:$0x1]  ;;  %v12658_v61 = vpop.permute.xlu1 %5474 }
 0x27e   : > { %4615 = vst.msk [vmem:[#allocation3 + $0xa0] sm:$0xf] %vm3313_vm9, %v4424_v19  ;;  %4618 = vst [vmem:[#allocation3 + $0xa4] sm:$0x1] %v4617_v52  ;;  %5410 = vrot.lane.b32.xlu1 %v8964_v62, %s9943_s22  ;;  %v3368_v63 = vsel %vm11602_vm13, 0, %v3367_v36  ;;  %v9308_v40 = vadd.f32 %v12372_v23, %v12364_v28  ;;  %v6616_v54 = vor.u32 %v12563_v7, %v12561_v21  ;;  %v6629_v33 = vshll.u32 %v6409_v11, 16 }
 0x27f   : > { %v12646_v27 = vrot.slane %v6634_v3, 4  ;;  %v12649_v38 = vsel %vm1390_vm8, %v5665_v39, %v5585_v22  ;;  %3369 = vst [vmem:[#allocation3 + $0xa8] sm:$0x1] %v3368_v63  ;;  %v6626_v17 = vor.u32 %v12559_v20, %v12543_v30  ;;  %v3424_v28 = vsel %vm11624_vm14, 0, %v3423_v53  ;;  %v5760_v21 = vld [vmem:[#allocation3 + $0xc] sm:$0xf]  ;;  %v12670_v19 = vpop.permute.xlu0 %6901 }
 0x280   : > { %v3975_v60 = vadd.f32 %v12233_v50, %v9308_v40  ;;  %v6617_v24 = vrot.slane %v6616_v54, 4  ;;  %v9311_v23 = vadd.f32 %v12389_v48, %v12381_v47  ;;  %v6631_v10 = vrot.slane %v6629_v33, 5  ;;  %3425 = vst [vmem:[#allocation3 + $0xb0] sm:$0x1] %v3424_v28  ;;  %v9732_v3 = vld [vmem:[#allocation3 + $0x84] sm:$0xff]  }
 0x281   : > { %v6627_v7 = vrot.slane %v6626_v17, 4  ;;  %v9092_v59 = vrot.slane %v7292_v55, 9  ;;  %v7426_v36 = vrot.slane %v7293_v2, 5  ;;  %v7429_v39 = vrot.slane %v7294_v4, 5  ;;  %v5791_v63 = vld [vmem:[#allocation3 + $0x88] sm:$0xf] }
 0x282   : > { %5492 = vrot.lane.b32.xlu1 %v8981_v9, %s9941_s20  ;;  %v4030_v20 = vmul.f32 %v12481_v16, %v3975_v60  ;;  %v6622_v50 = vsel %vm10143_vm5, %v6617_v24, %v12543_v30  ;;  %v3978_v62 = vadd.f32 %v12259_v18, %v9311_v23  ;;  %v5809_v11 = vshrl.u32 %v5760_v21, 16  ;;  %v6202_v18 = vld [vmem:[#allocation3 + $0x84] sm:$0xe]  ;;  %v9818_v55 = vld [vmem:[#allocation3 + $0x10] sm:$0xf] }
 0x283   : > { %v6632_v47 = vsel %vm10143_vm5, %v6627_v7, %v6631_v10  ;;  %v7427_v48 = vsel %vm10089_vm2, %v9092_v59, %v7426_v36  ;;  %v7428_v22 = vrot.slane %v7426_v36, 4  ;;  %v5812_v30 = vshll.u32 %v5760_v21, 16  ;;  %v12683_v36 = vpop.permute.xlu1 %5586 }
 0x284   : > { %v4069_v9 = vadd.f32 %v12495_v14, %v4030_v20  ;;  %v9075_v52 = vcombine.low %v6622_v50, %v6632_v47  ;;  %v4031_v53 = vmul.f32 %v12481_v16, %v3978_v62  ;;  %v5811_v54 = vrot.slane %v5809_v11, 4  ;;  %v4660_v47 = vld [vmem:[#allocation3 + $0x78] sm:$0xf] }
 0x285   : > { %v7430_v40 = vsel %vm10089_vm2, %v7428_v22, %v7429_v39  ;;  %v5818_v2 = vshll.u32 %v9818_v55, 16  ;;  %v13804_v17 = vshrl.u32 %v11768_v12, 16  ;;  %v5814_v28 = vrot.slane %v5812_v30, 5  ;;  %v5792_v39 = vld [vmem:[#allocation3 + $0x8c] sm:$0x1] }
 0x286   : > { %v4101_v4 = vmax.f32 %v4069_v9, 0.0  ;;  %7105 = vrot.lane.b32.xlu0 %v9075_v52, %s9942_s21  ;;  %5604 = vrot.lane.b32.xlu1 %v9732_v3, %s9942_s21  ;;  %v4070_v60 = vadd.f32 %v12495_v14, %v4031_v53  ;;  %v9108_v24 = vcombine.low %v7427_v48, %v7430_v40  ;;  %v13805_v21 = vshll.u32 %v11770_v26, 16  ;;  %v12689_v26 = vpop.permute.xlu0 %7013 }
 0x287   : > { %v5824_v33 = vrot.slane %v13804_v17, 4  ;;  %v5820_v23 = vrot.slane %v5818_v2, 5  ;;  %v9013_v10 = vrot.slane %v6202_v18, 9  ;;  %v6328_v59 = vrot.slane %v5791_v63, 5 }
 0x288   : > { %v5830_v7 = vrot.slane %v13805_v21, 5  ;;  %v9173_v20 = vpack.c.bf16 %v4101_v4, %v4101_v4  ;;  %v4102_v12 = vmax.f32 %v4070_v60, 0.0  ;;  %v7540_v50 = vsel %vm1308_vm6, %v9108_v24, 0  ;;  %v4619_v4 = vld [vmem:[#allocation3 + $0xa8] sm:$0xf] }
 0x289   : > { %v5815_v62 = vor.u32 %v5814_v28, %v5811_v54  ;;  %v7562_v22 = vsel %vm1357_vm7, %v7540_v50, 0  ;;  %v5825_v11 = vor.u32 %v5824_v33, %v5820_v23  ;;  %v6329_v48 = vsel %vm10089_vm2, %v9013_v10, %v6328_v59  ;;  %v12698_v10 = vpop.permute.xlu1 %5394 }
 0x28a   : > { %v6330_v9 = vrot.slane %v6328_v59, 4  ;;  %v4427_v52 = vshrl.u32 %v9173_v20, 16  ;;  %v4430_v3 = vshll.u32 %v9173_v20, 16  ;;  %v9174_v53 = vpack.c.bf16 %v4102_v12, %v4102_v12  ;;  %9565 = vmatmul.mubr.msk.bf16.gmra.mrb[80].mxu0 %vm1390_vm8, %v7562_v22 }
 0x28b   : > { %v5816_v30 = vrot.slane %v5815_v62, 4  ;;  %v5826_v63 = vrot.slane %v5825_v11, 4  ;;  %v6331_v18 = vrot.slane %v5792_v39, 5  ;;  %v4929_v40 = vshrl.u32 %v4660_v47, 16  ;;  %v4623_v62 = vld [vmem:[#allocation3 + $0xb0] sm:$0x1]  ;;  %v12702_v11 = vpop.permute.xlu0 %7091 }
 0x28c   : > { %v4932_v54 = vshll.u32 %v4660_v47, 16  ;;  %v4429_v55 = vrot.slane %v4427_v52, 7  ;;  %v4435_v2 = vshrl.u32 %v9174_v53, 16  ;;  %v4438_v17 = vshll.u32 %v9174_v53, 16  ;;  %v12708_v53 = vld [vmem:[#allocation3 + $0x88] sm:$0xf] }
 0x28d   : > { %v5821_v33 = vsel %vm10143_vm5, %v5816_v30, %v5820_v23  ;;  %v5831_v60 = vsel %vm10143_vm5, %v5826_v63, %v5830_v7  ;;  %v6332_v24 = vsel %vm10089_vm2, %v6330_v9, %v6331_v18  ;;  %v4931_v28 = vrot.slane %v4929_v40, 4  ;;  %v5083_v30 = vld [vmem:[#allocation3 + $0x84] sm:$0xe]  ;;  %v6390_v40 = vld [vmem:[#allocation3 + $0x94] sm:$0xf] }
 0x28e   : > { %v4934_v21 = vrot.slane %v4932_v54, 5  ;;  %v4432_v59 = vor.u32 %v4430_v3, %v4429_v55  ;;  %v4433_v20 = vrot.slane %v4429_v55, 4  ;;  %v4437_v12 = vrot.slane %v4435_v2, 7 }
 0x28f   : > { %v9019_v50 = vcombine.low %v5821_v33, %v5831_v60  ;;  %v9045_v39 = vcombine.low %v6329_v48, %v6332_v24  ;;  %v4938_v23 = vshll.u32 %v12596_v57, 16  ;;  %v4942_v22 = vshrl.u32 %v12596_v57, 16  ;;  %v6389_v33 = vld [vmem:[#allocation3 + $0x90] sm:$0xf]  ;;  %v12728_v60 = vpop.permute.xlu1 %5476 }
 0x290   : > { %v4935_v47 = vor.u32 %v4934_v21, %v4931_v28  ;;  %v4620_v7 = vsel %vm11745_vm0, %v4432_v59, %v4619_v4  ;;  %v4440_v9 = vor.u32 %v4438_v17, %v4437_v12  ;;  %v4442_v52 = vrot.slane %v4437_v12, 4  ;;  %v12722_v17 = vld [vmem:[#allocation3 + $0x8c] sm:$0x1]  ;;  %v5763_v59 = vld [vmem:[#allocation3 + $0x18] sm:$0xf] }
 0x291   : > { %v7123_v3 = vsel %vm1308_vm6, %v9019_v50, %v12530_v31  ;;  %4621 = vst [vmem:[#allocation3 + $0xa8] sm:$0xf] %v4620_v7  ;;  %6917 = vrot.lane.b32.xlu0 %v9045_v39, %s9943_s22  ;;  %v4940_v63 = vrot.slane %v4938_v23, 5  ;;  %v4944_v18 = vrot.slane %v4942_v22, 4  ;;  %v4948_v57 = vshll.u32 %v12605_v0, 16  ;;  %v12731_v39 = vpop.permute.xlu0 %6903 }
 0x292   : > { %v4936_v48 = vrot.slane %v4935_v47, 4  ;;  %v6639_v54 = vrot.slane %v6637_v29, 5  ;;  %v4441_v55 = vsel %vm11751_vm1, %v4433_v20, %v4440_v9  ;;  %v4624_v31 = vsel %vm11602_vm13, %v4442_v52, %v4623_v62 }
 0x293   : > { %v12720_v2 = vsel %vm1357_vm7, %v7123_v3, %v12570_v25  ;;  %4622 = vst.msk [vmem:[#allocation3 + $0xac] sm:$0xf] %vm3313_vm9, %v4441_v55  ;;  %4625 = vst [vmem:[#allocation3 + $0xb0] sm:$0x1] %v4624_v31  ;;  %v4945_v51 = vor.u32 %v4944_v18, %v4940_v63  ;;  %v8934_v29 = vrot.slane %v5083_v30, 9  ;;  %v5215_v4 = vrot.slane %v12708_v53, 5 }
 0x294   : > { %v4941_v0 = vsel %vm10143_vm5, %v4936_v48, %v4940_v63  ;;  %v4950_v24 = vrot.slane %v4948_v57, 5  ;;  %v6667_v28 = vshll.u32 %v6390_v40, 16  ;;  %v6671_v21 = vshrl.u32 %v6390_v40, 16  ;;  %v9819_v3 = vld [vmem:[#allocation3 + $0x10] sm:$0xf] }
 0x295   : > { %v9061_v25 = vcombine.low %v6389_v33, %v6390_v40  ;;  %v4946_v20 = vrot.slane %v4945_v51, 4  ;;  %v5217_v12 = vrot.slane %v5215_v4, 4  ;;  %v5218_v50 = vrot.slane %v12722_v17, 5  ;;  %v9820_v30 = vld [vmem:[#allocation3 + $0xc] sm:$0xf] }
 0x296   : > { %v6658_v62 = vshrl.u32 %v6389_v33, 16  ;;  %v5216_v47 = vsel %vm10089_vm2, %v8934_v29, %v5215_v4  ;;  %v12735_v23 = vrot.slane %v6667_v28, 5  ;;  %v12737_v22 = vrot.slane %v6671_v21, 4  ;;  %v3370_v18 = vld [vmem:[#allocation3 + $0xb4] sm:$0x1]  ;;  %v12748_v21 = vpop.permute.xlu1 %5588 }
 0x297   : > { %7029 = vrot.lane.b32.xlu0 %v9061_v25, %s9941_s20  ;;  %v6661_v7 = vshll.u32 %v6389_v33, 16  ;;  %v4951_v9 = vsel %vm10143_vm5, %v4946_v20, %v4950_v24  ;;  %v5219_v52 = vsel %vm10089_vm2, %v5217_v12, %v5218_v50  ;;  %v8940_v48 = vcombine.low %v9820_v30, %v9819_v3  ;;  %v9821_v33 = vld [vmem:[#allocation3 + $0x1c] sm:$0xf]  ;;  %v6410_v24 = vld [vmem:[#allocation3 + $0x8c] sm:$0x1] }
 0x298   : > { %v5833_v63 = vshrl.u32 %v5763_v59, 16  ;;  %v8965_v57 = vcombine.low %v4941_v0, %v4951_v9  ;;  %v8982_v40 = vcombine.low %v5216_v47, %v5219_v52  ;;  %v12744_v55 = vrot.slane %v6658_v62, 4  ;;  %v9822_v25 = vld [vmem:[#allocation3 + $0x20] sm:$0x1]  ;;  %v3426_v9 = vld [vmem:[#allocation3 + $0xbc] sm:$0x1]  ;;  %v12758_v52 = vpop.permute.xlu0 %7015 }
 0x299   : > { %v12746_v31 = vrot.slane %v6661_v7, 5  ;;  %v5836_v29 = vshll.u32 %v5763_v59, 16  ;;  %v5842_v4 = vshll.u32 %v9821_v33, 16  ;;  %v5846_v28 = vshrl.u32 %v9821_v33, 16  ;;  %v7296_v33 = vld [vmem:[#allocation3 + $0x94] sm:$0xf] }
 0x29a   : > { %v5835_v51 = vrot.slane %v5833_v63, 4  ;;  %5412 = vrot.lane.b32.xlu1 %v8965_v57, %s9943_s22  ;;  %v5852_v20 = vshll.u32 %v9822_v25, 16  ;;  %v9314_v0 = vadd.f32 %v12462_v58, %v12453_v5  ;;  %v3371_v12 = vsel %vm11602_vm13, 0, %v3370_v18  ;;  %v13806_v5 = vld [vmem:[#allocation9_spill] sm:$0xff] }
 0x29b   : > { %v6640_v50 = vor.u32 %v6639_v54, %v12646_v27  ;;  %v5838_v62 = vrot.slane %v5836_v29, 5  ;;  %v5844_v59 = vrot.slane %v5842_v4, 5  ;;  %v5848_v47 = vrot.slane %v5846_v28, 4  ;;  %3372 = vst [vmem:[#allocation3 + $0xb4] sm:$0x1] %v3371_v12  ;;  %v12775_v12 = vpop.permute.xlu1 %5396 }
 0x29c   : > { %v6650_v7 = vor.u32 %v12632_v42, %v12625_v43  ;;  %v12762_v3 = vsel %vm1308_vm6, %v8940_v48, %v12698_v10  ;;  %v3983_v58 = vadd.f32 %v9314_v0, %v13806_v5  ;;  %v6653_v63 = vshll.u32 %v6410_v24, 16  ;;  %v7295_v29 = vld [vmem:[#allocation3 + $0x90] sm:$0xe]  ;;  %v7297_v0 = vld [vmem:[#allocation3 + $0x98] sm:$0x1] }
 0x29d   : > { %v6641_v30 = vrot.slane %v6640_v50, 4  ;;  %v5839_v18 = vor.u32 %v5838_v62, %v5835_v51  ;;  %v5849_v27 = vor.u32 %v5848_v47, %v5844_v59  ;;  %v9317_v57 = vadd.f32 %v12474_v6, %v12471_v32  ;;  %v9740_v24 = vld [vmem:[#allocation3 + $0x90] sm:$0xff]  }
 0x29e   : > { %v6651_v54 = vrot.slane %v6650_v7, 4  ;;  %5494 = vrot.lane.b32.xlu1 %v8982_v40, %s9941_s20  ;;  %v5854_v42 = vrot.slane %v5852_v20, 5  ;;  %v4032_v4 = vmul.f32 %v12481_v16, %v3983_v58  ;;  %v6655_v28 = vrot.slane %v6653_v63, 5  ;;  %v13807_v32 = vld [vmem:[#allocation11_spill] sm:$0xff]  ;;  %v4662_v63 = vld [vmem:[#allocation3 + $0x84] sm:$0xf] }
 0x29f   : > { %v3427_v10 = vsel %vm11624_vm14, 0, %v3426_v9  ;;  %v5840_v48 = vrot.slane %v5839_v18, 4  ;;  %v5850_v25 = vrot.slane %v5849_v27, 4  ;;  %v6646_v51 = vsel %vm10143_vm5, %v6641_v30, %v12625_v43  ;;  %v5794_v47 = vld [vmem:[#allocation3 + $0x94] sm:$0xf]  ;;  %v12785_v18 = vpop.permute.xlu0 %7093 }
 0x2a0   : > { %3428 = vst [vmem:[#allocation3 + $0xbc] sm:$0x1] %v3427_v10  ;;  %v3986_v6 = vadd.f32 %v9317_v57, %v13807_v32  ;;  %v4071_v40 = vadd.f32 %v12495_v14, %v4032_v4  ;;  %v6656_v20 = vsel %vm10143_vm5, %v6651_v54, %v6655_v28  ;;  %v9093_v50 = vrot.slane %v7295_v29, 9  ;;  %v6203_v7 = vld [vmem:[#allocation3 + $0x90] sm:$0xe] }
 0x2a1   : > { %v7433_v62 = vrot.slane %v7296_v33, 5  ;;  %v5845_v9 = vsel %vm10143_vm5, %v5840_v48, %v5844_v59  ;;  %v5855_v43 = vsel %vm10143_vm5, %v5850_v25, %v5854_v42  ;;  %v9076_v5 = vcombine.low %v6646_v51, %v6656_v20  ;;  %v5795_v30 = vld [vmem:[#allocation3 + $0x98] sm:$0x1] }
 0x2a2   : > { %v4033_v58 = vmul.f32 %v12481_v16, %v3986_v6  ;;  %v9020_v27 = vcombine.low %v5845_v9, %v5855_v43  ;;  %v4103_v57 = vmax.f32 %v4071_v40, 0.0  ;;  %5606 = vrot.lane.b32.xlu1 %v9740_v24, %s9942_s21  ;;  %v7436_v29 = vrot.slane %v7297_v0, 5 }
 0x2a3   : > { %v7435_v54 = vrot.slane %v7433_v62, 4  ;;  %7107 = vrot.lane.b32.xlu0 %v9076_v5, %s9942_s21  ;;  %v7434_v33 = vsel %vm10089_vm2, %v9093_v50, %v7433_v62  ;;  %v9014_v42 = vrot.slane %v6203_v7, 9  ;;  %v6335_v4 = vrot.slane %v5794_v47, 5  ;;  %v12802_v9 = vpop.permute.xlu0 %6905 }
 0x2a4   : > { %v4072_v59 = vadd.f32 %v12495_v14, %v4033_v58  ;;  %v9175_v16 = vpack.c.bf16 %v4103_v57, %v4103_v57  ;;  %v6338_v10 = vrot.slane %v5795_v30, 5  ;;  %v4953_v48 = vshrl.u32 %v4662_v63, 16  ;;  %v12798_v14 = vpop.permute.xlu1 %5478  ;;  %v12808_v30 = vld [vmem:[#allocation3 + $0x94] sm:$0xf] }
 0x2a5   : > { %v7437_v28 = vsel %vm10089_vm2, %v7435_v54, %v7436_v29  ;;  %v7126_v25 = vsel %vm1308_vm6, %v9020_v27, %v12594_v46  ;;  %v6336_v32 = vsel %vm10089_vm2, %v9014_v42, %v6335_v4  ;;  %v6337_v40 = vrot.slane %v6335_v4, 4  ;;  %v4626_v27 = vld [vmem:[#allocation3 + $0xb4] sm:$0xf] }
 0x2a6   : > { %v4104_v51 = vmax.f32 %v4072_v59, 0.0  ;;  %v9109_v24 = vcombine.low %v7434_v33, %v7437_v28  ;;  %v4444_v6 = vshrl.u32 %v9175_v16, 16  ;;  %v4447_v0 = vshll.u32 %v9175_v16, 16  ;;  %v5084_v59 = vld [vmem:[#allocation3 + $0x90] sm:$0xe] }
 0x2a7   : > { %v4955_v20 = vrot.slane %v4953_v48, 4  ;;  %v4956_v47 = vshll.u32 %v4662_v63, 16  ;;  %v4962_v7 = vshll.u32 %v12708_v53, 16  ;;  %v6339_v5 = vsel %vm10089_vm2, %v6337_v40, %v6338_v10  ;;  %v12815_v28 = vld [vmem:[#allocation3 + $0x98] sm:$0x1] }
 0x2a8   : > { %v9176_v50 = vpack.c.bf16 %v4104_v51, %v4104_v51  ;;  %v7542_v62 = vsel %vm1308_vm6, %v9109_v24, 0  ;;  %v4446_v46 = vrot.slane %v4444_v6, 7  ;;  %v4966_v58 = vshrl.u32 %v12708_v53, 16  ;;  %v6392_v24 = vld [vmem:[#allocation3 + $0xa0] sm:$0xf]  ;;  %v12819_v6 = vpop.permute.xlu1 %5590 }
 0x2a9   : > { %v7563_v43 = vsel %vm1357_vm7, %v7542_v62, 0  ;;  %v12813_v63 = vsel %vm1357_vm7, %v7126_v25, %v12608_v15  ;;  %v9046_v54 = vcombine.low %v6336_v32, %v6339_v5  ;;  %v4958_v29 = vrot.slane %v4956_v47, 5  ;;  %v4630_v25 = vld [vmem:[#allocation3 + $0xbc] sm:$0x1] }
 0x2aa   : > { %v4452_v57 = vshrl.u32 %v9176_v50, 16  ;;  %9568 = vmatprep.mubr.msk.bf16.mxu0 %vm1390_vm8, %v7563_v43  ;;  %v4449_v33 = vor.u32 %v4447_v0, %v4446_v46  ;;  %v4455_v42 = vshll.u32 %v9176_v50, 16  ;;  %v4964_v4 = vrot.slane %v4962_v7, 5 }
 0x2ab   : > { %v4968_v16 = vrot.slane %v4966_v58, 4  ;;  %v4450_v53 = vrot.slane %v4446_v46, 4  ;;  %6919 = vrot.lane.b32.xlu0 %v9046_v54, %s9943_s22  ;;  %v4959_v48 = vor.u32 %v4958_v29, %v4955_v20  ;;  %v4972_v51 = vshll.u32 %v12722_v17, 16  ;;  %v6391_v20 = vld [vmem:[#allocation3 + $0x9c] sm:$0xf]  ;;  %v12825_v46 = vpop.permute.xlu0 %7017  ;;  %v12827_v17 = vpop.f32.mrb[64].mxu0 }
 0x2ac   : > { %v4454_v10 = vrot.slane %v4452_v57, 7  ;;  %v4627_v15 = vsel %vm11745_vm0, %v4449_v33, %v4626_v27  ;;  %v8935_v0 = vrot.slane %v5084_v59, 9  ;;  %v5222_v40 = vrot.slane %v12808_v30, 5  ;;  %13808 = vst [vmem:[#allocation9_spill] sm:$0xff] %v12827_v17  ;;  %v12829_v57 = vpop.f32.mrb[65].mxu0 }
 0x2ad   : > { %v4969_v32 = vor.u32 %v4968_v16, %v4964_v4  ;;  %4628 = vst [vmem:[#allocation3 + $0xb4] sm:$0xf] %v4627_v15  ;;  %v4960_v47 = vrot.slane %v4959_v48, 4  ;;  %v5225_v7 = vrot.slane %v12815_v28, 5  ;;  %v4974_v5 = vrot.slane %v4972_v51, 5  ;;  %13809 = vst [vmem:[#allocation11_spill] sm:$0xff] %v12829_v57 }
 0x2ae   : > { %v4457_v50 = vor.u32 %v4455_v42, %v4454_v10  ;;  %v4459_v62 = vrot.slane %v4454_v10, 4  ;;  %v5224_v58 = vrot.slane %v5222_v40, 4  ;;  %v6691_v27 = vshll.u32 %v6392_v24, 16  ;;  %v5766_v42 = vld [vmem:[#allocation3 + $0x24] sm:$0xf] }
 0x2af   : > { %v4970_v43 = vrot.slane %v4969_v32, 4  ;;  %v5223_v59 = vsel %vm10089_vm2, %v8935_v0, %v5222_v40  ;;  %v6695_v33 = vshrl.u32 %v6392_v24, 16  ;;  %v4965_v16 = vsel %vm10143_vm5, %v4960_v47, %v4964_v4  ;;  %v12846_v0 = vpop.permute.xlu1 %5398  ;;  %v3373_v47 = vld [vmem:[#allocation3 + $0xc0] sm:$0x1] }
 0x2b0   : > { %v4458_v54 = vsel %vm11751_vm1, %v4450_v53, %v4457_v50  ;;  %v4631_v29 = vsel %vm11602_vm13, %v4459_v62, %v4630_v25  ;;  %v5226_v53 = vsel %vm10089_vm2, %v5224_v58, %v5225_v7  ;;  %v9062_v48 = vcombine.low %v6391_v20, %v6392_v24  ;;  %v12854_v7 = vpop.f32.mrb[66].mxu0  ;;  %v9823_v24 = vld [vmem:[#allocation3 + $0x1c] sm:$0xf] }
 0x2b1   : > { %4629 = vst.msk [vmem:[#allocation3 + $0xb8] sm:$0xf] %vm3313_vm9, %v4458_v54  ;;  %4632 = vst [vmem:[#allocation3 + $0xbc] sm:$0x1] %v4631_v29  ;;  %v4975_v10 = vsel %vm10143_vm5, %v4970_v43, %v4974_v5  ;;  %v8983_v15 = vcombine.low %v5223_v59, %v5226_v53  ;;  %v12844_v25 = vrot.slane %v6691_v27, 5  ;;  %v6682_v32 = vshrl.u32 %v6391_v20, 16 }
 0x2b2   : > { %v8966_v51 = vcombine.low %v4965_v16, %v4975_v10  ;;  %v12848_v40 = vrot.slane %v6695_v33, 4  ;;  %7031 = vrot.lane.b32.xlu0 %v9062_v48, %s9941_s20  ;;  %v6685_v50 = vshll.u32 %v6391_v20, 16  ;;  %v7202_v4 = vsel %vm1390_vm8, %v12720_v2, %v12635_v1  ;;  %13810 = vst [vmem:[#allocation12_spill] sm:$0xff] %v12854_v7  ;;  %v9824_v43 = vld [vmem:[#allocation3 + $0x18] sm:$0xf]  ;;  %v12857_v20 = vpop.permute.xlu0 %7095  ;;  %v12859_v33 = vpop.f32.mrb[67].mxu0 }
 0x2b3   : > { %v5857_v62 = vshrl.u32 %v5766_v42, 16  ;;  %7889 = vmatprep.mubr.bf16.mxu1 %v7202_v4  ;;  %v8941_v5 = vcombine.low %v9824_v43, %v9823_v24  ;;  %v5860_v58 = vshll.u32 %v5766_v42, 16  ;;  %v9825_v27 = vld [vmem:[#allocation3 + $0x28] sm:$0xf]  ;;  %13811 = vst [vmem:[#allocation13_spill] sm:$0xff] %v12859_v33  ;;  %v12861_v1 = vrot.slane %v6682_v32, 4 }
 0x2b4   : > { %5414 = vrot.lane.b32.xlu1 %v8966_v51, %s9943_s22  ;;  %v5866_v54 = vshll.u32 %v9825_v27, 16  ;;  %v5870_v29 = vshrl.u32 %v9825_v27, 16  ;;  %v3429_v59 = vld [vmem:[#allocation3 + $0xc8] sm:$0x1]  ;;  %v12863_v2 = vrot.slane %v6685_v50, 5  ;;  %7890 = vmatmul.mubr.bf16.vlgmr.msra.gmra.mrb[32].mxu1 %v12649_v38  ;;  %v3374_v24 = vsel %vm11602_vm13, 0, %v3373_v47 }
 0x2b5   : > { %v5859_v16 = vrot.slane %v5857_v62, 4  ;;  %v9826_v10 = vld [vmem:[#allocation3 + $0x2c] sm:$0x1]  ;;  %v6411_v48 = vld [vmem:[#allocation3 + $0x98] sm:$0x1]  ;;  %v5862_v51 = vrot.slane %v5860_v58, 5  ;;  %v12870_v43 = vsel %vm1308_vm6, %v8941_v5, %v12775_v12  ;;  %v9320_v32 = vadd.f32 %v12540_v41, %v12532_v8 }
 0x2b6   : > { %v5876_v53 = vshll.u32 %v9826_v10, 16  ;;  %v5868_v42 = vrot.slane %v5866_v54, 5  ;;  %v5872_v4 = vrot.slane %v5870_v29, 4  ;;  %3375 = vst [vmem:[#allocation3 + $0xc0] sm:$0x1] %v3374_v24  ;;  %v6664_v38 = vor.u32 %v12746_v31, %v12744_v55  ;;  %v12881_v54 = vpop.permute.xlu1 %5480  ;;  %v13812_v29 = vld [vmem:[#allocation8_spill] sm:$0xff] }
 0x2b7   : > { %v6674_v50 = vor.u32 %v12737_v22, %v12735_v23  ;;  %v7298_v62 = vld [vmem:[#allocation3 + $0x9c] sm:$0xe]  ;;  %v5863_v58 = vor.u32 %v5862_v51, %v5859_v16  ;;  %v6677_v47 = vshll.u32 %v6411_v48, 16  ;;  %v3430_v12 = vsel %vm11624_vm14, 0, %v3429_v59  ;;  %v7299_v5 = vld [vmem:[#allocation3 + $0xa0] sm:$0xf]  ;;  %v12886_v48 = vpop.permute.xlu0 %6907 }
 0x2b8   : > { %5496 = vrot.lane.b32.xlu1 %v8983_v15, %s9941_s20  ;;  %v5873_v27 = vor.u32 %v5872_v4, %v5868_v42  ;;  %v3991_v8 = vadd.f32 %v13812_v29, %v9320_v32  ;;  %v6665_v41 = vrot.slane %v6664_v38, 4  ;;  %3431 = vst [vmem:[#allocation3 + $0xc8] sm:$0x1] %v3430_v12  ;;  %v9323_v22 = vadd.f32 %v12557_v13, %v12546_v37  ;;  %v9746_v51 = vld [vmem:[#allocation3 + $0x9c] sm:$0xff]   ;;  %v13813_v24 = vld [vmem:[#allocation10_spill] sm:$0xff] }
 0x2b9   : > { %v6675_v10 = vrot.slane %v6674_v50, 4  ;;  %v5864_v55 = vrot.slane %v5863_v58, 4  ;;  %v5878_v15 = vrot.slane %v5876_v53, 5  ;;  %v6679_v16 = vrot.slane %v6677_v47, 5  ;;  %v9827_v59 = vld [vmem:[%s13767_s3] ss:$0 sm:$0xff] }
 0x2ba   : > { %v5874_v31 = vrot.slane %v5873_v27, 4  ;;  %v4034_v4 = vmul.f32 %v9827_v59, %v3991_v8  ;;  %v3994_v32 = vadd.f32 %v13813_v24, %v9323_v22  ;;  %v7300_v38 = vld [vmem:[#allocation3 + $0xa4] sm:$0x1]  ;;  %v9094_v50 = vrot.slane %v7298_v62, 9  ;;  %v5797_v29 = vld [vmem:[#allocation3 + $0xa0] sm:$0xf] }
 0x2bb   : > { %v7440_v12 = vrot.slane %v7299_v5, 5  ;;  %v5869_v37 = vsel %vm10143_vm5, %v5864_v55, %v5868_v42  ;;  %v6670_v53 = vsel %vm10143_vm5, %v6665_v41, %v12735_v23  ;;  %v6680_v58 = vsel %vm10143_vm5, %v6675_v10, %v6679_v16  ;;  %v6204_v27 = vld [vmem:[#allocation3 + $0x9c] sm:$0xe]  ;;  %v9828_v62 = vld [vmem:[%s13768_s4] ss:$0 sm:$0xff]  ;;  %v12907_v10 = vpop.permute.xlu1 %5592 }
 0x2bc   : > { %v5879_v13 = vsel %vm10143_vm5, %v5874_v31, %v5878_v15  ;;  %5608 = vrot.lane.b32.xlu1 %v9746_v51, %s9942_s21  ;;  %v4073_v5 = vadd.f32 %v9828_v62, %v4034_v4  ;;  %v9077_v42 = vcombine.low %v6670_v53, %v6680_v58  ;;  %v4035_v8 = vmul.f32 %v9827_v59, %v3994_v32  ;;  %v5798_v22 = vld [vmem:[#allocation3 + $0xa4] sm:$0x1]  ;;  %v4664_v15 = vld [vmem:[#allocation3 + $0x90] sm:$0xf] }
 0x2bd   : > { %v9021_v47 = vcombine.low %v5869_v37, %v5879_v13  ;;  %v7441_v55 = vsel %vm10089_vm2, %v9094_v50, %v7440_v12  ;;  %v7442_v31 = vrot.slane %v7440_v12, 4  ;;  %v7443_v23 = vrot.slane %v7300_v38, 5  ;;  %v12918_v12 = vpop.permute.xlu0 %7019 }
 0x2be   : > { %v6342_v41 = vrot.slane %v5797_v29, 5  ;;  %v4105_v51 = vmax.f32 %v4073_v5, 0.0  ;;  %7109 = vrot.lane.b32.xlu0 %v9077_v42, %s9942_s21  ;;  %v4074_v24 = vadd.f32 %v9828_v62, %v4035_v8  ;;  %v9015_v4 = vrot.slane %v6204_v27, 9  ;;  %v5085_v8 = vld [vmem:[#allocation3 + $0x9c] sm:$0xe] }
 0x2bf   : > { %v7129_v16 = vsel %vm1308_vm6, %v9021_v47, %v12670_v19  ;;  %v7444_v59 = vsel %vm10089_vm2, %v7442_v31, %v7443_v23  ;;  %v6345_v50 = vrot.slane %v5798_v22, 5  ;;  %v4977_v19 = vshrl.u32 %v4664_v15, 16 }
 0x2c0   : > { %v12916_v32 = vsel %vm1357_vm7, %v7129_v16, %v12689_v26  ;;  %v6344_v38 = vrot.slane %v6342_v41, 4  ;;  %v9177_v29 = vpack.c.bf16 %v4105_v51, %v4105_v51  ;;  %v4106_v37 = vmax.f32 %v4074_v24, 0.0  ;;  %v12928_v16 = vld [vmem:[#allocation3 + $0xa0] sm:$0xf] }
 0x2c1   : > { %v9110_v13 = vcombine.low %v7441_v55, %v7444_v59  ;;  %v4980_v58 = vshll.u32 %v4664_v15, 16  ;;  %v4986_v27 = vshll.u32 %v12808_v30, 16  ;;  %v4990_v47 = vshrl.u32 %v12808_v30, 16  ;;  %v12930_v15 = vpop.permute.xlu1 %5400 }
 0x2c2   : > { %v6346_v53 = vsel %vm10089_vm2, %v6344_v38, %v6345_v50  ;;  %v4461_v62 = vshrl.u32 %v9177_v29, 16  ;;  %v9178_v5 = vpack.c.bf16 %v4106_v37, %v4106_v37  ;;  %v6343_v42 = vsel %vm10089_vm2, %v9015_v4, %v6342_v41  ;;  %v12933_v38 = vld [vmem:[#allocation3 + $0xa4] sm:$0x1]  ;;  %v4633_v50 = vld [vmem:[#allocation3 + $0xc0] sm:$0xf] }
 0x2c3   : > { %v7544_v26 = vsel %vm1308_vm6, %v9110_v13, 0  ;;  %v9047_v55 = vcombine.low %v6343_v42, %v6346_v53  ;;  %v4979_v31 = vrot.slane %v4977_v19, 4  ;;  %v4982_v23 = vrot.slane %v4980_v58, 5  ;;  %v12937_v19 = vpop.permute.xlu0 %7097 }
 0x2c4   : > { %v7564_v22 = vsel %vm1357_vm7, %v7544_v26, 0  ;;  %v4463_v51 = vrot.slane %v4461_v62, 7  ;;  %v4464_v24 = vshll.u32 %v9177_v29, 16  ;;  %v4469_v30 = vshrl.u32 %v9178_v5, 16  ;;  %v6394_v26 = vld [vmem:[#allocation3 + $0xac] sm:$0xf] }
 0x2c5   : > { %9569 = vmatmul.mubr.msk.bf16.gmra.mrb[84].mxu0 %vm1390_vm8, %v7564_v22  ;;  %v4988_v59 = vrot.slane %v4986_v27, 5  ;;  %v4472_v41 = vshll.u32 %v9178_v5, 16  ;;  %6921 = vrot.lane.b32.xlu0 %v9047_v55, %s9943_s22  ;;  %v4983_v4 = vor.u32 %v4982_v23, %v4979_v31  ;;  %v4992_v37 = vrot.slane %v4990_v47, 4  ;;  %v4637_v27 = vld [vmem:[#allocation3 + $0xc8] sm:$0x1] }
 0x2c6   : > { %v4996_v13 = vshll.u32 %v12815_v28, 16  ;;  %v4466_v53 = vor.u32 %v4464_v24, %v4463_v51  ;;  %v4471_v58 = vrot.slane %v4469_v30, 7  ;;  %v8936_v62 = vrot.slane %v5085_v8, 9  ;;  %v6393_v31 = vld [vmem:[#allocation3 + $0xa8] sm:$0xf] }
 0x2c7   : > { %v5229_v29 = vrot.slane %v12928_v16, 5  ;;  %v4467_v42 = vrot.slane %v4463_v51, 4  ;;  %v4984_v22 = vrot.slane %v4983_v4, 4  ;;  %v4993_v7 = vor.u32 %v4992_v37, %v4988_v59  ;;  %v12945_v51 = vpop.permute.xlu1 %5482 }
 0x2c8   : > { %v4998_v17 = vrot.slane %v4996_v13, 5  ;;  %v4634_v5 = vsel %vm11745_vm0, %v4466_v53, %v4633_v50  ;;  %v4474_v55 = vor.u32 %v4472_v41, %v4471_v58  ;;  %v4476_v47 = vrot.slane %v4471_v58, 4  ;;  %v12958_v58 = vpop.permute.xlu0 %6909 }
 0x2c9   : > { %v5232_v28 = vrot.slane %v12933_v38, 5  ;;  %4635 = vst [vmem:[#allocation3 + $0xc0] sm:$0xf] %v4634_v5  ;;  %v4994_v23 = vrot.slane %v4993_v7, 4  ;;  %v5230_v8 = vsel %vm10089_vm2, %v8936_v62, %v5229_v29  ;;  %v5231_v24 = vrot.slane %v5229_v29, 4  ;;  %13814 = vst [vmem:[#allocation8_spill] sm:$0xff] %v12958_v58 }
 0x2ca   : > { %v6715_v30 = vshll.u32 %v6394_v26, 16  ;;  %v4475_v4 = vsel %vm11751_vm1, %v4467_v42, %v4474_v55  ;;  %v4638_v45 = vsel %vm11602_vm13, %v4476_v47, %v4637_v27  ;;  %v6719_v50 = vshrl.u32 %v6394_v26, 16  ;;  %v12976_v55 = vld [vmem:[#allocation3 + $0x28] sm:$0xf]  ;;  %v12978_v47 = vld [vmem:[#allocation3 + $0x24] sm:$0xf] }
 0x2cb   : > { %v9063_v41 = vcombine.low %v6393_v31, %v6394_v26  ;;  %4636 = vst.msk [vmem:[#allocation3 + $0xc4] sm:$0xf] %vm3313_vm9, %v4475_v4  ;;  %4639 = vst [vmem:[#allocation3 + $0xc8] sm:$0x1] %v4638_v45  ;;  %v4989_v7 = vsel %vm10143_vm5, %v4984_v22, %v4988_v59  ;;  %v4999_v37 = vsel %vm10143_vm5, %v4994_v23, %v4998_v17  ;;  %v6706_v53 = vshrl.u32 %v6393_v31, 16  ;;  %v12984_v45 = vpop.permute.xlu1 %5594 }
 0x2cc   : > { %v5233_v13 = vsel %vm10089_vm2, %v5231_v24, %v5232_v28  ;;  %v8967_v62 = vcombine.low %v4989_v7, %v4999_v37  ;;  %v12960_v42 = vrot.slane %v6715_v30, 5  ;;  %v6709_v26 = vshll.u32 %v6393_v31, 16  ;;  %v9832_v30 = vld [vmem:[#allocation3 + $0x38] sm:$0x1] }
 0x2cd   : > { %v8984_v29 = vcombine.low %v5230_v8, %v5233_v13  ;;  %7033 = vrot.lane.b32.xlu0 %v9063_v41, %s9941_s20  ;;  %v12963_v27 = vrot.slane %v6719_v50, 4  ;;  %v12965_v59 = vrot.slane %v6706_v53, 4  ;;  %v7205_v17 = vsel %vm1390_vm8, %v12813_v63, %v12702_v11  ;;  %v6412_v11 = vld [vmem:[#allocation3 + $0xa4] sm:$0x1]  ;;  %v7301_v63 = vld [vmem:[#allocation3 + $0xa8] sm:$0xe] }
 0x2ce   : > { %v5667_v22 = vsel %vm1357_vm7, %v12762_v3, %v12658_v61  ;;  %5416 = vrot.lane.b32.xlu1 %v8967_v62, %s9943_s22  ;;  %7897 = vmatprep.mubr.bf16.mxu1 %v7205_v17  ;;  %v5881_v31 = vshrl.u32 %v5769_v44, 16  ;;  %v5884_v23 = vshll.u32 %v5769_v44, 16  ;;  %v12982_v8 = vrot.slane %v6709_v26, 5  ;;  %v9831_v61 = vld [vmem:[#allocation3 + $0x34] sm:$0xf] }
 0x2cf   : > { %v5700_v5 = vsel %vm1390_vm8, %v5667_v22, %v12683_v36  ;;  %v5890_v3 = vshll.u32 %v9831_v61, 16  ;;  %v5894_v24 = vshrl.u32 %v9831_v61, 16  ;;  %v5900_v4 = vshll.u32 %v9832_v30, 16  ;;  %v7302_v36 = vld [vmem:[#allocation3 + $0xac] sm:$0xf] }
 0x2d0   : > { %7898 = vmatmul.mubr.bf16.gmra.mrb[36].mxu1 %v5700_v5  ;;  %v5883_v50 = vrot.slane %v5881_v31, 4  ;;  %v5886_v41 = vrot.slane %v5884_v23, 5  ;;  %v6688_v7 = vor.u32 %v12863_v2, %v12861_v1  ;;  %v6698_v37 = vor.u32 %v12848_v40, %v12844_v25  ;;  %v7303_v13 = vld [vmem:[#allocation3 + $0xb0] sm:$0x1]  ;;  %v5800_v53 = vld [vmem:[#allocation3 + $0xac] sm:$0xf]  ;;  %v12990_v5 = vpop.permute.xlu0 %7021 }
 0x2d1   : > { %v5892_v44 = vrot.slane %v5890_v3, 5  ;;  %v5896_v62 = vrot.slane %v5894_v24, 4  ;;  %v5902_v26 = vrot.slane %v5900_v4, 5  ;;  %v6701_v17 = vshll.u32 %v6412_v11, 16  ;;  %v6205_v22 = vld [vmem:[#allocation3 + $0xa8] sm:$0xe] }
 0x2d2   : > { %13815 = vst [vmem:[#allocation10_spill] sm:$0xff] %v12990_v5  ;;  %5498 = vrot.lane.b32.xlu1 %v8984_v29, %s9941_s20  ;;  %v5887_v61 = vor.u32 %v5886_v41, %v5883_v50  ;;  %v6689_v31 = vrot.slane %v6688_v7, 4  ;;  %v6699_v23 = vrot.slane %v6698_v37, 4  ;;  %v9095_v30 = vrot.slane %v7301_v63, 9  ;;  %v4666_v40 = vld [vmem:[#allocation3 + $0x9c] sm:$0xf] }
 0x2d3   : > { %v5897_v28 = vor.u32 %v5896_v62, %v5892_v44  ;;  %v6703_v1 = vrot.slane %v6701_v17, 5  ;;  %v7447_v2 = vrot.slane %v7302_v36, 5  ;;  %v7450_v33 = vrot.slane %v7303_v13, 5  ;;  %v9748_v11 = vld [vmem:[#allocation3 + $0xa8] sm:$0xff]   ;;  %v5801_v24 = vld [vmem:[#allocation3 + $0xb0] sm:$0x1]  ;;  %v13000_v36 = vpop.permute.xlu1 %5402 }
 0x2d4   : > { %v5888_v57 = vrot.slane %v5887_v61, 4  ;;  %v6694_v3 = vsel %vm10143_vm5, %v6689_v31, %v12844_v25  ;;  %v9016_v4 = vrot.slane %v6205_v22, 9  ;;  %v6349_v5 = vrot.slane %v5800_v53, 5  ;;  %v13011_v17 = vpop.permute.xlu0 %7099  ;;  %v13015_v31 = vld [vmem:[#allocation3 + $0xac] sm:$0xf] }
 0x2d5   : > { %v5898_v58 = vrot.slane %v5897_v28, 4  ;;  %v6704_v29 = vsel %vm10143_vm5, %v6699_v23, %v6703_v1  ;;  %v7448_v63 = vsel %vm10089_vm2, %v9095_v30, %v7447_v2  ;;  %v7449_v50 = vrot.slane %v7447_v2, 4  ;;  %v5086_v23 = vld [vmem:[#allocation3 + $0xa8] sm:$0xe] }
 0x2d6   : > { %v5893_v41 = vsel %vm10143_vm5, %v5888_v57, %v5892_v44  ;;  %v9078_v7 = vcombine.low %v6694_v3, %v6704_v29  ;;  %5610 = vrot.lane.b32.xlu1 %v9748_v11, %s9942_s21  ;;  %v6350_v25 = vsel %vm10089_vm2, %v9016_v4, %v6349_v5  ;;  %v6351_v37 = vrot.slane %v6349_v5, 4 }
 0x2d7   : > { %v5903_v28 = vsel %vm10143_vm5, %v5898_v58, %v5902_v26  ;;  %v7451_v13 = vsel %vm10089_vm2, %v7449_v50, %v7450_v33  ;;  %v6352_v53 = vrot.slane %v5801_v24, 5  ;;  %v5001_v62 = vshrl.u32 %v4666_v40, 16  ;;  %v13021_v30 = vpop.f32.mrb[68].mxu0  ;;  %v6396_v24 = vld [vmem:[#allocation3 + $0xb8] sm:$0xf] }
 0x2d8   : > { %v9022_v22 = vcombine.low %v5893_v41, %v5903_v28  ;;  %7111 = vrot.lane.b32.xlu0 %v9078_v7, %s9942_s21  ;;  %v9111_v57 = vcombine.low %v7448_v63, %v7451_v13  ;;  %v5004_v44 = vshll.u32 %v4666_v40, 16  ;;  %v5010_v61 = vshll.u32 %v12928_v16, 16  ;;  %13816 = vst [vmem:[#allocation14_spill] sm:$0xff] %v13021_v30  ;;  %v13031_v4 = vpop.f32.mrb[69].mxu0  ;;  %v13036_v50 = vld [vmem:[#allocation3 + $0xb0] sm:$0x1] }
 0x2d9   : > { %v6353_v5 = vsel %vm10089_vm2, %v6351_v37, %v6352_v53  ;;  %v5003_v58 = vrot.slane %v5001_v62, 4  ;;  %v5014_v26 = vshrl.u32 %v12928_v16, 16  ;;  %v5020_v33 = vshll.u32 %v12933_v38, 16 }
 0x2da   : > { %v13817_v1 = vcombine.low %v12978_v47, %v12976_v55  ;;  %v7546_v40 = vsel %vm1308_vm6, %v9111_v57, 0  ;;  %v9048_v3 = vcombine.low %v6350_v25, %v6353_v5  ;;  %v5006_v11 = vrot.slane %v5004_v44, 5  ;;  %v13038_v55 = vpop.permute.xlu1 %5484  ;;  %v6395_v25 = vld [vmem:[#allocation3 + $0xb4] sm:$0xf] }
 0x2db   : > { %v7132_v16 = vsel %vm1308_vm6, %v9022_v22, %v12731_v39  ;;  %v7565_v38 = vsel %vm1357_vm7, %v7546_v40, 0  ;;  %v5012_v29 = vrot.slane %v5010_v61, 5  ;;  %v5016_v63 = vrot.slane %v5014_v26, 4  ;;  %v13051_v22 = vpop.permute.xlu0 %6911 }
 0x2dc   : > { %v13028_v2 = vsel %vm1308_vm6, %v13817_v1, %v12846_v0  ;;  %v13040_v0 = vpop.f32.mrb[70].mxu0  ;;  %9572 = vmatprep.mubr.msk.bf16.mxu0 %vm1390_vm8, %v7565_v38  ;;  %v13045_v47 = vsel %vm1357_vm7, %v7132_v16, %v12758_v52  ;;  %6923 = vrot.lane.b32.xlu0 %v9048_v3, %s9943_s22  ;;  %v5007_v41 = vor.u32 %v5006_v11, %v5003_v58  ;;  %v5022_v39 = vrot.slane %v5020_v33, 5  ;;  %v5772_v11 = vld [vmem:[#allocation3 + $0x3c] sm:$0xf] }
 0x2dd   : > { %13818 = vst [vmem:[#allocation15_spill] sm:$0xff] %v13040_v0  ;;  %v5236_v7 = vrot.slane %v13015_v31, 5  ;;  %v13049_v37 = vpop.f32.mrb[71].mxu0  ;;  %v5017_v28 = vor.u32 %v5016_v63, %v5012_v29  ;;  %v8937_v13 = vrot.slane %v5086_v23, 9  ;;  %v6739_v53 = vshll.u32 %v6396_v24, 16 }
 0x2de   : > { %13819 = vst [vmem:[#allocation16_spill] sm:$0xff] %v13049_v37  ;;  %v6743_v62 = vshrl.u32 %v6396_v24, 16  ;;  %v5008_v57 = vrot.slane %v5007_v41, 4  ;;  %v5239_v52 = vrot.slane %v13036_v50, 5  ;;  %v9064_v61 = vcombine.low %v6395_v25, %v6396_v24  ;;  %v13073_v41 = vpop.permute.xlu1 %5596  ;;  %v5775_v37 = vld [vmem:[#allocation3 + $0x48] sm:$0xf] }
 0x2df   : > { %v5238_v44 = vrot.slane %v5236_v7, 4  ;;  %v5018_v5 = vrot.slane %v5017_v28, 4  ;;  %v5237_v58 = vsel %vm10089_vm2, %v8937_v13, %v5236_v7  ;;  %v13056_v26 = vrot.slane %v6739_v53, 5 }
 0x2e0   : > { %v6730_v33 = vshrl.u32 %v6395_v25, 16  ;;  %v13060_v23 = vrot.slane %v6743_v62, 4  ;;  %7035 = vrot.lane.b32.xlu0 %v9064_v61, %s9941_s20  ;;  %v6733_v40 = vshll.u32 %v6395_v25, 16  ;;  %v7208_v3 = vsel %vm1390_vm8, %v12916_v32, %v12785_v18  ;;  %v6413_v62 = vld [vmem:[#allocation3 + $0xb0] sm:$0x1] }
 0x2e1   : > { %v5240_v1 = vsel %vm10089_vm2, %v5238_v44, %v5239_v52  ;;  %v5013_v24 = vsel %vm10143_vm5, %v5008_v57, %v5012_v29  ;;  %v5023_v16 = vsel %vm10143_vm5, %v5018_v5, %v5022_v39  ;;  %7905 = vmatprep.mubr.bf16.mxu1 %v7208_v3  ;;  %v5669_v63 = vsel %vm1357_vm7, %v12870_v43, %v12728_v60  ;;  %v9833_v39 = vld [vmem:[#allocation3 + $0x40] sm:$0xf]  ;;  %v13081_v57 = vpop.permute.xlu0 %7023  ;;  %v9834_v60 = vld [vmem:[#allocation3 + $0x34] sm:$0xf]  ;;  %v9835_v43 = vld [vmem:[#allocation3 + $0x30] sm:$0xf] }
 0x2e2   : > { %v8985_v38 = vcombine.low %v5237_v58, %v5240_v1  ;;  %v8968_v7 = vcombine.low %v5013_v24, %v5023_v16  ;;  %v13075_v25 = vrot.slane %v6730_v33, 4  ;;  %v13077_v28 = vrot.slane %v6733_v40, 5  ;;  %v9836_v52 = vld [vmem:[#allocation3 + $0x44] sm:$0x1]  ;;  %v7304_v58 = vld [vmem:[#allocation3 + $0xb4] sm:$0xe] }
 0x2e3   : > { %v5703_v18 = vsel %vm1390_vm8, %v5669_v63, %v12748_v21  ;;  %v5905_v32 = vshrl.u32 %v5772_v11, 16  ;;  %v5908_v29 = vshll.u32 %v5772_v11, 16  ;;  %v5914_v13 = vshll.u32 %v9833_v39, 16  ;;  %v7305_v33 = vld [vmem:[#allocation3 + $0xb8] sm:$0xf] }
 0x2e4   : > { %7906 = vmatmul.mubr.bf16.gmra.mrb[40].mxu1 %v5703_v18  ;;  %v5918_v53 = vshrl.u32 %v9833_v39, 16  ;;  %5418 = vrot.lane.b32.xlu1 %v8968_v7, %s9943_s22  ;;  %v8943_v44 = vcombine.low %v9835_v43, %v9834_v60  ;;  %v5924_v61 = vshll.u32 %v9836_v52, 16  ;;  %v6712_v5 = vor.u32 %v12982_v8, %v12965_v59  ;;  %v7306_v24 = vld [vmem:[#allocation3 + $0xbc] sm:$0x1]  ;;  %v6206_v39 = vld [vmem:[#allocation3 + $0xb4] sm:$0xe] }
 0x2e5   : > { %v6722_v21 = vor.u32 %v12963_v27, %v12960_v42  ;;  %v5907_v1 = vrot.slane %v5905_v32, 4  ;;  %v5910_v40 = vrot.slane %v5908_v29, 5  ;;  %v5916_v3 = vrot.slane %v5914_v13, 5  ;;  %v13092_v27 = vld [vmem:[#allocation3 + $0xb8] sm:$0xf]  ;;  %v13094_v32 = vpop.permute.xlu1 %5404 }
 0x2e6   : > { %v5920_v11 = vrot.slane %v5918_v53, 4  ;;  %v13090_v16 = vsel %vm1308_vm6, %v8943_v44, %v12930_v15  ;;  %v6713_v63 = vrot.slane %v6712_v5, 4  ;;  %v6725_v18 = vshll.u32 %v6413_v62, 16  ;;  %v4668_v52 = vld [vmem:[#allocation3 + $0xa8] sm:$0xf] }
 0x2e7   : > { %v6723_v7 = vrot.slane %v6722_v21, 4  ;;  %v5911_v60 = vor.u32 %v5910_v40, %v5907_v1  ;;  %v5926_v8 = vrot.slane %v5924_v61, 5  ;;  %v7454_v43 = vrot.slane %v7305_v33, 5  ;;  %v13100_v21 = vld [vmem:[#allocation3 + $0xbc] sm:$0x1]  ;;  %v13102_v33 = vpop.permute.xlu0 %7101  ;;  %v9750_v40 = vld [vmem:[#allocation3 + $0xb4] sm:$0xff]  }
 0x2e8   : > { %v5921_v59 = vor.u32 %v5920_v11, %v5916_v3  ;;  %5500 = vrot.lane.b32.xlu1 %v8985_v38, %s9941_s20  ;;  %v6718_v15 = vsel %vm10143_vm5, %v6713_v63, %v12960_v42  ;;  %v6727_v29 = vrot.slane %v6725_v18, 5  ;;  %v9096_v13 = vrot.slane %v7304_v58, 9 }
 0x2e9   : > { %v7457_v53 = vrot.slane %v7306_v24, 5  ;;  %v5912_v62 = vrot.slane %v5911_v60, 4  ;;  %v7456_v5 = vrot.slane %v7454_v43, 4  ;;  %v9017_v61 = vrot.slane %v6206_v39, 9 }
 0x2ea   : > { %v5922_v44 = vrot.slane %v5921_v59, 4  ;;  %v6728_v1 = vsel %vm10143_vm5, %v6723_v7, %v6727_v29  ;;  %v7455_v38 = vsel %vm10089_vm2, %v9096_v13, %v7454_v43  ;;  %v6356_v42 = vrot.slane %v13092_v27, 5 }
 0x2eb   : > { %v5025_v11 = vshrl.u32 %v4668_v52, 16  ;;  %v5917_v58 = vsel %vm10143_vm5, %v5912_v62, %v5916_v3  ;;  %v9079_v63 = vcombine.low %v6718_v15, %v6728_v1  ;;  %v7458_v18 = vsel %vm10089_vm2, %v7456_v5, %v7457_v53  ;;  %v13120_v15 = vpop.permute.xlu1 %5486  ;;  %v13129_v1 = vld [vmem:[#allocation3 + $0xb8] sm:$0xf] }
 0x2ec   : > { %v5927_v24 = vsel %vm10143_vm5, %v5922_v44, %v5926_v8  ;;  %5612 = vrot.lane.b32.xlu1 %v9750_v40, %s9942_s21  ;;  %v9112_v7 = vcombine.low %v7455_v38, %v7458_v18  ;;  %v6358_v60 = vrot.slane %v6356_v42, 4  ;;  %v6359_v59 = vrot.slane %v13100_v21, 5  ;;  %v4670_v8 = vld [vmem:[#allocation3 + $0xb4] sm:$0xf] }
 0x2ed   : > { %v9023_v39 = vcombine.low %v5917_v58, %v5927_v24  ;;  %7113 = vrot.lane.b32.xlu0 %v9079_v63, %s9942_s21  ;;  %v5027_v43 = vrot.slane %v5025_v11, 4  ;;  %v5028_v29 = vshll.u32 %v4668_v52, 16  ;;  %v5034_v3 = vshll.u32 %v13015_v31, 16  ;;  %v13131_v52 = vld [vmem:[#allocation3 + $0xbc] sm:$0x1] }
 0x2ee   : > { %v5038_v13 = vshrl.u32 %v13015_v31, 16  ;;  %v7548_v62 = vsel %vm1308_vm6, %v9112_v7, 0  ;;  %v6357_v44 = vsel %vm10089_vm2, %v9017_v61, %v6356_v42  ;;  %v6360_v5 = vsel %vm10089_vm2, %v6358_v60, %v6359_v59  ;;  %v6398_v58 = vld [vmem:[#allocation3 + $0xc4] sm:$0xf] }
 0x2ef   : > { %v7135_v53 = vsel %vm1308_vm6, %v9023_v39, %v12802_v9  ;;  %v7566_v31 = vsel %vm1357_vm7, %v7548_v62, 0  ;;  %v9049_v40 = vcombine.low %v6357_v44, %v6360_v5  ;;  %v5030_v38 = vrot.slane %v5028_v29, 5  ;;  %v13135_v9 = vpop.permute.xlu0 %6913 }
 0x2f0   : > { %v5044_v11 = vshll.u32 %v13036_v50, 16  ;;  %9573 = vmatmul.mubr.msk.bf16.gmra.mrb[88].mxu0 %vm1390_vm8, %v7566_v31  ;;  %v13140_v61 = vsel %vm1357_vm7, %v7135_v53, %v12825_v46  ;;  %v5036_v42 = vrot.slane %v5034_v3, 5  ;;  %v5040_v24 = vrot.slane %v5038_v13, 4  ;;  %v6397_v3 = vld [vmem:[#allocation3 + $0xc0] sm:$0xf]  ;;  %v13146_v13 = vpop.permute.xlu1 %5598 }
 0x2f1   : > { %v5049_v63 = vshrl.u32 %v4670_v8, 16  ;;  %6925 = vrot.lane.b32.xlu0 %v9049_v40, %s9943_s22  ;;  %v5031_v18 = vor.u32 %v5030_v38, %v5027_v43  ;;  %v5052_v39 = vshll.u32 %v4670_v8, 16  ;;  %v5058_v7 = vshll.u32 %v13129_v1, 16 }
 0x2f2   : > { %v5062_v50 = vshrl.u32 %v13129_v1, 16  ;;  %v5041_v60 = vor.u32 %v5040_v24, %v5036_v42  ;;  %v5068_v29 = vshll.u32 %v13131_v52, 16  ;;  %v6763_v62 = vshll.u32 %v6398_v58, 16 }
 0x2f3   : > { %v5051_v59 = vrot.slane %v5049_v63, 4  ;;  %v5032_v44 = vrot.slane %v5031_v18, 4  ;;  %v5054_v5 = vrot.slane %v5052_v39, 5  ;;  %v5060_v46 = vrot.slane %v5058_v7, 5  ;;  %v13150_v63 = vpop.permute.xlu0 %7025 }
 0x2f4   : > { %v5064_v53 = vrot.slane %v5062_v50, 4  ;;  %v5042_v31 = vrot.slane %v5041_v60, 4  ;;  %v5046_v40 = vrot.slane %v5044_v11, 5  ;;  %v5070_v43 = vrot.slane %v5068_v29, 5 }
 0x2f5   : > { %v6767_v8 = vshrl.u32 %v6398_v58, 16  ;;  %v5055_v38 = vor.u32 %v5054_v5, %v5051_v59  ;;  %v13148_v30 = vrot.slane %v6763_v62, 5  ;;  %v9065_v24 = vcombine.low %v6397_v3, %v6398_v58  ;;  %v9838_v5 = vld [vmem:[#allocation3 + $0x3c] sm:$0xf] }
 0x2f6   : > { %v5065_v0 = vor.u32 %v5064_v53, %v5060_v46  ;;  %v5037_v18 = vsel %vm10143_vm5, %v5032_v44, %v5036_v42  ;;  %v5047_v39 = vsel %vm10143_vm5, %v5042_v31, %v5046_v40  ;;  %v6754_v7 = vshrl.u32 %v6397_v3, 16  ;;  %v9837_v44 = vld [vmem:[#allocation3 + $0x40] sm:$0xf]  ;;  %v5087_v31 = vld [vmem:[#allocation3 + $0xb4] sm:$0xe]  ;;  %v13174_v40 = vpop.permute.xlu1 %5406 }
 0x2f7   : > { %v6757_v50 = vshll.u32 %v6397_v3, 16  ;;  %v8969_v60 = vcombine.low %v5037_v18, %v5047_v39  ;;  %v5056_v11 = vrot.slane %v5055_v38, 4  ;;  %7037 = vrot.lane.b32.xlu0 %v9065_v24, %s9941_s20  ;;  %v7211_v58 = vsel %vm1390_vm8, %v13045_v47, %v12857_v20  ;;  %v9839_v38 = vld [vmem:[#allocation3 + $0x4c] sm:$0xf]  ;;  %v9840_v39 = vld [vmem:[#allocation3 + $0x50] sm:$0x1] }
 0x2f8   : > { %v5066_v29 = vrot.slane %v5065_v0, 4  ;;  %v13160_v59 = vrot.slane %v6767_v8, 4  ;;  %v13162_v62 = vrot.slane %v6754_v7, 4  ;;  %7913 = vmatprep.mubr.bf16.mxu1 %v7211_v58  ;;  %v5671_v42 = vsel %vm1357_vm7, %v13028_v2, %v12798_v14 }
 0x2f9   : > { %v8944_v53 = vcombine.low %v9838_v5, %v9837_v44  ;;  %5420 = vrot.lane.b32.xlu1 %v8969_v60, %s9943_s22  ;;  %v5061_v0 = vsel %vm10143_vm5, %v5056_v11, %v5060_v46  ;;  %v5706_v47 = vsel %vm1390_vm8, %v5671_v42, %v12819_v6  ;;  %v5929_v3 = vshrl.u32 %v5775_v37, 16  ;;  %v6414_v6 = vld [vmem:[#allocation3 + $0xbc] sm:$0x1]  ;;  %v13182_v60 = vpop.permute.xlu0 %7103  ;;  %v7308_v5 = vld [vmem:[#allocation3 + $0xc4] sm:$0xf] }
 0x2fa   : > { %v5071_v20 = vsel %vm10143_vm5, %v5066_v29, %v5070_v43  ;;  %v13176_v14 = vrot.slane %v6757_v50, 5  ;;  %7914 = vmatmul.mubr.bf16.gmra.mrb[44].mxu1 %v5706_v47  ;;  %v5932_v2 = vshll.u32 %v5775_v37, 16  ;;  %v5938_v24 = vshll.u32 %v9839_v38, 16 }
 0x2fb   : > { %v8970_v8 = vcombine.low %v5061_v0, %v5071_v20  ;;  %v13180_v46 = vsel %vm1308_vm6, %v8944_v53, %v13000_v36  ;;  %v5931_v18 = vrot.slane %v5929_v3, 4  ;;  %v5942_v43 = vshrl.u32 %v9839_v38, 16  ;;  %v7307_v3 = vld [vmem:[#allocation3 + $0xc0] sm:$0xe]  ;;  %v7309_v38 = vld [vmem:[#allocation3 + $0xc8] sm:$0x1] }
 0x2fc   : > { %v5948_v7 = vshll.u32 %v9840_v39, 16  ;;  %v5934_v11 = vrot.slane %v5932_v2, 5  ;;  %v5940_v29 = vrot.slane %v5938_v24, 5  ;;  %v8938_v58 = vrot.slane %v5087_v31, 9 }
 0x2fd   : > { %v5243_v50 = vrot.slane %v13129_v1, 5  ;;  %5422 = vrot.lane.b32.xlu1 %v8970_v8, %s9943_s22  ;;  %v5944_v37 = vrot.slane %v5942_v43, 4  ;;  %v5246_v42 = vrot.slane %v13131_v52, 5  ;;  %v6736_v36 = vor.u32 %v13077_v28, %v13075_v25  ;;  %v13193_v52 = vpop.permute.xlu1 %5488 }
 0x2fe   : > { %v6746_v44 = vor.u32 %v13060_v23, %v13056_v26  ;;  %v5935_v53 = vor.u32 %v5934_v11, %v5931_v18  ;;  %v5950_v0 = vrot.slane %v5948_v7, 5  ;;  %v6749_v47 = vshll.u32 %v6414_v6, 16  ;;  %v13197_v18 = vld [vmem:[#allocation3 + $0xc4] sm:$0xf]  ;;  %v6207_v11 = vld [vmem:[#allocation3 + $0xc0] sm:$0xe] }
 0x2ff   : > { %v5245_v20 = vrot.slane %v5243_v50, 4  ;;  %v5945_v31 = vor.u32 %v5944_v37, %v5940_v29  ;;  %v5244_v1 = vsel %vm10089_vm2, %v8938_v58, %v5243_v50  ;;  %v6737_v8 = vrot.slane %v6736_v36, 4  ;;  %v13202_v58 = vpop.permute.xlu0 %6915 }
 0x300   : > { %v6747_v2 = vrot.slane %v6746_v44, 4  ;;  %v5936_v24 = vrot.slane %v5935_v53, 4  ;;  %v6751_v23 = vrot.slane %v6749_v47, 5  ;;  %v7461_v28 = vrot.slane %v7308_v5, 5  ;;  %v13208_v44 = vld [vmem:[#allocation3 + $0xc8] sm:$0x1] }
 0x301   : > { %v5247_v25 = vsel %vm10089_vm2, %v5245_v20, %v5246_v42  ;;  %v5946_v43 = vrot.slane %v5945_v31, 4  ;;  %v6742_v7 = vsel %vm10143_vm5, %v6737_v8, %v13056_v26  ;;  %v9097_v6 = vrot.slane %v7307_v3, 9  ;;  %v6415_v47 = vld [vmem:[#allocation3 + $0xc8] sm:$0x1] }
 0x302   : > { %v8986_v39 = vcombine.low %v5244_v1, %v5247_v25  ;;  %v5941_v50 = vsel %vm10143_vm5, %v5936_v24, %v5940_v29  ;;  %v6752_v37 = vsel %vm10143_vm5, %v6747_v2, %v6751_v23  ;;  %v7463_v42 = vrot.slane %v7461_v28, 4  ;;  %v13224_v25 = vpop.permute.xlu1 %5600 }
 0x303   : > { %v7464_v36 = vrot.slane %v7309_v38, 5  ;;  %v5951_v5 = vsel %vm10143_vm5, %v5946_v43, %v5950_v0  ;;  %v9080_v26 = vcombine.low %v6742_v7, %v6752_v37  ;;  %v7462_v53 = vsel %vm10089_vm2, %v9097_v6, %v7461_v28  ;;  %v9752_v38 = vld [vmem:[#allocation3 + $0xc0] sm:$0xff]  }
 0x304   : > { %5502 = vrot.lane.b32.xlu1 %v8986_v39, %s9941_s20  ;;  %v6363_v20 = vrot.slane %v13197_v18, 5  ;;  %v9024_v29 = vcombine.low %v5941_v50, %v5951_v5  ;;  %v9018_v31 = vrot.slane %v6207_v11, 9  ;;  %v6760_v1 = vor.u32 %v13176_v14, %v13162_v62  ;;  %v5778_v14 = vld [vmem:[#allocation3 + $0x54] sm:$0xf]  ;;  %v13237_v11 = vpop.permute.xlu0 %7027 }
 0x305   : > { %v7465_v3 = vsel %vm10089_vm2, %v7463_v42, %v7464_v36  ;;  %7115 = vrot.lane.b32.xlu0 %v9080_v26, %s9942_s21  ;;  %v6366_v2 = vrot.slane %v13208_v44, 5  ;;  %v6770_v24 = vor.u32 %v13160_v59, %v13148_v30  ;;  %v6773_v43 = vshll.u32 %v6415_v47, 16  ;;  %v3376_v42 = vld [vmem:[#allocation3 + $0xcc] sm:$0x1]  ;;  %v13253_v47 = vld [vmem:[#allocation3 + $0xd0] sm:$0xf] }
 0x306   : > { %v9113_v0 = vcombine.low %v7462_v53, %v7465_v3  ;;  %v6365_v8 = vrot.slane %v6363_v20, 4  ;;  %v6364_v23 = vsel %vm10089_vm2, %v9018_v31, %v6363_v20  ;;  %v6761_v28 = vrot.slane %v6760_v1, 4  ;;  %v9841_v31 = vld [vmem:[#allocation3 + $0x58] sm:$0xf] }
 0x307   : > { %v7214_v62 = vsel %vm1390_vm8, %v13140_v61, %v12937_v19  ;;  %v7138_v39 = vsel %vm1308_vm6, %v9024_v29, %v12886_v48  ;;  %v6771_v6 = vrot.slane %v6770_v24, 4  ;;  %v13239_v50 = vpop.f32.mrb[72].mxu0  ;;  %v6775_v48 = vrot.slane %v6773_v43, 5 }
 0x308   : > { %v7550_v7 = vsel %vm1308_vm6, %v9113_v0, 0  ;;  %v6367_v59 = vsel %vm10089_vm2, %v6365_v8, %v6366_v2  ;;  %5614 = vrot.lane.b32.xlu1 %v9752_v38, %s9942_s21  ;;  %7921 = vmatprep.mubr.bf16.mxu1 %v7214_v62  ;;  %v7180_v19 = vsel %vm1357_vm7, %v7138_v39, %v12918_v12  ;;  %v13244_v36 = vpop.f32.mrb[73].mxu0  ;;  %v6766_v5 = vsel %vm10143_vm5, %v6761_v28, %v13148_v30  ;;  %v3432_v0 = vld [vmem:[#allocation3 + $0xd4] sm:$0x1]  ;;  %v9843_v2 = vld [vmem:[#allocation3 + $0x48] sm:$0xf]  ;;  %v13264_v28 = vpop.permute.xlu1 %5408 }
 0x309   : > { %v7567_v37 = vsel %vm1357_vm7, %v7550_v7, 0  ;;  %v9050_v61 = vcombine.low %v6364_v23, %v6367_v59  ;;  %v5673_v26 = vsel %vm1357_vm7, %v13090_v16, %v12881_v54  ;;  %v5953_v53 = vshrl.u32 %v5778_v14, 16  ;;  %v13255_v12 = vpop.f32.mrb[74].mxu0  ;;  %v9842_v16 = vld [vmem:[#allocation3 + $0x4c] sm:$0xf] }
 0x30a   : > { %9576 = vmatprep.mubr.msk.bf16.mxu0 %vm1390_vm8, %v7567_v37  ;;  %v5956_v20 = vshll.u32 %v5778_v14, 16  ;;  %v6776_v29 = vsel %vm10143_vm5, %v6771_v6, %v6775_v48  ;;  %v5709_v3 = vsel %vm1390_vm8, %v5673_v26, %v12907_v10  ;;  %v5962_v30 = vshll.u32 %v9841_v31, 16  ;;  %v13262_v8 = vpop.f32.mrb[75].mxu0  ;;  %v9844_v14 = vld [vmem:[#allocation3 + $0x5c] sm:$0x1]  ;;  %v13272_v48 = vpop.permute.xlu0 %7105 }
 0x30b   : > { %6927 = vrot.lane.b32.xlu0 %v9050_v61, %s9943_s22  ;;  %v5966_v1 = vshrl.u32 %v9841_v31, 16  ;;  %v9081_v54 = vcombine.low %v6766_v5, %v6776_v29  ;;  %7922 = vmatmul.mubr.bf16.gmra.mrb[48].mxu1 %v5709_v3  ;;  %v8945_v38 = vcombine.low %v9843_v2, %v9842_v16  ;;  %v5955_v24 = vrot.slane %v5953_v53, 4  ;;  %v5781_v61 = vld [vmem:[#allocation3 + $0x60] sm:$0xf]  ;;  %s13713_s22 = scalar_lea.hbm %s13772_s8, %s9179_s18 }
 0x30c   : > { %v5958_v23 = vrot.slane %v5956_v20, 5  ;;  %v5964_v43 = vrot.slane %v5962_v30, 5  ;;  %v5972_v39 = vshll.u32 %v9844_v14, 16  ;;  %v3377_v10 = vsel %vm11602_vm13, 0, %v3376_v42 }
 0x30d   : > { %v5968_v62 = vrot.slane %v5966_v1, 4  ;;  %3378 = vst [vmem:[#allocation3 + $0xcc] sm:$0x1] %v3377_v10  ;;  %v6787_v59 = vshll.u32 %v13253_v47, 16  ;;  %v6791_v6 = vshrl.u32 %v13253_v47, 16  ;;  %v3433_v37 = vsel %vm11624_vm14, 0, %v3432_v0 }
 0x30e   : > { %v5959_v7 = vor.u32 %v5958_v23, %v5955_v24  ;;  %v5636_v5 = vsel %vm1308_vm6, %v8945_v38, %v13094_v32  ;;  %3434 = vst [vmem:[#allocation3 + $0xd4] sm:$0x1] %v3433_v37  ;;  %v7217_v49 = vsel %vm1390_vm8, %v7180_v19, %v13011_v17  ;;  %v5675_v42 = vsel %vm1357_vm7, %v13180_v46, %v12945_v51  ;;  %v9845_v0 = vld [vmem:[#allocation3 + $0x58] sm:$0xf]  ;;  %v9846_v17 = vld [vmem:[#allocation3 + $0x54] sm:$0xf]  ;;  %v13287_v46 = vpop.permute.xlu1 %5490  ;;  %v13295_v10 = vpop.permute.xlu0 %6917 }
 0x30f   : > { %7117 = vrot.lane.b32.xlu0 %v9081_v54, %s9942_s21  ;;  %v5969_v26 = vor.u32 %v5968_v62, %v5964_v43  ;;  %v5974_v56 = vrot.slane %v5972_v39, 5  ;;  %v13282_v20 = vrot.slane %v6787_v59, 5  ;;  %v6793_v29 = vrot.slane %v6791_v6, 4  ;;  %7929 = vmatprep.mubr.bf16.mxu1 %v7217_v49  ;;  %v9847_v54 = vld [vmem:[#allocation3 + $0x64] sm:$0xf] }
 0x310   : > { %v5960_v53 = vrot.slane %v5959_v7, 4  ;;  %v5712_v31 = vsel %vm1390_vm8, %v5675_v42, %v12984_v45  ;;  %v5977_v32 = vshrl.u32 %v5781_v61, 16  ;;  %v5980_v30 = vshll.u32 %v5781_v61, 16  ;;  %v9848_v37 = vld [vmem:[#allocation3 + $0x68] sm:$0x1] }
 0x311   : > { %v5970_v3 = vrot.slane %v5969_v26, 4  ;;  %v6794_v1 = vor.u32 %v6793_v29, %v13282_v20  ;;  %v8946_v19 = vcombine.low %v9846_v17, %v9845_v0  ;;  %v5986_v16 = vshll.u32 %v9847_v54, 16  ;;  %v13820_v26 = vld [vmem:[#allocation8_spill] sm:$0xff]  ;;  %v13821_v29 = vld [vmem:[#allocation10_spill] sm:$0xff] }
 0x312   : > { %v5990_v51 = vshrl.u32 %v9847_v54, 16  ;;  %v5965_v2 = vsel %vm10143_vm5, %v5960_v53, %v5964_v43  ;;  %v5979_v24 = vrot.slane %v5977_v32, 4  ;;  %v5982_v45 = vrot.slane %v5980_v30, 5 }
 0x313   : > { %v5975_v38 = vsel %vm10143_vm5, %v5970_v3, %v5974_v56  ;;  %7930 = vmatmul.mubr.bf16.gmra.mrb[52].mxu1 %v5712_v31  ;;  %v5639_v62 = vsel %vm1308_vm6, %v8946_v19, %v13174_v40  ;;  %v5988_v14 = vrot.slane %v5986_v16, 5  ;;  %v6795_v59 = vrot.slane %v6794_v1, 4  ;;  %v5784_v1 = vld [vmem:[#allocation3 + $0x6c] sm:$0xf]  ;;  %v9850_v19 = vld [vmem:[#allocation3 + $0x60] sm:$0xf]  ;;  %v13307_v16 = vpop.permute.xlu1 %5602 }
 0x314   : > { %v9025_v23 = vcombine.low %v5965_v2, %v5975_v38  ;;  %v5992_v39 = vrot.slane %v5990_v51, 4  ;;  %v6399_v7 = vld [vmem:[#allocation3 + $0xcc] sm:$0xf]  ;;  %v5983_v6 = vor.u32 %v5982_v45, %v5979_v24  ;;  %v5996_v61 = vshll.u32 %v9848_v37, 16  ;;  %v9851_v37 = vld [vmem:[#allocation3 + $0x70] sm:$0xf] }
 0x315   : > { %v5677_v43 = vsel %vm1357_vm7, %v5636_v5, %v13038_v55  ;;  %v6778_v42 = vshrl.u32 %v6399_v7, 16  ;;  %v6781_v53 = vshll.u32 %v6399_v7, 16  ;;  %v9066_v56 = vcombine.low %v6399_v7, %v13253_v47  ;;  %v6416_v40 = vld [vmem:[#allocation3 + $0xd4] sm:$0x1]  ;;  %v9849_v5 = vld [vmem:[#allocation3 + $0x64] sm:$0xf]  ;;  %v13313_v7 = vpop.permute.xlu0 %7029 }
 0x316   : > { %v7141_v49 = vsel %vm1308_vm6, %v9025_v23, %v13820_v26  ;;  %v6797_v31 = vshll.u32 %v6416_v40, 16  ;;  %v5984_v32 = vrot.slane %v5983_v6, 4  ;;  %v5993_v30 = vor.u32 %v5992_v39, %v5988_v14 }
 0x317   : > { %v7182_v3 = vsel %vm1357_vm7, %v7141_v49, %v13821_v29  ;;  %v6780_v0 = vrot.slane %v6778_v42, 4  ;;  %v6783_v17 = vrot.slane %v6781_v53, 5  ;;  %7039 = vrot.lane.b32.xlu0 %v9066_v56, %s9941_s20  ;;  %v8947_v54 = vcombine.low %v9850_v19, %v9849_v5  ;;  %v5787_v29 = vld [vmem:[#allocation3 + $0x78] sm:$0xf]  ;;  %s9146_s20 = sshll.u32 %s10043_s17, 8  ;;  %s311_s17 = sand.u32 1, %s9931_s28  }
 0x318   : > { %v7220_v55 = vsel %vm1390_vm8, %v7182_v3, %v13102_v33  ;;  %v6799_v47 = vrot.slane %v6797_v31, 5  ;;  %v5989_v51 = vsel %vm10143_vm5, %v5984_v32, %v5988_v14  ;;  %v5994_v2 = vrot.slane %v5993_v30, 4  ;;  %v13326_v30 = vpop.permute.xlu1 %5410  ;;  %s13483_s25 = scalar_lea.vmem %s13765_s1, %s9146_s20  ;;  %s8477_s12 = sshll.u32 %s311_s17, 8 }
 0x319   : > { %v5998_v38 = vrot.slane %v5996_v61, 5  ;;  %7937 = vmatprep.mubr.bf16.mxu1 %v7220_v55  ;;  %v6784_v24 = vor.u32 %v6783_v17, %v6780_v0  ;;  %v5715_v45 = vsel %vm1390_vm8, %v5677_v43, %v13073_v41  ;;  %v6001_v23 = vshrl.u32 %v5784_v1, 16  ;;  %v9852_v43 = vld [vmem:[#allocation3 + $0x74] sm:$0x1]  ;;  %s13508_s13 = scalar_lea.vmem [#allocation5], %s8477_s12  ;;  %s13723_s9 = scalar_lea.sflag [#allocation6], %s311_s17 }
 0x31a   : > { %v6004_v39 = vshll.u32 %v5784_v1, 16  ;;  %v6800_v33 = vsel %vm10143_vm5, %v6795_v59, %v6799_v47  ;;  %v6010_v26 = vshll.u32 %v9851_v37, 16  ;;  %v6014_v14 = vshrl.u32 %v9851_v37, 16  ;;  %v7108_v47 = vpop.permute.xlu0 %7107  ;;  %s8399_s19 = sshll.u32 %s13508_s13, 4  ;;  %s13715_s19 = int_to_ptr.vmem [resolvable:$true] %s8399_s19 }
 0x31b   : > { %v5999_v6 = vsel %vm10143_vm5, %v5994_v2, %v5998_v38  ;;  %v6785_v49 = vrot.slane %v6784_v24, 4  ;;  %7938 = vmatmul.mubr.bf16.gmra.mrb[56].mxu1 %v5715_v45  ;;  %v6003_v42 = vrot.slane %v6001_v23, 4  ;;  %v6020_v40 = vshll.u32 %v9852_v43, 16  ;;  %v9854_v24 = vld [vmem:[#allocation3 + $0x80] sm:$0x1]  ;;  %s9877_s23 = scalar_lea.vmem %s13715_s19, 4096 }
 0x31c   : > { %v9026_v61 = vcombine.low %v5989_v51, %v5999_v6  ;;  %v6006_v53 = vrot.slane %v6004_v39, 5  ;;  %v6012_v56 = vrot.slane %v6010_v26, 5  ;;  %v6016_v41 = vrot.slane %v6014_v14, 4  ;;  %v9853_v51 = vld [vmem:[#allocation3 + $0x7c] sm:$0xf]  ;;  %v13341_v26 = vpop.permute.xlu1 %5492  ;;  %p9878_p11 = scmp.ne.s32.totalorder %s13715_s19, %s9877_s23 }
 0x31d   : > { %v6790_v59 = vsel %vm10143_vm5, %v6785_v49, %v13282_v20  ;;  %v5642_v31 = vsel %vm1308_vm6, %v8947_v54, %v13264_v28  ;;  %v5679_v55 = vsel %vm1357_vm7, %v5639_v62, %v13120_v15  ;;  %v6022_v19 = vrot.slane %v6020_v40, 5 }
 0x31e   : > { %v7144_v3 = vsel %vm1308_vm6, %v9026_v61, %v13051_v22  ;;  %v6007_v32 = vor.u32 %v6006_v53, %v6003_v42  ;;  %v9082_v1 = vcombine.low %v6790_v59, %v6800_v33  ;;  %v6017_v17 = vor.u32 %v6016_v41, %v6012_v56  ;;  %v9855_v41 = vld [vmem:[#allocation3 + $0x88] sm:$0xf]  ;;  %v13347_v40 = vpop.permute.xlu0 %6919  ;;  %p9879_p12 = pnand %p9878_p11, %p10031_p5 }
 0x31f   : > { %v7184_v0 = vsel %vm1357_vm7, %v7144_v3, %v13081_v57  ;;  %v6025_v22 = vshrl.u32 %v5787_v29, 16  ;;  %v6028_v54 = vshll.u32 %v5787_v29, 16  ;;  %v6034_v2 = vshll.u32 %v9853_v51, 16 }
 0x320   : > { %v6008_v5 = vrot.slane %v6007_v32, 4  ;;  %v7223_v20 = vsel %vm1390_vm8, %v7184_v0, %v13182_v60  ;;  %7119 = vrot.lane.b32.xlu0 %v9082_v1, %s9942_s21  ;;  %v6018_v28 = vrot.slane %v6017_v17, 4  ;;  %v6038_v38 = vshrl.u32 %v9853_v51, 16  ;;  %v5790_v60 = vld [vmem:[#allocation3 + $0x84] sm:$0xf]  ;;  %p9880_p13 = pneg %p9879_p12 }
 0x321   : > { %7945 = vmatprep.mubr.bf16.mxu1 %v7223_v20  ;;  %v5718_v15 = vsel %vm1390_vm8, %v5679_v55, %v13146_v13  ;;  %v6027_v62 = vrot.slane %v6025_v22, 4  ;;  %v6044_v45 = vshll.u32 %v9854_v24, 16  ;;  %v6030_v39 = vrot.slane %v6028_v54, 5  ;;  %v9856_v20 = vld [vmem:[#allocation3 + $0x8c] sm:$0x1] }
 0x322   : > { %v6013_v57 = vsel %vm10143_vm5, %v6008_v5, %v6012_v56  ;;  %v6023_v23 = vsel %vm10143_vm5, %v6018_v28, %v6022_v19  ;;  %v6036_v33 = vrot.slane %v6034_v2, 5  ;;  %v6040_v6 = vrot.slane %v6038_v38, 4  ;;  %v5605_v5 = vpop.permute.xlu1 %5604  ;;  %v9857_v28 = vld [vmem:[#allocation3 + $0x70] sm:$0xf]  ;;  %v9858_v54 = vld [vmem:[#allocation3 + $0x6c] sm:$0xf] }
 0x323   : > { %v9027_v37 = vcombine.low %v6013_v57, %v6023_v23  ;;  %7946 = vmatmul.mubr.bf16.gmra.mrb[60].mxu1 %v5718_v15  ;;  %v6031_v14 = vor.u32 %v6030_v39, %v6027_v62  ;;  %v6046_v61 = vrot.slane %v6044_v45, 5  ;;  %v6049_v42 = vshrl.u32 %v5790_v60, 16 }
 0x324   : > { %v6041_v49 = vor.u32 %v6040_v6, %v6036_v33  ;;  %v5681_v53 = vsel %vm1357_vm7, %v5642_v31, %v13193_v52  ;;  %v6052_v56 = vshll.u32 %v5790_v60, 16  ;;  %v6058_v43 = vshll.u32 %v9855_v41, 16  ;;  %v13361_v15 = vpop.permute.xlu0 %7031 }
 0x325   : > { %v7147_v13 = vsel %vm1308_vm6, %v9027_v37, %v13135_v9  ;;  %v6032_v59 = vrot.slane %v6031_v14, 4  ;;  %v6051_v32 = vrot.slane %v6049_v42, 4  ;;  %v6062_v9 = vshrl.u32 %v9855_v41, 16  ;;  %v9859_v37 = vld [vmem:[#allocation3 + $0x7c] sm:$0xf] }
 0x326   : > { %v7186_v29 = vsel %vm1357_vm7, %v7147_v13, %v13150_v63  ;;  %v6042_v3 = vrot.slane %v6041_v49, 4  ;;  %v6054_v0 = vrot.slane %v6052_v56, 5  ;;  %v6060_v17 = vrot.slane %v6058_v43, 5  ;;  %v9860_v14 = vld [vmem:[#allocation3 + $0x78] sm:$0xf] }
 0x327   : > { %v7226_v1 = vsel %vm1390_vm8, %v7186_v29, %v13272_v48  ;;  %v6037_v52 = vsel %vm10143_vm5, %v6032_v59, %v6036_v33  ;;  %v6064_v63 = vrot.slane %v6062_v9, 4  ;;  %v6068_v22 = vshll.u32 %v9856_v20, 16 }
 0x328   : > { %v6047_v31 = vsel %vm10143_vm5, %v6042_v3, %v6046_v61  ;;  %7953 = vmatprep.mubr.bf16.mxu1 %v7226_v1  ;;  %v6055_v19 = vor.u32 %v6054_v0, %v6051_v32  ;;  %v8948_v51 = vcombine.low %v9858_v54, %v9857_v28  ;;  %v5721_v48 = vsel %vm1390_vm8, %v5681_v53, %v13224_v25  ;;  %v5413_v25 = vpop.permute.xlu1 %5412  ;;  %v5793_v61 = vld [vmem:[#allocation3 + $0x90] sm:$0xf]  ;;  %v9861_v53 = vld [vmem:[#allocation3 + $0x94] sm:$0xf] }
 0x329   : > { %v9028_v55 = vcombine.low %v6037_v52, %v6047_v31  ;;  %v6065_v57 = vor.u32 %v6064_v63, %v6060_v17  ;;  %v6070_v60 = vrot.slane %v6068_v22, 5  ;;  %v6086_v56 = vshrl.u32 %v9861_v53, 16  ;;  %v9862_v63 = vld [vmem:[#allocation3 + $0x98] sm:$0x1]  ;;  %v5805_v22 = vld [vmem:[#allocation3 + $0xc0] sm:$0xf] }
 0x32a   : > { %v6056_v38 = vrot.slane %v6055_v19, 4  ;;  %v5645_v62 = vsel %vm1308_vm6, %v8948_v51, %v13326_v30  ;;  %v6076_v3 = vshll.u32 %v5793_v61, 16  ;;  %v6092_v20 = vshll.u32 %v9862_v63, 16 }
 0x32b   : > { %v7150_v2 = vsel %vm1308_vm6, %v9028_v55, %v13202_v58  ;;  %7954 = vmatmul.mubr.bf16.gmra.mrb[64].mxu1 %v5721_v48  ;;  %v6066_v45 = vrot.slane %v6065_v57, 4  ;;  %v5683_v33 = vsel %vm1357_vm7, %v5645_v62, %v13287_v46  ;;  %v6082_v46 = vshll.u32 %v9861_v53, 16 }
 0x32c   : > { %v7188_v24 = vsel %vm1357_vm7, %v7150_v2, %v13237_v11  ;;  %v6061_v58 = vsel %vm10143_vm5, %v6056_v38, %v6060_v17  ;;  %v8949_v11 = vcombine.low %v9860_v14, %v9859_v37  ;;  %v5495_v59 = vpop.permute.xlu1 %5494  ;;  %v6078_v9 = vrot.slane %v6076_v3, 5 }
 0x32d   : > { %v7229_v23 = vsel %vm1390_vm8, %v7188_v24, %v7108_v47  ;;  %v6071_v39 = vsel %vm10143_vm5, %v6066_v45, %v6070_v60  ;;  %v5724_v47 = vsel %vm1390_vm8, %v5683_v33, %v13307_v16  ;;  %v6073_v16 = vshrl.u32 %v5793_v61, 16  ;;  %v9863_v24 = vld [vmem:[#allocation3 + $0x88] sm:$0xf]  ;;  %v9864_v45 = vld [vmem:[#allocation3 + $0x84] sm:$0xf] }
 0x32e   : > { %7961 = vmatprep.mubr.bf16.mxu1 %v7229_v23  ;;  %v9029_v6 = vcombine.low %v6061_v58, %v6071_v39  ;;  %v5648_v43 = vsel %vm1308_vm6, %v8949_v11, %v5413_v25  ;;  %v6084_v1 = vrot.slane %v6082_v46, 5  ;;  %v6169_v51 = vshrl.u32 %v5805_v22, 16  ;;  %v7311_v58 = vld [vmem:[#allocation3 + $0xd0] sm:$0xf]  ;;  %v7312_v39 = vld [vmem:[#allocation3 + $0xd4] sm:$0x1] }
 0x32f   : > { %v5685_v0 = vsel %vm1357_vm7, %v5648_v43, %v13341_v26  ;;  %v6075_v17 = vrot.slane %v6073_v16, 4  ;;  %v6172_v48 = vshll.u32 %v5805_v22, 16  ;;  %v6094_v57 = vrot.slane %v6092_v20, 5 }
 0x330   : > { %v7110_v30 = vpop.permute.xlu0 %7109  ;;  %v7153_v49 = vsel %vm1308_vm6, %v9029_v6, %v13295_v10  ;;  %v5727_v52 = vsel %vm1390_vm8, %v5685_v0, %v5605_v5  ;;  %v5607_v31 = vpop.permute.xlu1 %5606  ;;  %v6178_v26 = vshll.u32 %v13197_v18, 16  ;;  %v6182_v62 = vshrl.u32 %v13197_v18, 16  ;;  %v7310_v5 = vld [vmem:[#allocation3 + $0xcc] sm:$0xe]  ;;  %v9865_v0 = vld [vmem:[#allocation3 + $0xa0] sm:$0xf] }
 0x331   : > { %v13378_v42 = vpop.f32.mrb[76].mxu0  ;;  %v7190_v13 = vsel %vm1357_vm7, %v7153_v49, %v13313_v7  ;;  %v6088_v7 = vrot.slane %v6086_v56, 4  ;;  %v6079_v19 = vor.u32 %v6078_v9, %v6075_v17  ;;  %v8950_v60 = vcombine.low %v9864_v45, %v9863_v24 }
 0x332   : > { %v13382_v41 = vpop.f32.mrb[77].mxu0  ;;  %v7232_v29 = vsel %vm1390_vm8, %v7190_v13, %v7110_v30  ;;  %v6171_v23 = vrot.slane %v6169_v51, 4  ;;  %v6174_v25 = vrot.slane %v6172_v48, 5  ;;  %v6180_v6 = vrot.slane %v6178_v26, 5 }
 0x333   : > { %7962 = vmatmul.mubr.bf16.gmra.mrb[68].mxu1 %v5724_v47  ;;  %v13386_v10 = vpop.f32.mrb[78].mxu0  ;;  %v6089_v55 = vor.u32 %v6088_v7, %v6084_v1  ;;  %v6080_v38 = vrot.slane %v6079_v19, 4  ;;  %v6184_v30 = vrot.slane %v6182_v62, 4  ;;  %v6188_v18 = vshll.u32 %v13208_v44, 16  ;;  %v5796_v7 = vld [vmem:[#allocation3 + $0x9c] sm:$0xf] }
 0x334   : > { %7969 = vmatprep.mubr.bf16.mxu1 %v7232_v29  ;;  %v13388_v32 = vpop.f32.mrb[79].mxu0  ;;  %v5415_v2 = vpop.permute.xlu1 %5414  ;;  %v6175_v11 = vor.u32 %v6174_v25, %v6171_v23  ;;  %v9098_v49 = vrot.slane %v7310_v5, 9  ;;  %v7468_v13 = vrot.slane %v7311_v58, 5  ;;  %v7471_v53 = vrot.slane %v7312_v39, 5 }
 0x335   : > { %v6090_v54 = vrot.slane %v6089_v55, 4  ;;  %v5651_v37 = vsel %vm1308_vm6, %v8950_v60, %v5415_v2  ;;  %v6085_v47 = vsel %vm10143_vm5, %v6080_v38, %v6084_v1  ;;  %v6185_v61 = vor.u32 %v6184_v30, %v6180_v6  ;;  %v9866_v60 = vld [vmem:[#allocation3 + $0xa4] sm:$0x1]  ;;  %v9868_v30 = vld [vmem:[#allocation3 + $0x90] sm:$0xf] }
 0x336   : > { %v6176_v56 = vrot.slane %v6175_v11, 4  ;;  %v6190_v29 = vrot.slane %v6188_v18, 5  ;;  %v7469_v16 = vsel %vm10089_vm2, %v9098_v49, %v7468_v13  ;;  %v7470_v3 = vrot.slane %v7468_v13, 4 }
 0x337   : > { %v13393_v28 = vpop.permute.xlu0 %6921  ;;  %v6095_v33 = vsel %vm10143_vm5, %v6090_v54, %v6094_v57  ;;  %v6186_v43 = vrot.slane %v6185_v61, 4  ;;  %v6106_v17 = vshll.u32 %v9865_v0, 16  ;;  %v6110_v9 = vshrl.u32 %v9865_v0, 16 }
 0x338   : > { %v9030_v46 = vcombine.low %v6085_v47, %v6095_v33  ;;  %v5687_v44 = vsel %vm1357_vm7, %v5651_v37, %v5495_v59  ;;  %v6181_v55 = vsel %vm10143_vm5, %v6176_v56, %v6180_v6  ;;  %v7472_v63 = vsel %vm10089_vm2, %v7470_v3, %v7471_v53  ;;  %v9867_v6 = vld [vmem:[#allocation3 + $0x94] sm:$0xf] }
 0x339   : > { %v6191_v19 = vsel %vm10143_vm5, %v6186_v43, %v6190_v29  ;;  %v9114_v59 = vcombine.low %v7469_v16, %v7472_v63  ;;  %v6097_v51 = vshrl.u32 %v5796_v7, 16  ;;  %v6100_v48 = vshll.u32 %v5796_v7, 16  ;;  %v5799_v7 = vld [vmem:[#allocation3 + $0xa8] sm:$0xf] }
 0x33a   : > { %v7156_v1 = vsel %vm1308_vm6, %v9030_v46, %v13347_v40  ;;  %v13418_v54 = vcombine.low %v6181_v55, %v6191_v19  ;;  %v5730_v2 = vsel %vm1390_vm8, %v5687_v44, %v5607_v31  ;;  %v6108_v57 = vrot.slane %v6106_v17, 5  ;;  %v9869_v44 = vld [vmem:[#allocation3 + $0xac] sm:$0xf] }
 0x33b   : > { %7970 = vmatmul.mubr.bf16.gmra.mrb[72].mxu1 %v5727_v52  ;;  %v5497_v52 = vpop.permute.xlu1 %5496  ;;  %v7192_v20 = vsel %vm1357_vm7, %v7156_v1, %v13361_v15  ;;  %v7552_v38 = vsel %vm1308_vm6, %v9114_v59, 0  ;;  %v6112_v26 = vrot.slane %v6110_v9, 4  ;;  %v6099_v62 = vrot.slane %v6097_v51, 4 }
 0x33c   : > { %v7568_v35 = vsel %vm1357_vm7, %v7552_v38, 0  ;;  %v6102_v5 = vrot.slane %v6100_v48, 5  ;;  %v6116_v23 = vshll.u32 %v9866_v60, 16  ;;  %v8951_v37 = vcombine.low %v9868_v30, %v9867_v6  ;;  %v5802_v48 = vld [vmem:[#allocation3 + $0xb4] sm:$0xf] }
 0x33d   : > { %9577 = vmatmul.mubr.msk.bf16.gmra.mrb[92].mxu0 %vm1390_vm8, %v7568_v35  ;;  %v6113_v24 = vor.u32 %v6112_v26, %v6108_v57  ;;  %v6130_v1 = vshll.u32 %v9869_v44, 16  ;;  %v6134_v55 = vshrl.u32 %v9869_v44, 16  ;;  %v6124_v19 = vshll.u32 %v5799_v7, 16  ;;  %v9872_v6 = vld [vmem:[#allocation3 + $0x9c] sm:$0xf] }
 0x33e   : > { %v6103_v45 = vor.u32 %v6102_v5, %v6099_v62  ;;  %v6118_v33 = vrot.slane %v6116_v23, 5  ;;  %v6145_v62 = vshrl.u32 %v5802_v48, 16 }
 0x33f   : > { %v13400_v14 = vpop.permute.xlu0 %7033  ;;  %v5609_v15 = vpop.permute.xlu1 %5608  ;;  %v6114_v31 = vrot.slane %v6113_v24, 4  ;;  %v6132_v63 = vrot.slane %v6130_v1, 5  ;;  %v6126_v59 = vrot.slane %v6124_v19, 5 }
 0x340   : > { %v6104_v39 = vrot.slane %v6103_v45, 4 }
 0x341   : > { %v6119_v11 = vsel %vm10143_vm5, %v6114_v31, %v6118_v33  ;;  %v6147_v31 = vrot.slane %v6145_v62, 4  ;;  %v9871_v33 = vld [vmem:[#allocation3 + $0xa0] sm:$0xf] }
 0x342   : > { %v6109_v47 = vsel %vm10143_vm5, %v6104_v39, %v6108_v57  ;;  %v9870_v57 = vld [vmem:[#allocation3 + $0xb0] sm:$0x1]  ;;  %v8952_v30 = vcombine.low %v9872_v6, %v9871_v33  ;;  %v13823_v33 = vld [vmem:[#allocation13_spill] sm:$0xff] }
 0x343   : > { %v5417_v58 = vpop.permute.xlu1 %5416  ;;  %v9031_v13 = vcombine.low %v6109_v47, %v6119_v11  ;;  %v6140_v26 = vshll.u32 %v9870_v57, 16 }
 0x344   : > { %v5654_v49 = vsel %vm1308_vm6, %v8951_v37, %v5417_v58 }
 0x345   : > { %v7159_v46 = vsel %vm1308_vm6, %v9031_v13, %v13393_v28  ;;  %v5689_v56 = vsel %vm1357_vm7, %v5654_v49, %v5497_v52  ;;  %v6121_v52 = vshrl.u32 %v5799_v7, 16  ;;  %v6142_v58 = vrot.slane %v6140_v26, 5 }
 0x346   : > { %v7194_v29 = vsel %vm1357_vm7, %v7159_v46, %v13400_v14  ;;  %v5733_v28 = vsel %vm1390_vm8, %v5689_v56, %v5609_v15  ;;  %v6136_v14 = vrot.slane %v6134_v55, 4  ;;  %v6148_v15 = vshll.u32 %v5802_v48, 16 }
 0x347   : > { %v5499_v61 = vpop.permute.xlu1 %5498 }
 0x348   : > { %v6137_v51 = vor.u32 %v6136_v14, %v6132_v63  ;;  %v6150_v39 = vrot.slane %v6148_v15, 5  ;;  %v9873_v14 = vld [vmem:[#allocation3 + $0xac] sm:$0xf] }
 0x34a   : > { %v7112_v22 = vpop.permute.xlu0 %7111  ;;  %v6138_v5 = vrot.slane %v6137_v51, 4  ;;  %v6151_v56 = vor.u32 %v6150_v39, %v6147_v31  ;;  %v13490_v31 = vld [vmem:[%s13771_s7] ss:$0 sm:$0xff] }
 0x34b   : > { %v7235_v40 = vsel %vm1390_vm8, %v7192_v20, %v7112_v22  ;;  %v5611_v9 = vpop.permute.xlu1 %5610  ;;  %v6123_v22 = vrot.slane %v6121_v52, 4 }
 0x34c   : > { %7977 = vmatprep.mubr.bf16.mxu1 %v7235_v40  ;;  %v6154_v40 = vshll.u32 %v13092_v27, 16  ;;  %v6152_v55 = vrot.slane %v6151_v56, 4 }
 0x34d   : > { %7978 = vmatmul.mubr.bf16.gmra.mrb[76].mxu1 %v5730_v2  ;;  %v6158_v2 = vshrl.u32 %v13092_v27, 16  ;;  %v6127_v38 = vor.u32 %v6126_v59, %v6123_v22  ;;  %v6143_v27 = vsel %vm10143_vm5, %v6138_v5, %v6142_v58 }
 0x34e   : > { %v13425_v25 = vpop.permute.xlu0 %6923  ;;  %v6156_v45 = vrot.slane %v6154_v40, 5 }
 0x34f   : > { %v6160_v60 = vrot.slane %v6158_v2, 4  ;;  %v6128_v23 = vrot.slane %v6127_v38, 4 }
 0x351   : > { %v6161_v11 = vor.u32 %v6160_v60, %v6156_v45  ;;  %v6133_v47 = vsel %vm10143_vm5, %v6128_v23, %v6132_v63 }
 0x352   : > { %v13429_v18 = vpop.permute.xlu0 %7035  ;;  %v9032_v46 = vcombine.low %v6133_v47, %v6143_v27 }
 0x353   : > { %v6162_v7 = vrot.slane %v6161_v11, 4  ;;  %v9875_v11 = vld [vmem:[#allocation3 + $0xb4] sm:$0xf] }
 0x356   : > { %v5419_v20 = vpop.permute.xlu1 %5418 }
 0x357   : > { %v5657_v49 = vsel %vm1308_vm6, %v8952_v30, %v5419_v20  ;;  %v8257_v30 = vld [vmem:[%s13483_s25] sm:$0xff] }
 0x35a   : > { %v5501_v24 = vpop.permute.xlu1 %5500 }
 0x35d   : > { %v13434_v53 = vpop.f32.mrb[80].mxu0 }
 0x35e   : > { %v13439_v43 = vpop.f32.mrb[81].mxu0  ;;  %v5613_v13 = vpop.permute.xlu1 %5612 }
 0x35f   : > { %v7114_v16 = vpop.permute.xlu0 %7113  ;;  %v13443_v3 = vpop.f32.mrb[82].mxu0 }
 0x360   : > { %v7238_v0 = vsel %vm1390_vm8, %v7194_v29, %v7114_v16  ;;  %v13446_v17 = vpop.f32.mrb[83].mxu0  ;;  %v6164_v29 = vshll.u32 %v13100_v21, 16  ;;  %v7162_v16 = vsel %vm1308_vm6, %v9032_v46, %v13425_v25  ;;  %v9874_v21 = vld [vmem:[#allocation3 + $0xa8] sm:$0xf] }
 0x361   : > { %7985 = vmatprep.mubr.bf16.mxu1 %v7238_v0  ;;  %v5691_v0 = vsel %vm1357_vm7, %v5657_v49, %v5499_v61  ;;  %v7196_v44 = vsel %vm1357_vm7, %v7162_v16, %v13429_v18  ;;  %v8953_v20 = vcombine.low %v9874_v21, %v9873_v14  ;;  %v6157_v18 = vsel %vm10143_vm5, %v6152_v55, %v6156_v45  ;;  %v13822_v45 = vld [vmem:[#allocation11_spill] sm:$0xff]  ;;  %v9876_v49 = vld [vmem:[#allocation3 + $0xb8] sm:$0xf] }
 0x362   : > { %7986 = vmatmul.mubr.bf16.gmra.mrb[80].mxu1 %v5733_v28  ;;  %v6166_v28 = vrot.slane %v6164_v29, 5  ;;  %v5736_v63 = vsel %vm1390_vm8, %v5691_v0, %v5611_v9  ;;  %v8954_v47 = vcombine.low %v9875_v11, %v9876_v49  ;;  %v13826_v11 = vld [vmem:[#allocation16_spill] sm:$0xff] }
 0x363   : > { %v6926_v35 = vpop.permute.xlu0 %6925 }
 0x364   : > { %v6167_v25 = vsel %vm10143_vm5, %v6162_v7, %v6166_v28 }
 0x365   : > { %v9033_v59 = vcombine.low %v6157_v18, %v6167_v25 }
 0x367   : > { %v7165_v51 = vsel %vm1308_vm6, %v9033_v59, %v6926_v35  ;;  %v13478_v35 = vld [vmem:[%s13770_s6] ss:$0 sm:$0xff] }
 0x369   : > { %v7038_v37 = vpop.permute.xlu0 %7037 }
 0x36a   : > { %v7198_v9 = vsel %vm1357_vm7, %v7165_v51, %v7038_v37  ;;  %v13824_v51 = vld [vmem:[#allocation9_spill] sm:$0xff] }
 0x36b   : > { %v5421_v19 = vpop.permute.xlu1 %5420 }
 0x36c   : > { %v5660_v61 = vsel %vm1308_vm6, %v8953_v20, %v5421_v19 }
 0x36d   : > { %v5693_v48 = vsel %vm1357_vm7, %v5660_v61, %v5501_v24 }
 0x36e   : > { %v5739_v38 = vsel %vm1390_vm8, %v5693_v48, %v5613_v13  ;;  %v8258_v13 = vld [vmem:[%s13483_s25 + $0x8] sm:$0xff] }
 0x36f   : > { %v5423_v57 = vpop.permute.xlu1 %5422 }
 0x370   : > { %v5663_v7 = vsel %vm1308_vm6, %v8954_v47, %v5423_v57  ;;  %v8259_v57 = vld [vmem:[%s13483_s25 + $0x10] sm:$0xff]  ;;  %v8261_v47 = vld [vmem:[%s13483_s25 + $0x20] sm:$0xff] }
 0x376   : > { %v5503_v24 = vpop.permute.xlu1 %5502 }
 0x377   : > { %v7116_v1 = vpop.permute.xlu0 %7115 }
 0x378   : > { %v7241_v52 = vsel %vm1390_vm8, %v7196_v44, %v7116_v1  ;;  %v5695_v1 = vsel %vm1357_vm7, %v5663_v7, %v5503_v24 }
 0x379   : > { %7993 = vmatprep.mubr.bf16.mxu1 %v7241_v52 }
 0x37a   : > { %7994 = vmatmul.mubr.bf16.gmra.mrb[84].mxu1 %v5736_v63  ;;  %v5615_v46 = vpop.permute.xlu1 %5614 }
 0x37b   : > { %v5742_v19 = vsel %vm1390_vm8, %v5695_v1, %v5615_v46 }
 0x37d   : > { %v6928_v22 = vpop.permute.xlu0 %6927 }
 0x37e   : > { %v7168_v56 = vsel %vm1308_vm6, %v13418_v54, %v6928_v22 }
 0x381   : > { %v7118_v40 = vpop.permute.xlu0 %7117 }
 0x382   : > { %v7244_v2 = vsel %vm1390_vm8, %v7198_v9, %v7118_v40 }
 0x383   : > { %8001 = vmatprep.mubr.bf16.mxu1 %v7244_v2  ;;  %v13825_v2 = vld [vmem:[#allocation12_spill] sm:$0xff] }
 0x384   : > { %8002 = vmatmul.mubr.bf16.gmra.mrb[88].mxu1 %v5739_v38 }
 0x387   : > { %v9364_v26 = vpop.f32.mrb[32].mxu1 }
 0x388   : > { %v9365_v34 = vpop.f32.mrb[33].mxu1 }
 0x389   : > { %v9366_v62 = vadd.f32 %v9365_v34, %v9364_v26  ;;  %v9367_v15 = vpop.f32.mrb[34].mxu1  ;;  %v7040_v58 = vpop.permute.xlu0 %7039 }
 0x38a   : > { %v9368_v5 = vpop.f32.mrb[35].mxu1  ;;  %v7200_v0 = vsel %vm1357_vm7, %v7168_v56, %v7040_v58  ;;  %v8262_v56 = vld [vmem:[%s13483_s25 + $0x28] sm:$0xff] }
 0x38b   : > { %v8053_v60 = vadd.f32 %v9366_v62, %v13822_v45  ;;  %v9369_v23 = vadd.f32 %v9368_v5, %v9367_v15  ;;  %v8260_v62 = vld [vmem:[%s13483_s25 + $0x18] sm:$0xff] }
 0x38d   : > { %v8186_v39 = vmul.f32 %v13478_v35, %v8053_v60  ;;  %v8056_v6 = vadd.f32 %v9369_v23, %v13823_v33 }
 0x38f   : > { %v8225_v27 = vadd.f32 %v13490_v31, %v8186_v39  ;;  %v8187_v37 = vmul.f32 %v13478_v35, %v8056_v6 }
 0x391   : > { %v8289_v29 = vadd.f32 %v8257_v30, %v8225_v27  ;;  %v8226_v16 = vadd.f32 %v13490_v31, %v8187_v37 }
 0x392   : > { %v7120_v44 = vpop.permute.xlu0 %7119 }
 0x393   : > { %v7247_v55 = vsel %vm1390_vm8, %v7200_v0, %v7120_v44  ;;  %v8321_v28 = vmax.f32 %v8289_v29, 0.0  ;;  %v8290_v52 = vadd.f32 %v8258_v13, %v8226_v16 }
 0x394   : > { %8009 = vmatprep.mubr.bf16.mxu1 %v7247_v55 }
 0x395   : > { %8010 = vmatmul.mubr.bf16.gmra.mrb[92].mxu1 %v5742_v19  ;;  %8353 = vst.msk [vmem:[%s13508_s13] sm:$0xff] %vm1308_vm6, %v8321_v28  ;;  %v8322_v54 = vmax.f32 %v8290_v52, 0.0 }
 0x397   : > { %8354 = vst.msk [vmem:[%s13508_s13 + $0x8] sm:$0xff] %vm1308_vm6, %v8322_v54 }
 0x398   : > { %v13514_v63 = vpop.f32.mrb[84].mxu0 }
 0x399   : > { %v13516_v14 = vpop.f32.mrb[85].mxu0 }
 0x39a   : > { %v13518_v21 = vpop.f32.mrb[86].mxu0 }
 0x39b   : > { %v13520_v20 = vpop.f32.mrb[87].mxu0 }
 0x3a3   : > { %v9370_v25 = vpop.f32.mrb[36].mxu1 }
 0x3a4   : > { %v9371_v61 = vpop.f32.mrb[37].mxu1 }
 0x3a5   : > { %v9372_v18 = vadd.f32 %v9371_v61, %v9370_v25  ;;  %v9373_v22 = vpop.f32.mrb[38].mxu1 }
 0x3a6   : > { %v9374_v59 = vpop.f32.mrb[39].mxu1 }
 0x3a7   : > { %v8061_v48 = vadd.f32 %v13824_v51, %v9372_v18  ;;  %v9375_v9 = vadd.f32 %v9374_v59, %v9373_v22  ;;  %v13827_v18 = vld [vmem:[#allocation14_spill] sm:$0xff] }
 0x3a9   : > { %v8188_v40 = vmul.f32 %v13478_v35, %v8061_v48  ;;  %v8064_v38 = vadd.f32 %v13825_v2, %v9375_v9  ;;  %v13828_v48 = vld [vmem:[#allocation15_spill] sm:$0xff] }
 0x3ab   : > { %v8227_v26 = vadd.f32 %v13490_v31, %v8188_v40  ;;  %v8189_v34 = vmul.f32 %v13478_v35, %v8064_v38  ;;  %v8263_v40 = vld [vmem:[%s13483_s25 + $0x30] sm:$0xff] }
 0x3ad   : > { %v8291_v15 = vadd.f32 %v8259_v57, %v8227_v26  ;;  %v8228_v5 = vadd.f32 %v13490_v31, %v8189_v34  ;;  %v8264_v57 = vld [vmem:[%s13483_s25 + $0x38] sm:$0xff] }
 0x3af   : > { %v8323_v24 = vmax.f32 %v8291_v15, 0.0  ;;  %v8292_v45 = vadd.f32 %v8260_v62, %v8228_v5 }
 0x3b1   : > { %8355 = vst.msk [vmem:[%s13508_s13 + $0x10] sm:$0xff] %vm1308_vm6, %v8323_v24  ;;  %v8324_v60 = vmax.f32 %v8292_v45, 0.0 }
 0x3b3   : > { %8356 = vst.msk [vmem:[%s13508_s13 + $0x18] sm:$0xff] %vm1308_vm6, %v8324_v60 }
 0x3b7   : > { %v9376_v23 = vpop.f32.mrb[40].mxu1 }
 0x3b8   : > { %v9377_v58 = vpop.f32.mrb[41].mxu1 }
 0x3b9   : > { %v9378_v39 = vadd.f32 %v9377_v58, %v9376_v23  ;;  %v9379_v33 = vpop.f32.mrb[42].mxu1 }
 0x3ba   : > { %v9380_v6 = vpop.f32.mrb[43].mxu1 }
 0x3bb   : > { %v8069_v30 = vadd.f32 %v9378_v39, %v13031_v4  ;;  %v9381_v27 = vadd.f32 %v9380_v6, %v9379_v33 }
 0x3bd   : > { %v8190_v37 = vmul.f32 %v13478_v35, %v8069_v30  ;;  %v8072_v49 = vadd.f32 %v9381_v27, %v13826_v11  ;;  %v8265_v27 = vld [vmem:[%s13483_s25 + $0x40] sm:$0xff] }
 0x3bf   : > { %v8229_v13 = vadd.f32 %v13490_v31, %v8190_v37  ;;  %v8191_v46 = vmul.f32 %v13478_v35, %v8072_v49 }
 0x3c1   : > { %v8293_v29 = vadd.f32 %v8261_v47, %v8229_v13  ;;  %v8230_v16 = vadd.f32 %v13490_v31, %v8191_v46  ;;  %v8266_v47 = vld [vmem:[%s13483_s25 + $0x48] sm:$0xff] }
 0x3c3   : > { %v8325_v7 = vmax.f32 %v8293_v29, 0.0  ;;  %v8294_v0 = vadd.f32 %v8262_v56, %v8230_v16  ;;  %v13542_v44 = vpop.f32.mrb[88].mxu0 }
 0x3c4   : > { %v13546_v1 = vpop.f32.mrb[89].mxu0 }
 0x3c5   : > { %8357 = vst.msk [vmem:[%s13508_s13 + $0x20] sm:$0xff] %vm1308_vm6, %v8325_v7  ;;  %v8326_v4 = vmax.f32 %v8294_v0, 0.0  ;;  %v13548_v55 = vpop.f32.mrb[90].mxu0 }
 0x3c6   : > { %v13552_v28 = vpop.f32.mrb[91].mxu0 }
 0x3c7   : > { %8358 = vst.msk [vmem:[%s13508_s13 + $0x28] sm:$0xff] %vm1308_vm6, %v8326_v4 }
 0x3cd   : > { %v9382_v52 = vpop.f32.mrb[44].mxu1 }
 0x3ce   : > { %v9383_v19 = vpop.f32.mrb[45].mxu1 }
 0x3cf   : > { %v9384_v54 = vadd.f32 %v9383_v19, %v9382_v52  ;;  %v9385_v25 = vpop.f32.mrb[46].mxu1 }
 0x3d0   : > { %v9386_v61 = vpop.f32.mrb[47].mxu1 }
 0x3d1   : > { %v8077_v22 = vadd.f32 %v13827_v18, %v9384_v54  ;;  %v9387_v59 = vadd.f32 %v9386_v61, %v9385_v25  ;;  %v8267_v25 = vld [vmem:[%s13483_s25 + $0x50] sm:$0xff] }
 0x3d3   : > { %v8192_v51 = vmul.f32 %v13478_v35, %v8077_v22  ;;  %v8080_v9 = vadd.f32 %v13828_v48, %v9387_v59  ;;  %v8268_v59 = vld [vmem:[%s13483_s25 + $0x58] sm:$0xff] }
 0x3d5   : > { %v8231_v2 = vadd.f32 %v13490_v31, %v8192_v51  ;;  %v8193_v38 = vmul.f32 %v13478_v35, %v8080_v9 }
 0x3d7   : > { %v8295_v26 = vadd.f32 %v8263_v40, %v8231_v2  ;;  %v8232_v34 = vadd.f32 %v13490_v31, %v8193_v38 }
 0x3d9   : > { %v8327_v62 = vmax.f32 %v8295_v26, 0.0  ;;  %v8296_v15 = vadd.f32 %v8264_v57, %v8232_v34 }
 0x3db   : > { %8359 = vst.msk [vmem:[%s13508_s13 + $0x30] sm:$0xff] %vm1308_vm6, %v8327_v62  ;;  %v8328_v5 = vmax.f32 %v8296_v15, 0.0 }
 0x3dd   : > { %8360 = vst.msk [vmem:[%s13508_s13 + $0x38] sm:$0xff] %vm1308_vm6, %v8328_v5  ;;  %v8269_v5 = vld [vmem:[%s13483_s25 + $0x60] sm:$0xff] }
 0x3de   : > { %v9388_v24 = vpop.f32.mrb[48].mxu1 }
 0x3df   : > { %v9389_v45 = vpop.f32.mrb[49].mxu1 }
 0x3e0   : > { %v9390_v60 = vadd.f32 %v9389_v45, %v9388_v24  ;;  %v9391_v23 = vpop.f32.mrb[50].mxu1 }
 0x3e1   : > { %v9392_v58 = vpop.f32.mrb[51].mxu1 }
 0x3e2   : > { %v8085_v39 = vadd.f32 %v9390_v60, %v13244_v36  ;;  %v9393_v33 = vadd.f32 %v9392_v58, %v9391_v23  ;;  %v8270_v23 = vld [vmem:[%s13483_s25 + $0x68] sm:$0xff] }
 0x3e4   : > { %v8194_v6 = vmul.f32 %v13478_v35, %v8085_v39  ;;  %v8088_v30 = vadd.f32 %v9393_v33, %v13262_v8 }
 0x3e6   : > { %v8233_v37 = vadd.f32 %v13490_v31, %v8194_v6  ;;  %v8195_v11 = vmul.f32 %v13478_v35, %v8088_v30  ;;  %v9394_v49 = vpop.f32.mrb[52].mxu1 }
 0x3e7   : > { %v9395_v13 = vpop.f32.mrb[53].mxu1 }
 0x3e8   : > { %v8297_v46 = vadd.f32 %v8265_v27, %v8233_v37  ;;  %v8234_v56 = vadd.f32 %v13490_v31, %v8195_v11  ;;  %v9396_v36 = vadd.f32 %v9395_v13, %v9394_v49  ;;  %v9397_v29 = vpop.f32.mrb[54].mxu1 }
 0x3e9   : > { %v9398_v16 = vpop.f32.mrb[55].mxu1 }
 0x3ea   : > { %v8329_v7 = vmax.f32 %v8297_v46, 0.0  ;;  %v8298_v8 = vadd.f32 %v8266_v47, %v8234_v56  ;;  %v8093_v0 = vadd.f32 %v13239_v50, %v9396_v36  ;;  %v9399_v4 = vadd.f32 %v9398_v16, %v9397_v29  ;;  %v8271_v46 = vld [vmem:[%s13483_s25 + $0x70] sm:$0xff]  ;;  %v8272_v16 = vld [vmem:[%s13483_s25 + $0x78] sm:$0xff] }
 0x3ec   : > { %8361 = vst.msk [vmem:[%s13508_s13 + $0x40] sm:$0xff] %vm1308_vm6, %v8329_v7  ;;  %v8330_v52 = vmax.f32 %v8298_v8, 0.0  ;;  %v8196_v19 = vmul.f32 %v13478_v35, %v8093_v0  ;;  %v8096_v54 = vadd.f32 %v13255_v12, %v9399_v4 }
 0x3ee   : > { %8362 = vst.msk [vmem:[%s13508_s13 + $0x48] sm:$0xff] %vm1308_vm6, %v8330_v52  ;;  %v8235_v61 = vadd.f32 %v13490_v31, %v8196_v19  ;;  %v8197_v18 = vmul.f32 %v13478_v35, %v8096_v54  ;;  %v9400_v22 = vpop.f32.mrb[56].mxu1 }
 0x3ef   : > { %v9401_v50 = vpop.f32.mrb[57].mxu1 }
 0x3f0   : > { %v8299_v51 = vadd.f32 %v8267_v25, %v8235_v61  ;;  %v8236_v48 = vadd.f32 %v13490_v31, %v8197_v18  ;;  %v9402_v9 = vadd.f32 %v9401_v50, %v9400_v22  ;;  %v9403_v40 = vpop.f32.mrb[58].mxu1 }
 0x3f1   : > { %v9404_v12 = vpop.f32.mrb[59].mxu1 }
 0x3f2   : > { %v8331_v2 = vmax.f32 %v8299_v51, 0.0  ;;  %v8300_v38 = vadd.f32 %v8268_v59, %v8236_v48  ;;  %v8101_v57 = vadd.f32 %v9402_v9, %v13382_v41  ;;  %v9405_v26 = vadd.f32 %v9404_v12, %v9403_v40  ;;  %v8273_v59 = vld [vmem:[%s13483_s25 + $0x80] sm:$0xff]  ;;  %v8274_v9 = vld [vmem:[%s13483_s25 + $0x88] sm:$0xff] }
 0x3f4   : > { %8363 = vst.msk [vmem:[%s13508_s13 + $0x50] sm:$0xff] %vm1308_vm6, %v8331_v2  ;;  %v8332_v34 = vmax.f32 %v8300_v38, 0.0  ;;  %v8198_v62 = vmul.f32 %v13478_v35, %v8101_v57  ;;  %v8104_v15 = vadd.f32 %v9405_v26, %v13388_v32 }
 0x3f6   : > { %8364 = vst.msk [vmem:[%s13508_s13 + $0x58] sm:$0xff] %vm1308_vm6, %v8332_v34  ;;  %v8237_v24 = vadd.f32 %v13490_v31, %v8198_v62  ;;  %v8199_v45 = vmul.f32 %v13478_v35, %v8104_v15  ;;  %v9406_v60 = vpop.f32.mrb[60].mxu1 }
 0x3f7   : > { %v9407_v41 = vpop.f32.mrb[61].mxu1 }
 0x3f8   : > { %v8301_v58 = vadd.f32 %v8269_v5, %v8237_v24  ;;  %v8238_v39 = vadd.f32 %v13490_v31, %v8199_v45  ;;  %v9408_v33 = vadd.f32 %v9407_v41, %v9406_v60  ;;  %v9409_v6 = vpop.f32.mrb[62].mxu1  ;;  %v8275_v45 = vld [vmem:[%s13483_s25 + $0x90] sm:$0xff] }
 0x3f9   : > { %v9410_v32 = vpop.f32.mrb[63].mxu1 }
 0x3fa   : > { %v8333_v30 = vmax.f32 %v8301_v58, 0.0  ;;  %v8302_v27 = vadd.f32 %v8270_v23, %v8238_v39  ;;  %v8109_v37 = vadd.f32 %v13378_v42, %v9408_v33  ;;  %v9411_v11 = vadd.f32 %v9410_v32, %v9409_v6  ;;  %v8276_v58 = vld [vmem:[%s13483_s25 + $0x98] sm:$0xff] }
 0x3fc   : > { %8365 = vst.msk [vmem:[%s13508_s13 + $0x60] sm:$0xff] %vm1308_vm6, %v8333_v30  ;;  %v8334_v49 = vmax.f32 %v8302_v27, 0.0  ;;  %v8200_v47 = vmul.f32 %v13478_v35, %v8109_v37  ;;  %v8112_v13 = vadd.f32 %v13386_v10, %v9411_v11 }
 0x3fe   : > { %8366 = vst.msk [vmem:[%s13508_s13 + $0x68] sm:$0xff] %vm1308_vm6, %v8334_v49  ;;  %v8239_v56 = vadd.f32 %v13490_v31, %v8200_v47  ;;  %v8201_v36 = vmul.f32 %v13478_v35, %v8112_v13  ;;  %v9412_v29 = vpop.f32.mrb[64].mxu1 }
 0x3ff   : > { %v9413_v42 = vpop.f32.mrb[65].mxu1 }
 0x400   : > { %v8303_v7 = vadd.f32 %v8271_v46, %v8239_v56  ;;  %v8240_v8 = vadd.f32 %v13490_v31, %v8201_v36  ;;  %v9414_v0 = vadd.f32 %v9413_v42, %v9412_v29  ;;  %v9415_v4 = vpop.f32.mrb[66].mxu1  ;;  %v8277_v46 = vld [vmem:[%s13483_s25 + $0xa0] sm:$0xff]  ;;  %v8278_v29 = vld [vmem:[%s13483_s25 + $0xa8] sm:$0xff] }
 0x401   : > { %v9416_v10 = vpop.f32.mrb[67].mxu1 }
 0x402   : > { %v8335_v52 = vmax.f32 %v8303_v7, 0.0  ;;  %v8304_v19 = vadd.f32 %v8272_v16, %v8240_v8  ;;  %v8117_v54 = vadd.f32 %v9414_v0, %v13439_v43  ;;  %v9417_v25 = vadd.f32 %v9416_v10, %v9415_v4 }
 0x404   : > { %8367 = vst.msk [vmem:[%s13508_s13 + $0x70] sm:$0xff] %vm1308_vm6, %v8335_v52  ;;  %v8336_v61 = vmax.f32 %v8304_v19, 0.0  ;;  %v8202_v18 = vmul.f32 %v13478_v35, %v8117_v54  ;;  %v8120_v22 = vadd.f32 %v9417_v25, %v13446_v17 }
 0x406   : > { %8368 = vst.msk [vmem:[%s13508_s13 + $0x78] sm:$0xff] %vm1308_vm6, %v8336_v61  ;;  %v8241_v50 = vadd.f32 %v13490_v31, %v8202_v18  ;;  %v8203_v51 = vmul.f32 %v13478_v35, %v8120_v22  ;;  %v9418_v48 = vpop.f32.mrb[68].mxu1 }
 0x407   : > { %v9419_v43 = vpop.f32.mrb[69].mxu1 }
 0x408   : > { %v8305_v40 = vadd.f32 %v8273_v59, %v8241_v50  ;;  %v8242_v12 = vadd.f32 %v13490_v31, %v8203_v51  ;;  %v9420_v2 = vadd.f32 %v9419_v43, %v9418_v48  ;;  %v9421_v38 = vpop.f32.mrb[70].mxu1  ;;  %v8279_v51 = vld [vmem:[%s13483_s25 + $0xb0] sm:$0xff]  ;;  %v8280_v43 = vld [vmem:[%s13483_s25 + $0xb8] sm:$0xff] }
 0x409   : > { %v9422_v17 = vpop.f32.mrb[71].mxu1 }
 0x40a   : > { %v8337_v57 = vmax.f32 %v8305_v40, 0.0  ;;  %v8306_v26 = vadd.f32 %v8274_v9, %v8242_v12  ;;  %v8125_v34 = vadd.f32 %v13434_v53, %v9420_v2  ;;  %v9423_v62 = vadd.f32 %v9422_v17, %v9421_v38 }
 0x40c   : > { %8369 = vst.msk [vmem:[%s13508_s13 + $0x80] sm:$0xff] %vm1308_vm6, %v8337_v57  ;;  %v8338_v15 = vmax.f32 %v8306_v26, 0.0  ;;  %v8204_v5 = vmul.f32 %v13478_v35, %v8125_v34  ;;  %v8128_v24 = vadd.f32 %v13443_v3, %v9423_v62 }
 0x40e   : > { %8370 = vst.msk [vmem:[%s13508_s13 + $0x88] sm:$0xff] %vm1308_vm6, %v8338_v15  ;;  %v8243_v60 = vadd.f32 %v13490_v31, %v8204_v5  ;;  %v8205_v23 = vmul.f32 %v13478_v35, %v8128_v24  ;;  %v9424_v41 = vpop.f32.mrb[72].mxu1 }
 0x40f   : > { %v9425_v53 = vpop.f32.mrb[73].mxu1 }
 0x410   : > { %v8307_v39 = vadd.f32 %v8275_v45, %v8243_v60  ;;  %v8244_v33 = vadd.f32 %v13490_v31, %v8205_v23  ;;  %v9426_v6 = vadd.f32 %v9425_v53, %v9424_v41  ;;  %v9427_v32 = vpop.f32.mrb[74].mxu1  ;;  %v13650_v4 = vpop.f32.mrb[92].mxu0  ;;  %v8281_v45 = vld [vmem:[%s13483_s25 + $0xc0] sm:$0xff]  ;;  %v8282_v41 = vld [vmem:[%s13483_s25 + $0xc8] sm:$0xff] }
 0x411   : > { %v9428_v3 = vpop.f32.mrb[75].mxu1  ;;  %v8164_v19 = vpop.f32.mrb[93].mxu0 }
 0x412   : > { %v8339_v30 = vmax.f32 %v8307_v39, 0.0  ;;  %v8308_v27 = vadd.f32 %v8276_v58, %v8244_v33  ;;  %v8133_v37 = vadd.f32 %v9426_v6, %v13516_v14  ;;  %v9429_v11 = vadd.f32 %v9428_v3, %v9427_v32  ;;  %v13652_v25 = vpop.f32.mrb[94].mxu0 }
 0x413   : > { %v8167_v22 = vpop.f32.mrb[95].mxu0 }
 0x414   : > { %8371 = vst.msk [vmem:[%s13508_s13 + $0x90] sm:$0xff] %vm1308_vm6, %v8339_v30  ;;  %v8340_v49 = vmax.f32 %v8308_v27, 0.0  ;;  %v8206_v47 = vmul.f32 %v13478_v35, %v8133_v37  ;;  %v8136_v13 = vadd.f32 %v9429_v11, %v13520_v20 }
 0x416   : > { %8372 = vst.msk [vmem:[%s13508_s13 + $0x98] sm:$0xff] %vm1308_vm6, %v8340_v49  ;;  %v8245_v56 = vadd.f32 %v13490_v31, %v8206_v47  ;;  %v8207_v36 = vmul.f32 %v13478_v35, %v8136_v13  ;;  %v8283_v47 = vld [vmem:[%s13483_s25 + $0xd0] sm:$0xff] }
 0x418   : > { %v8309_v16 = vadd.f32 %v8277_v46, %v8245_v56  ;;  %v8246_v14 = vadd.f32 %v13490_v31, %v8207_v36  ;;  %v8284_v56 = vld [vmem:[%s13483_s25 + $0xd8] sm:$0xff] }
 0x41a   : > { %v8341_v42 = vmax.f32 %v8309_v16, 0.0  ;;  %v8310_v7 = vadd.f32 %v8278_v29, %v8246_v14 }
 0x41c   : > { %8373 = vst.msk [vmem:[%s13508_s13 + $0xa0] sm:$0xff] %vm1308_vm6, %v8341_v42  ;;  %v8342_v8 = vmax.f32 %v8310_v7, 0.0 }
 0x41e   : > { %8374 = vst.msk [vmem:[%s13508_s13 + $0xa8] sm:$0xff] %vm1308_vm6, %v8342_v8 }
 0x420   : > { %v9430_v20 = vpop.f32.mrb[76].mxu1 }
 0x421   : > { %v9431_v0 = vpop.f32.mrb[77].mxu1 }
 0x422   : > { %v9432_v10 = vadd.f32 %v9431_v0, %v9430_v20  ;;  %v9433_v52 = vpop.f32.mrb[78].mxu1 }
 0x423   : > { %v9434_v54 = vpop.f32.mrb[79].mxu1 }
 0x424   : > { %v8141_v61 = vadd.f32 %v13514_v63, %v9432_v10  ;;  %v9435_v18 = vadd.f32 %v9434_v54, %v9433_v52 }
 0x426   : > { %v8208_v59 = vmul.f32 %v13478_v35, %v8141_v61  ;;  %v8144_v50 = vadd.f32 %v13518_v21, %v9435_v18  ;;  %v8285_v61 = vld [vmem:[%s13483_s25 + $0xe0] sm:$0xff] }
 0x428   : > { %v8247_v48 = vadd.f32 %v13490_v31, %v8208_v59  ;;  %v8209_v9 = vmul.f32 %v13478_v35, %v8144_v50  ;;  %v8286_v50 = vld [vmem:[%s13483_s25 + $0xe8] sm:$0xff] }
 0x42a   : > { %v8311_v40 = vadd.f32 %v8279_v51, %v8247_v48  ;;  %v8248_v12 = vadd.f32 %v13490_v31, %v8209_v9 }
 0x42c   : > { %v8343_v2 = vmax.f32 %v8311_v40, 0.0  ;;  %v8312_v38 = vadd.f32 %v8280_v43, %v8248_v12 }
 0x42e   : > { %8375 = vst.msk [vmem:[%s13508_s13 + $0xb0] sm:$0xff] %vm1308_vm6, %v8343_v2  ;;  %v8344_v63 = vmax.f32 %v8312_v38, 0.0 }
 0x430   : > { %8376 = vst.msk [vmem:[%s13508_s13 + $0xb8] sm:$0xff] %vm1308_vm6, %v8344_v63 }
 0x435   : > { %v9436_v17 = vpop.f32.mrb[80].mxu1 }
 0x436   : > { %v9437_v21 = vpop.f32.mrb[81].mxu1 }
 0x437   : > { %v9438_v57 = vadd.f32 %v9437_v21, %v9436_v17  ;;  %v9439_v26 = vpop.f32.mrb[82].mxu1 }
 0x438   : > { %v9440_v34 = vpop.f32.mrb[83].mxu1 }
 0x439   : > { %v8149_v62 = vadd.f32 %v9438_v57, %v13546_v1  ;;  %v9441_v15 = vadd.f32 %v9440_v34, %v9439_v26  ;;  %v8287_v26 = vld [vmem:[%s13483_s25 + $0xf0] sm:$0xff] }
 0x43b   : > { %v8210_v5 = vmul.f32 %v13478_v35, %v8149_v62  ;;  %v8152_v24 = vadd.f32 %v9441_v15, %v13552_v28  ;;  %v8288_v15 = vld [vmem:[%s13483_s25 + $0xf8] sm:$0xff]  ;;  %s9881_s25 = sshll.u32 %s9945_s24, 4  ;;  %s9882_s25 = int_to_ptr.vmem [resolvable:$false] %s9881_s25 }
 0x43c   : > { %s9883_s26 = scalar_lea.vmem %s9882_s25, 8192  ;;  %p9884_p0 = scmp.lt.s32.totalorder %s13715_s19, %s9882_s25 }
 0x43d   : > { %v8249_v60 = vadd.f32 %v13490_v31, %v8210_v5  ;;  %v8211_v23 = vmul.f32 %v13478_v35, %v8152_v24  ;;  %p9885_p1 = scmp.lt.s32.totalorder %s9883_s26, %s9877_s23 }
 0x43f   : > { %v8313_v58 = vadd.f32 %v8281_v45, %v8249_v60  ;;  %v8250_v53 = vadd.f32 %v13490_v31, %v8211_v23  ;;  %p9886_p2 = por %p9885_p1, %p9884_p0 }
 0x441   : > { %v8345_v39 = vmax.f32 %v8313_v58, 0.0  ;;  %v8314_v33 = vadd.f32 %v8282_v41, %v8250_v53  ;;  %p9887_p3 = pnand %p9886_p2, %p9880_p13 }
 0x443   : > { %8377 = vst.msk [vmem:[%s13508_s13 + $0xc0] sm:$0xff] %vm1308_vm6, %v8345_v39  ;;  %v8346_v1 = vmax.f32 %v8314_v33, 0.0 }
 0x445   : > { %8378 = vst.msk [vmem:[%s13508_s13 + $0xc8] sm:$0xff] %vm1308_vm6, %v8346_v1 }
 0x44d   : > { %v9442_v6 = vpop.f32.mrb[84].mxu1 }
 0x44e   : > { %v9443_v28 = vpop.f32.mrb[85].mxu1 }
 0x44f   : > { %v9444_v32 = vadd.f32 %v9443_v28, %v9442_v6  ;;  %v9445_v3 = vpop.f32.mrb[86].mxu1 }
 0x450   : > { %v9446_v30 = vpop.f32.mrb[87].mxu1 }
 0x451   : > { %v8157_v27 = vadd.f32 %v13542_v44, %v9444_v32  ;;  %v9447_v37 = vadd.f32 %v9446_v30, %v9445_v3 }
 0x453   : > { %v8212_v11 = vmul.f32 %v13478_v35, %v8157_v27  ;;  %v8160_v49 = vadd.f32 %v13548_v55, %v9447_v37 }
 0x455   : > { %v8251_v13 = vadd.f32 %v13490_v31, %v8212_v11  ;;  %v8213_v46 = vmul.f32 %v13478_v35, %v8160_v49 }
 0x457   : > { %v9448_v36 = vpop.f32.mrb[88].mxu1  ;;  %v8315_v29 = vadd.f32 %v8283_v47, %v8251_v13  ;;  %v8252_v16 = vadd.f32 %v13490_v31, %v8213_v46 }
 0x458   : > { %v9449_v14 = vpop.f32.mrb[89].mxu1 }
 0x459   : > { %v9450_v44 = vadd.f32 %v9449_v14, %v9448_v36  ;;  %v9451_v42 = vpop.f32.mrb[90].mxu1  ;;  %v8347_v7 = vmax.f32 %v8315_v29, 0.0  ;;  %v8316_v8 = vadd.f32 %v8284_v56, %v8252_v16 }
 0x45a   : > { %v9452_v55 = vpop.f32.mrb[91].mxu1 }
 0x45b   : > { %v9453_v20 = vadd.f32 %v9452_v55, %v9451_v42  ;;  %v8165_v0 = vadd.f32 %v9450_v44, %v8164_v19  ;;  %8379 = vst.msk [vmem:[%s13508_s13 + $0xd0] sm:$0xff] %vm1308_vm6, %v8347_v7  ;;  %v8348_v10 = vmax.f32 %v8316_v8, 0.0 }
 0x45d   : > { %v8214_v52 = vmul.f32 %v13478_v35, %v8165_v0  ;;  %v8168_v54 = vadd.f32 %v9453_v20, %v8167_v22  ;;  %8380 = vst.msk [vmem:[%s13508_s13 + $0xd8] sm:$0xff] %vm1308_vm6, %v8348_v10 }
 0x45f   : > { %v8253_v18 = vadd.f32 %v13490_v31, %v8214_v52  ;;  %v8215_v59 = vmul.f32 %v13478_v35, %v8168_v54 }
 0x461   : > { %v8317_v51 = vadd.f32 %v8285_v61, %v8253_v18  ;;  %v8254_v48 = vadd.f32 %v13490_v31, %v8215_v59 }
 0x463   : > { %v8349_v19 = vmax.f32 %v8317_v51, 0.0  ;;  %v8318_v9 = vadd.f32 %v8286_v50, %v8254_v48 }
 0x465   : > { %8381 = vst.msk [vmem:[%s13508_s13 + $0xe0] sm:$0xff] %vm1308_vm6, %v8349_v19  ;;  %v8350_v43 = vmax.f32 %v8318_v9, 0.0 }
 0x467   : > { %8382 = vst.msk [vmem:[%s13508_s13 + $0xe8] sm:$0xff] %vm1308_vm6, %v8350_v43 }
 0x468   : > { %v9454_v22 = vpop.f32.mrb[92].mxu1 }
 0x469   : > { %v9455_v40 = vpop.f32.mrb[93].mxu1 }
 0x46a   : > { %v9456_v12 = vadd.f32 %v9455_v40, %v9454_v22  ;;  %v9457_v2 = vpop.f32.mrb[94].mxu1 }
 0x46b   : > { %v9458_v38 = vpop.f32.mrb[95].mxu1 }
 0x46c   : > { %v8173_v63 = vadd.f32 %v13650_v4, %v9456_v12  ;;  %v9459_v17 = vadd.f32 %v9458_v38, %v9457_v2 }
 0x46e   : > { %v8216_v21 = vmul.f32 %v13478_v35, %v8173_v63  ;;  %v8176_v57 = vadd.f32 %v13652_v25, %v9459_v17 }
 0x470   : > { %v8255_v34 = vadd.f32 %v13490_v31, %v8216_v21  ;;  %v8217_v62 = vmul.f32 %v13478_v35, %v8176_v57 }
 0x472   : > { %v8319_v5 = vadd.f32 %v8287_v26, %v8255_v34  ;;  %v8256_v24 = vadd.f32 %v13490_v31, %v8217_v62 }
 0x474   : > { %v8351_v4 = vmax.f32 %v8319_v5, 0.0  ;;  %v8320_v45 = vadd.f32 %v8288_v15, %v8256_v24 }
 0x476   : > { %8383 = vst.msk [vmem:[%s13508_s13 + $0xf0] sm:$0xff] %vm1308_vm6, %v8351_v4  ;;  %v8352_v35 = vmax.f32 %v8320_v45, 0.0 }
 0x478   : > { %8384 = vst.msk [vmem:[%s13508_s13 + $0xf8] sm:$0xff] %vm1308_vm6, %v8352_v35 }
 0x479   : > { %9890 = shalt.err (!%p9887_p3)
}
 0x47a   : > { %s9891_s17 = scalar_lea.hbm %s13713_s22, 4096  ;;  %s9895_s13 = scalar_lea.hbm %s13772_s8, 8192 }
 0x47b   : > { %p9892_p4 = scmp.ne.s32.totalorder %s13713_s22, %s9891_s17  ;;  %p9896_p9 = scmp.lt.u32.totalorder %s13713_s22, %s13772_s8 }
 0x47c   : > { %p9897_p10 = scmp.lt.u32.totalorder %s9895_s13, %s9891_s17  ;;  %p9899_p12 = scmp.lt.u32.totalorder %s9891_s17, %s13713_s22 }
 0x47d   : > { %p9893_p7 = pnand %p9892_p4, %p10031_p5 }
 0x47e   : > { %p9898_p11 = por %p9897_p10, %p9896_p9 }
 0x47f   : > { %p9894_p8 = pneg %p9893_p7 }
 0x480   : > { %p9900_p13 = por %p9899_p12, %p9898_p11 }
 0x482   : > { %p9901_p0 = pnand %p9900_p13, %p9894_p8 }
 0x484   : > { %9904 = shalt.err (!%p9901_p0)
}
 0x485   : > { %s9946_s21 = smov 128   ;;  %s9947_s23 = smov 8  }
 0x486   : > { %9581 = dma.vmem_to_hbm [thread:$0]  (%p10031_p5), %s13715_s19, 4096, %s13713_s22, %s13723_s9, %s9946_s21, %s9946_s21, %s9947_s23  }
 0x487 PF: > { %p9587_p1 = scmp.ge.s32.totalorder %s9939_s30, 2  ;;  %s8414_s24 = sand.u32 1, %s9927_s27  }
 0x488   : > { %s8415_s25 = scalar_lea.sflag [#allocation6], %s8414_s24 }
 0x489   : > { %p9584_p2 = pnand %p9587_p1, %p10035_p6 }
 0x48b   : > { %9922 = dma.done.wait (!%p9584_p2), %s8415_s25, 4096  }
 0x48c   : > { %9924 = vsyncadd (!%p9584_p2), %s8415_s25, 4294963200  ;;  %p18_p3 = scmp.ge.s32.totalorder %s10018_s11, 4   ;;  %s13829_s27 = smov %s9931_s28 }
 0x48d   : > { %s13830_s28 = smov %s9935_s29  ;;  %s13831_s29 = smov %s10029_s14 }
 0x48e   : > { %s13832_s30 = smov %s10018_s11  ;;  %20 = sbr.rel (!%p18_p3) target bundleno = 3 (0x3), region = 95 }
 0x495   :  { %8420 = vsyncpa [#allocation6], 1 }
 0x496   :  { %8422 = vsyncpa [#allocation6 + $0x1], 1 }

</bundles_post_ra>
